<compile_context>
chip_gen: v7x
topology: tpu7x:2x2x1
jax: 0.10.0
libtpu: 0.0.40
codegen_flags: <defaults>
</compile_context>

<pallas_src>
import functools

import jax
import jax.numpy as jnp
from jax.experimental import pallas as pl
from jax.experimental.pallas import tpu as pltpu

# ---- ViT-Huge-patch16 structure at toy scale.
# Real model: EMBED_DIM=1280, DEPTH=32, NUM_HEADS=16 (HEAD_DIM=80), MLP=5120.
# The padding / tiling logic below generalizes to those shapes unchanged.
PATCH = 16
IN_CH = 3
EMBED_DIM = 128
DEPTH = 2
NUM_HEADS = 2
HEAD_DIM = EMBED_DIM // NUM_HEADS
DH_PAD = ((HEAD_DIM + 127) // 128) * 128            # head dim padded to 128 lanes
H_TILE = NUM_HEADS // 4 if NUM_HEADS % 4 == 0 else 1  # heads per attention grid step
MLP_DIM = 4 * EMBED_DIM
LN_EPS = 1e-6
ROW_TILE = 256

# RADIO input conditioner statistics (ImageNet mean / std).
COND_MEAN = (0.485, 0.456, 0.406)
COND_STD = (0.229, 0.224, 0.225)

_VMEM_LIMIT_CACHE = [None]


def _vmem_limit():
    """Generation-aware scoped-VMEM limit: ~48 MiB on v7x, ~96 MiB on v5e/v6e."""
    if _VMEM_LIMIT_CACHE[0] is None:
        try:
            cap = int(getattr(pltpu.get_tpu_info(), "vmem_capacity_bytes",
                              64 * 1024 * 1024))
        except Exception:  # pragma: no cover - conservative fallback
            cap = 64 * 1024 * 1024
        _VMEM_LIMIT_CACHE[0] = max(32 * 1024 * 1024,
                                   min(100 * 1024 * 1024, (cap * 3) // 4))
    return _VMEM_LIMIT_CACHE[0]


def _round_up(n, m):
    return ((n + m - 1) // m) * m


def _row_tile(m):
    if m % 256 == 0:
        return 256
    if m % 128 == 0:
        return 128
    return m


def _mlp_chunk(n):
    """Largest multiple-of-128 divisor of n capped at ~1280 (4 chunks at real scale)."""
    cap = min(1280, max(128, n // 2))
    for c in range(cap, 127, -128):
        if n % c == 0:
            return c
    return n


def _ln_f32(x, w, b):
    mu = jnp.mean(x, axis=-1, keepdims=True)
    var = jnp.mean(jnp.square(x - mu), axis=-1, keepdims=True)
    return (x - mu) * jax.lax.rsqrt(var + LN_EPS) * w + b


# ----------------------------- kernels ---------------------------------------
def _patch_embed_kernel(p_ref, w_ref, b_ref, o_ref):
    # RADIO input conditioner already folded into (w, b): pure MXU matmul.
    o_ref[...] = (
        jnp.dot(p_ref[...], w_ref[...], preferred_element_type=jnp.float32)
        + b_ref[...]
    ).astype(o_ref.dtype)


def _attn_block_kernel(x_ref, lnw_ref, lnb_ref, wqkv_ref, bqkv_ref,
                       wproj_ref, bproj_ref, o_ref, hln_sc, acc_sc,
                       *, t_real, h_tile):
    """Fused pre-LN + QKV + attention + out-proj + residual.

    Grid = (batch, head_group); head_group axis is 'arbitrary' (accumulated).
    """
    hg = pl.program_id(1)

    @pl.when(hg == 0)
    def _():
        xf = x_ref[0].astype(jnp.float32)
        hln_sc[...] = _ln_f32(xf, lnw_ref[...], lnb_ref[...]).astype(jnp.bfloat16)
        acc_sc[...] = jnp.zeros_like(acc_sc)

    h = hln_sc[...]                                   # [T_pad, D] bf16 (cached)
    t_pad = h.shape[0]
    key_ok = jax.lax.broadcasted_iota(jnp.int32, (1, t_pad), 1) < t_real
    scale = jnp.float32(1.0 / (HEAD_DIM ** 0.5))

    # Static unroll over the (small) head tile; every matmul is 2D, lane-dense.
    for hh in range(h_tile):
        q = jnp.dot(h, wqkv_ref[0, hh],
                    preferred_element_type=jnp.float32) + bqkv_ref[0, hh]
        k = jnp.dot(h, wqkv_ref[1, hh],
                    preferred_element_type=jnp.float32) + bqkv_ref[1, hh]
        v = jnp.dot(h, wqkv_ref[2, hh],
                    preferred_element_type=jnp.float32) + bqkv_ref[2, hh]

        s = jax.lax.dot_general(
            (q * scale).astype(jnp.bfloat16), k.astype(jnp.bfloat16),
            (((1,), (1,)), ((), ())),
            preferred_element_type=jnp.float32)        # [T_pad, T_pad]
        s = jnp.where(key_ok, s, jnp.float32(-1e30))   # mask padded keys
        s = s - jnp.max(s, axis=-1, keepdims=True)
        p = jnp.exp(s)
        p = p * pl.reciprocal(jnp.sum(p, axis=-1, keepdims=True), approx=False)

        o_h = jnp.dot(p.astype(jnp.bfloat16), v.astype(jnp.bfloat16),
                      preferred_element_type=jnp.float32)          # [T_pad, DH_PAD]
        acc_sc[...] += jnp.dot(o_h.astype(jnp.bfloat16), wproj_ref[hh],
                               preferred_element_type=jnp.float32)  # [T_pad, D]

    @pl.when(hg == pl.num_programs(1) - 1)
    def _():
        # Residual read/cast deferred to the final store (keeps vreg pressure low).
        o_ref[0] = (x_ref[0].astype(jnp.float32) + acc_sc[...]
                    + bproj_ref[...]).astype(o_ref.dtype)


def _mlp_kernel(x_ref, lnw_ref, lnb_ref, w1_ref, b1_ref, w2_ref, b2_ref, o_ref,
                hln_sc, acc_sc):
    """Pre-LN MLP + residual, tiled over rows ('parallel') and hidden dim ('arbitrary')."""
    j = pl.program_id(1)

    @pl.when(j == 0)
    def _():
        xf = x_ref[...].astype(jnp.float32)
        hln_sc[...] = _ln_f32(xf, lnw_ref[...], lnb_ref[...]).astype(jnp.bfloat16)
        acc_sc[...] = jnp.zeros_like(acc_sc)

    y = jnp.dot(hln_sc[...], w1_ref[...],
                preferred_element_type=jnp.float32) + b1_ref[...]
    # TODO(synk): PyTorch nn.GELU uses exact erf; tanh approximation used (EUP).
    y = jax.nn.gelu(y, approximate=True).astype(jnp.bfloat16)
    acc_sc[...] += jnp.dot(y, w2_ref[...], preferred_element_type=jnp.float32)

    @pl.when(j == pl.num_programs(1) - 1)
    def _():
        o_ref[...] = (x_ref[...].astype(jnp.float32) + acc_sc[...]
                      + b2_ref[...]).astype(o_ref.dtype)


def _summary_ln_kernel(cls_ref, gw_ref, gb_ref, o_ref):
    # Final LayerNorm on the summary (CLS) token only: [B, D] -> [B, D] fp32.
    x = cls_ref[...].astype(jnp.float32)
    o_ref[...] = _ln_f32(x, gw_ref[...], gb_ref[...])


# --------------------------- pallas wrappers ----------------------------------
def patch_embed(patches, w_eff, b_eff):
    m, pd = patches.shape
    d = w_eff.shape[1]
    tm = _row_tile(m)
    return pl.pallas_call(
        _patch_embed_kernel,
        out_shape=jax.ShapeDtypeStruct((m, d), jnp.bfloat16),
        grid=(m // tm,),
        in_specs=[pl.BlockSpec((tm, pd), lambda i: (i, 0)),
                  pl.BlockSpec((pd, d), lambda i: (0, 0)),
                  pl.BlockSpec((1, d), lambda i: (0, 0))],
        out_specs=pl.BlockSpec((tm, d), lambda i: (i, 0)),
        compiler_params=pltpu.CompilerParams(
            dimension_semantics=("parallel",),
            vmem_limit_bytes=_vmem_limit()),
    )(patches, w_eff, b_eff)


def attention_block(x, t_real, blk):
    b, t_pad, d = x.shape
    n_hg = NUM_HEADS // H_TILE
    kernel = functools.partial(_attn_block_kernel, t_real=t_real, h_tile=H_TILE)
    return pl.pallas_call(
        kernel,
        out_shape=jax.ShapeDtypeStruct((b, t_pad, d), jnp.bfloat16),
        grid=(b, n_hg),
        in_specs=[
            pl.BlockSpec((1, t_pad, d), lambda i, j: (i, 0, 0)),
            pl.BlockSpec((1, d), lambda i, j: (0, 0)),
            pl.BlockSpec((1, d), lambda i, j: (0, 0)),
            pl.BlockSpec((3, H_TILE, d, DH_PAD), lambda i, j: (0, j, 0, 0)),
            pl.BlockSpec((3, H_TILE, 1, DH_PAD), lambda i, j: (0, j, 0, 0)),
            pl.BlockSpec((H_TILE, DH_PAD, d), lambda i, j: (j, 0, 0)),
            pl.BlockSpec((1, d), lambda i, j: (0, 0)),
        ],
        out_specs=pl.BlockSpec((1, t_pad, d), lambda i, j: (i, 0, 0)),
        scratch_shapes=[pltpu.VMEM((t_pad, d), jnp.bfloat16),   # cached LN(x)
                        pltpu.VMEM((t_pad, d), jnp.float32)],   # head-group accum
        compiler_params=pltpu.CompilerParams(
            dimension_semantics=("parallel", "arbitrary"),
            vmem_limit_bytes=_vmem_limit()),
    )(x, blk["ln1_w"], blk["ln1_b"], blk["wqkv"], blk["bqkv"],
      blk["wproj"], blk["bproj"])


def mlp(xf, blk):
    m, d = xf.shape
    n = blk["fc1_w"].shape[1]
    tm = _row_tile(m)
    nt = _mlp_chunk(n)
    return pl.pallas_call(
        _mlp_kernel,
        out_shape=jax.ShapeDtypeStruct((m, d), jnp.bfloat16),
        grid=(m // tm, n // nt),
        in_specs=[
            pl.BlockSpec((tm, d), lambda i, j: (i, 0)),
            pl.BlockSpec((1, d), lambda i, j: (0, 0)),
            pl.BlockSpec((1, d), lambda i, j: (0, 0)),
            pl.BlockSpec((d, nt), lambda i, j: (0, j)),
            pl.BlockSpec((1, nt), lambda i, j: (0, j)),
            pl.BlockSpec((nt, d), lambda i, j: (j, 0)),
            pl.BlockSpec((1, d), lambda i, j: (0, 0)),
        ],
        out_specs=pl.BlockSpec((tm, d), lambda i, j: (i, 0)),
        scratch_shapes=[pltpu.VMEM((tm, d), jnp.bfloat16),   # cached LN(x)
                        pltpu.VMEM((tm, d), jnp.float32)],   # hidden-chunk accum
        compiler_params=pltpu.CompilerParams(
            dimension_semantics=("parallel", "arbitrary"),
            vmem_limit_bytes=_vmem_limit()),
    )(xf, blk["ln2_w"], blk["ln2_b"], blk["fc1_w"], blk["fc1_b"],
      blk["fc2_w"], blk["fc2_b"])


def final_summary(cls_tok, gw, gb):
    b, d = cls_tok.shape
    return pl.pallas_call(
        _summary_ln_kernel,
        out_shape=jax.ShapeDtypeStruct((b, d), jnp.float32),
        grid=(1,),
        in_specs=[pl.BlockSpec((b, d), lambda i: (0, 0)),
                  pl.BlockSpec((1, d), lambda i: (0, 0)),
                  pl.BlockSpec((1, d), lambda i: (0, 0))],
        out_specs=pl.BlockSpec((b, d), lambda i: (0, 0)),
        compiler_params=pltpu.CompilerParams(
            dimension_semantics=("arbitrary",),
            vmem_limit_bytes=_vmem_limit()),
    )(cls_tok, gw, gb)


# ----------------------------- parameters -------------------------------------
def init_params(key, num_patches):
    def nrm(k, shape, scale=0.02, dtype=jnp.bfloat16):
        return (scale * jax.random.normal(k, shape, jnp.float32)).astype(dtype)

    pd = IN_CH * PATCH * PATCH
    keys = jax.random.split(key, 3 + DEPTH)
    params = {
        "patch_w": nrm(keys[0], (pd, EMBED_DIM), dtype=jnp.float32),
        "patch_b": jnp.zeros((1, EMBED_DIM), jnp.float32),
        "cls_token": nrm(keys[1], (1, 1, EMBED_DIM), dtype=jnp.float32),
        "pos_embed": nrm(keys[2], (1, num_patches + 1, EMBED_DIM), dtype=jnp.float32),
        "final_ln_w": jnp.ones((1, EMBED_DIM), jnp.float32),
        "final_ln_b": jnp.zeros((1, EMBED_DIM), jnp.float32),
        "blocks": [],
    }
    for i in range(DEPTH):
        bk = jax.random.split(keys[3 + i], 4)
        params["blocks"].append({
            "ln1_w": jnp.ones((1, EMBED_DIM), jnp.float32),
            "ln1_b": jnp.zeros((1, EMBED_DIM), jnp.float32),
            "qkv_w": nrm(bk[0], (EMBED_DIM, 3 * EMBED_DIM), dtype=jnp.float32),
            "qkv_b": jnp.zeros((1, 3 * EMBED_DIM), jnp.float32),
            "proj_w": nrm(bk[1], (EMBED_DIM, EMBED_DIM), dtype=jnp.float32),
            "proj_b": jnp.zeros((1, EMBED_DIM), jnp.float32),
            "ln2_w": jnp.ones((1, EMBED_DIM), jnp.float32),
            "ln2_b": jnp.zeros((1, EMBED_DIM), jnp.float32),
            "fc1_w": nrm(bk[2], (EMBED_DIM, MLP_DIM)),
            "fc1_b": jnp.zeros((1, MLP_DIM), jnp.float32),
            "fc2_w": nrm(bk[3], (MLP_DIM, EMBED_DIM)),
            "fc2_b": jnp.zeros((1, EMBED_DIM), jnp.float32),
        })
    return params


def prepare_params(params):
    """One-time (load-time) weight preparation:
       - fold the RADIO input conditioner (x-mean)/std into patch-embed weights,
       - reorganize QKV / proj weights into head-major, 128-lane-padded layout,
       - cast matmul weights to bf16."""
    d = EMBED_DIM
    mean_vec = jnp.repeat(jnp.asarray(COND_MEAN, jnp.float32), PATCH * PATCH)
    invstd_vec = 1.0 / jnp.repeat(jnp.asarray(COND_STD, jnp.float32), PATCH * PATCH)
    w32 = params["patch_w"]
    prep = {
        "patch_w": (w32 * invstd_vec[:, None]).astype(jnp.bfloat16),
        "patch_b": params["patch_b"] - (mean_vec * invstd_vec) @ w32,
        "cls_token": params["cls_token"].astype(jnp.float32),
        "pos_embed": params["pos_embed"].astype(jnp.float32),
        "final_ln_w": params["final_ln_w"],
        "final_ln_b": params["final_ln_b"],
        "blocks": [],
    }
    pad = DH_PAD - HEAD_DIM
    for blk in params["blocks"]:
        wqkv = blk["qkv_w"].astype(jnp.float32).reshape(d, 3, NUM_HEADS, HEAD_DIM)
        wqkv = jnp.pad(wqkv.transpose(1, 2, 0, 3),
                       ((0, 0), (0, 0), (0, 0), (0, pad))).astype(jnp.bfloat16)
        bqkv = blk["qkv_b"].astype(jnp.float32).reshape(3, NUM_HEADS, 1, HEAD_DIM)
        bqkv = jnp.pad(bqkv, ((0, 0), (0, 0), (0, 0), (0, pad)))
        wproj = blk["proj_w"].astype(jnp.float32).reshape(NUM_HEADS, HEAD_DIM, d)
        wproj = jnp.pad(wproj, ((0, 0), (0, pad), (0, 0))).astype(jnp.bfloat16)
        prep["blocks"].append({
            "ln1_w": blk["ln1_w"], "ln1_b": blk["ln1_b"],
            "wqkv": wqkv, "bqkv": bqkv,
            "wproj": wproj, "bproj": blk["proj_b"],
            "ln2_w": blk["ln2_w"], "ln2_b": blk["ln2_b"],
            "fc1_w": blk["fc1_w"].astype(jnp.bfloat16), "fc1_b": blk["fc1_b"],
            "fc2_w": blk["fc2_w"].astype(jnp.bfloat16), "fc2_b": blk["fc2_b"],
        })
    return prep


# ----------------------------- model glue -------------------------------------
def c_radio_v2_forward(x, prep):
    """x: NCHW float image in [0, 1].  Returns summary features [B, D] fp32."""
    b, c, h, w = x.shape
    hp, wp = h // PATCH, w // PATCH
    p = hp * wp
    t_real = p + 1
    t_pad = _round_up(max(t_real, 8), 128)

    # Patch extraction (glue).
    # TODO(synk): fold this NCHW->patch-row transpose into the patch_embed
    # BlockSpec (or permute w_eff rows) to avoid a standalone XLA transpose.
    patches = x.reshape(b, c, hp, PATCH, wp, PATCH)
    patches = patches.transpose(0, 2, 4, 1, 3, 5).reshape(b * p, c * PATCH * PATCH)
    m = b * p
    m_pad = _round_up(m, ROW_TILE)
    patches = jnp.pad(patches.astype(jnp.bfloat16), ((0, m_pad - m), (0, 0)))

    tok = patch_embed(patches, prep["patch_w"], prep["patch_b"])[:m]
    tok = tok.reshape(b, p, EMBED_DIM).astype(jnp.float32)

    # Prepend summary (CLS) token, add positional embedding, pad T to 128-mult.
    # TODO(synk): RADIO's CPE pos-embed interpolation and multi-register summary
    # heads are simplified to a single CLS summary at fixed resolution.
    cls = jnp.broadcast_to(prep["cls_token"], (b, 1, EMBED_DIM))
    tok = jnp.concatenate([cls, tok], axis=1) + prep["pos_embed"]
    tok = jnp.pad(tok, ((0, 0), (0, t_pad - t_real), (0, 0))).astype(jnp.bfloat16)

    for blk in prep["blocks"]:
        tok = attention_block(tok, t_real, blk)          # [B, T_pad, D] bf16
        xf = tok.reshape(b * t_pad, EMBED_DIM)
        tok = mlp(xf, blk).reshape(b, t_pad, EMBED_DIM)

    # Slice only the summary token in glue so the final LN kernel DMAs [B, D].
    cls_tok = tok[:, 0, :]
    return final_summary(cls_tok, prep["final_ln_w"], prep["final_ln_b"])


if __name__ == "__main__":
    key = jax.random.PRNGKey(0)
    pkey, xkey = jax.random.split(key)

    resolution = (32, 32)  # small resolution; real model uses e.g. 224/432
    num_patches = (resolution[0] // PATCH) * (resolution[1] // PATCH)
    params = init_params(pkey, num_patches)
    prep = prepare_params(params)

    x = jax.random.uniform(xkey, (2, IN_CH, resolution[0], resolution[1]),
                           dtype=jnp.float32)

    summary = jax.jit(c_radio_v2_forward)(x, prep)
    jax.block_until_ready(summary)
    assert summary.shape == (2, EMBED_DIM) and summary.dtype == jnp.float32
    print("KERNEL_OK")
</pallas_src>

<mosaic_0001>
module attributes {stable_mosaic.version = 11 : i64} {
  func.func @_patch_embed_kernel(%arg0: i32, %arg1: memref<256x768xbf16, #tpu.memory_space<vmem>>, %arg2: memref<768x128xbf16, #tpu.memory_space<vmem>>, %arg3: memref<1x128xf32, #tpu.memory_space<vmem>>, %arg4: memref<256x128xbf16, #tpu.memory_space<vmem>>) attributes {dimension_semantics = [#tpu.dimension_semantics<parallel>], iteration_bounds = array<i64: 1>, scalar_prefetch = 0 : i64, scratch_operands = 0 : i64, tpu.core_type = #tpu.core_type<tc>, window_params = [{transform_indices = @transform_0, window_bounds = array<i64: 256, 768>}, {pipeline_mode = #tpu.pipeline_mode<synchronous>, transform_indices = @transform_1, window_bounds = array<i64: 768, 128>}, {pipeline_mode = #tpu.pipeline_mode<synchronous>, transform_indices = @transform_2, window_bounds = array<i64: 1, 128>}, {transform_indices = @transform_3, window_bounds = array<i64: 256, 128>}]} {
    %c0 = arith.constant 0 : index
    %c0_0 = arith.constant 0 : index
    %0 = vector.load %arg1[%c0, %c0_0] : memref<256x768xbf16, #tpu.memory_space<vmem>>, vector<256x768xbf16>
    %c0_1 = arith.constant 0 : index
    %c0_2 = arith.constant 0 : index
    %1 = vector.load %arg2[%c0_1, %c0_2] : memref<768x128xbf16, #tpu.memory_space<vmem>>, vector<768x128xbf16>
    %cst = arith.constant dense<0.000000e+00> : vector<256x128xf32>
    %2 = tpu.matmul %0, %1, %cst {dimension_numbers = #tpu.dot_dimension_numbers<[1], [0], [0], [1], [0, 0, 1, 1], [], []>} : vector<256x768xbf16>, vector<768x128xbf16>, vector<256x128xf32> -> vector<256x128xf32>
    %c0_3 = arith.constant 0 : index
    %c0_4 = arith.constant 0 : index
    %3 = vector.load %arg3[%c0_3, %c0_4] : memref<1x128xf32, #tpu.memory_space<vmem>>, vector<1x128xf32>
    %4 = vector.broadcast %3 : vector<1x128xf32> to vector<256x128xf32>
    %5 = arith.addf %2, %4 : vector<256x128xf32>
    %6 = arith.truncf %5 : vector<256x128xf32> to vector<256x128xbf16>
    %c0_5 = arith.constant 0 : index
    %c0_6 = arith.constant 0 : index
    %7 = vector.load %arg4[%c0_5, %c0_6] : memref<256x128xbf16, #tpu.memory_space<vmem>>, vector<256x128xbf16>
    tpu.vector_store %arg4[%c0_5, %c0_6], %6 {strides = array<i32>} : memref<256x128xbf16, #tpu.memory_space<vmem>>, vector<256x128xbf16>,
    return
  }
  func.func @transform_0(%arg0: i32) -> (i32, i32) {
    %c0_i32 = arith.constant 0 : i32
    %c0_i32_0 = arith.constant 0 : i32
    return %arg0, %c0_i32 : i32, i32
  }
  func.func @transform_1(%arg0: i32) -> (i32, i32) {
    %c0_i32 = arith.constant 0 : i32
    %c0_i32_0 = arith.constant 0 : i32
    %c0_i32_1 = arith.constant 0 : i32
    return %c0_i32, %c0_i32_0 : i32, i32
  }
  func.func @transform_2(%arg0: i32) -> (i32, i32) {
    %c0_i32 = arith.constant 0 : i32
    %c0_i32_0 = arith.constant 0 : i32
    %c0_i32_1 = arith.constant 0 : i32
    return %c0_i32, %c0_i32_0 : i32, i32
  }
  func.func @transform_3(%arg0: i32) -> (i32, i32) {
    %c0_i32 = arith.constant 0 : i32
    %c0_i32_0 = arith.constant 0 : i32
    return %arg0, %c0_i32 : i32, i32
  }
}

module attributes {stable_mosaic.version = 11 : i64} {
  func.func @_mlp_kernel(%arg0: i32, %arg1: i32, %arg2: memref<256x128xbf16, #tpu.memory_space<vmem>>, %arg3: memref<1x128xf32, #tpu.memory_space<vmem>>, %arg4: memref<1x128xf32, #tpu.memory_space<vmem>>, %arg5: memref<128x256xbf16, #tpu.memory_space<vmem>>, %arg6: memref<1x256xf32, #tpu.memory_space<vmem>>, %arg7: memref<256x128xbf16, #tpu.memory_space<vmem>>, %arg8: memref<1x128xf32, #tpu.memory_space<vmem>>, %arg9: memref<256x128xbf16, #tpu.memory_space<vmem>>, %arg10: memref<256x128xbf16, #tpu.memory_space<vmem>>, %arg11: memref<256x128xf32, #tpu.memory_space<vmem>>) attributes {dimension_semantics = [#tpu.dimension_semantics<parallel>, #tpu.dimension_semantics<arbitrary>], iteration_bounds = array<i64: 1, 2>, scalar_prefetch = 0 : i64, scratch_operands = 2 : i64, tpu.core_type = #tpu.core_type<tc>, window_params = [{transform_indices = @transform_0, window_bounds = array<i64: 256, 128>}, {pipeline_mode = #tpu.pipeline_mode<synchronous>, transform_indices = @transform_1, window_bounds = array<i64: 1, 128>}, {pipeline_mode = #tpu.pipeline_mode<synchronous>, transform_indices = @transform_2, window_bounds = array<i64: 1, 128>}, {transform_indices = @transform_3, window_bounds = array<i64: 128, 256>}, {transform_indices = @transform_4, window_bounds = array<i64: 1, 256>}, {transform_indices = @transform_5, window_bounds = array<i64: 256, 128>}, {pipeline_mode = #tpu.pipeline_mode<synchronous>, transform_indices = @transform_6, window_bounds = array<i64: 1, 128>}, {transform_indices = @transform_7, window_bounds = array<i64: 256, 128>}]} {
    %c0_i32 = arith.constant 0 : i32
    %0 = arith.cmpi eq, %arg1, %c0_i32 : i32
    %1 = arith.extui %0 : i1 to i32
    %c0_i32_0 = arith.constant 0 : i32
    %2 = arith.cmpi ne, %1, %c0_i32_0 : i32
    scf.if %2 {
      %c0_18 = arith.constant 0 : index
      %c0_19 = arith.constant 0 : index
      %31 = vector.load %arg2[%c0_18, %c0_19] : memref<256x128xbf16, #tpu.memory_space<vmem>>, vector<256x128xbf16>
      %32 = arith.extf %31 : vector<256x128xbf16> to vector<256x128xf32>
      %c0_20 = arith.constant 0 : index
      %c0_21 = arith.constant 0 : index
      %33 = vector.load %arg3[%c0_20, %c0_21] : memref<1x128xf32, #tpu.memory_space<vmem>>, vector<1x128xf32>
      %c0_22 = arith.constant 0 : index
      %c0_23 = arith.constant 0 : index
      %34 = vector.load %arg4[%c0_22, %c0_23] : memref<1x128xf32, #tpu.memory_space<vmem>>, vector<1x128xf32>
      %cst_24 = arith.constant dense<0.000000e+00> : vector<256xf32>
      %35 = vector.multi_reduction <add>, %32, %cst_24 [1] : vector<256x128xf32> to vector<256xf32>
      %36 = vector.shape_cast %35 : vector<256xf32> to vector<256x1xf32>
      %cst_25 = arith.constant 1.280000e+02 : f32
      %37 = vector.broadcast %cst_25 : f32 to vector<256x1xf32>
      %38 = arith.divf %36, %37 : vector<256x1xf32>
      %39 = vector.broadcast %38 : vector<256x1xf32> to vector<256x128xf32>
      %40 = arith.subf %32, %39 : vector<256x128xf32>
      %41 = arith.mulf %40, %40 : vector<256x128xf32>
      %cst_26 = arith.constant dense<0.000000e+00> : vector<256xf32>
      %42 = vector.multi_reduction <add>, %41, %cst_26 [1] : vector<256x128xf32> to vector<256xf32>
      %43 = vector.shape_cast %42 : vector<256xf32> to vector<256x1xf32>
      %cst_27 = arith.constant 1.280000e+02 : f32
      %44 = vector.broadcast %cst_27 : f32 to vector<256x1xf32>
      %45 = arith.divf %43, %44 : vector<256x1xf32>
      %46 = vector.broadcast %38 : vector<256x1xf32> to vector<256x128xf32>
      %47 = arith.subf %32, %46 : vector<256x128xf32>
      %cst_28 = arith.constant 9.99999997E-7 : f32
      %48 = vector.broadcast %cst_28 : f32 to vector<256x1xf32>
      %49 = arith.addf %45, %48 : vector<256x1xf32>
      %50 = math.rsqrt %49 : vector<256x1xf32>
      %51 = vector.broadcast %50 : vector<256x1xf32> to vector<256x128xf32>
      %52 = arith.mulf %47, %51 : vector<256x128xf32>
      %53 = vector.broadcast %33 : vector<1x128xf32> to vector<256x128xf32>
      %54 = arith.mulf %52, %53 : vector<256x128xf32>
      %55 = vector.broadcast %34 : vector<1x128xf32> to vector<256x128xf32>
      %56 = arith.addf %54, %55 : vector<256x128xf32>
      %57 = arith.truncf %56 : vector<256x128xf32> to vector<256x128xbf16>
      %c0_29 = arith.constant 0 : index
      %c0_30 = arith.constant 0 : index
      %58 = vector.load %arg10[%c0_29, %c0_30] : memref<256x128xbf16, #tpu.memory_space<vmem>>, vector<256x128xbf16>
      tpu.vector_store %arg10[%c0_29, %c0_30], %57 {strides = array<i32>} : memref<256x128xbf16, #tpu.memory_space<vmem>>, vector<256x128xbf16>,
      %cst_31 = arith.constant 0.000000e+00 : f32
      %59 = vector.broadcast %cst_31 : f32 to vector<256x128xf32>
      %c0_32 = arith.constant 0 : index
      %c0_33 = arith.constant 0 : index
      %60 = vector.load %arg11[%c0_32, %c0_33] : memref<256x128xf32, #tpu.memory_space<vmem>>, vector<256x128xf32>
      tpu.vector_store %arg11[%c0_32, %c0_33], %59 {strides = array<i32>} : memref<256x128xf32, #tpu.memory_space<vmem>>, vector<256x128xf32>,
    } else {
    }
    %c0 = arith.constant 0 : index
    %c0_1 = arith.constant 0 : index
    %3 = vector.load %arg10[%c0, %c0_1] : memref<256x128xbf16, #tpu.memory_space<vmem>>, vector<256x128xbf16>
    %c0_2 = arith.constant 0 : index
    %c0_3 = arith.constant 0 : index
    %4 = vector.load %arg5[%c0_2, %c0_3] : memref<128x256xbf16, #tpu.memory_space<vmem>>, vector<128x256xbf16>
    %cst = arith.constant dense<0.000000e+00> : vector<256x256xf32>
    %5 = tpu.matmul %3, %4, %cst {dimension_numbers = #tpu.dot_dimension_numbers<[1], [0], [0], [1], [0, 0, 1, 1], [], []>} : vector<256x128xbf16>, vector<128x256xbf16>, vector<256x256xf32> -> vector<256x256xf32>
    %c0_4 = arith.constant 0 : index
    %c0_5 = arith.constant 0 : index
    %6 = vector.load %arg6[%c0_4, %c0_5] : memref<1x256xf32, #tpu.memory_space<vmem>>, vector<1x256xf32>
    %7 = vector.broadcast %6 : vector<1x256xf32> to vector<256x256xf32>
    %8 = arith.addf %5, %7 : vector<256x256xf32>
    %9 = arith.mulf %8, %8 : vector<256x256xf32>
    %10 = arith.mulf %8, %9 : vector<256x256xf32>
    %cst_6 = arith.constant 4.471500e-02 : f32
    %11 = vector.broadcast %cst_6 : f32 to vector<256x256xf32>
    %12 = arith.mulf %11, %10 : vector<256x256xf32>
    %13 = arith.addf %8, %12 : vector<256x256xf32>
    %cst_7 = arith.constant 0.797884583 : f32
    %14 = vector.broadcast %cst_7 : f32 to vector<256x256xf32>
    %15 = arith.mulf %14, %13 : vector<256x256xf32>
    %16 = math.tanh %15 : vector<256x256xf32>
    %cst_8 = arith.constant 1.000000e+00 : f32
    %17 = vector.broadcast %cst_8 : f32 to vector<256x256xf32>
    %18 = arith.addf %17, %16 : vector<256x256xf32>
    %cst_9 = arith.constant 5.000000e-01 : f32
    %19 = vector.broadcast %cst_9 : f32 to vector<256x256xf32>
    %20 = arith.mulf %19, %18 : vector<256x256xf32>
    %21 = arith.mulf %8, %20 : vector<256x256xf32>
    %22 = arith.truncf %21 : vector<256x256xf32> to vector<256x256xbf16>
    %c0_10 = arith.constant 0 : index
    %c0_11 = arith.constant 0 : index
    %23 = vector.load %arg11[%c0_10, %c0_11] : memref<256x128xf32, #tpu.memory_space<vmem>>, vector<256x128xf32>
    %c0_12 = arith.constant 0 : index
    %c0_13 = arith.constant 0 : index
    %24 = vector.load %arg7[%c0_12, %c0_13] : memref<256x128xbf16, #tpu.memory_space<vmem>>, vector<256x128xbf16>
    %cst_14 = arith.constant dense<0.000000e+00> : vector<256x128xf32>
    %25 = tpu.matmul %22, %24, %cst_14 {dimension_numbers = #tpu.dot_dimension_numbers<[1], [0], [0], [1], [0, 0, 1, 1], [], []>} : vector<256x256xbf16>, vector<256x128xbf16>, vector<256x128xf32> -> vector<256x128xf32>
    %26 = arith.addf %23, %25 : vector<256x128xf32>
    %c0_15 = arith.constant 0 : index
    %c0_16 = arith.constant 0 : index
    %27 = vector.load %arg11[%c0_15, %c0_16] : memref<256x128xf32, #tpu.memory_space<vmem>>, vector<256x128xf32>
    tpu.vector_store %arg11[%c0_15, %c0_16], %26 {strides = array<i32>} : memref<256x128xf32, #tpu.memory_space<vmem>>, vector<256x128xf32>,
    %c1_i32 = arith.constant 1 : i32
    %28 = arith.cmpi eq, %arg1, %c1_i32 : i32
    %29 = arith.extui %28 : i1 to i32
    %c0_i32_17 = arith.constant 0 : i32
    %30 = arith.cmpi ne, %29, %c0_i32_17 : i32
    scf.if %30 {
      %c0_18 = arith.constant 0 : index
      %c0_19 = arith.constant 0 : index
      %31 = vector.load %arg2[%c0_18, %c0_19] : memref<256x128xbf16, #tpu.memory_space<vmem>>, vector<256x128xbf16>
      %32 = arith.extf %31 : vector<256x128xbf16> to vector<256x128xf32>
      %c0_20 = arith.constant 0 : index
      %c0_21 = arith.constant 0 : index
      %33 = vector.load %arg11[%c0_20, %c0_21] : memref<256x128xf32, #tpu.memory_space<vmem>>, vector<256x128xf32>
      %34 = arith.addf %32, %33 : vector<256x128xf32>
      %c0_22 = arith.constant 0 : index
      %c0_23 = arith.constant 0 : index
      %35 = vector.load %arg8[%c0_22, %c0_23] : memref<1x128xf32, #tpu.memory_space<vmem>>, vector<1x128xf32>
      %36 = vector.broadcast %35 : vector<1x128xf32> to vector<256x128xf32>
      %37 = arith.addf %34, %36 : vector<256x128xf32>
      %38 = arith.truncf %37 : vector<256x128xf32> to vector<256x128xbf16>
      %c0_24 = arith.constant 0 : index
      %c0_25 = arith.constant 0 : index
      %39 = vector.load %arg9[%c0_24, %c0_25] : memref<256x128xbf16, #tpu.memory_space<vmem>>, vector<256x128xbf16>
      tpu.vector_store %arg9[%c0_24, %c0_25], %38 {strides = array<i32>} : memref<256x128xbf16, #tpu.memory_space<vmem>>, vector<256x128xbf16>,
    } else {
    }
    return
  }
  func.func @transform_0(%arg0: i32, %arg1: i32) -> (i32, i32) {
    %c0_i32 = arith.constant 0 : i32
    %c0_i32_0 = arith.constant 0 : i32
    return %arg0, %c0_i32 : i32, i32
  }
  func.func @transform_1(%arg0: i32, %arg1: i32) -> (i32, i32) {
    %c0_i32 = arith.constant 0 : i32
    %c0_i32_0 = arith.constant 0 : i32
    %c0_i32_1 = arith.constant 0 : i32
    return %c0_i32, %c0_i32_0 : i32, i32
  }
  func.func @transform_2(%arg0: i32, %arg1: i32) -> (i32, i32) {
    %c0_i32 = arith.constant 0 : i32
    %c0_i32_0 = arith.constant 0 : i32
    %c0_i32_1 = arith.constant 0 : i32
    return %c0_i32, %c0_i32_0 : i32, i32
  }
  func.func @transform_3(%arg0: i32, %arg1: i32) -> (i32, i32) {
    %c0_i32 = arith.constant 0 : i32
    %c0_i32_0 = arith.constant 0 : i32
    return %c0_i32, %arg1 : i32, i32
  }
  func.func @transform_4(%arg0: i32, %arg1: i32) -> (i32, i32) {
    %c0_i32 = arith.constant 0 : i32
    %c0_i32_0 = arith.constant 0 : i32
    return %c0_i32, %arg1 : i32, i32
  }
  func.func @transform_5(%arg0: i32, %arg1: i32) -> (i32, i32) {
    %c0_i32 = arith.constant 0 : i32
    %c0_i32_0 = arith.constant 0 : i32
    return %arg1, %c0_i32 : i32, i32
  }
  func.func @transform_6(%arg0: i32, %arg1: i32) -> (i32, i32) {
    %c0_i32 = arith.constant 0 : i32
    %c0_i32_0 = arith.constant 0 : i32
    %c0_i32_1 = arith.constant 0 : i32
    return %c0_i32, %c0_i32_0 : i32, i32
  }
  func.func @transform_7(%arg0: i32, %arg1: i32) -> (i32, i32) {
    %c0_i32 = arith.constant 0 : i32
    %c0_i32_0 = arith.constant 0 : i32
    return %arg0, %c0_i32 : i32, i32
  }
}

module attributes {stable_mosaic.version = 11 : i64} {
  func.func @_attn_block_kernel(%arg0: i32, %arg1: i32, %arg2: memref<1x128x128xbf16, #tpu.memory_space<vmem>>, %arg3: memref<1x128xf32, #tpu.memory_space<vmem>>, %arg4: memref<1x128xf32, #tpu.memory_space<vmem>>, %arg5: memref<3x1x128x128xbf16, #tpu.memory_space<vmem>>, %arg6: memref<3x1x1x128xf32, #tpu.memory_space<vmem>>, %arg7: memref<1x128x128xbf16, #tpu.memory_space<vmem>>, %arg8: memref<1x128xf32, #tpu.memory_space<vmem>>, %arg9: memref<1x128x128xbf16, #tpu.memory_space<vmem>>, %arg10: memref<128x128xbf16, #tpu.memory_space<vmem>>, %arg11: memref<128x128xf32, #tpu.memory_space<vmem>>) attributes {dimension_semantics = [#tpu.dimension_semantics<parallel>, #tpu.dimension_semantics<arbitrary>], iteration_bounds = array<i64: 2, 2>, scalar_prefetch = 0 : i64, scratch_operands = 2 : i64, tpu.core_type = #tpu.core_type<tc>, window_params = [{transform_indices = @transform_0, window_bounds = array<i64: 1, 128, 128>}, {pipeline_mode = #tpu.pipeline_mode<synchronous>, transform_indices = @transform_1, window_bounds = array<i64: 1, 128>}, {pipeline_mode = #tpu.pipeline_mode<synchronous>, transform_indices = @transform_2, window_bounds = array<i64: 1, 128>}, {transform_indices = @transform_3, window_bounds = array<i64: 3, 1, 128, 128>}, {transform_indices = @transform_4, window_bounds = array<i64: 3, 1, 1, 128>}, {transform_indices = @transform_5, window_bounds = array<i64: 1, 128, 128>}, {pipeline_mode = #tpu.pipeline_mode<synchronous>, transform_indices = @transform_6, window_bounds = array<i64: 1, 128>}, {transform_indices = @transform_7, window_bounds = array<i64: 1, 128, 128>}]} {
    %c0_i32 = arith.constant 0 : i32
    %0 = arith.cmpi eq, %arg1, %c0_i32 : i32
    %1 = arith.extui %0 : i1 to i32
    %c0_i32_0 = arith.constant 0 : i32
    %2 = arith.cmpi ne, %1, %c0_i32_0 : i32
    scf.if %2 {
      %c0_41 = arith.constant 0 : index
      %c0_42 = arith.constant 0 : index
      %c0_43 = arith.constant 0 : index
      %60 = vector.load %arg2[%c0_41, %c0_42, %c0_43] : memref<1x128x128xbf16, #tpu.memory_space<vmem>>, vector<1x128x128xbf16>
      %61 = vector.shape_cast %60 : vector<1x128x128xbf16> to vector<128x128xbf16>
      %62 = arith.extf %61 : vector<128x128xbf16> to vector<128x128xf32>
      %c0_44 = arith.constant 0 : index
      %c0_45 = arith.constant 0 : index
      %63 = vector.load %arg3[%c0_44, %c0_45] : memref<1x128xf32, #tpu.memory_space<vmem>>, vector<1x128xf32>
      %c0_46 = arith.constant 0 : index
      %c0_47 = arith.constant 0 : index
      %64 = vector.load %arg4[%c0_46, %c0_47] : memref<1x128xf32, #tpu.memory_space<vmem>>, vector<1x128xf32>
      %cst_48 = arith.constant dense<0.000000e+00> : vector<128xf32>
      %65 = vector.multi_reduction <add>, %62, %cst_48 [1] : vector<128x128xf32> to vector<128xf32>
      %66 = vector.shape_cast %65 : vector<128xf32> to vector<128x1xf32>
      %cst_49 = arith.constant 1.280000e+02 : f32
      %67 = vector.broadcast %cst_49 : f32 to vector<128x1xf32>
      %68 = arith.divf %66, %67 : vector<128x1xf32>
      %69 = vector.broadcast %68 : vector<128x1xf32> to vector<128x128xf32>
      %70 = arith.subf %62, %69 : vector<128x128xf32>
      %71 = arith.mulf %70, %70 : vector<128x128xf32>
      %cst_50 = arith.constant dense<0.000000e+00> : vector<128xf32>
      %72 = vector.multi_reduction <add>, %71, %cst_50 [1] : vector<128x128xf32> to vector<128xf32>
      %73 = vector.shape_cast %72 : vector<128xf32> to vector<128x1xf32>
      %cst_51 = arith.constant 1.280000e+02 : f32
      %74 = vector.broadcast %cst_51 : f32 to vector<128x1xf32>
      %75 = arith.divf %73, %74 : vector<128x1xf32>
      %76 = vector.broadcast %68 : vector<128x1xf32> to vector<128x128xf32>
      %77 = arith.subf %62, %76 : vector<128x128xf32>
      %cst_52 = arith.constant 9.99999997E-7 : f32
      %78 = vector.broadcast %cst_52 : f32 to vector<128x1xf32>
      %79 = arith.addf %75, %78 : vector<128x1xf32>
      %80 = math.rsqrt %79 : vector<128x1xf32>
      %81 = vector.broadcast %80 : vector<128x1xf32> to vector<128x128xf32>
      %82 = arith.mulf %77, %81 : vector<128x128xf32>
      %83 = vector.broadcast %63 : vector<1x128xf32> to vector<128x128xf32>
      %84 = arith.mulf %82, %83 : vector<128x128xf32>
      %85 = vector.broadcast %64 : vector<1x128xf32> to vector<128x128xf32>
      %86 = arith.addf %84, %85 : vector<128x128xf32>
      %87 = arith.truncf %86 : vector<128x128xf32> to vector<128x128xbf16>
      %c0_53 = arith.constant 0 : index
      %c0_54 = arith.constant 0 : index
      %88 = vector.load %arg10[%c0_53, %c0_54] : memref<128x128xbf16, #tpu.memory_space<vmem>>, vector<128x128xbf16>
      tpu.vector_store %arg10[%c0_53, %c0_54], %87 {strides = array<i32>} : memref<128x128xbf16, #tpu.memory_space<vmem>>, vector<128x128xbf16>,
      %cst_55 = arith.constant 0.000000e+00 : f32
      %89 = vector.broadcast %cst_55 : f32 to vector<128x128xf32>
      %c0_56 = arith.constant 0 : index
      %c0_57 = arith.constant 0 : index
      %90 = vector.load %arg11[%c0_56, %c0_57] : memref<128x128xf32, #tpu.memory_space<vmem>>, vector<128x128xf32>
      tpu.vector_store %arg11[%c0_56, %c0_57], %89 {strides = array<i32>} : memref<128x128xf32, #tpu.memory_space<vmem>>, vector<128x128xf32>,
    } else {
    }
    %c0 = arith.constant 0 : index
    %c0_1 = arith.constant 0 : index
    %3 = vector.load %arg10[%c0, %c0_1] : memref<128x128xbf16, #tpu.memory_space<vmem>>, vector<128x128xbf16>
    %4 = tpu.iota {dimensions = array<i32: 1>} : vector<1x128xi32>
    %c5_i32 = arith.constant 5 : i32
    %5 = vector.broadcast %c5_i32 : i32 to vector<1x128xi32>
    %6 = arith.cmpi slt, %4, %5 : vector<1x128xi32>
    %c0_2 = arith.constant 0 : index
    %c0_3 = arith.constant 0 : index
    %c0_4 = arith.constant 0 : index
    %c0_5 = arith.constant 0 : index
    %7 = vector.load %arg5[%c0_2, %c0_3, %c0_4, %c0_5] : memref<3x1x128x128xbf16, #tpu.memory_space<vmem>>, vector<1x1x128x128xbf16>
    %8 = vector.shape_cast %7 : vector<1x1x128x128xbf16> to vector<128x128xbf16>
    %cst = arith.constant dense<0.000000e+00> : vector<128x128xf32>
    %9 = tpu.matmul %3, %8, %cst {dimension_numbers = #tpu.dot_dimension_numbers<[1], [0], [0], [1], [0, 0, 1, 1], [], []>} : vector<128x128xbf16>, vector<128x128xbf16>, vector<128x128xf32> -> vector<128x128xf32>
    %c0_6 = arith.constant 0 : index
    %c0_7 = arith.constant 0 : index
    %c0_8 = arith.constant 0 : index
    %c0_9 = arith.constant 0 : index
    %10 = vector.load %arg6[%c0_6, %c0_7, %c0_8, %c0_9] : memref<3x1x1x128xf32, #tpu.memory_space<vmem>>, vector<1x1x1x128xf32>
    %11 = vector.shape_cast %10 : vector<1x1x1x128xf32> to vector<1x128xf32>
    %12 = vector.broadcast %11 : vector<1x128xf32> to vector<128x128xf32>
    %13 = arith.addf %9, %12 : vector<128x128xf32>
    %c1 = arith.constant 1 : index
    %c0_10 = arith.constant 0 : index
    %c0_11 = arith.constant 0 : index
    %c0_12 = arith.constant 0 : index
    %14 = vector.load %arg5[%c1, %c0_10, %c0_11, %c0_12] : memref<3x1x128x128xbf16, #tpu.memory_space<vmem>>, vector<1x1x128x128xbf16>
    %15 = vector.shape_cast %14 : vector<1x1x128x128xbf16> to vector<128x128xbf16>
    %cst_13 = arith.constant dense<0.000000e+00> : vector<128x128xf32>
    %16 = tpu.matmul %3, %15, %cst_13 {dimension_numbers = #tpu.dot_dimension_numbers<[1], [0], [0], [1], [0, 0, 1, 1], [], []>} : vector<128x128xbf16>, vector<128x128xbf16>, vector<128x128xf32> -> vector<128x128xf32>
    %c1_14 = arith.constant 1 : index
    %c0_15 = arith.constant 0 : index
    %c0_16 = arith.constant 0 : index
    %c0_17 = arith.constant 0 : index
    %17 = vector.load %arg6[%c1_14, %c0_15, %c0_16, %c0_17] : memref<3x1x1x128xf32, #tpu.memory_space<vmem>>, vector<1x1x1x128xf32>
    %18 = vector.shape_cast %17 : vector<1x1x1x128xf32> to vector<1x128xf32>
    %19 = vector.broadcast %18 : vector<1x128xf32> to vector<128x128xf32>
    %20 = arith.addf %16, %19 : vector<128x128xf32>
    %c2 = arith.constant 2 : index
    %c0_18 = arith.constant 0 : index
    %c0_19 = arith.constant 0 : index
    %c0_20 = arith.constant 0 : index
    %21 = vector.load %arg5[%c2, %c0_18, %c0_19, %c0_20] : memref<3x1x128x128xbf16, #tpu.memory_space<vmem>>, vector<1x1x128x128xbf16>
    %22 = vector.shape_cast %21 : vector<1x1x128x128xbf16> to vector<128x128xbf16>
    %cst_21 = arith.constant dense<0.000000e+00> : vector<128x128xf32>
    %23 = tpu.matmul %3, %22, %cst_21 {dimension_numbers = #tpu.dot_dimension_numbers<[1], [0], [0], [1], [0, 0, 1, 1], [], []>} : vector<128x128xbf16>, vector<128x128xbf16>, vector<128x128xf32> -> vector<128x128xf32>
    %c2_22 = arith.constant 2 : index
    %c0_23 = arith.constant 0 : index
    %c0_24 = arith.constant 0 : index
    %c0_25 = arith.constant 0 : index
    %24 = vector.load %arg6[%c2_22, %c0_23, %c0_24, %c0_25] : memref<3x1x1x128xf32, #tpu.memory_space<vmem>>, vector<1x1x1x128xf32>
    %25 = vector.shape_cast %24 : vector<1x1x1x128xf32> to vector<1x128xf32>
    %26 = vector.broadcast %25 : vector<1x128xf32> to vector<128x128xf32>
    %27 = arith.addf %23, %26 : vector<128x128xf32>
    %cst_26 = arith.constant 1.250000e-01 : f32
    %28 = vector.broadcast %cst_26 : f32 to vector<128x128xf32>
    %29 = arith.mulf %13, %28 : vector<128x128xf32>
    %30 = arith.truncf %29 : vector<128x128xf32> to vector<128x128xbf16>
    %31 = arith.truncf %20 : vector<128x128xf32> to vector<128x128xbf16>
    %cst_27 = arith.constant dense<0.000000e+00> : vector<128x128xf32>
    %32 = tpu.matmul %30, %31, %cst_27 {dimension_numbers = #tpu.dot_dimension_numbers<[1], [1], [0], [0], [0, 0, 1, 0], [], []>} : vector<128x128xbf16>, vector<128x128xbf16>, vector<128x128xf32> -> vector<128x128xf32>
    %cst_28 = arith.constant -1.000000e+30 : f32
    %33 = vector.shape_cast %6 : vector<1x128xi1> to vector<1x128xi1>
    %34 = vector.broadcast %33 : vector<1x128xi1> to vector<128x128xi1>
    %35 = vector.broadcast %cst_28 : f32 to vector<128x128xf32>
    %36 = arith.select %34, %32, %35 : vector<128x128xi1>, vector<128x128xf32>
    %cst_29 = arith.constant dense<0xFF800000> : vector<128xf32>
    %37 = vector.multi_reduction <maximumf>, %36, %cst_29 [1] : vector<128x128xf32> to vector<128xf32>
    %38 = vector.shape_cast %37 : vector<128xf32> to vector<128x1xf32>
    %39 = vector.broadcast %38 : vector<128x1xf32> to vector<128x128xf32>
    %40 = arith.subf %36, %39 : vector<128x128xf32>
    %41 = math.exp %40 : vector<128x128xf32>
    %cst_30 = arith.constant dense<0.000000e+00> : vector<128xf32>
    %42 = vector.multi_reduction <add>, %41, %cst_30 [1] : vector<128x128xf32> to vector<128xf32>
    %43 = vector.shape_cast %42 : vector<128xf32> to vector<128x1xf32>
    %44 = tpu.reciprocal %43 : vector<128x1xf32> -> vector<128x1xf32>
    %45 = vector.broadcast %44 : vector<128x1xf32> to vector<128x128xf32>
    %46 = arith.mulf %41, %45 : vector<128x128xf32>
    %47 = arith.truncf %46 : vector<128x128xf32> to vector<128x128xbf16>
    %48 = arith.truncf %27 : vector<128x128xf32> to vector<128x128xbf16>
    %cst_31 = arith.constant dense<0.000000e+00> : vector<128x128xf32>
    %49 = tpu.matmul %47, %48, %cst_31 {dimension_numbers = #tpu.dot_dimension_numbers<[1], [0], [0], [1], [0, 0, 1, 1], [], []>} : vector<128x128xbf16>, vector<128x128xbf16>, vector<128x128xf32> -> vector<128x128xf32>
    %c0_32 = arith.constant 0 : index
    %c0_33 = arith.constant 0 : index
    %50 = vector.load %arg11[%c0_32, %c0_33] : memref<128x128xf32, #tpu.memory_space<vmem>>, vector<128x128xf32>
    %51 = arith.truncf %49 : vector<128x128xf32> to vector<128x128xbf16>
    %c0_34 = arith.constant 0 : index
    %c0_35 = arith.constant 0 : index
    %c0_36 = arith.constant 0 : index
    %52 = vector.load %arg7[%c0_34, %c0_35, %c0_36] : memref<1x128x128xbf16, #tpu.memory_space<vmem>>, vector<1x128x128xbf16>
    %53 = vector.shape_cast %52 : vector<1x128x128xbf16> to vector<128x128xbf16>
    %cst_37 = arith.constant dense<0.000000e+00> : vector<128x128xf32>
    %54 = tpu.matmul %51, %53, %cst_37 {dimension_numbers = #tpu.dot_dimension_numbers<[1], [0], [0], [1], [0, 0, 1, 1], [], []>} : vector<128x128xbf16>, vector<128x128xbf16>, vector<128x128xf32> -> vector<128x128xf32>
    %55 = arith.addf %50, %54 : vector<128x128xf32>
    %c0_38 = arith.constant 0 : index
    %c0_39 = arith.constant 0 : index
    %56 = vector.load %arg11[%c0_38, %c0_39] : memref<128x128xf32, #tpu.memory_space<vmem>>, vector<128x128xf32>
    tpu.vector_store %arg11[%c0_38, %c0_39], %55 {strides = array<i32>} : memref<128x128xf32, #tpu.memory_space<vmem>>, vector<128x128xf32>,
    %c1_i32 = arith.constant 1 : i32
    %57 = arith.cmpi eq, %arg1, %c1_i32 : i32
    %58 = arith.extui %57 : i1 to i32
    %c0_i32_40 = arith.constant 0 : i32
    %59 = arith.cmpi ne, %58, %c0_i32_40 : i32
    scf.if %59 {
      %c0_41 = arith.constant 0 : index
      %c0_42 = arith.constant 0 : index
      %c0_43 = arith.constant 0 : index
      %60 = vector.load %arg2[%c0_41, %c0_42, %c0_43] : memref<1x128x128xbf16, #tpu.memory_space<vmem>>, vector<1x128x128xbf16>
      %61 = vector.shape_cast %60 : vector<1x128x128xbf16> to vector<128x128xbf16>
      %62 = arith.extf %61 : vector<128x128xbf16> to vector<128x128xf32>
      %c0_44 = arith.constant 0 : index
      %c0_45 = arith.constant 0 : index
      %63 = vector.load %arg11[%c0_44, %c0_45] : memref<128x128xf32, #tpu.memory_space<vmem>>, vector<128x128xf32>
      %64 = arith.addf %62, %63 : vector<128x128xf32>
      %c0_46 = arith.constant 0 : index
      %c0_47 = arith.constant 0 : index
      %65 = vector.load %arg8[%c0_46, %c0_47] : memref<1x128xf32, #tpu.memory_space<vmem>>, vector<1x128xf32>
      %66 = vector.broadcast %65 : vector<1x128xf32> to vector<128x128xf32>
      %67 = arith.addf %64, %66 : vector<128x128xf32>
      %68 = arith.truncf %67 : vector<128x128xf32> to vector<128x128xbf16>
      %c0_48 = arith.constant 0 : index
      %c0_49 = arith.constant 0 : index
      %c0_50 = arith.constant 0 : index
      %69 = vector.load %arg9[%c0_48, %c0_49, %c0_50] : memref<1x128x128xbf16, #tpu.memory_space<vmem>>, vector<1x128x128xbf16>
      %70 = vector.shape_cast %69 : vector<1x128x128xbf16> to vector<128x128xbf16>
      %71 = vector.shape_cast %68 : vector<128x128xbf16> to vector<1x128x128xbf16>
      tpu.vector_store %arg9[%c0_48, %c0_49, %c0_50], %71 {strides = array<i32>} : memref<1x128x128xbf16, #tpu.memory_space<vmem>>, vector<1x128x128xbf16>,
    } else {
    }
    return
  }
  func.func @transform_0(%arg0: i32, %arg1: i32) -> (i32, i32, i32) {
    %c0_i32 = arith.constant 0 : i32
    %c0_i32_0 = arith.constant 0 : i32
    %c0_i32_1 = arith.constant 0 : i32
    return %arg0, %c0_i32, %c0_i32_0 : i32, i32, i32
  }
  func.func @transform_1(%arg0: i32, %arg1: i32) -> (i32, i32) {
    %c0_i32 = arith.constant 0 : i32
    %c0_i32_0 = arith.constant 0 : i32
    %c0_i32_1 = arith.constant 0 : i32
    return %c0_i32, %c0_i32_0 : i32, i32
  }
  func.func @transform_2(%arg0: i32, %arg1: i32) -> (i32, i32) {
    %c0_i32 = arith.constant 0 : i32
    %c0_i32_0 = arith.constant 0 : i32
    %c0_i32_1 = arith.constant 0 : i32
    return %c0_i32, %c0_i32_0 : i32, i32
  }
  func.func @transform_3(%arg0: i32, %arg1: i32) -> (i32, i32, i32, i32) {
    %c0_i32 = arith.constant 0 : i32
    %c0_i32_0 = arith.constant 0 : i32
    %c0_i32_1 = arith.constant 0 : i32
    %c0_i32_2 = arith.constant 0 : i32
    return %c0_i32, %arg1, %c0_i32_0, %c0_i32_1 : i32, i32, i32, i32
  }
  func.func @transform_4(%arg0: i32, %arg1: i32) -> (i32, i32, i32, i32) {
    %c0_i32 = arith.constant 0 : i32
    %c0_i32_0 = arith.constant 0 : i32
    %c0_i32_1 = arith.constant 0 : i32
    %c0_i32_2 = arith.constant 0 : i32
    return %c0_i32, %arg1, %c0_i32_0, %c0_i32_1 : i32, i32, i32, i32
  }
  func.func @transform_5(%arg0: i32, %arg1: i32) -> (i32, i32, i32) {
    %c0_i32 = arith.constant 0 : i32
    %c0_i32_0 = arith.constant 0 : i32
    %c0_i32_1 = arith.constant 0 : i32
    return %arg1, %c0_i32, %c0_i32_0 : i32, i32, i32
  }
  func.func @transform_6(%arg0: i32, %arg1: i32) -> (i32, i32) {
    %c0_i32 = arith.constant 0 : i32
    %c0_i32_0 = arith.constant 0 : i32
    %c0_i32_1 = arith.constant 0 : i32
    return %c0_i32, %c0_i32_0 : i32, i32
  }
  func.func @transform_7(%arg0: i32, %arg1: i32) -> (i32, i32, i32) {
    %c0_i32 = arith.constant 0 : i32
    %c0_i32_0 = arith.constant 0 : i32
    %c0_i32_1 = arith.constant 0 : i32
    return %arg0, %c0_i32, %c0_i32_0 : i32, i32, i32
  }
}

module attributes {stable_mosaic.version = 11 : i64} {
  func.func @_summary_ln_kernel(%arg0: i32, %arg1: memref<2x128xbf16, #tpu.memory_space<vmem>>, %arg2: memref<1x128xf32, #tpu.memory_space<vmem>>, %arg3: memref<1x128xf32, #tpu.memory_space<vmem>>, %arg4: memref<2x128xf32, #tpu.memory_space<vmem>>) attributes {dimension_semantics = [#tpu.dimension_semantics<arbitrary>], iteration_bounds = array<i64: 1>, scalar_prefetch = 0 : i64, scratch_operands = 0 : i64, tpu.core_type = #tpu.core_type<tc>, window_params = [{pipeline_mode = #tpu.pipeline_mode<synchronous>, transform_indices = @transform_0, window_bounds = array<i64: 2, 128>}, {pipeline_mode = #tpu.pipeline_mode<synchronous>, transform_indices = @transform_1, window_bounds = array<i64: 1, 128>}, {pipeline_mode = #tpu.pipeline_mode<synchronous>, transform_indices = @transform_2, window_bounds = array<i64: 1, 128>}, {pipeline_mode = #tpu.pipeline_mode<synchronous>, transform_indices = @transform_3, window_bounds = array<i64: 2, 128>}]} {
    %c0 = arith.constant 0 : index
    %c0_0 = arith.constant 0 : index
    %0 = vector.load %arg1[%c0, %c0_0] : memref<2x128xbf16, #tpu.memory_space<vmem>>, vector<2x128xbf16>
    %1 = arith.extf %0 : vector<2x128xbf16> to vector<2x128xf32>
    %c0_1 = arith.constant 0 : index
    %c0_2 = arith.constant 0 : index
    %2 = vector.load %arg2[%c0_1, %c0_2] : memref<1x128xf32, #tpu.memory_space<vmem>>, vector<1x128xf32>
    %c0_3 = arith.constant 0 : index
    %c0_4 = arith.constant 0 : index
    %3 = vector.load %arg3[%c0_3, %c0_4] : memref<1x128xf32, #tpu.memory_space<vmem>>, vector<1x128xf32>
    %cst = arith.constant dense<0.000000e+00> : vector<2xf32>
    %4 = vector.multi_reduction <add>, %1, %cst [1] : vector<2x128xf32> to vector<2xf32>
    %5 = vector.shape_cast %4 : vector<2xf32> to vector<2x1xf32>
    %cst_5 = arith.constant 1.280000e+02 : f32
    %6 = vector.broadcast %cst_5 : f32 to vector<2x1xf32>
    %7 = arith.divf %5, %6 : vector<2x1xf32>
    %8 = vector.broadcast %7 : vector<2x1xf32> to vector<2x128xf32>
    %9 = arith.subf %1, %8 : vector<2x128xf32>
    %10 = arith.mulf %9, %9 : vector<2x128xf32>
    %cst_6 = arith.constant dense<0.000000e+00> : vector<2xf32>
    %11 = vector.multi_reduction <add>, %10, %cst_6 [1] : vector<2x128xf32> to vector<2xf32>
    %12 = vector.shape_cast %11 : vector<2xf32> to vector<2x1xf32>
    %cst_7 = arith.constant 1.280000e+02 : f32
    %13 = vector.broadcast %cst_7 : f32 to vector<2x1xf32>
    %14 = arith.divf %12, %13 : vector<2x1xf32>
    %15 = vector.broadcast %7 : vector<2x1xf32> to vector<2x128xf32>
    %16 = arith.subf %1, %15 : vector<2x128xf32>
    %cst_8 = arith.constant 9.99999997E-7 : f32
    %17 = vector.broadcast %cst_8 : f32 to vector<2x1xf32>
    %18 = arith.addf %14, %17 : vector<2x1xf32>
    %19 = math.rsqrt %18 : vector<2x1xf32>
    %20 = vector.broadcast %19 : vector<2x1xf32> to vector<2x128xf32>
    %21 = arith.mulf %16, %20 : vector<2x128xf32>
    %22 = vector.broadcast %2 : vector<1x128xf32> to vector<2x128xf32>
    %23 = arith.mulf %21, %22 : vector<2x128xf32>
    %24 = vector.broadcast %3 : vector<1x128xf32> to vector<2x128xf32>
    %25 = arith.addf %23, %24 : vector<2x128xf32>
    %c0_9 = arith.constant 0 : index
    %c0_10 = arith.constant 0 : index
    %26 = vector.load %arg4[%c0_9, %c0_10] : memref<2x128xf32, #tpu.memory_space<vmem>>, vector<2x128xf32>
    tpu.vector_store %arg4[%c0_9, %c0_10], %25 {strides = array<i32>} : memref<2x128xf32, #tpu.memory_space<vmem>>, vector<2x128xf32>,
    return
  }
  func.func @transform_0(%arg0: i32) -> (i32, i32) {
    %c0_i32 = arith.constant 0 : i32
    %c0_i32_0 = arith.constant 0 : i32
    %c0_i32_1 = arith.constant 0 : i32
    return %c0_i32, %c0_i32_0 : i32, i32
  }
  func.func @transform_1(%arg0: i32) -> (i32, i32) {
    %c0_i32 = arith.constant 0 : i32
    %c0_i32_0 = arith.constant 0 : i32
    %c0_i32_1 = arith.constant 0 : i32
    return %c0_i32, %c0_i32_0 : i32, i32
  }
  func.func @transform_2(%arg0: i32) -> (i32, i32) {
    %c0_i32 = arith.constant 0 : i32
    %c0_i32_0 = arith.constant 0 : i32
    %c0_i32_1 = arith.constant 0 : i32
    return %c0_i32, %c0_i32_0 : i32, i32
  }
  func.func @transform_3(%arg0: i32) -> (i32, i32) {
    %c0_i32 = arith.constant 0 : i32
    %c0_i32_0 = arith.constant 0 : i32
    %c0_i32_1 = arith.constant 0 : i32
    return %c0_i32, %c0_i32_0 : i32, i32
  }
}

</mosaic_0001>

<bundles_post_ra>
// kernel: c_radio_v2_forward.11
= control target key start
LH: loop header
LB: loop body
LE: loop exit
PB: predicated region body
PF: predicated region fallthrough
CT: control target
= control target key end

     0   :  { %vm19_vm0 = vcmask 1041408   ;;  %s134_s0 = inlined_call_operand.vmem [shape: bf16[2,128], index: 0, kind: input, shape index: {}]   ;;  %s135_s1 = inlined_call_operand.vmem [shape: f32[1,128], index: 1, kind: input, shape index: {}]   ;;  %s136_s2 = inlined_call_operand.vmem [shape: f32[1,128], index: 2, kind: input, shape index: {}]   ;;  %s137_s3 = inlined_call_operand.hbm [shape: f32[2,128], index: 3, kind: output, shape index: {}]  }
   0x1   :  { %v15_v0 = vld [vmem:[%s134_s0] sm:$0x1] }
   0x2   :  { %8 = vsyncpa [#allocation3], 0  ;;  %v16_v1 = vunpack.c.l.bf16 %v15_v0  ;;  %v63_v12 = vld [vmem:[%s135_s1] ss:$0 sm:$0xff]  ;;  %s92_s17 = smov [#allocation2]  }
   0x3   :  { %v64_v14 = vld [vmem:[%s136_s2] ss:$0 sm:$0xff]  ;;  %s55_s18 = sshll.u32 %s92_s17, 4  ;;  %s56_s18 = int_to_ptr.vmem [resolvable:$true] %s55_s18 }
   0x4   :  { %v20_v2 = vsel %vm19_vm0, %v16_v1, 0.0  ;;  %s68_s19 = scalar_lea.vmem %s56_s18, 32  ;;  %p73_p1 = scmp.lt.s32.totalorder %s56_s18, %s56_s18 }
   0x5   :  { %21 = vadd.xlane.f32.xlu0 %v20_v2  ;;  %p69_p0 = scmp.ne.s32.totalorder %s56_s18, %s68_s19  ;;  %p74_p2 = scmp.lt.s32.totalorder %s68_s19, %s68_s19 }
   0x7   :  { %p75_p3 = por %p74_p2, %p73_p1 }
   0x9   :  { %p76_p4 = pnand %p75_p3, %p69_p0 }
  0x92   :  { %v22_v3 = vpop.xlane.xlu0 %21 }
  0x93   :  { %v24_v4 = vmul.f32 0.0078125, %v22_v3 }
  0x95   :  { %v25_v5 = vsub.f32 %v16_v1, %v24_v4 }
  0x97   :  { %v26_v6 = vmul.f32 %v25_v5, %v25_v5 }
  0x99   :  { %v27_v7 = vsel %vm19_vm0, %v26_v6, 0.0 }
  0x9a   :  { %28 = vadd.xlane.f32.xlu0 %v27_v7 }
 0x127   :  { %v29_v8 = vpop.xlane.xlu0 %28 }
 0x128   :  { %v30_v9 = vmul.f32 0.0078125, %v29_v8 }
 0x12a   :  { %v31_v10 = vadd.f32 1e-06, %v30_v9 }
 0x12c   :  { %66 = vrsqrt.f32 %v31_v10 }
 0x136   :  { %v67_v11 = vpop.eup %66 }
 0x137   :  { %v33_v13 = vmul.f32 %v67_v11, %v25_v5 }
 0x139   :  { %v40_v15 = vmul.f32 %v63_v12, %v33_v13 }
 0x13b   :  { %v47_v16 = vadd.f32 %v64_v14, %v40_v15 }
 0x13d   :  { %48 = vst [vmem:[#allocation2] sm:$0x3] %v47_v16 }
 0x13e   :  { %79 = shalt.err (!%p76_p4)
}
 0x13f   :  { %s80_s21 = scalar_lea.hbm %s137_s3, 32 }
 0x140   :  { %p81_p5 = scmp.ne.s32.totalorder %s137_s3, %s80_s21  ;;  %p84_p6 = scmp.lt.u32.totalorder %s80_s21, %s137_s3 }
 0x142   :  { %p86_p7 = pnand %p84_p6, %p81_p5 }
 0x144   :  { %89 = shalt.err (!%p86_p7)
}
 0x145   :  { %58 = dma.vmem_to_hbm [thread:$0]  %s56_s18, 32, %s137_s3, [#allocation3]  }
 0x146   :  { %90 = dma.done.wait [#allocation3], 32  }
 0x147   :  { %91 = vsyncadd [#allocation3], 4294967264 }
 0x148   :  { %62 = vsyncpa [#allocation3], 1 }

// kernel: c_radio_v2_forward.6
= control target key start
LH: loop header
LB: loop body
LE: loop exit
PB: predicated region body
PF: predicated region fallthrough
CT: control target
= control target key end

     0   :  { %s3110_s1 = inlined_call_operand.vmem [shape: bf16[768,128], index: 1, kind: input, shape index: {}]   ;;  %s3111_s0 = inlined_call_operand.vmem [shape: bf16[256,768], index: 0, kind: input, shape index: {}]   ;;  %s3112_s2 = inlined_call_operand.vmem [shape: f32[1,128], index: 2, kind: input, shape index: {}]   ;;  %s3113_s3 = inlined_call_operand.vmem [shape: bf16[256,128], index: 3, kind: output, shape index: {}]  }
   0x1   :  { %v2285_v0 = vld [vmem:[%s3110_s1 + $0x40] sm:$0xff]   ;;  %v2287_v2 = vld [vmem:[%s3110_s1 + $0x48] sm:$0xff]   ;;  %v2289_v4 = vld [vmem:[%s3110_s1 + $0x50] sm:$0xff]  }
   0x2   :  { %v2286_v1 = vld [vmem:[%s3110_s1] sm:$0xff]   ;;  %1933 = vmatprep.subr.bf16.mxu0 %v2285_v0  ;;  %2269 = vmatprep.subr.bf16.mxu1 %v2285_v0  ;;  %v2288_v3 = vld [vmem:[%s3110_s1 + $0x8] sm:$0xff]   ;;  %v2290_v5 = vld [vmem:[%s3110_s1 + $0x10] sm:$0xff]  }
   0x3   :  { %1934 = vmatpush3.bf16.msra.mxu0 %v2286_v1  ;;  %2277 = vmatpush3.bf16.msra.mxu1 %v2286_v1  ;;  %v2291_v6 = vld [vmem:[%s3110_s1 + $0x58] sm:$0xff]   ;;  %v2293_v8 = vld [vmem:[%s3110_s1 + $0x60] sm:$0xff]   ;;  %v2295_v10 = vld [vmem:[%s3110_s1 + $0x68] sm:$0xff]  }
   0x4   :  { %1935 = vmatprep.subr.bf16.mxu0 %v2287_v2  ;;  %2270 = vmatprep.subr.bf16.mxu1 %v2287_v2  ;;  %v2292_v7 = vld [vmem:[%s3110_s1 + $0x18] sm:$0xff]   ;;  %v2294_v9 = vld [vmem:[%s3110_s1 + $0x20] sm:$0xff]   ;;  %v2296_v13 = vld [vmem:[%s3110_s1 + $0x28] sm:$0xff]  }
   0x5   :  { %v2303_v11 = vld [vmem:[%s3111_s0 + $0x4] ss:$24 sps:$4 sm:$0xff]   ;;  %v2297_v14 = vld [vmem:[%s3110_s1 + $0x70] sm:$0xff]   ;;  %v2301_v19 = vld [vmem:[%s3111_s0] ss:$24 sps:$4 sm:$0xff]  }
   0x6   :  { %v2306_v12 = vld [vmem:[%s3111_s0 + $0x184] ss:$24 sps:$4 sm:$0xff]   ;;  %1014 = vmatprep.mubr.bf16.mxu0 %v2303_v11  ;;  %v2298_v15 = vld [vmem:[%s3110_s1 + $0x30] sm:$0xff]   ;;  %v2304_v21 = vld [vmem:[%s3111_s0 + $0x180] ss:$24 sps:$4 sm:$0xff]  }
   0x7   :  { %1936 = vmatpush3.bf16.msra.mxu0 %v2288_v3  ;;  %2278 = vmatpush3.bf16.msra.mxu1 %v2288_v3  ;;  %v2299_v16 = vld [vmem:[%s3110_s1 + $0x78] sm:$0xff]   ;;  %v2307_v18 = vld [vmem:[%s3110_s1 + $0xc0] sm:$0xff]   ;;  %v2311_v24 = vld [vmem:[%s3111_s0 + $0x34] ss:$24 sps:$4 sm:$0xff]  }
   0x8   :  { %1937 = vmatprep.subr.bf16.mxu0 %v2289_v4  ;;  %2271 = vmatprep.subr.bf16.mxu1 %v2289_v4  ;;  %v2300_v17 = vld [vmem:[%s3110_s1 + $0x38] sm:$0xff]   ;;  %v2309_v20 = vld [vmem:[%s3110_s1 + $0x140] sm:$0xff]   ;;  %v2313_v25 = vld [vmem:[%s3111_s0 + $0x1b4] ss:$24 sps:$4 sm:$0xff]  }
   0x9   :  { %1078 = vmatprep.mubr.bf16.mxu1 %v2306_v12  ;;  %v2308_v22 = vld [vmem:[%s3110_s1 + $0x80] sm:$0xff]   ;;  %v2317_v26 = vld [vmem:[%s3110_s1 + $0xc8] sm:$0xff]   ;;  %v2327_v30 = vld [vmem:[%s3110_s1 + $0xd0] sm:$0xff]  }
   0xa   :  { %v2310_v23 = vld [vmem:[%s3110_s1 + $0x100] sm:$0xff]   ;;  %v2318_v27 = vld [vmem:[%s3110_s1 + $0x88] sm:$0xff]   ;;  %v2329_v33 = vld [vmem:[%s3110_s1 + $0x150] sm:$0xff]  }
   0xb   :  { %1938 = vmatpush3.bf16.msra.mxu0 %v2290_v5  ;;  %2279 = vmatpush3.bf16.msra.mxu1 %v2290_v5  ;;  %v2319_v28 = vld [vmem:[%s3110_s1 + $0x148] sm:$0xff]   ;;  %v2321_v34 = vld [vmem:[%s3111_s0 + $0x64] ss:$24 sps:$4 sm:$0xff]   ;;  %v2328_v36 = vld [vmem:[%s3110_s1 + $0x90] sm:$0xff]  }
   0xc   :  { %1939 = vmatprep.subr.bf16.mxu0 %v2291_v6  ;;  %2272 = vmatprep.subr.bf16.mxu1 %v2291_v6  ;;  %v2320_v29 = vld [vmem:[%s3110_s1 + $0x108] sm:$0xff]   ;;  %v2323_v35 = vld [vmem:[%s3111_s0 + $0x1e4] ss:$24 sps:$4 sm:$0xff]   ;;  %v2330_v37 = vld [vmem:[%s3110_s1 + $0x110] sm:$0xff]  }
   0xd   :  { %v2315_v31 = vld [vmem:[%s3111_s0 + $0x30] ss:$24 sps:$4 sm:$0xff]   ;;  %v2337_v38 = vld [vmem:[%s3110_s1 + $0xd8] sm:$0xff]   ;;  %v2331_v44 = vld [vmem:[%s3111_s0 + $0x94] ss:$24 sps:$4 sm:$0xff]  }
   0xe   :  { %v2316_v32 = vld [vmem:[%s3111_s0 + $0x1b0] ss:$24 sps:$4 sm:$0xff]   ;;  %v2339_v39 = vld [vmem:[%s3110_s1 + $0x158] sm:$0xff]   ;;  %v2333_v45 = vld [vmem:[%s3111_s0 + $0x214] ss:$24 sps:$4 sm:$0xff]  }
   0xf   :  { %1940 = vmatpush3.bf16.msra.mxu0 %v2292_v7  ;;  %2280 = vmatpush3.bf16.msra.mxu1 %v2292_v7  ;;  %v2325_v40 = vld [vmem:[%s3111_s0 + $0x60] ss:$24 sps:$4 sm:$0xff]   ;;  %v2335_v50 = vld [vmem:[%s3111_s0 + $0x90] ss:$24 sps:$4 sm:$0xff]   ;;  %v2341_v53 = vld [vmem:[%s3111_s0 + $0xc4] ss:$24 sps:$4 sm:$0xff]  }
  0x10   :  { %1941 = vmatprep.subr.bf16.mxu0 %v2293_v8  ;;  %2273 = vmatprep.subr.bf16.mxu1 %v2293_v8  ;;  %v2326_v41 = vld [vmem:[%s3111_s0 + $0x1e0] ss:$24 sps:$4 sm:$0xff]   ;;  %v2336_v51 = vld [vmem:[%s3111_s0 + $0x210] ss:$24 sps:$4 sm:$0xff]   ;;  %v2343_v54 = vld [vmem:[%s3111_s0 + $0x244] ss:$24 sps:$4 sm:$0xff]  }
  0x11   :  { %v2338_v42 = vld [vmem:[%s3110_s1 + $0x98] sm:$0xff]   ;;  %v2347_v46 = vld [vmem:[%s3110_s1 + $0xe0] sm:$0xff]   ;;  %v2357_v52 = vld [vmem:[%s3110_s1 + $0xe8] sm:$0xff]  }
  0x12   :  { %v2340_v43 = vld [vmem:[%s3110_s1 + $0x118] sm:$0xff]   ;;  %v2348_v47 = vld [vmem:[%s3110_s1 + $0xa0] sm:$0xff]   ;;  %v2358_v55 = vld [vmem:[%s3110_s1 + $0xa8] sm:$0xff]  }
  0x13   :  { %1942 = vmatpush3.bf16.msra.mxu0 %v2294_v9  ;;  %2281 = vmatpush3.bf16.msra.mxu1 %v2294_v9  ;;  %v2349_v48 = vld [vmem:[%s3110_s1 + $0x160] sm:$0xff]   ;;  %v2359_v56 = vld [vmem:[%s3110_s1 + $0x168] sm:$0xff]   ;;  %v2367_v58 = vld [vmem:[%s3110_s1 + $0xf0] sm:$0xff]  }
  0x14   :  { %1943 = vmatprep.subr.bf16.mxu0 %v2295_v10  ;;  %2274 = vmatprep.subr.bf16.mxu1 %v2295_v10  ;;  %v2350_v49 = vld [vmem:[%s3110_s1 + $0x120] sm:$0xff]   ;;  %v2360_v57 = vld [vmem:[%s3110_s1 + $0x128] sm:$0xff]   ;;  %v2368_v61 = vld [vmem:[%s3110_s1 + $0xb0] sm:$0xff]  }
  0x15   :  { %v2345_v59 = vld [vmem:[%s3111_s0 + $0xc0] ss:$24 sps:$4 sm:$0xff]   ;;  %v2351_v62 = vld [vmem:[%s3111_s0 + $0xf4] ss:$24 sps:$4 sm:$0xff]   ;;  %v2355_v6 = vld [vmem:[%s3111_s0 + $0xf0] ss:$24 sps:$4 sm:$0xff]  }
  0x16   :  { %v2346_v60 = vld [vmem:[%s3111_s0 + $0x240] ss:$24 sps:$4 sm:$0xff]   ;;  %v2369_v63 = vld [vmem:[%s3110_s1 + $0x170] sm:$0xff]   ;;  %v2361_v8 = vld [vmem:[%s3111_s0 + $0x124] ss:$24 sps:$4 sm:$0xff]  }
  0x17   :  { %1944 = vmatpush3.bf16.msra.mxu0 %v2296_v13  ;;  %2282 = vmatpush3.bf16.msra.mxu1 %v2296_v13  ;;  %v2370_v0 = vld [vmem:[%s3110_s1 + $0x130] sm:$0xff]   ;;  %v2377_v2 = vld [vmem:[%s3110_s1 + $0xf8] sm:$0xff]  }
  0x18   :  { %1945 = vmatprep.subr.bf16.mxu0 %v2297_v14  ;;  %2275 = vmatprep.subr.bf16.mxu1 %v2297_v14  ;;  %v2353_v1 = vld [vmem:[%s3111_s0 + $0x274] ss:$24 sps:$4 sm:$0xff]   ;;  %v2378_v3 = vld [vmem:[%s3110_s1 + $0xb8] sm:$0xff]   ;;  %v2356_v7 = vld [vmem:[%s3111_s0 + $0x270] ss:$24 sps:$4 sm:$0xff]  }
  0x19   :  { %v2379_v4 = vld [vmem:[%s3110_s1 + $0x178] sm:$0xff]   ;;  %v2371_v12 = vld [vmem:[%s3111_s0 + $0x154] ss:$24 sps:$4 sm:$0xff]   ;;  %v2375_v14 = vld [vmem:[%s3111_s0 + $0x150] ss:$24 sps:$4 sm:$0xff]  }
  0x1a   :  { %v2380_v5 = vld [vmem:[%s3110_s1 + $0x138] sm:$0xff]   ;;  %v2373_v13 = vld [vmem:[%s3111_s0 + $0x2d4] ss:$24 sps:$4 sm:$0xff]  }
  0x1b   :  { %1946 = vmatpush3.bf16.msra.mxu0 %v2298_v15  ;;  %2283 = vmatpush3.bf16.msra.mxu1 %v2298_v15  ;;  %v2363_v9 = vld [vmem:[%s3111_s0 + $0x2a4] ss:$24 sps:$4 sm:$0xff]   ;;  %v2365_v10 = vld [vmem:[%s3111_s0 + $0x120] ss:$24 sps:$4 sm:$0xff]   ;;  %v2376_v15 = vld [vmem:[%s3111_s0 + $0x2d0] ss:$24 sps:$4 sm:$0xff]  }
  0x1c   :  { %1947 = vmatprep.subr.bf16.mxu0 %v2299_v16  ;;  %2276 = vmatprep.subr.bf16.mxu1 %v2299_v16  ;;  %v2366_v11 = vld [vmem:[%s3111_s0 + $0x2a0] ss:$24 sps:$4 sm:$0xff]   ;;  %v2383_v16 = vld [vmem:[%s3111_s0 + $0xc] ss:$24 sps:$4 sm:$0xff]  }
  0x1f   :  { %1948 = vmatpush3.bf16.msra.mxu0 %v2300_v17  ;;  %2284 = vmatpush3.bf16.msra.mxu1 %v2300_v17  ;;  %v2386_v17 = vld [vmem:[%s3111_s0 + $0x14] ss:$24 sps:$4 sm:$0xff]  }
  0x20   :  { %2045 = vmatprep.subr.bf16.mxu1 %v2307_v18  ;;  %2157 = vmatprep.subr.bf16.mxu0 %v2309_v20  ;;  %v2381_v18 = vld [vmem:[%s3111_s0 + $0x8] ss:$24 sps:$4 sm:$0xff]   ;;  %v2387_v20 = vld [vmem:[%s3111_s0 + $0x3c] ss:$24 sps:$4 sm:$0xff]  }
  0x22   :  { %1015 = vmatmul.mubr.bf16.vlgmr.msra.gmra.mrb[0].mxu0 %v2301_v19  ;;  %1079 = vmatmul.mubr.bf16.vlgmr.msra.gmra.mrb[0].mxu1 %v2304_v21  ;;  %v2384_v19 = vld [vmem:[%s3111_s0 + $0x10] ss:$24 sps:$4 sm:$0xff]   ;;  %v2389_v21 = vld [vmem:[%s3111_s0 + $0x44] ss:$24 sps:$4 sm:$0xff]  }
  0x23   :  { %2046 = vmatpush3.bf16.msra.mxu1 %v2308_v22  ;;  %2158 = vmatpush3.bf16.msra.mxu0 %v2310_v23  ;;  %v2391_v22 = vld [vmem:[%s3111_s0 + $0x38] ss:$24 sps:$4 sm:$0xff]  }
  0x24   :  { %1022 = vmatprep.mubr.bf16.mxu0 %v2311_v24  ;;  %1086 = vmatprep.mubr.bf16.mxu1 %v2313_v25  ;;  %v2392_v23 = vld [vmem:[%s3111_s0 + $0x40] ss:$24 sps:$4 sm:$0xff]   ;;  %v2393_v24 = vld [vmem:[%s3111_s0 + $0x6c] ss:$24 sps:$4 sm:$0xff]  }
  0x25   :  { %2047 = vmatprep.subr.bf16.mxu1 %v2317_v26  ;;  %2159 = vmatprep.subr.bf16.mxu0 %v2319_v28  ;;  %v2395_v25 = vld [vmem:[%s3111_s0 + $0x74] ss:$24 sps:$4 sm:$0xff]   ;;  %v2397_v26 = vld [vmem:[%s3111_s0 + $0x68] ss:$24 sps:$4 sm:$0xff]  }
  0x26   :  { %v2399_v28 = vld [vmem:[%s3111_s0 + $0x9c] ss:$24 sps:$4 sm:$0xff]  }
  0x27   :  { %2048 = vmatpush3.bf16.msra.mxu1 %v2318_v27  ;;  %2160 = vmatpush3.bf16.msra.mxu0 %v2320_v29  ;;  %v2398_v27 = vld [vmem:[%s3111_s0 + $0x70] ss:$24 sps:$4 sm:$0xff]   ;;  %v2401_v29 = vld [vmem:[%s3111_s0 + $0xa4] ss:$24 sps:$4 sm:$0xff]  }
  0x28   :  { %2049 = vmatprep.subr.bf16.mxu1 %v2327_v30  ;;  %2161 = vmatprep.subr.bf16.mxu0 %v2329_v33  ;;  %v2403_v30 = vld [vmem:[%s3111_s0 + $0x98] ss:$24 sps:$4 sm:$0xff]   ;;  %v2407_v33 = vld [vmem:[%s3111_s0 + $0xd4] ss:$24 sps:$4 sm:$0xff]  }
  0x2a   :  { %1023 = vmatmul.mubr.bf16.gmra.mrb[4].mxu0 %v2315_v31  ;;  %1087 = vmatmul.mubr.bf16.gmra.mrb[4].mxu1 %v2316_v32  ;;  %v2404_v31 = vld [vmem:[%s3111_s0 + $0xa0] ss:$24 sps:$4 sm:$0xff]   ;;  %v2405_v32 = vld [vmem:[%s3111_s0 + $0xcc] ss:$24 sps:$4 sm:$0xff]  }
  0x2b   :  { %1030 = vmatprep.mubr.bf16.mxu0 %v2321_v34  ;;  %1094 = vmatprep.mubr.bf16.mxu1 %v2323_v35  ;;  %v2409_v34 = vld [vmem:[%s3111_s0 + $0xc8] ss:$24 sps:$4 sm:$0xff]  }
  0x2c   :  { %2050 = vmatpush3.bf16.msra.mxu1 %v2328_v36  ;;  %2162 = vmatpush3.bf16.msra.mxu0 %v2330_v37  ;;  %v2410_v35 = vld [vmem:[%s3111_s0 + $0xd0] ss:$24 sps:$4 sm:$0xff]   ;;  %v2411_v36 = vld [vmem:[%s3111_s0 + $0xfc] ss:$24 sps:$4 sm:$0xff]  }
  0x2d   :  { %2051 = vmatprep.subr.bf16.mxu1 %v2337_v38  ;;  %2163 = vmatprep.subr.bf16.mxu0 %v2339_v39  ;;  %v2413_v37 = vld [vmem:[%s3111_s0 + $0x104] ss:$24 sps:$4 sm:$0xff]   ;;  %v2415_v38 = vld [vmem:[%s3111_s0 + $0xf8] ss:$24 sps:$4 sm:$0xff]  }
  0x2e   :  { %v2416_v39 = vld [vmem:[%s3111_s0 + $0x100] ss:$24 sps:$4 sm:$0xff]  }
  0x30   :  { %2052 = vmatpush3.bf16.msra.mxu1 %v2338_v42  ;;  %2164 = vmatpush3.bf16.msra.mxu0 %v2340_v43  ;;  %v2421_v42 = vld [vmem:[%s3111_s0 + $0x128] ss:$24 sps:$4 sm:$0xff]  }
  0x31   :  { %2053 = vmatprep.subr.bf16.mxu1 %v2347_v46  ;;  %2165 = vmatprep.subr.bf16.mxu0 %v2349_v48  ;;  %v2422_v43 = vld [vmem:[%s3111_s0 + $0x130] ss:$24 sps:$4 sm:$0xff]   ;;  %v2429_v48 = vld [vmem:[%s3111_s0 + $0x18c] ss:$24 sps:$4 sm:$0xff]  }
  0x32   :  { %1031 = vmatmul.mubr.bf16.gmra.mrb[8].mxu0 %v2325_v40  ;;  %1095 = vmatmul.mubr.bf16.gmra.mrb[8].mxu1 %v2326_v41  ;;  %v2417_v40 = vld [vmem:[%s3111_s0 + $0x12c] ss:$24 sps:$4 sm:$0xff]   ;;  %v2427_v46 = vld [vmem:[%s3111_s0 + $0x158] ss:$24 sps:$4 sm:$0xff]  }
  0x33   :  { %1038 = vmatprep.mubr.bf16.mxu0 %v2331_v44  ;;  %1102 = vmatprep.mubr.bf16.mxu1 %v2333_v45  ;;  %v2419_v41 = vld [vmem:[%s3111_s0 + $0x134] ss:$24 sps:$4 sm:$0xff]   ;;  %v2425_v45 = vld [vmem:[%s3111_s0 + $0x164] ss:$24 sps:$4 sm:$0xff]  }
  0x34   :  { %2054 = vmatpush3.bf16.msra.mxu1 %v2348_v47  ;;  %2166 = vmatpush3.bf16.msra.mxu0 %v2350_v49  ;;  %v2423_v44 = vld [vmem:[%s3111_s0 + $0x15c] ss:$24 sps:$4 sm:$0xff]   ;;  %v2428_v47 = vld [vmem:[%s3111_s0 + $0x160] ss:$24 sps:$4 sm:$0xff]  }
  0x35   :  { %2055 = vmatprep.subr.bf16.mxu1 %v2357_v52  ;;  %2167 = vmatprep.subr.bf16.mxu0 %v2359_v56  ;;  %v2431_v49 = vld [vmem:[%s3111_s0 + $0x194] ss:$24 sps:$4 sm:$0xff]  }
  0x36   :  { %v2435_v52 = vld [vmem:[%s3111_s0 + $0x1bc] ss:$24 sps:$4 sm:$0xff]   ;;  %v2441_v56 = vld [vmem:[%s3111_s0 + $0x1ec] ss:$24 sps:$4 sm:$0xff]  }
  0x38   :  { %2056 = vmatpush3.bf16.msra.mxu1 %v2358_v55  ;;  %2168 = vmatpush3.bf16.msra.mxu0 %v2360_v57  ;;  %v2440_v55 = vld [vmem:[%s3111_s0 + $0x1c0] ss:$24 sps:$4 sm:$0xff]   ;;  %v2443_v57 = vld [vmem:[%s3111_s0 + $0x1f4] ss:$24 sps:$4 sm:$0xff]  }
  0x39   :  { %2057 = vmatprep.subr.bf16.mxu1 %v2367_v58  ;;  %2169 = vmatprep.subr.bf16.mxu0 %v2369_v63  ;;  %v2445_v58 = vld [vmem:[%s3111_s0 + $0x1e8] ss:$24 sps:$4 sm:$0xff]  }
  0x3a   :  { %1039 = vmatmul.mubr.bf16.gmra.mrb[12].mxu0 %v2335_v50  ;;  %1103 = vmatmul.mubr.bf16.gmra.mrb[12].mxu1 %v2336_v51  ;;  %v2433_v50 = vld [vmem:[%s3111_s0 + $0x188] ss:$24 sps:$4 sm:$0xff]  }
  0x3b   :  { %1046 = vmatprep.mubr.bf16.mxu0 %v2341_v53  ;;  %1110 = vmatprep.mubr.bf16.mxu1 %v2343_v54  ;;  %v2434_v51 = vld [vmem:[%s3111_s0 + $0x190] ss:$24 sps:$4 sm:$0xff]   ;;  %v2437_v53 = vld [vmem:[%s3111_s0 + $0x1c4] ss:$24 sps:$4 sm:$0xff]   ;;  %v2452_v63 = vld [vmem:[%s3111_s0 + $0x220] ss:$24 sps:$4 sm:$0xff]  }
  0x3c   :  { %2058 = vmatpush3.bf16.msra.mxu1 %v2368_v61  ;;  %2170 = vmatpush3.bf16.msra.mxu0 %v2370_v0  ;;  %v2439_v54 = vld [vmem:[%s3111_s0 + $0x1b8] ss:$24 sps:$4 sm:$0xff]   ;;  %v2449_v61 = vld [vmem:[%s3111_s0 + $0x224] ss:$24 sps:$4 sm:$0xff]  }
  0x3d   :  { %2059 = vmatprep.subr.bf16.mxu1 %v2377_v2  ;;  %2171 = vmatprep.subr.bf16.mxu0 %v2379_v4  ;;  %v2453_v0 = vld [vmem:[%s3111_s0 + $0x24c] ss:$24 sps:$4 sm:$0xff]   ;;  %v2457_v2 = vld [vmem:[%s3111_s0 + $0x248] ss:$24 sps:$4 sm:$0xff]   ;;  %v2459_v4 = vld [vmem:[%s3111_s0 + $0x27c] ss:$24 sps:$4 sm:$0xff]  }
  0x40   :  { %2060 = vmatpush3.bf16.msra.mxu1 %v2378_v3  ;;  %2172 = vmatpush3.bf16.msra.mxu0 %v2380_v5  ;;  %v2458_v3 = vld [vmem:[%s3111_s0 + $0x250] ss:$24 sps:$4 sm:$0xff]   ;;  %v2461_v5 = vld [vmem:[%s3111_s0 + $0x284] ss:$24 sps:$4 sm:$0xff]  }
  0x42   :  { %1047 = vmatmul.mubr.bf16.gmra.mrb[16].mxu0 %v2345_v59  ;;  %1111 = vmatmul.mubr.bf16.gmra.mrb[16].mxu1 %v2346_v60  ;;  %v2446_v59 = vld [vmem:[%s3111_s0 + $0x1f0] ss:$24 sps:$4 sm:$0xff]   ;;  %v2447_v60 = vld [vmem:[%s3111_s0 + $0x21c] ss:$24 sps:$4 sm:$0xff]  }
  0x43   :  { %1054 = vmatprep.mubr.bf16.mxu0 %v2351_v62  ;;  %1118 = vmatprep.mubr.bf16.mxu1 %v2353_v1  ;;  %v2451_v62 = vld [vmem:[%s3111_s0 + $0x218] ss:$24 sps:$4 sm:$0xff]   ;;  %v2455_v1 = vld [vmem:[%s3111_s0 + $0x254] ss:$24 sps:$4 sm:$0xff]  }
  0x4a   :  { %1055 = vmatmul.mubr.bf16.gmra.mrb[20].mxu0 %v2355_v6  ;;  %1119 = vmatmul.mubr.bf16.gmra.mrb[20].mxu1 %v2356_v7  ;;  %v2463_v6 = vld [vmem:[%s3111_s0 + $0x278] ss:$24 sps:$4 sm:$0xff]  }
  0x4b   :  { %1062 = vmatprep.mubr.bf16.mxu0 %v2361_v8  ;;  %1126 = vmatprep.mubr.bf16.mxu1 %v2363_v9  ;;  %v2464_v7 = vld [vmem:[%s3111_s0 + $0x280] ss:$24 sps:$4 sm:$0xff]   ;;  %v2465_v8 = vld [vmem:[%s3111_s0 + $0x2ac] ss:$24 sps:$4 sm:$0xff]  }
  0x4c   :  { %v2467_v9 = vld [vmem:[%s3111_s0 + $0x2b4] ss:$24 sps:$4 sm:$0xff]  }
  0x52   :  { %1063 = vmatmul.mubr.bf16.gmra.mrb[24].mxu0 %v2365_v10  ;;  %1127 = vmatmul.mubr.bf16.gmra.mrb[24].mxu1 %v2366_v11  ;;  %v2469_v10 = vld [vmem:[%s3111_s0 + $0x2a8] ss:$24 sps:$4 sm:$0xff]  }
  0x53   :  { %1070 = vmatprep.mubr.bf16.mxu0 %v2371_v12  ;;  %1134 = vmatprep.mubr.bf16.mxu1 %v2373_v13  ;;  %v2470_v11 = vld [vmem:[%s3111_s0 + $0x2b0] ss:$24 sps:$4 sm:$0xff]   ;;  %v2471_v12 = vld [vmem:[%s3111_s0 + $0x2dc] ss:$24 sps:$4 sm:$0xff]  }
  0x54   :  { %v2473_v13 = vld [vmem:[%s3111_s0 + $0x2e4] ss:$24 sps:$4 sm:$0xff]  }
  0x5a   :  { %1071 = vmatmul.mubr.bf16.gmra.mrb[28].mxu0 %v2375_v14  ;;  %1135 = vmatmul.mubr.bf16.gmra.mrb[28].mxu1 %v2376_v15  ;;  %v2475_v14 = vld [vmem:[%s3111_s0 + $0x2d8] ss:$24 sps:$4 sm:$0xff]  }
  0x5b   :  { %1175 = vmatprep.mubr.bf16.mxu1 %v2383_v16  ;;  %1336 = vmatprep.mubr.bf16.mxu0 %v2386_v17  ;;  %v2476_v15 = vld [vmem:[%s3111_s0 + $0x2e0] ss:$24 sps:$4 sm:$0xff]  }
  0x62   :  { %1176 = vmatmul.mubr.bf16.vlgmr.msra.gmra.mrb[32].mxu1 %v2381_v18  ;;  %1337 = vmatmul.mubr.bf16.vlgmr.msra.gmra.mrb[32].mxu0 %v2384_v19  ;;  %v2932_v18 = vld [vmem:[%s3112_s2] ss:$0 sm:$0xff] }
  0x63   :  { %1183 = vmatprep.mubr.bf16.mxu1 %v2387_v20  ;;  %1344 = vmatprep.mubr.bf16.mxu0 %v2389_v21 }
  0x6a   :  { %1184 = vmatmul.mubr.bf16.gmra.mrb[36].mxu1 %v2391_v22  ;;  %1345 = vmatmul.mubr.bf16.gmra.mrb[36].mxu0 %v2392_v23 }
  0x6b   :  { %1191 = vmatprep.mubr.bf16.mxu1 %v2393_v24  ;;  %1352 = vmatprep.mubr.bf16.mxu0 %v2395_v25 }
  0x72   :  { %1192 = vmatmul.mubr.bf16.gmra.mrb[40].mxu1 %v2397_v26  ;;  %1353 = vmatmul.mubr.bf16.gmra.mrb[40].mxu0 %v2398_v27 }
  0x73   :  { %1199 = vmatprep.mubr.bf16.mxu1 %v2399_v28  ;;  %1360 = vmatprep.mubr.bf16.mxu0 %v2401_v29 }
  0x7a   :  { %1200 = vmatmul.mubr.bf16.gmra.mrb[44].mxu1 %v2403_v30  ;;  %1361 = vmatmul.mubr.bf16.gmra.mrb[44].mxu0 %v2404_v31 }
  0x7b   :  { %1207 = vmatprep.mubr.bf16.mxu1 %v2405_v32  ;;  %1368 = vmatprep.mubr.bf16.mxu0 %v2407_v33 }
  0x82   :  { %1208 = vmatmul.mubr.bf16.gmra.mrb[48].mxu1 %v2409_v34  ;;  %1369 = vmatmul.mubr.bf16.gmra.mrb[48].mxu0 %v2410_v35 }
  0x83   :  { %1215 = vmatprep.mubr.bf16.mxu1 %v2411_v36  ;;  %1376 = vmatprep.mubr.bf16.mxu0 %v2413_v37 }
  0x8a   :  { %1216 = vmatmul.mubr.bf16.gmra.mrb[52].mxu1 %v2415_v38  ;;  %1377 = vmatmul.mubr.bf16.gmra.mrb[52].mxu0 %v2416_v39 }
  0x8b   :  { %1223 = vmatprep.mubr.bf16.mxu1 %v2417_v40  ;;  %1384 = vmatprep.mubr.bf16.mxu0 %v2419_v41 }
  0x92   :  { %1224 = vmatmul.mubr.bf16.gmra.mrb[56].mxu1 %v2421_v42  ;;  %1385 = vmatmul.mubr.bf16.gmra.mrb[56].mxu0 %v2422_v43 }
  0x93   :  { %1231 = vmatprep.mubr.bf16.mxu1 %v2423_v44  ;;  %1392 = vmatprep.mubr.bf16.mxu0 %v2425_v45 }
  0x9a   :  { %1232 = vmatmul.mubr.bf16.gmra.mrb[60].mxu1 %v2427_v46  ;;  %1393 = vmatmul.mubr.bf16.gmra.mrb[60].mxu0 %v2428_v47 }
  0x9b   :  { %1239 = vmatprep.mubr.bf16.mxu1 %v2429_v48  ;;  %1400 = vmatprep.mubr.bf16.mxu0 %v2431_v49 }
  0xa2   :  { %1240 = vmatmul.mubr.bf16.gmra.mrb[64].mxu1 %v2433_v50  ;;  %1401 = vmatmul.mubr.bf16.gmra.mrb[64].mxu0 %v2434_v51 }
  0xa3   :  { %1247 = vmatprep.mubr.bf16.mxu1 %v2435_v52  ;;  %1408 = vmatprep.mubr.bf16.mxu0 %v2437_v53 }
  0xaa   :  { %1248 = vmatmul.mubr.bf16.gmra.mrb[68].mxu1 %v2439_v54  ;;  %1409 = vmatmul.mubr.bf16.gmra.mrb[68].mxu0 %v2440_v55 }
  0xab   :  { %1255 = vmatprep.mubr.bf16.mxu1 %v2441_v56  ;;  %1416 = vmatprep.mubr.bf16.mxu0 %v2443_v57 }
  0xb2   :  { %1256 = vmatmul.mubr.bf16.gmra.mrb[72].mxu1 %v2445_v58  ;;  %1417 = vmatmul.mubr.bf16.gmra.mrb[72].mxu0 %v2446_v59 }
  0xb3   :  { %1263 = vmatprep.mubr.bf16.mxu1 %v2447_v60  ;;  %1424 = vmatprep.mubr.bf16.mxu0 %v2449_v61 }
  0xba   :  { %1264 = vmatmul.mubr.bf16.gmra.mrb[76].mxu1 %v2451_v62  ;;  %1425 = vmatmul.mubr.bf16.gmra.mrb[76].mxu0 %v2452_v63 }
  0xbb   :  { %1271 = vmatprep.mubr.bf16.mxu1 %v2453_v0  ;;  %1432 = vmatprep.mubr.bf16.mxu0 %v2455_v1 }
  0xc2   :  { %1272 = vmatmul.mubr.bf16.gmra.mrb[80].mxu1 %v2457_v2  ;;  %1433 = vmatmul.mubr.bf16.gmra.mrb[80].mxu0 %v2458_v3 }
  0xc3   :  { %1279 = vmatprep.mubr.bf16.mxu1 %v2459_v4  ;;  %1440 = vmatprep.mubr.bf16.mxu0 %v2461_v5 }
  0xca   :  { %1280 = vmatmul.mubr.bf16.gmra.mrb[84].mxu1 %v2463_v6  ;;  %1441 = vmatmul.mubr.bf16.gmra.mrb[84].mxu0 %v2464_v7 }
  0xcb   :  { %1287 = vmatprep.mubr.bf16.mxu1 %v2465_v8  ;;  %1448 = vmatprep.mubr.bf16.mxu0 %v2467_v9 }
  0xd2   :  { %1288 = vmatmul.mubr.bf16.gmra.mrb[88].mxu1 %v2469_v10  ;;  %1449 = vmatmul.mubr.bf16.gmra.mrb[88].mxu0 %v2470_v11 }
  0xd3   :  { %1295 = vmatprep.mubr.bf16.mxu1 %v2471_v12  ;;  %1456 = vmatprep.mubr.bf16.mxu0 %v2473_v13 }
  0xda   :  { %1296 = vmatmul.mubr.bf16.gmra.mrb[92].mxu1 %v2475_v14  ;;  %1457 = vmatmul.mubr.bf16.gmra.mrb[92].mxu0 %v2476_v15 }
  0xf5   :  { %v1949_v16 = vpop.f32.mrb[0].mxu0  ;;  %v1997_v17 = vpop.f32.mrb[0].mxu1 }
  0xf6   :  { %v1950_v19 = vpop.f32.mrb[1].mxu0  ;;  %v1998_v20 = vpop.f32.mrb[1].mxu1 }
  0xf7   :  { %v2934_v21 = vadd.f32 %v1950_v19, %v1949_v16  ;;  %v1999_v22 = vadd.f32 %v1998_v20, %v1997_v17  ;;  %v1952_v23 = vpop.f32.mrb[2].mxu0  ;;  %v2000_v24 = vpop.f32.mrb[2].mxu1 }
  0xf8   :  { %v1953_v25 = vpop.f32.mrb[3].mxu0  ;;  %v2001_v26 = vpop.f32.mrb[3].mxu1 }
  0xf9   :  { %v2937_v27 = vadd.f32 %v1999_v22, %v2932_v18  ;;  %v2939_v28 = vadd.f32 %v1953_v25, %v1952_v23  ;;  %v2002_v29 = vadd.f32 %v2001_v26, %v2000_v24 }
  0xfb   :  { %v2942_v30 = vadd.f32 %v2002_v29, %v2932_v18 }
  0xfd   :  { %v1955_v31 = vpop.f32.mrb[4].mxu0  ;;  %v2003_v32 = vpop.f32.mrb[4].mxu1 }
  0xfe   :  { %v1956_v33 = vpop.f32.mrb[5].mxu0  ;;  %v2004_v34 = vpop.f32.mrb[5].mxu1 }
  0xff   :  { %v2944_v35 = vadd.f32 %v1956_v33, %v1955_v31  ;;  %v2005_v36 = vadd.f32 %v2004_v34, %v2003_v32  ;;  %v1958_v37 = vpop.f32.mrb[6].mxu0  ;;  %v2006_v38 = vpop.f32.mrb[6].mxu1 }
 0x100   :  { %v1959_v39 = vpop.f32.mrb[7].mxu0  ;;  %v2007_v40 = vpop.f32.mrb[7].mxu1 }
 0x101   :  { %v2947_v41 = vadd.f32 %v2005_v36, %v2932_v18  ;;  %v2949_v42 = vadd.f32 %v1959_v39, %v1958_v37  ;;  %v2008_v43 = vadd.f32 %v2007_v40, %v2006_v38 }
 0x103   :  { %v2952_v44 = vadd.f32 %v2008_v43, %v2932_v18 }
 0x105   :  { %v1961_v45 = vpop.f32.mrb[8].mxu0  ;;  %v2009_v46 = vpop.f32.mrb[8].mxu1 }
 0x106   :  { %v1962_v47 = vpop.f32.mrb[9].mxu0  ;;  %v2010_v48 = vpop.f32.mrb[9].mxu1 }
 0x107   :  { %v2954_v49 = vadd.f32 %v1962_v47, %v1961_v45  ;;  %v2011_v50 = vadd.f32 %v2010_v48, %v2009_v46  ;;  %v1964_v51 = vpop.f32.mrb[10].mxu0  ;;  %v2012_v52 = vpop.f32.mrb[10].mxu1 }
 0x108   :  { %v1965_v53 = vpop.f32.mrb[11].mxu0  ;;  %v2013_v54 = vpop.f32.mrb[11].mxu1 }
 0x109   :  { %v2957_v55 = vadd.f32 %v2011_v50, %v2932_v18  ;;  %v2959_v56 = vadd.f32 %v1965_v53, %v1964_v51  ;;  %v2014_v57 = vadd.f32 %v2013_v54, %v2012_v52 }
 0x10b   :  { %v2962_v58 = vadd.f32 %v2014_v57, %v2932_v18 }
 0x10d   :  { %v1967_v59 = vpop.f32.mrb[12].mxu0  ;;  %v2015_v60 = vpop.f32.mrb[12].mxu1 }
 0x10e   :  { %v1968_v61 = vpop.f32.mrb[13].mxu0  ;;  %v2016_v62 = vpop.f32.mrb[13].mxu1 }
 0x10f   :  { %v2964_v63 = vadd.f32 %v1968_v61, %v1967_v59  ;;  %v2017_v0 = vadd.f32 %v2016_v62, %v2015_v60  ;;  %v1970_v1 = vpop.f32.mrb[14].mxu0  ;;  %v2018_v2 = vpop.f32.mrb[14].mxu1 }
 0x110   :  { %v1971_v3 = vpop.f32.mrb[15].mxu0  ;;  %v2019_v4 = vpop.f32.mrb[15].mxu1 }
 0x111   :  { %v2967_v5 = vadd.f32 %v2017_v0, %v2932_v18  ;;  %v2969_v6 = vadd.f32 %v1971_v3, %v1970_v1  ;;  %v2020_v7 = vadd.f32 %v2019_v4, %v2018_v2 }
 0x113   :  { %v2972_v8 = vadd.f32 %v2020_v7, %v2932_v18 }
 0x115   :  { %v1973_v9 = vpop.f32.mrb[16].mxu0  ;;  %v2021_v10 = vpop.f32.mrb[16].mxu1 }
 0x116   :  { %v1974_v11 = vpop.f32.mrb[17].mxu0  ;;  %v2022_v12 = vpop.f32.mrb[17].mxu1 }
 0x117   :  { %v2974_v13 = vadd.f32 %v1974_v11, %v1973_v9  ;;  %v2023_v14 = vadd.f32 %v2022_v12, %v2021_v10  ;;  %v1976_v15 = vpop.f32.mrb[18].mxu0  ;;  %v2024_v16 = vpop.f32.mrb[18].mxu1 }
 0x118   :  { %v1977_v17 = vpop.f32.mrb[19].mxu0  ;;  %v2025_v19 = vpop.f32.mrb[19].mxu1 }
 0x119   :  { %v2977_v20 = vadd.f32 %v2023_v14, %v2932_v18  ;;  %v2979_v22 = vadd.f32 %v1977_v17, %v1976_v15  ;;  %v2026_v23 = vadd.f32 %v2025_v19, %v2024_v16 }
 0x11b   :  { %v2982_v24 = vadd.f32 %v2026_v23, %v2932_v18 }
 0x11d   :  { %v1979_v25 = vpop.f32.mrb[20].mxu0  ;;  %v2027_v26 = vpop.f32.mrb[20].mxu1 }
 0x11e   :  { %v1980_v29 = vpop.f32.mrb[21].mxu0  ;;  %v2028_v31 = vpop.f32.mrb[21].mxu1 }
 0x11f   :  { %v2984_v32 = vadd.f32 %v1980_v29, %v1979_v25  ;;  %v2029_v33 = vadd.f32 %v2028_v31, %v2027_v26  ;;  %v1982_v34 = vpop.f32.mrb[22].mxu0  ;;  %v2030_v36 = vpop.f32.mrb[22].mxu1  ;;  %v1017_v31 = vadd.f32 %v2934_v21, %v2932_v18  ;;  %v1025_v21 = vadd.f32 %v2944_v35, %v2932_v18 }
 0x120   :  { %v1983_v37 = vpop.f32.mrb[23].mxu0  ;;  %v2031_v38 = vpop.f32.mrb[23].mxu1 }
 0x121   :  { %v2987_v39 = vadd.f32 %v2029_v33, %v2932_v18  ;;  %v2989_v40 = vadd.f32 %v1983_v37, %v1982_v34  ;;  %v2032_v43 = vadd.f32 %v2031_v38, %v2030_v36 }
 0x123   :  { %v2992_v45 = vadd.f32 %v2032_v43, %v2932_v18 }
 0x125   :  { %v1985_v46 = vpop.f32.mrb[24].mxu0  ;;  %v2033_v47 = vpop.f32.mrb[24].mxu1 }
 0x126   :  { %v1986_v48 = vpop.f32.mrb[25].mxu0  ;;  %v2034_v50 = vpop.f32.mrb[25].mxu1 }
 0x127   :  { %v2994_v51 = vadd.f32 %v1986_v48, %v1985_v46  ;;  %v2035_v52 = vadd.f32 %v2034_v50, %v2033_v47  ;;  %v1988_v53 = vpop.f32.mrb[26].mxu0  ;;  %v2036_v54 = vpop.f32.mrb[26].mxu1  ;;  %v1020_v46 = vadd.f32 %v2939_v28, %v2932_v18 }
 0x128   :  { %v1989_v57 = vpop.f32.mrb[27].mxu0  ;;  %v2037_v59 = vpop.f32.mrb[27].mxu1 }
 0x129   :  { %v2997_v60 = vadd.f32 %v2035_v52, %v2932_v18  ;;  %v2999_v61 = vadd.f32 %v1989_v57, %v1988_v53  ;;  %v2038_v62 = vadd.f32 %v2037_v59, %v2036_v54 }
 0x12b   :  { %v3002_v0 = vadd.f32 %v2038_v62, %v2932_v18 }
 0x12d   :  { %v1991_v1 = vpop.f32.mrb[28].mxu0  ;;  %v2039_v2 = vpop.f32.mrb[28].mxu1 }
 0x12e   :  { %v1992_v3 = vpop.f32.mrb[29].mxu0  ;;  %v2040_v4 = vpop.f32.mrb[29].mxu1 }
 0x12f   :  { %v3004_v7 = vadd.f32 %v1992_v3, %v1991_v1  ;;  %v2041_v9 = vadd.f32 %v2040_v4, %v2039_v2  ;;  %v1994_v10 = vpop.f32.mrb[30].mxu0  ;;  %v2042_v11 = vpop.f32.mrb[30].mxu1 }
 0x130   :  { %v1995_v12 = vpop.f32.mrb[31].mxu0  ;;  %v2043_v14 = vpop.f32.mrb[31].mxu1 }
 0x131   :  { %v3007_v15 = vadd.f32 %v2041_v9, %v2932_v18  ;;  %v3009_v16 = vadd.f32 %v1995_v12, %v1994_v10  ;;  %v2044_v17 = vadd.f32 %v2043_v14, %v2042_v11  ;;  %v1028_v12 = vadd.f32 %v2949_v42, %v2932_v18 }
 0x133   :  { %v3012_v19 = vadd.f32 %v2044_v17, %v2932_v18 }
 0x135   :  { %v2061_v23 = vpop.f32.mrb[32].mxu1  ;;  %v2173_v25 = vpop.f32.mrb[32].mxu0 }
 0x136   :  { %v2062_v26 = vpop.f32.mrb[33].mxu1  ;;  %v2174_v29 = vpop.f32.mrb[33].mxu0 }
 0x137   :  { %v2063_v33 = vadd.f32 %v2062_v26, %v2061_v23  ;;  %v2175_v34 = vadd.f32 %v2174_v29, %v2173_v25  ;;  %v2064_v36 = vpop.f32.mrb[34].mxu1  ;;  %v2176_v37 = vpop.f32.mrb[34].mxu0 }
 0x138   :  { %v2065_v38 = vpop.f32.mrb[35].mxu1  ;;  %v2177_v43 = vpop.f32.mrb[35].mxu0 }
 0x139   :  { %v1178_v47 = vadd.f32 %v2063_v33, %v1017_v31  ;;  %v2066_v48 = vadd.f32 %v2065_v38, %v2064_v36  ;;  %v2178_v50 = vadd.f32 %v2177_v43, %v2176_v37  ;;  %v1033_v36 = vadd.f32 %v2954_v49, %v2932_v18 }
 0x13b   :  { %v1339_v52 = vadd.f32 %v2175_v34, %v1178_v47  ;;  %v1181_v53 = vadd.f32 %v2066_v48, %v1020_v46 }
 0x13d   :  { %v1342_v54 = vadd.f32 %v2178_v50, %v1181_v53  ;;  %v2067_v57 = vpop.f32.mrb[36].mxu1  ;;  %v2179_v59 = vpop.f32.mrb[36].mxu0  ;;  %v1036_v50 = vadd.f32 %v2959_v56, %v2932_v18 }
 0x13e   :  { %v2068_v62 = vpop.f32.mrb[37].mxu1  ;;  %v2180_v1 = vpop.f32.mrb[37].mxu0 }
 0x13f   :  { %v1841_v2 = vpack.c.bf16 %v1342_v54, %v1339_v52  ;;  %v2069_v3 = vadd.f32 %v2068_v62, %v2067_v57  ;;  %v2181_v4 = vadd.f32 %v2180_v1, %v2179_v59  ;;  %v2070_v9 = vpop.f32.mrb[38].mxu1  ;;  %v2182_v10 = vpop.f32.mrb[38].mxu0 }
 0x140   :  { %v2071_v11 = vpop.f32.mrb[39].mxu1  ;;  %v2183_v28 = vpop.f32.mrb[39].mxu0 }
 0x141   :  { %1842 = vst [vmem:[%s3113_s3] sm:$0xff] %v1841_v2   ;;  %v1186_v14 = vadd.f32 %v2069_v3, %v1025_v21  ;;  %v2072_v17 = vadd.f32 %v2071_v11, %v2070_v9  ;;  %v2184_v23 = vadd.f32 %v2183_v28, %v2182_v10  ;;  %v1041_v3 = vadd.f32 %v2964_v63, %v2932_v18 }
 0x143   :  { %v1347_v25 = vadd.f32 %v2181_v4, %v1186_v14  ;;  %v1189_v26 = vadd.f32 %v2072_v17, %v1028_v12  ;;  %v1044_v14 = vadd.f32 %v2969_v6, %v2932_v18 }
 0x145   :  { %v1350_v35 = vadd.f32 %v2184_v23, %v1189_v26  ;;  %v2073_v29 = vpop.f32.mrb[40].mxu1  ;;  %v2185_v31 = vpop.f32.mrb[40].mxu0 }
 0x146   :  { %v2074_v33 = vpop.f32.mrb[41].mxu1  ;;  %v2186_v34 = vpop.f32.mrb[41].mxu0 }
 0x147   :  { %v1846_v37 = vpack.c.bf16 %v1350_v35, %v1347_v25  ;;  %v2075_v38 = vadd.f32 %v2074_v33, %v2073_v29  ;;  %v2187_v42 = vadd.f32 %v2186_v34, %v2185_v31  ;;  %v2076_v43 = vpop.f32.mrb[42].mxu1  ;;  %v2188_v46 = vpop.f32.mrb[42].mxu0 }
 0x148   :  { %v2077_v47 = vpop.f32.mrb[43].mxu1  ;;  %v2189_v48 = vpop.f32.mrb[43].mxu0 }
 0x149   :  { %1918 = vst [vmem:[%s3113_s3 + $0x8] sm:$0xff] %v1846_v37   ;;  %v1194_v52 = vadd.f32 %v2075_v38, %v1033_v36  ;;  %v2078_v53 = vadd.f32 %v2077_v47, %v2076_v43  ;;  %v2190_v54 = vadd.f32 %v2189_v48, %v2188_v46  ;;  %v1049_v36 = vadd.f32 %v2974_v13, %v2932_v18 }
 0x14a   :  { %v1052_v48 = vadd.f32 %v2979_v22, %v2932_v18 }
 0x14b   :  { %v1355_v57 = vadd.f32 %v2187_v42, %v1194_v52  ;;  %v1197_v59 = vadd.f32 %v2078_v53, %v1036_v50 }
 0x14d   :  { %v1358_v49 = vadd.f32 %v2190_v54, %v1197_v59  ;;  %v2079_v62 = vpop.f32.mrb[44].mxu1  ;;  %v2191_v1 = vpop.f32.mrb[44].mxu0 }
 0x14e   :  { %v2080_v21 = vpop.f32.mrb[45].mxu1  ;;  %v2192_v2 = vpop.f32.mrb[45].mxu0 }
 0x14f   :  { %v1851_v4 = vpack.c.bf16 %v1358_v49, %v1355_v57  ;;  %v2081_v9 = vadd.f32 %v2080_v21, %v2079_v62  ;;  %v2193_v56 = vadd.f32 %v2192_v2, %v2191_v1  ;;  %v2082_v10 = vpop.f32.mrb[46].mxu1  ;;  %v2194_v11 = vpop.f32.mrb[46].mxu0  ;;  %v1057_v21 = vadd.f32 %v2984_v32, %v2932_v18 }
 0x150   :  { %v2083_v28 = vpop.f32.mrb[47].mxu1  ;;  %v2195_v12 = vpop.f32.mrb[47].mxu0 }
 0x151   :  { %1919 = vst [vmem:[%s3113_s3 + $0x10] sm:$0xff] %v1851_v4   ;;  %v1202_v17 = vadd.f32 %v2081_v9, %v1041_v3  ;;  %v2084_v23 = vadd.f32 %v2083_v28, %v2082_v10  ;;  %v2196_v25 = vadd.f32 %v2195_v12, %v2194_v11  ;;  %v1060_v11 = vadd.f32 %v2989_v40, %v2932_v18 }
 0x153   :  { %v1363_v26 = vadd.f32 %v2193_v56, %v1202_v17  ;;  %v1205_v35 = vadd.f32 %v2084_v23, %v1044_v14 }
 0x155   :  { %v1366_v63 = vadd.f32 %v2196_v25, %v1205_v35  ;;  %v2085_v29 = vpop.f32.mrb[48].mxu1  ;;  %v2197_v31 = vpop.f32.mrb[48].mxu0 }
 0x156   :  { %v2086_v33 = vpop.f32.mrb[49].mxu1  ;;  %v2198_v34 = vpop.f32.mrb[49].mxu0 }
 0x157   :  { %v1856_v37 = vpack.c.bf16 %v1366_v63, %v1363_v26  ;;  %v2087_v38 = vadd.f32 %v2086_v33, %v2085_v29  ;;  %v2199_v6 = vadd.f32 %v2198_v34, %v2197_v31  ;;  %v2088_v42 = vpop.f32.mrb[50].mxu1  ;;  %v2200_v43 = vpop.f32.mrb[50].mxu0  ;;  %v1065_v29 = vadd.f32 %v2994_v51, %v2932_v18 }
 0x158   :  { %v2089_v46 = vpop.f32.mrb[51].mxu1  ;;  %v2201_v47 = vpop.f32.mrb[51].mxu0 }
 0x159   :  { %1920 = vst [vmem:[%s3113_s3 + $0x18] sm:$0xff] %v1856_v37   ;;  %v1210_v50 = vadd.f32 %v2087_v38, %v1049_v36  ;;  %v2090_v52 = vadd.f32 %v2089_v46, %v2088_v42  ;;  %v2202_v53 = vadd.f32 %v2201_v47, %v2200_v43 }
 0x15b   :  { %v1371_v54 = vadd.f32 %v2199_v6, %v1210_v50  ;;  %v1213_v57 = vadd.f32 %v2090_v52, %v1052_v48  ;;  %v1068_v6 = vadd.f32 %v2999_v61, %v2932_v18 }
 0x15d   :  { %v1374_v13 = vadd.f32 %v2202_v53, %v1213_v57  ;;  %v2091_v59 = vpop.f32.mrb[52].mxu1  ;;  %v2203_v49 = vpop.f32.mrb[52].mxu0  ;;  %v1073_v57 = vadd.f32 %v3004_v7, %v2932_v18 }
 0x15e   :  { %v2092_v62 = vpop.f32.mrb[53].mxu1  ;;  %v2204_v1 = vpop.f32.mrb[53].mxu0 }
 0x15f   :  { %v1861_v2 = vpack.c.bf16 %v1374_v13, %v1371_v54  ;;  %v2093_v3 = vadd.f32 %v2092_v62, %v2091_v59  ;;  %v2205_v22 = vadd.f32 %v2204_v1, %v2203_v49  ;;  %v2094_v4 = vpop.f32.mrb[54].mxu1  ;;  %v2206_v9 = vpop.f32.mrb[54].mxu0 }
 0x160   :  { %v2095_v56 = vpop.f32.mrb[55].mxu1  ;;  %v2207_v10 = vpop.f32.mrb[55].mxu0 }
 0x161   :  { %1921 = vst [vmem:[%s3113_s3 + $0x20] sm:$0xff] %v1861_v2   ;;  %v1218_v28 = vadd.f32 %v2093_v3, %v1057_v21  ;;  %v2096_v12 = vadd.f32 %v2095_v56, %v2094_v4  ;;  %v2208_v14 = vadd.f32 %v2207_v10, %v2206_v9  ;;  %v1076_v2 = vadd.f32 %v3009_v16, %v2932_v18 }
 0x163   :  { %v1379_v17 = vadd.f32 %v2205_v22, %v1218_v28  ;;  %v1221_v23 = vadd.f32 %v2096_v12, %v1060_v11 }
 0x165   :  { %v1382_v32 = vadd.f32 %v2208_v14, %v1221_v23  ;;  %v2097_v25 = vpop.f32.mrb[56].mxu1  ;;  %v2209_v26 = vpop.f32.mrb[56].mxu0 }
 0x166   :  { %v2098_v35 = vpop.f32.mrb[57].mxu1  ;;  %v2210_v63 = vpop.f32.mrb[57].mxu0 }
 0x167   :  { %v1866_v31 = vpack.c.bf16 %v1382_v32, %v1379_v17  ;;  %v2099_v33 = vadd.f32 %v2098_v35, %v2097_v25  ;;  %v2211_v40 = vadd.f32 %v2210_v63, %v2209_v26  ;;  %v2100_v34 = vpop.f32.mrb[58].mxu1  ;;  %v2212_v36 = vpop.f32.mrb[58].mxu0 }
 0x168   :  { %v2101_v37 = vpop.f32.mrb[59].mxu1  ;;  %v2213_v38 = vpop.f32.mrb[59].mxu0 }
 0x169   :  { %1922 = vst [vmem:[%s3113_s3 + $0x28] sm:$0xff] %v1866_v31   ;;  %v1226_v42 = vadd.f32 %v2099_v33, %v1065_v29  ;;  %v2102_v43 = vadd.f32 %v2101_v37, %v2100_v34  ;;  %v2214_v46 = vadd.f32 %v2213_v38, %v2212_v36 }
 0x16b   :  { %v1387_v47 = vadd.f32 %v2211_v40, %v1226_v42  ;;  %v1229_v48 = vadd.f32 %v2102_v43, %v1068_v6 }
 0x16d   :  { %v1390_v51 = vadd.f32 %v2214_v46, %v1229_v48  ;;  %v2103_v50 = vpop.f32.mrb[60].mxu1  ;;  %v2215_v52 = vpop.f32.mrb[60].mxu0 }
 0x16e   :  { %v2104_v53 = vpop.f32.mrb[61].mxu1  ;;  %v2216_v54 = vpop.f32.mrb[61].mxu0 }
 0x16f   :  { %v1871_v13 = vpack.c.bf16 %v1390_v51, %v1387_v47  ;;  %v2105_v59 = vadd.f32 %v2104_v53, %v2103_v50  ;;  %v2217_v61 = vadd.f32 %v2216_v54, %v2215_v52  ;;  %v2106_v49 = vpop.f32.mrb[62].mxu1  ;;  %v2218_v62 = vpop.f32.mrb[62].mxu0 }
 0x170   :  { %v2107_v1 = vpop.f32.mrb[63].mxu1  ;;  %v2219_v21 = vpop.f32.mrb[63].mxu0 }
 0x171   :  { %1923 = vst [vmem:[%s3113_s3 + $0x30] sm:$0xff] %v1871_v13   ;;  %v1234_v3 = vadd.f32 %v2105_v59, %v1073_v57  ;;  %v2108_v22 = vadd.f32 %v2107_v1, %v2106_v49  ;;  %v2220_v4 = vadd.f32 %v2219_v21, %v2218_v62 }
 0x173   :  { %v1395_v9 = vadd.f32 %v2217_v61, %v1234_v3  ;;  %v1237_v56 = vadd.f32 %v2108_v22, %v1076_v2 }
 0x175   :  { %v1398_v7 = vadd.f32 %v2220_v4, %v1237_v56  ;;  %v2109_v10 = vpop.f32.mrb[64].mxu1  ;;  %v2221_v11 = vpop.f32.mrb[64].mxu0 }
 0x176   :  { %v2110_v28 = vpop.f32.mrb[65].mxu1  ;;  %v2222_v12 = vpop.f32.mrb[65].mxu0 }
 0x177   :  { %v1876_v14 = vpack.c.bf16 %v1398_v7, %v1395_v9  ;;  %v2111_v17 = vadd.f32 %v2110_v28, %v2109_v10  ;;  %v2223_v23 = vadd.f32 %v2222_v12, %v2221_v11  ;;  %v2112_v32 = vpop.f32.mrb[66].mxu1  ;;  %v2224_v25 = vpop.f32.mrb[66].mxu0 }
 0x178   :  { %v2113_v18 = vpop.f32.mrb[67].mxu1  ;;  %v2225_v16 = vpop.f32.mrb[67].mxu0 }
 0x179   :  { %1924 = vst [vmem:[%s3113_s3 + $0x38] sm:$0xff] %v1876_v14   ;;  %v1242_v26 = vadd.f32 %v2111_v17, %v2937_v27  ;;  %v2114_v35 = vadd.f32 %v2113_v18, %v2112_v32  ;;  %v2226_v63 = vadd.f32 %v2225_v16, %v2224_v25 }
 0x17b   :  { %v1403_v29 = vadd.f32 %v2223_v23, %v1242_v26  ;;  %v1245_v31 = vadd.f32 %v2114_v35, %v2942_v30 }
 0x17d   :  { %v1406_v33 = vadd.f32 %v2226_v63, %v1245_v31  ;;  %v2115_v40 = vpop.f32.mrb[68].mxu1  ;;  %v2227_v34 = vpop.f32.mrb[68].mxu0 }
 0x17e   :  { %v2116_v36 = vpop.f32.mrb[69].mxu1  ;;  %v2228_v37 = vpop.f32.mrb[69].mxu0 }
 0x17f   :  { %v1881_v38 = vpack.c.bf16 %v1406_v33, %v1403_v29  ;;  %v2117_v6 = vadd.f32 %v2116_v36, %v2115_v40  ;;  %v2229_v42 = vadd.f32 %v2228_v37, %v2227_v34  ;;  %v2118_v43 = vpop.f32.mrb[70].mxu1  ;;  %v2230_v46 = vpop.f32.mrb[70].mxu0 }
 0x180   :  { %v2119_v47 = vpop.f32.mrb[71].mxu1  ;;  %v2231_v48 = vpop.f32.mrb[71].mxu0 }
 0x181   :  { %1925 = vst [vmem:[%s3113_s3 + $0x40] sm:$0xff] %v1881_v38   ;;  %v1250_v27 = vadd.f32 %v2117_v6, %v2947_v41  ;;  %v2120_v51 = vadd.f32 %v2119_v47, %v2118_v43  ;;  %v2232_v30 = vadd.f32 %v2231_v48, %v2230_v46 }
 0x183   :  { %v1411_v50 = vadd.f32 %v2229_v42, %v1250_v27  ;;  %v1253_v52 = vadd.f32 %v2120_v51, %v2952_v44 }
 0x185   :  { %v1414_v53 = vadd.f32 %v2232_v30, %v1253_v52  ;;  %v2121_v54 = vpop.f32.mrb[72].mxu1  ;;  %v2233_v57 = vpop.f32.mrb[72].mxu0 }
 0x186   :  { %v2122_v13 = vpop.f32.mrb[73].mxu1  ;;  %v2234_v59 = vpop.f32.mrb[73].mxu0 }
 0x187   :  { %v1886_v61 = vpack.c.bf16 %v1414_v53, %v1411_v50  ;;  %v2123_v49 = vadd.f32 %v2122_v13, %v2121_v54  ;;  %v2235_v62 = vadd.f32 %v2234_v59, %v2233_v57  ;;  %v2124_v1 = vpop.f32.mrb[74].mxu1  ;;  %v2236_v21 = vpop.f32.mrb[74].mxu0 }
 0x188   :  { %v2125_v2 = vpop.f32.mrb[75].mxu1  ;;  %v2237_v3 = vpop.f32.mrb[75].mxu0 }
 0x189   :  { %1926 = vst [vmem:[%s3113_s3 + $0x48] sm:$0xff] %v1886_v61   ;;  %v1258_v41 = vadd.f32 %v2123_v49, %v2957_v55  ;;  %v2126_v22 = vadd.f32 %v2125_v2, %v2124_v1  ;;  %v2238_v44 = vadd.f32 %v2237_v3, %v2236_v21 }
 0x18b   :  { %v1419_v4 = vadd.f32 %v2235_v62, %v1258_v41  ;;  %v1261_v9 = vadd.f32 %v2126_v22, %v2962_v58 }
 0x18d   :  { %v1422_v56 = vadd.f32 %v2238_v44, %v1261_v9  ;;  %v2127_v7 = vpop.f32.mrb[76].mxu1  ;;  %v2239_v10 = vpop.f32.mrb[76].mxu0 }
 0x18e   :  { %v2128_v11 = vpop.f32.mrb[77].mxu1  ;;  %v2240_v28 = vpop.f32.mrb[77].mxu0 }
 0x18f   :  { %v1891_v12 = vpack.c.bf16 %v1422_v56, %v1419_v4  ;;  %v2129_v14 = vadd.f32 %v2128_v11, %v2127_v7  ;;  %v2241_v17 = vadd.f32 %v2240_v28, %v2239_v10  ;;  %v2130_v23 = vpop.f32.mrb[78].mxu1  ;;  %v2242_v32 = vpop.f32.mrb[78].mxu0 }
 0x190   :  { %v2131_v25 = vpop.f32.mrb[79].mxu1  ;;  %v2243_v18 = vpop.f32.mrb[79].mxu0 }
 0x191   :  { %1927 = vst [vmem:[%s3113_s3 + $0x50] sm:$0xff] %v1891_v12   ;;  %v1266_v55 = vadd.f32 %v2129_v14, %v2967_v5  ;;  %v2132_v16 = vadd.f32 %v2131_v25, %v2130_v23  ;;  %v2244_v58 = vadd.f32 %v2243_v18, %v2242_v32 }
 0x193   :  { %v1427_v26 = vadd.f32 %v2241_v17, %v1266_v55  ;;  %v1269_v35 = vadd.f32 %v2132_v16, %v2972_v8 }
 0x195   :  { %v1430_v63 = vadd.f32 %v2244_v58, %v1269_v35  ;;  %v2133_v29 = vpop.f32.mrb[80].mxu1  ;;  %v2245_v31 = vpop.f32.mrb[80].mxu0 }
 0x196   :  { %v2134_v33 = vpop.f32.mrb[81].mxu1  ;;  %v2246_v40 = vpop.f32.mrb[81].mxu0 }
 0x197   :  { %v1896_v34 = vpack.c.bf16 %v1430_v63, %v1427_v26  ;;  %v2135_v36 = vadd.f32 %v2134_v33, %v2133_v29  ;;  %v2247_v37 = vadd.f32 %v2246_v40, %v2245_v31  ;;  %v2136_v38 = vpop.f32.mrb[82].mxu1  ;;  %v2248_v6 = vpop.f32.mrb[82].mxu0 }
 0x198   :  { %v2137_v42 = vpop.f32.mrb[83].mxu1  ;;  %v2249_v43 = vpop.f32.mrb[83].mxu0 }
 0x199   :  { %1928 = vst [vmem:[%s3113_s3 + $0x58] sm:$0xff] %v1896_v34   ;;  %v1274_v5 = vadd.f32 %v2135_v36, %v2977_v20  ;;  %v2138_v46 = vadd.f32 %v2137_v42, %v2136_v38  ;;  %v2250_v8 = vadd.f32 %v2249_v43, %v2248_v6 }
 0x19b   :  { %v1435_v47 = vadd.f32 %v2247_v37, %v1274_v5  ;;  %v1277_v48 = vadd.f32 %v2138_v46, %v2982_v24 }
 0x19d   :  { %v1438_v27 = vadd.f32 %v2250_v8, %v1277_v48  ;;  %v2139_v51 = vpop.f32.mrb[84].mxu1  ;;  %v2251_v30 = vpop.f32.mrb[84].mxu0 }
 0x19e   :  { %v2140_v50 = vpop.f32.mrb[85].mxu1  ;;  %v2252_v52 = vpop.f32.mrb[85].mxu0 }
 0x19f   :  { %v1901_v53 = vpack.c.bf16 %v1438_v27, %v1435_v47  ;;  %v2141_v54 = vadd.f32 %v2140_v50, %v2139_v51  ;;  %v2253_v57 = vadd.f32 %v2252_v52, %v2251_v30  ;;  %v2142_v13 = vpop.f32.mrb[86].mxu1  ;;  %v2254_v59 = vpop.f32.mrb[86].mxu0 }
 0x1a0   :  { %v2143_v61 = vpop.f32.mrb[87].mxu1  ;;  %v2255_v49 = vpop.f32.mrb[87].mxu0 }
 0x1a1   :  { %1929 = vst [vmem:[%s3113_s3 + $0x60] sm:$0xff] %v1901_v53   ;;  %v1282_v20 = vadd.f32 %v2141_v54, %v2987_v39  ;;  %v2144_v62 = vadd.f32 %v2143_v61, %v2142_v13  ;;  %v2256_v24 = vadd.f32 %v2255_v49, %v2254_v59 }
 0x1a3   :  { %v1443_v1 = vadd.f32 %v2253_v57, %v1282_v20  ;;  %v1285_v21 = vadd.f32 %v2144_v62, %v2992_v45 }
 0x1a5   :  { %v1446_v2 = vadd.f32 %v2256_v24, %v1285_v21  ;;  %v2145_v3 = vpop.f32.mrb[88].mxu1  ;;  %v2257_v41 = vpop.f32.mrb[88].mxu0 }
 0x1a6   :  { %v2146_v22 = vpop.f32.mrb[89].mxu1  ;;  %v2258_v44 = vpop.f32.mrb[89].mxu0 }
 0x1a7   :  { %v1906_v4 = vpack.c.bf16 %v1446_v2, %v1443_v1  ;;  %v2147_v9 = vadd.f32 %v2146_v22, %v2145_v3  ;;  %v2259_v56 = vadd.f32 %v2258_v44, %v2257_v41  ;;  %v2148_v7 = vpop.f32.mrb[90].mxu1  ;;  %v2260_v10 = vpop.f32.mrb[90].mxu0 }
 0x1a8   :  { %v2149_v11 = vpop.f32.mrb[91].mxu1  ;;  %v2261_v28 = vpop.f32.mrb[91].mxu0 }
 0x1a9   :  { %1930 = vst [vmem:[%s3113_s3 + $0x68] sm:$0xff] %v1906_v4   ;;  %v1290_v39 = vadd.f32 %v2147_v9, %v2997_v60  ;;  %v2150_v12 = vadd.f32 %v2149_v11, %v2148_v7  ;;  %v2262_v45 = vadd.f32 %v2261_v28, %v2260_v10 }
 0x1ab   :  { %v1451_v14 = vadd.f32 %v2259_v56, %v1290_v39  ;;  %v1293_v17 = vadd.f32 %v2150_v12, %v3002_v0 }
 0x1ad   :  { %v1454_v23 = vadd.f32 %v2262_v45, %v1293_v17  ;;  %v2151_v32 = vpop.f32.mrb[92].mxu1  ;;  %v2263_v25 = vpop.f32.mrb[92].mxu0 }
 0x1ae   :  { %v2152_v18 = vpop.f32.mrb[93].mxu1  ;;  %v2264_v55 = vpop.f32.mrb[93].mxu0 }
 0x1af   :  { %v1911_v16 = vpack.c.bf16 %v1454_v23, %v1451_v14  ;;  %v2153_v58 = vadd.f32 %v2152_v18, %v2151_v32  ;;  %v2265_v26 = vadd.f32 %v2264_v55, %v2263_v25  ;;  %v2154_v35 = vpop.f32.mrb[94].mxu1  ;;  %v2266_v63 = vpop.f32.mrb[94].mxu0 }
 0x1b0   :  { %v2155_v29 = vpop.f32.mrb[95].mxu1  ;;  %v2267_v31 = vpop.f32.mrb[95].mxu0 }
 0x1b1   :  { %1931 = vst [vmem:[%s3113_s3 + $0x70] sm:$0xff] %v1911_v16   ;;  %v1298_v60 = vadd.f32 %v2153_v58, %v3007_v15  ;;  %v2156_v33 = vadd.f32 %v2155_v29, %v2154_v35  ;;  %v2268_v0 = vadd.f32 %v2267_v31, %v2266_v63 }
 0x1b3   :  { %v1459_v40 = vadd.f32 %v2265_v26, %v1298_v60  ;;  %v1301_v34 = vadd.f32 %v2156_v33, %v3012_v19 }
 0x1b5   :  { %v1462_v36 = vadd.f32 %v2268_v0, %v1301_v34 }
 0x1b7   :  { %v1916_v37 = vpack.c.bf16 %v1462_v36, %v1459_v40 }
 0x1b9   :  { %1932 = vst [vmem:[%s3113_s3 + $0x78] sm:$0xff] %v1916_v37  }

// kernel: c_radio_v2_forward.7
= control target key start
LH: loop header
LB: loop body
LE: loop exit
PB: predicated region body
PF: predicated region fallthrough
CT: control target
= control target key end

     0   :  { %s3854_s0 = inlined_call_operand.vmem [shape: bf16[2,128,128], index: 0, kind: input, shape index: {}]   ;;  %s3855_s1 = inlined_call_operand.vmem [shape: f32[1,128], index: 1, kind: input, shape index: {}]   ;;  %s3856_s2 = inlined_call_operand.vmem [shape: f32[1,128], index: 2, kind: input, shape index: {}]   ;;  %s3857_s3 = inlined_call_operand.vmem [shape: bf16[3,2,128,128], index: 3, kind: input, shape index: {}]   ;;  %s3858_s4 = inlined_call_operand.vmem [shape: f32[3,2,1,128], index: 4, kind: input, shape index: {}]   ;;  %s3859_s5 = inlined_call_operand.vmem [shape: bf16[2,128,128], index: 5, kind: input, shape index: {}]   ;;  %s3860_s6 = inlined_call_operand.vmem [shape: f32[1,128], index: 6, kind: input, shape index: {}]   ;;  %s3861_s7 = inlined_call_operand.vmem [shape: bf16[2,128,128], index: 7, kind: output, shape index: {}]  }
   0x1   :  { %3862 = sst [smem:[#allocation6_spill]] %s3857_s3 }
   0x2   :  { %3863 = sst [smem:[#allocation7_spill]] %s3858_s4 }
   0x3   :  { %s3177_s24 = smov 0   ;;  %s3179_s25 = smov 0  }
   0x4   :  { %s3181_s26 = smov 0   ;;  %s3183_s27 = smov 0  }
   0x5   :  { %s3185_s28 = smov 0   ;;  %s3187_s29 = smov 0  }
   0x6   :  { %s3189_s30 = smov 0  }
   0x7 LB: > { %s26_s8 = sadd.s32 1, %s3126_s28  ;;  %s29_s9 = sadd.s32 1, %s3130_s29  ;;  %s3134_s30 = sphi %s3189_s30, %s17_s30   ;;  %s3130_s29 = sphi %s3187_s29, %s3872_s29   ;;  %s3126_s28 = sphi %s3185_s28, %s3871_s28   ;;  %s3122_s27 = sphi %s3183_s27, %s3870_s27   ;;  %s3118_s26 = sphi %s3181_s26, %s3869_s26   ;;  %s3114_s25 = sphi %s3179_s25, %s3868_s25   ;;  %s3110_s24 = sphi %s3177_s24, %s3867_s24  }
   0x8   : > { %p27_p0 = scmp.ge.s32.totalorder %s26_s8, 2  ;;  %s104_s10 = sadd.s32 1, %s3114_s25 }
   0x9   : > { %p111_p1 = scmp.ne.s32.totalorder %s3114_s25, %s3110_s24  ;;  %p112_p2 = scmp.eq.s32.totalorder %s3134_s30, 0 }
   0xa   : > { %s3874_s8 = smov (%p27_p0, %s26_s8), 0  ;;  %s3876_s9 = smov (!%p27_p0, %s29_s9), %s3130_s29 }
   0xb   : > { %s101_s11 = ssub.s32 %s3126_s28, %s3874_s8  ;;  %p3223_p3 = por %p112_p2, %p111_p1 }
   0xc   : > { %p31_p4 = scmp.ge.s32.totalorder %s3876_s9, 2  ;;  %p102_p5 = scmp.eq.s32.totalorder %s101_s11, 0 }
   0xd   : > { %p2340_p6 = scmp.ge.s32.totalorder %s3134_s30, 4 }
   0xe   : > { %s3878_s9 = smov (%p31_p4, %s3876_s9), 0 }
   0xf   : > { %s3230_s13 = scalar_select %p102_p5, %s3114_s25, %s104_s10  }
  0x10   : > { %245 = sbr.rel (%p2340_p6) target bundleno = 57 (0x39), region = 28 }
  0x17   : > { %256 = sbr.rel (!%p3223_p3) target bundleno = 46 (0x2e), region = 36  ;;  %s258_s14 = sand.u32 (%p3223_p3), 1, %s3114_s25  }
  0x18   : > { %s2442_s15 = sshll.u32 (%p3223_p3), %s3126_s28, 6  ;;  %s2891_s16 = smul.u32 (%p3223_p3), 192, %s258_s14 }
  0x19   : > { %s3865_s3 = sld [smem:[#allocation6_spill]] (%p3223_p3) }
  0x1a   : > { %s3248_s20 = scalar_lea.vmem (%p3223_p3), [#allocation4], %s2891_s16 }
  0x1f   : > { %s3240_s19 = scalar_lea.vmem %s3865_s3, %s2442_s15 }
  0x20   : > { %v279_v0 = vld [vmem:[%s3240_s19] sm:$0xff]   ;;  %v283_v1 = vld [vmem:[%s3240_s19 + $0x8] sm:$0xff]   ;;  %v287_v2 = vld [vmem:[%s3240_s19 + $0x10] sm:$0xff]  }
  0x21   : > { %v291_v3 = vld [vmem:[%s3240_s19 + $0x18] sm:$0xff]   ;;  %v295_v4 = vld [vmem:[%s3240_s19 + $0x20] sm:$0xff]   ;;  %v299_v5 = vld [vmem:[%s3240_s19 + $0x28] sm:$0xff]   ;;  %280 = vst [vmem:[%s3248_s20] sm:$0xff] %v279_v0  }
  0x22   : > { %284 = vst [vmem:[%s3248_s20 + $0x8] sm:$0xff] %v283_v1   ;;  %288 = vst [vmem:[%s3248_s20 + $0x10] sm:$0xff] %v287_v2   ;;  %v303_v6 = vld [vmem:[%s3240_s19 + $0x30] sm:$0xff]   ;;  %v307_v7 = vld [vmem:[%s3240_s19 + $0x38] sm:$0xff]  }
  0x23   : > { %292 = vst [vmem:[%s3248_s20 + $0x18] sm:$0xff] %v291_v3   ;;  %296 = vst [vmem:[%s3248_s20 + $0x20] sm:$0xff] %v295_v4   ;;  %v311_v8 = vld [vmem:[%s3240_s19 + $0x80] sm:$0xff]   ;;  %v315_v9 = vld [vmem:[%s3240_s19 + $0x88] sm:$0xff]  }
  0x24   : > { %300 = vst [vmem:[%s3248_s20 + $0x28] sm:$0xff] %v299_v5   ;;  %304 = vst [vmem:[%s3248_s20 + $0x30] sm:$0xff] %v303_v6   ;;  %v319_v10 = vld [vmem:[%s3240_s19 + $0x90] sm:$0xff]   ;;  %v323_v11 = vld [vmem:[%s3240_s19 + $0x98] sm:$0xff]  }
  0x25   : > { %308 = vst [vmem:[%s3248_s20 + $0x38] sm:$0xff] %v307_v7   ;;  %312 = vst [vmem:[%s3248_s20 + $0x40] sm:$0xff] %v311_v8   ;;  %v327_v12 = vld [vmem:[%s3240_s19 + $0xa0] sm:$0xff]   ;;  %v331_v13 = vld [vmem:[%s3240_s19 + $0xa8] sm:$0xff]  }
  0x26   : > { %316 = vst [vmem:[%s3248_s20 + $0x48] sm:$0xff] %v315_v9   ;;  %320 = vst [vmem:[%s3248_s20 + $0x50] sm:$0xff] %v319_v10   ;;  %v335_v14 = vld [vmem:[%s3240_s19 + $0xb0] sm:$0xff]   ;;  %v339_v15 = vld [vmem:[%s3240_s19 + $0xb8] sm:$0xff]  }
  0x27   : > { %324 = vst [vmem:[%s3248_s20 + $0x58] sm:$0xff] %v323_v11   ;;  %328 = vst [vmem:[%s3248_s20 + $0x60] sm:$0xff] %v327_v12   ;;  %v343_v16 = vld [vmem:[%s3240_s19 + $0x100] sm:$0xff]   ;;  %v347_v17 = vld [vmem:[%s3240_s19 + $0x108] sm:$0xff]  }
  0x28   : > { %332 = vst [vmem:[%s3248_s20 + $0x68] sm:$0xff] %v331_v13   ;;  %336 = vst [vmem:[%s3248_s20 + $0x70] sm:$0xff] %v335_v14   ;;  %v351_v18 = vld [vmem:[%s3240_s19 + $0x110] sm:$0xff]   ;;  %v355_v19 = vld [vmem:[%s3240_s19 + $0x118] sm:$0xff]  }
  0x29   : > { %340 = vst [vmem:[%s3248_s20 + $0x78] sm:$0xff] %v339_v15   ;;  %344 = vst [vmem:[%s3248_s20 + $0x80] sm:$0xff] %v343_v16   ;;  %v359_v20 = vld [vmem:[%s3240_s19 + $0x120] sm:$0xff]   ;;  %v363_v21 = vld [vmem:[%s3240_s19 + $0x128] sm:$0xff]  }
  0x2a   : > { %348 = vst [vmem:[%s3248_s20 + $0x88] sm:$0xff] %v347_v17   ;;  %352 = vst [vmem:[%s3248_s20 + $0x90] sm:$0xff] %v351_v18   ;;  %v367_v22 = vld [vmem:[%s3240_s19 + $0x130] sm:$0xff]   ;;  %v371_v23 = vld [vmem:[%s3240_s19 + $0x138] sm:$0xff]  }
  0x2b   : > { %356 = vst [vmem:[%s3248_s20 + $0x98] sm:$0xff] %v355_v19   ;;  %360 = vst [vmem:[%s3248_s20 + $0xa0] sm:$0xff] %v359_v20  }
  0x2c   : > { %364 = vst [vmem:[%s3248_s20 + $0xa8] sm:$0xff] %v363_v21   ;;  %368 = vst [vmem:[%s3248_s20 + $0xb0] sm:$0xff] %v367_v22  }
  0x2d   : > { %372 = vst [vmem:[%s3248_s20 + $0xb8] sm:$0xff] %v371_v23  }
  0x2e PF: > { %493 = sbr.rel (!%p3223_p3) target bundleno = 57 (0x39), region = 77  ;;  %s495_s21 = sand.u32 (%p3223_p3), 1, %s3114_s25  }
  0x2f   : > { %s3866_s4 = sld [smem:[#allocation7_spill]] (%p3223_p3)  ;;  %s2892_s11 = smul.u32 (%p3223_p3), 3, %s495_s21 }
  0x31   : > { %s497_s14 = scalar_lea.vmem (%p3223_p3), [#allocation5], %s2892_s11 }
  0x35   : > { %s498_s10 = scalar_lea.vmem %s3866_s4, %s3126_s28 }
  0x36   : > { %v514_v24 = vld [vmem:[%s498_s10] sm:$0x1]  ;;  %v516_v25 = vld [vmem:[%s498_s10 + $0x2] sm:$0x1]  ;;  %v518_v26 = vld [vmem:[%s498_s10 + $0x4] sm:$0x1] }
  0x37   : > { %515 = vst [vmem:[%s497_s14] sm:$0x1] %v514_v24  ;;  %517 = vst [vmem:[%s497_s14 + $0x1] sm:$0x1] %v516_v25 }
  0x38   : > { %519 = vst [vmem:[%s497_s14 + $0x2] sm:$0x1] %v518_v26 }
  0x39 PF: > { %p2343_p7 = scmp.ge.s32.totalorder %s3134_s30, 1  ;;  %p547_p8 = scmp.lt.s32.totalorder %s3134_s30, 5 }
  0x3b   : > { %p548_p9 = pnand %p2343_p7, %p547_p8 }
  0x3c   : > { %s554_s12 = sand.u32 (!%p548_p9), 1, %s3110_s24   ;;  %p606_p10 = scmp.lt.s32.totalorder (!%p548_p9), %s3122_s27, 1 }
  0x3d   : > { %551 = sbr.rel (%p548_p9) target bundleno = 1747 (0x6d3), region = 115  ;;  %p611_p11 = scmp.lt.s32.totalorder (!%p548_p9), %s3118_s26, 1 }
  0x3e   : > { %s2893_s15 = smul.u32 (!%p548_p9), 192, %s554_s12  ;;  %p2350_p12 = scmp.ne.s32.totalorder (!%p548_p9), %s3118_s26, 0 }
  0x3f   : > { %s2894_s16 = smul.u32 (!%p548_p9), 3, %s554_s12 }
  0x40   : > { %s3321_s12 = scalar_lea.vmem (!%p548_p9), [#allocation4], %s2893_s15 }
  0x41   : > { %s3323_s4 = scalar_lea.vmem (!%p548_p9), [#allocation5], %s2894_s16 }
  0x44   : > { %s3880_s27 = smov (!%p606_p10, %s3122_s27), 1  ;;  %625 = sbr.rel (%p2350_p12) target bundleno = 421 (0x1a5), region = 127 }
  0x45   : > { %s612_s17 = scalar_select %p611_p11, %s3118_s26, 1 }
  0x46   : > { %s2443_s18 = sshll.u32 %s3880_s27, 6 }
  0x47   : > { %s3309_s21 = scalar_lea.vmem %s3854_s0, %s2443_s18  ;;  %s2444_s22 = sshll.u32 %s612_s17, 6 }
  0x48   : > { %s3314_s11 = scalar_lea.vmem %s3859_s5, %s2444_s22  ;;  %s3319_s3 = scalar_lea.vmem %s3861_s7, %s2443_s18  ;;  %v2463_v27 = vld [vmem:[%s3309_s21] sm:$0xff] (!%p2350_p12)   ;;  %v2566_v28 = vld [vmem:[%s3309_s21 + $0x8] sm:$0xff] (!%p2350_p12)   ;;  %v2567_v33 = vld [vmem:[%s3309_s21 + $0x10] sm:$0xff] (!%p2350_p12)  }
  0x49   : > { %v2464_v29 = vunpack.c.l.bf16 (!%p2350_p12), %v2463_v27  ;;  %v2468_v30 = vunpack.c.l.bf16 (!%p2350_p12), %v2566_v28  ;;  %v2465_v31 = vunpack.c.h.bf16 (!%p2350_p12), %v2463_v27  ;;  %v2469_v32 = vunpack.c.h.bf16 (!%p2350_p12), %v2566_v28  ;;  %v2568_v36 = vld [vmem:[%s3309_s21 + $0x18] sm:$0xff] (!%p2350_p12)   ;;  %v3331_v39 = vld [vmem:[%s3309_s21 + $0x20] sm:$0xff] (!%p2350_p12)   ;;  %v3336_v42 = vld [vmem:[%s3309_s21 + $0x28] sm:$0xff] (!%p2350_p12)  }
  0x4a   : > { %v2472_v34 = vunpack.c.l.bf16 (!%p2350_p12), %v2567_v33  ;;  %v2473_v35 = vunpack.c.h.bf16 (!%p2350_p12), %v2567_v33  ;;  %v2476_v37 = vunpack.c.l.bf16 (!%p2350_p12), %v2568_v36  ;;  %v2477_v38 = vunpack.c.h.bf16 (!%p2350_p12), %v2568_v36  ;;  %v3341_v45 = vld [vmem:[%s3309_s21 + $0x30] sm:$0xff] (!%p2350_p12)   ;;  %v3350_v48 = vld [vmem:[%s3309_s21 + $0x38] sm:$0xff] (!%p2350_p12)  }
  0x4b   : > { %660 = vadd.xlane.f32.xlu0 %v2464_v29  ;;  %664 = vadd.xlane.f32.xlu1 %v2468_v30  ;;  %v2480_v40 = vunpack.c.l.bf16 %v3331_v39  ;;  %v2481_v41 = vunpack.c.h.bf16 %v3331_v39  ;;  %v2484_v43 = vunpack.c.l.bf16 %v3336_v42  ;;  %v2485_v44 = vunpack.c.h.bf16 %v3336_v42 }
  0x4c   : > { %v2488_v46 = vunpack.c.l.bf16 %v3341_v45  ;;  %v2489_v47 = vunpack.c.h.bf16 %v3341_v45  ;;  %v2492_v49 = vunpack.c.l.bf16 %v3350_v48  ;;  %v2493_v50 = vunpack.c.h.bf16 %v3350_v48 }
  0x4f   : > { %662 = vadd.xlane.f32.xlu0 %v2465_v31  ;;  %666 = vadd.xlane.f32.xlu1 %v2469_v32 }
  0x53   : > { %668 = vadd.xlane.f32.xlu0 %v2472_v34  ;;  %670 = vadd.xlane.f32.xlu1 %v2473_v35 }
  0x57   : > { %672 = vadd.xlane.f32.xlu0 %v2476_v37  ;;  %674 = vadd.xlane.f32.xlu1 %v2477_v38 }
  0x5b   : > { %676 = vadd.xlane.f32.xlu0 %v2480_v40  ;;  %678 = vadd.xlane.f32.xlu1 %v2481_v41 }
  0x5f   : > { %680 = vadd.xlane.f32.xlu0 %v2484_v43  ;;  %682 = vadd.xlane.f32.xlu1 %v2485_v44 }
  0x63   : > { %684 = vadd.xlane.f32.xlu0 %v2488_v46  ;;  %686 = vadd.xlane.f32.xlu1 %v2489_v47 }
  0x67   : > { %688 = vadd.xlane.f32.xlu0 %v2492_v49  ;;  %690 = vadd.xlane.f32.xlu1 %v2493_v50 }
  0xd8   : > { %v661_v51 = vpop.xlane.xlu0 %660  ;;  %v665_v52 = vpop.xlane.xlu1 %664 }
  0xd9   : > { %v693_v53 = vmul.f32 0.0078125, %v661_v51  ;;  %v695_v54 = vmul.f32 0.0078125, %v665_v52 }
  0xdb   : > { %v3362_v55 = vsub.f32 %v2464_v29, %v693_v53  ;;  %v3364_v56 = vsub.f32 %v2468_v30, %v695_v54 }
  0xdc   : > { %v663_v57 = vpop.xlane.xlu0 %662  ;;  %v667_v58 = vpop.xlane.xlu1 %666 }
  0xdd   : > { %v694_v59 = vmul.f32 0.0078125, %v663_v57  ;;  %v725_v60 = vmul.f32 %v3362_v55, %v3362_v55  ;;  %v696_v61 = vmul.f32 0.0078125, %v667_v58  ;;  %v727_v0 = vmul.f32 %v3364_v56, %v3364_v56 }
  0xdf   : > { %v3368_v62 = vsub.f32 %v2465_v31, %v694_v59  ;;  %741 = vadd.xlane.f32.xlu0 %v725_v60  ;;  %v3370_v63 = vsub.f32 %v2469_v32, %v696_v61 }
  0xe0   : > { %v669_v1 = vpop.xlane.xlu0 %668  ;;  %v671_v2 = vpop.xlane.xlu1 %670 }
  0xe1   : > { %v697_v3 = vmul.f32 0.0078125, %v669_v1  ;;  %v726_v4 = vmul.f32 %v3368_v62, %v3368_v62  ;;  %v698_v5 = vmul.f32 0.0078125, %v671_v2  ;;  %v728_v8 = vmul.f32 %v3370_v63, %v3370_v63 }
  0xe3   : > { %v3376_v6 = vsub.f32 %v2472_v34, %v697_v3  ;;  %745 = vadd.xlane.f32.xlu0 %v727_v0  ;;  %743 = vadd.xlane.f32.xlu1 %v726_v4  ;;  %v3378_v7 = vsub.f32 %v2473_v35, %v698_v5 }
  0xe4   : > { %v673_v9 = vpop.xlane.xlu0 %672  ;;  %v675_v10 = vpop.xlane.xlu1 %674 }
  0xe5   : > { %v699_v11 = vmul.f32 0.0078125, %v673_v9  ;;  %v729_v12 = vmul.f32 %v3376_v6, %v3376_v6  ;;  %v700_v13 = vmul.f32 0.0078125, %v675_v10  ;;  %v730_v16 = vmul.f32 %v3378_v7, %v3378_v7 }
  0xe7   : > { %v3384_v14 = vsub.f32 %v2476_v37, %v699_v11  ;;  %747 = vadd.xlane.f32.xlu1 %v728_v8  ;;  %749 = vadd.xlane.f32.xlu0 %v729_v12  ;;  %v3386_v15 = vsub.f32 %v2477_v38, %v700_v13 }
  0xe8   : > { %v677_v17 = vpop.xlane.xlu0 %676  ;;  %v679_v18 = vpop.xlane.xlu1 %678 }
  0xe9   : > { %v701_v19 = vmul.f32 0.0078125, %v677_v17  ;;  %v731_v20 = vmul.f32 %v3384_v14, %v3384_v14  ;;  %v702_v21 = vmul.f32 0.0078125, %v679_v18  ;;  %v732_v24 = vmul.f32 %v3386_v15, %v3386_v15 }
  0xeb   : > { %v3392_v22 = vsub.f32 %v2480_v40, %v701_v19  ;;  %751 = vadd.xlane.f32.xlu1 %v730_v16  ;;  %753 = vadd.xlane.f32.xlu0 %v731_v20  ;;  %v3394_v23 = vsub.f32 %v2481_v41, %v702_v21  ;;  %v3442_v21 = vld [vmem:[%s3855_s1] ss:$0 sm:$0xff] }
  0xec   : > { %v681_v25 = vpop.xlane.xlu0 %680  ;;  %v683_v26 = vpop.xlane.xlu1 %682 }
  0xed   : > { %v703_v27 = vmul.f32 0.0078125, %v681_v25  ;;  %v733_v28 = vmul.f32 %v3392_v22, %v3392_v22  ;;  %v704_v29 = vmul.f32 0.0078125, %v683_v26  ;;  %v734_v32 = vmul.f32 %v3394_v23, %v3394_v23 }
  0xef   : > { %v3402_v30 = vsub.f32 %v2484_v43, %v703_v27  ;;  %755 = vadd.xlane.f32.xlu1 %v732_v24  ;;  %757 = vadd.xlane.f32.xlu0 %v733_v28  ;;  %v3406_v31 = vsub.f32 %v2485_v44, %v704_v29 }
  0xf0   : > { %v685_v33 = vpop.xlane.xlu0 %684  ;;  %v687_v34 = vpop.xlane.xlu1 %686 }
  0xf1   : > { %v705_v35 = vmul.f32 0.0078125, %v685_v33  ;;  %v735_v36 = vmul.f32 %v3402_v30, %v3402_v30  ;;  %v706_v37 = vmul.f32 0.0078125, %v687_v34  ;;  %v736_v40 = vmul.f32 %v3406_v31, %v3406_v31 }
  0xf3   : > { %v3414_v38 = vsub.f32 %v2488_v46, %v705_v35  ;;  %759 = vadd.xlane.f32.xlu1 %v734_v32  ;;  %761 = vadd.xlane.f32.xlu0 %v735_v36  ;;  %v3418_v39 = vsub.f32 %v2489_v47, %v706_v37  ;;  %v3449_v35 = vld [vmem:[%s3856_s2] ss:$0 sm:$0xff] }
  0xf4   : > { %v689_v41 = vpop.xlane.xlu0 %688  ;;  %v691_v42 = vpop.xlane.xlu1 %690 }
  0xf5   : > { %v707_v43 = vmul.f32 0.0078125, %v689_v41  ;;  %v737_v44 = vmul.f32 %v3414_v38, %v3414_v38  ;;  %v708_v51 = vmul.f32 0.0078125, %v691_v42  ;;  %v738_v47 = vmul.f32 %v3418_v39, %v3418_v39 }
  0xf7   : > { %v3426_v46 = vsub.f32 %v2492_v49, %v707_v43  ;;  %763 = vadd.xlane.f32.xlu1 %v736_v40  ;;  %765 = vadd.xlane.f32.xlu0 %v737_v44  ;;  %v3430_v45 = vsub.f32 %v2493_v50, %v708_v51  ;;  %v3136_v49 = vmov 0.0  }
  0xf8   : > { %897 = vst [vmem:[#allocation3] sm:$0xff] %v3136_v49  ;;  %898 = vst [vmem:[#allocation3 + $0x8] sm:$0xff] %v3136_v49 }
  0xf9   : > { %v739_v52 = vmul.f32 %v3426_v46, %v3426_v46  ;;  %v740_v53 = vmul.f32 %v3430_v45, %v3430_v45  ;;  %899 = vst [vmem:[#allocation3 + $0x10] sm:$0xff] %v3136_v49  ;;  %900 = vst [vmem:[#allocation3 + $0x18] sm:$0xff] %v3136_v49 }
  0xfa   : > { %901 = vst [vmem:[#allocation3 + $0x20] sm:$0xff] %v3136_v49  ;;  %902 = vst [vmem:[#allocation3 + $0x28] sm:$0xff] %v3136_v49 }
  0xfb   : > { %767 = vadd.xlane.f32.xlu1 %v738_v47  ;;  %769 = vadd.xlane.f32.xlu0 %v739_v52  ;;  %903 = vst [vmem:[#allocation3 + $0x30] sm:$0xff] %v3136_v49  ;;  %904 = vst [vmem:[#allocation3 + $0x38] sm:$0xff] %v3136_v49 }
  0xfc   : > { %905 = vst [vmem:[#allocation3 + $0x40] sm:$0xff] %v3136_v49  ;;  %906 = vst [vmem:[#allocation3 + $0x48] sm:$0xff] %v3136_v49 }
  0xfd   : > { %907 = vst [vmem:[#allocation3 + $0x50] sm:$0xff] %v3136_v49  ;;  %908 = vst [vmem:[#allocation3 + $0x58] sm:$0xff] %v3136_v49 }
  0xfe   : > { %909 = vst [vmem:[#allocation3 + $0x60] sm:$0xff] %v3136_v49  ;;  %910 = vst [vmem:[#allocation3 + $0x68] sm:$0xff] %v3136_v49 }
  0xff   : > { %771 = vadd.xlane.f32.xlu1 %v740_v53  ;;  %911 = vst [vmem:[#allocation3 + $0x70] sm:$0xff] %v3136_v49  ;;  %912 = vst [vmem:[#allocation3 + $0x78] sm:$0xff] %v3136_v49 }
 0x16c   : > { %v742_v48 = vpop.xlane.xlu0 %741 }
 0x16d   : > { %v773_v50 = vmul.f32 0.0078125, %v742_v48 }
 0x16f   : > { %v789_v54 = vadd.f32 1e-06, %v773_v50 }
 0x170   : > { %v744_v57 = vpop.xlane.xlu1 %743  ;;  %v746_v58 = vpop.xlane.xlu0 %745 }
 0x171   : > { %2952 = vrsqrt.f32 %v789_v54  ;;  %v774_v59 = vmul.f32 0.0078125, %v744_v57  ;;  %v775_v60 = vmul.f32 0.0078125, %v746_v58 }
 0x173   : > { %v790_v61 = vadd.f32 1e-06, %v774_v59  ;;  %v791_v0 = vadd.f32 1e-06, %v775_v60 }
 0x174   : > { %v748_v1 = vpop.xlane.xlu1 %747  ;;  %v750_v2 = vpop.xlane.xlu0 %749 }
 0x175   : > { %2954 = vrsqrt.f32 %v790_v61  ;;  %v776_v3 = vmul.f32 0.0078125, %v748_v1  ;;  %v777_v4 = vmul.f32 0.0078125, %v750_v2 }
 0x176   : > { %2956 = vrsqrt.f32 %v791_v0 }
 0x177   : > { %v792_v5 = vadd.f32 1e-06, %v776_v3  ;;  %v793_v8 = vadd.f32 1e-06, %v777_v4 }
 0x178   : > { %v752_v9 = vpop.xlane.xlu1 %751  ;;  %v754_v10 = vpop.xlane.xlu0 %753 }
 0x179   : > { %2958 = vrsqrt.f32 %v792_v5  ;;  %v778_v11 = vmul.f32 0.0078125, %v752_v9  ;;  %v779_v12 = vmul.f32 0.0078125, %v754_v10 }
 0x17a   : > { %2960 = vrsqrt.f32 %v793_v8 }
 0x17b   : > { %v2953_v13 = vpop.eup %2952  ;;  %v794_v16 = vadd.f32 1e-06, %v778_v11  ;;  %v795_v17 = vadd.f32 1e-06, %v779_v12 }
 0x17c   : > { %v821_v18 = vmul.f32 %v2953_v13, %v3362_v55  ;;  %v756_v19 = vpop.xlane.xlu1 %755  ;;  %v758_v20 = vpop.xlane.xlu0 %757 }
 0x17d   : > { %2962 = vrsqrt.f32 %v794_v16  ;;  %v780_v24 = vmul.f32 0.0078125, %v756_v19  ;;  %v781_v25 = vmul.f32 0.0078125, %v758_v20 }
 0x17e   : > { %2964 = vrsqrt.f32 %v795_v17  ;;  %v843_v32 = vmul.f32 %v3442_v21, %v821_v18 }
 0x17f   : > { %v2955_v26 = vpop.eup %2954  ;;  %v796_v27 = vadd.f32 1e-06, %v780_v24  ;;  %v797_v28 = vadd.f32 1e-06, %v781_v25 }
 0x180   : > { %v2957_v29 = vpop.eup %2956  ;;  %v822_v33 = vmul.f32 %v2955_v26, %v3368_v62  ;;  %v760_v55 = vpop.xlane.xlu1 %759  ;;  %v865_v62 = vadd.f32 %v3449_v35, %v843_v32 }
 0x181   : > { %v762_v34 = vpop.xlane.xlu0 %761  ;;  %v823_v36 = vmul.f32 %v2957_v29, %v3364_v56  ;;  %2966 = vrsqrt.f32 %v796_v27  ;;  %v782_v37 = vmul.f32 0.0078125, %v760_v55 }
 0x182   : > { %v783_v40 = vmul.f32 0.0078125, %v762_v34  ;;  %v844_v41 = vmul.f32 %v3442_v21, %v822_v33  ;;  %2968 = vrsqrt.f32 %v797_v28 }
 0x183   : > { %v2959_v42 = vpop.eup %2958  ;;  %v798_v43 = vadd.f32 1e-06, %v782_v37  ;;  %v845_v52 = vmul.f32 %v3442_v21, %v823_v36 }
 0x184   : > { %v799_v44 = vadd.f32 1e-06, %v783_v40  ;;  %v2961_v51 = vpop.eup %2960  ;;  %v866_v47 = vadd.f32 %v3449_v35, %v844_v41  ;;  %v824_v53 = vmul.f32 %v2959_v42, %v3370_v63  ;;  %v764_v49 = vpop.xlane.xlu1 %763 }
 0x185   : > { %v766_v56 = vpop.xlane.xlu0 %765  ;;  %v825_v48 = vmul.f32 %v2961_v51, %v3376_v6  ;;  %2970 = vrsqrt.f32 %v798_v43  ;;  %v784_v50 = vmul.f32 0.0078125, %v764_v49  ;;  %v867_v1 = vadd.f32 %v3449_v35, %v845_v52 }
 0x186   : > { %v881_v54 = vpack.c.bf16 %v866_v47, %v865_v62  ;;  %v846_v57 = vmul.f32 %v3442_v21, %v824_v53  ;;  %2972 = vrsqrt.f32 %v799_v44  ;;  %v785_v58 = vmul.f32 0.0078125, %v766_v56 }
 0x187   : > { %v2963_v59 = vpop.eup %2962  ;;  %v847_v60 = vmul.f32 %v3442_v21, %v825_v48  ;;  %v800_v61 = vadd.f32 1e-06, %v784_v50 }
 0x188   : > { %v2965_v0 = vpop.eup %2964  ;;  %889 = vst [vmem:[#allocation2] sm:$0xff] %v881_v54  ;;  %v868_v63 = vadd.f32 %v3449_v35, %v846_v57  ;;  %v826_v2 = vmul.f32 %v2963_v59, %v3378_v7  ;;  %v801_v6 = vadd.f32 1e-06, %v785_v58  ;;  %v768_v3 = vpop.xlane.xlu1 %767 }
 0x189   : > { %v770_v4 = vpop.xlane.xlu0 %769  ;;  %v827_v5 = vmul.f32 %v2965_v0, %v3384_v14  ;;  %2974 = vrsqrt.f32 %v800_v61  ;;  %v786_v8 = vmul.f32 0.0078125, %v768_v3  ;;  %v869_v13 = vadd.f32 %v3449_v35, %v847_v60 }
 0x18a   : > { %v882_v9 = vpack.c.bf16 %v868_v63, %v867_v1  ;;  %v848_v10 = vmul.f32 %v3442_v21, %v826_v2  ;;  %2976 = vrsqrt.f32 %v801_v6  ;;  %v787_v11 = vmul.f32 0.0078125, %v770_v4 }
 0x18b   : > { %v2967_v12 = vpop.eup %2966  ;;  %v802_v16 = vadd.f32 1e-06, %v786_v8  ;;  %v849_v18 = vmul.f32 %v3442_v21, %v827_v5 }
 0x18c   : > { %v2969_v17 = vpop.eup %2968  ;;  %890 = vst [vmem:[#allocation2 + $0x8] sm:$0xff] %v882_v9  ;;  %v870_v7 = vadd.f32 %v3449_v35, %v848_v10  ;;  %v828_v19 = vmul.f32 %v2967_v12, %v3386_v15  ;;  %v803_v14 = vadd.f32 1e-06, %v787_v11  ;;  %v772_v20 = vpop.xlane.xlu1 %771 }
 0x18d   : > { %v829_v24 = vmul.f32 %v2969_v17, %v3392_v22  ;;  %2978 = vrsqrt.f32 %v802_v16  ;;  %v788_v25 = vmul.f32 0.0078125, %v772_v20  ;;  %v871_v33 = vadd.f32 %v3449_v35, %v849_v18 }
 0x18e   : > { %v883_v26 = vpack.c.bf16 %v870_v7, %v869_v13  ;;  %v850_v27 = vmul.f32 %v3442_v21, %v828_v19  ;;  %2980 = vrsqrt.f32 %v803_v14 }
 0x18f   : > { %v2971_v28 = vpop.eup %2970  ;;  %v804_v29 = vadd.f32 1e-06, %v788_v25  ;;  %v851_v15 = vmul.f32 %v3442_v21, %v829_v24 }
 0x190   : > { %v2973_v32 = vpop.eup %2972  ;;  %891 = vst [vmem:[#allocation2 + $0x10] sm:$0xff] %v883_v26  ;;  %v872_v55 = vadd.f32 %v3449_v35, %v850_v27  ;;  %v830_v34 = vmul.f32 %v2971_v28, %v3394_v23 }
 0x191   : > { %v831_v22 = vmul.f32 %v2973_v32, %v3402_v30  ;;  %2982 = vrsqrt.f32 %v804_v29  ;;  %v873_v42 = vadd.f32 %v3449_v35, %v851_v15 }
 0x192   : > { %v884_v36 = vpack.c.bf16 %v872_v55, %v871_v33  ;;  %v852_v37 = vmul.f32 %v3442_v21, %v830_v34 }
 0x193   : > { %v2975_v40 = vpop.eup %2974  ;;  %v853_v44 = vmul.f32 %v3442_v21, %v831_v22 }
 0x194   : > { %v2977_v41 = vpop.eup %2976  ;;  %892 = vst [vmem:[#allocation2 + $0x18] sm:$0xff] %v884_v36  ;;  %v874_v43 = vadd.f32 %v3449_v35, %v852_v37  ;;  %v832_v51 = vmul.f32 %v2975_v40, %v3406_v31 }
 0x195   : > { %v833_v62 = vmul.f32 %v2977_v41, %v3414_v38  ;;  %v875_v53 = vadd.f32 %v3449_v35, %v853_v44 }
 0x196   : > { %v885_v23 = vpack.c.bf16 %v874_v43, %v873_v42  ;;  %v854_v30 = vmul.f32 %v3442_v21, %v832_v51 }
 0x197   : > { %v2979_v47 = vpop.eup %2978  ;;  %v855_v56 = vmul.f32 %v3442_v21, %v833_v62 }
 0x198   : > { %v2981_v52 = vpop.eup %2980  ;;  %893 = vst [vmem:[#allocation2 + $0x20] sm:$0xff] %v885_v23  ;;  %v876_v49 = vadd.f32 %v3449_v35, %v854_v30  ;;  %v834_v48 = vmul.f32 %v2979_v47, %v3418_v39 }
 0x199   : > { %v835_v50 = vmul.f32 %v2981_v52, %v3426_v46  ;;  %v877_v57 = vadd.f32 %v3449_v35, %v855_v56 }
 0x19a   : > { %v886_v54 = vpack.c.bf16 %v876_v49, %v875_v53  ;;  %v856_v31 = vmul.f32 %v3442_v21, %v834_v48 }
 0x19b   : > { %v2983_v38 = vpop.eup %2982  ;;  %v857_v59 = vmul.f32 %v3442_v21, %v835_v50 }
 0x19c   : > { %894 = vst [vmem:[#allocation2 + $0x28] sm:$0xff] %v886_v54  ;;  %v878_v58 = vadd.f32 %v3449_v35, %v856_v31  ;;  %v836_v60 = vmul.f32 %v2983_v38, %v3430_v45 }
 0x19d   : > { %v879_v39 = vadd.f32 %v3449_v35, %v857_v59 }
 0x19e   : > { %v887_v61 = vpack.c.bf16 %v878_v58, %v877_v57  ;;  %v858_v0 = vmul.f32 %v3442_v21, %v836_v60 }
 0x1a0   : > { %895 = vst [vmem:[#allocation2 + $0x30] sm:$0xff] %v887_v61  ;;  %v880_v46 = vadd.f32 %v3449_v35, %v858_v0 }
 0x1a2   : > { %v888_v1 = vpack.c.bf16 %v880_v46, %v879_v39 }
 0x1a4   : > { %896 = vst [vmem:[#allocation2 + $0x38] sm:$0xff] %v888_v1 }
 0x1a5 PF: > { %v2984_v63 = vld [vmem:[%s3321_s12 + $0x40] sm:$0xff]   ;;  %v2985_v45 = vld [vmem:[%s3321_s12 + $0x48] sm:$0xff]   ;;  %v2986_v21 = vld [vmem:[%s3321_s12 + $0x50] sm:$0xff]   ;;  %p2422_p13 = scmp.ne.s32.totalorder %s3118_s26, 1 }
 0x1a6   : > { %2715 = vmatprep.subr.bf16.mxu1 %v2984_v63  ;;  %v2987_v35 = vld [vmem:[%s3321_s12 + $0x58] sm:$0xff]   ;;  %v913_v2 = vld [vmem:[#allocation2] sm:$0xff]  ;;  %v2993_v3 = vld [vmem:[%s3321_s12 + $0x8] sm:$0xff]  }
 0x1a7   : > { %2716 = vmatpush3.bf16.msra.mxu1 %v2984_v63  ;;  %2731 = vmatprep.mubr.bf16.mxu1 %v913_v2  ;;  %v2992_v6 = vld [vmem:[%s3321_s12] sm:$0xff]   ;;  %v2994_v5 = vld [vmem:[%s3321_s12 + $0x10] sm:$0xff]   ;;  %v2989_v8 = vld [vmem:[%s3321_s12 + $0x68] sm:$0xff]  }
 0x1a8   : > { %2717 = vmatprep.subr.bf16.mxu1 %v2985_v45  ;;  %2699 = vmatprep.mubr.bf16.mxu0 %v913_v2  ;;  %v2988_v4 = vld [vmem:[%s3321_s12 + $0x60] sm:$0xff]   ;;  %v2990_v9 = vld [vmem:[%s3321_s12 + $0x70] sm:$0xff]   ;;  %v2995_v10 = vld [vmem:[%s3321_s12 + $0x18] sm:$0xff]  }
 0x1a9   : > { %2683 = vmatprep.subr.bf16.mxu0 %v2992_v6  ;;  %v2996_v11 = vld [vmem:[%s3321_s12 + $0x20] sm:$0xff]   ;;  %v2991_v12 = vld [vmem:[%s3321_s12 + $0x78] sm:$0xff]   ;;  %v2997_v13 = vld [vmem:[%s3321_s12 + $0x28] sm:$0xff]  }
 0x1aa   : > { %2684 = vmatpush3.bf16.msra.mxu0 %v2992_v6  ;;  %v2998_v16 = vld [vmem:[%s3321_s12 + $0x30] sm:$0xff]   ;;  %v3511_v17 = vld [vmem:[#allocation2 + $0x8] sm:$0xff]  ;;  %v2999_v18 = vld [vmem:[%s3321_s12 + $0x38] sm:$0xff]  }
 0x1ab   : > { %2718 = vmatpush3.bf16.msra.mxu1 %v2985_v45  ;;  %2685 = vmatprep.subr.bf16.mxu0 %v2993_v3  ;;  %v3513_v7 = vld [vmem:[#allocation2 + $0x10] sm:$0xff]  ;;  %v3518_v19 = vld [vmem:[#allocation2 + $0x18] sm:$0xff]  ;;  %v3520_v14 = vld [vmem:[#allocation2 + $0x20] sm:$0xff] }
 0x1ac   : > { %2719 = vmatprep.subr.bf16.mxu1 %v2986_v21  ;;  %v3526_v20 = vld [vmem:[#allocation2 + $0x28] sm:$0xff]  ;;  %v3528_v24 = vld [vmem:[#allocation2 + $0x30] sm:$0xff]  ;;  %v3534_v25 = vld [vmem:[#allocation2 + $0x38] sm:$0xff] }
 0x1ad   : > { %v3541_v27 = vld [vmem:[%s3323_s4 + $0x1] ss:$0 sm:$0xff]  ;;  %v3548_v40 = vld [vmem:[%s3323_s4] ss:$0 sm:$0xff] }
 0x1ae   : > { %2686 = vmatpush3.bf16.msra.mxu0 %v2993_v3 }
 0x1af   : > { %2720 = vmatpush3.bf16.msra.mxu1 %v2986_v21  ;;  %2687 = vmatprep.subr.bf16.mxu0 %v2994_v5 }
 0x1b0   : > { %2721 = vmatprep.subr.bf16.mxu1 %v2987_v35 }
 0x1b2   : > { %2688 = vmatpush3.bf16.msra.mxu0 %v2994_v5 }
 0x1b3   : > { %2722 = vmatpush3.bf16.msra.mxu1 %v2987_v35  ;;  %2689 = vmatprep.subr.bf16.mxu0 %v2995_v10 }
 0x1b4   : > { %2723 = vmatprep.subr.bf16.mxu1 %v2988_v4 }
 0x1b6   : > { %2690 = vmatpush3.bf16.msra.mxu0 %v2995_v10 }
 0x1b7   : > { %2724 = vmatpush3.bf16.msra.mxu1 %v2988_v4  ;;  %2691 = vmatprep.subr.bf16.mxu0 %v2996_v11 }
 0x1b8   : > { %2725 = vmatprep.subr.bf16.mxu1 %v2989_v8 }
 0x1ba   : > { %2692 = vmatpush3.bf16.msra.mxu0 %v2996_v11 }
 0x1bb   : > { %2726 = vmatpush3.bf16.msra.mxu1 %v2989_v8  ;;  %2693 = vmatprep.subr.bf16.mxu0 %v2997_v13 }
 0x1bc   : > { %2727 = vmatprep.subr.bf16.mxu1 %v2990_v9 }
 0x1be   : > { %2694 = vmatpush3.bf16.msra.mxu0 %v2997_v13 }
 0x1bf   : > { %2728 = vmatpush3.bf16.msra.mxu1 %v2990_v9  ;;  %2695 = vmatprep.subr.bf16.mxu0 %v2998_v16 }
 0x1c0   : > { %2729 = vmatprep.subr.bf16.mxu1 %v2991_v12 }
 0x1c2   : > { %2696 = vmatpush3.bf16.msra.mxu0 %v2998_v16 }
 0x1c3   : > { %2730 = vmatpush3.bf16.msra.mxu1 %v2991_v12  ;;  %2697 = vmatprep.subr.bf16.mxu0 %v2999_v18 }
 0x1c6   : > { %2732 = vmatmul.mubr.bf16.vlgmr.msra.gmra.mrb[0].mxu1 %v3511_v17  ;;  %2698 = vmatpush3.bf16.msra.mxu0 %v2999_v18 }
 0x1c7   : > { %2735 = vmatprep.mubr.bf16.mxu1 %v3513_v7 }
 0x1c9   : > { %2700 = vmatmul.mubr.bf16.vlgmr.msra.gmra.mrb[0].mxu0 %v3511_v17 }
 0x1ca   : > { %2703 = vmatprep.mubr.bf16.mxu0 %v3513_v7 }
 0x1ce   : > { %2736 = vmatmul.mubr.bf16.gmra.mrb[4].mxu1 %v3518_v19 }
 0x1cf   : > { %2739 = vmatprep.mubr.bf16.mxu1 %v3520_v14 }
 0x1d1   : > { %2704 = vmatmul.mubr.bf16.gmra.mrb[4].mxu0 %v3518_v19 }
 0x1d2   : > { %2707 = vmatprep.mubr.bf16.mxu0 %v3520_v14 }
 0x1d6   : > { %2740 = vmatmul.mubr.bf16.gmra.mrb[8].mxu1 %v3526_v20 }
 0x1d7   : > { %2743 = vmatprep.mubr.bf16.mxu1 %v3528_v24 }
 0x1d9   : > { %2708 = vmatmul.mubr.bf16.gmra.mrb[8].mxu0 %v3526_v20 }
 0x1da   : > { %2711 = vmatprep.mubr.bf16.mxu0 %v3528_v24 }
 0x1de   : > { %2744 = vmatmul.mubr.bf16.gmra.mrb[12].mxu1 %v3534_v25 }
 0x1e1   : > { %2712 = vmatmul.mubr.bf16.gmra.mrb[12].mxu0 %v3534_v25 }
 0x1e2   : > { %2763 = vmatprep.mubr.bf16.mxu0 %v913_v2 }
 0x299   : > { %v2733_v26 = vpop.f32.mrb[0].mxu1 }
 0x29a   : > { %v1199_v28 = vpop.f32.mrb[1].mxu1  ;;  %v1208_v32 = vadd.f32 %v2733_v26, %v3541_v27 }
 0x29b   : > { %v2734_v29 = vpop.f32.mrb[2].mxu1  ;;  %v1200_v15 = vadd.f32 %v3541_v27, %v1199_v28 }
 0x29c   : > { %v1211_v33 = vadd.f32 %v2734_v29, %v3541_v27  ;;  %v1202_v55 = vpop.f32.mrb[3].mxu1  ;;  %v2701_v51 = vpop.f32.mrb[0].mxu0 }
 0x29d   : > { %v1203_v34 = vadd.f32 %v3541_v27, %v1202_v55  ;;  %v1038_v30 = vadd.f32 %v2701_v51, %v3548_v40  ;;  %v1029_v47 = vpop.f32.mrb[1].mxu0 }
 0x29e   : > { %v1457_v22 = vpack.c.bf16 %v1211_v33, %v1208_v32  ;;  %v1030_v53 = vadd.f32 %v3548_v40, %v1029_v47  ;;  %v2702_v49 = vpop.f32.mrb[2].mxu0 }
 0x29f   : > { %v1456_v36 = vpack.c.bf16 %v1203_v34, %v1200_v15  ;;  %v3556_v48 = vmul.f32 0.125, %v1038_v30  ;;  %v1041_v50 = vadd.f32 %v2702_v49, %v3548_v40  ;;  %v1032_v54 = vpop.f32.mrb[3].mxu0 }
 0x2a0   : > { %v1432_v38 = vmul.f32 0.125, %v1030_v53  ;;  %v1033_v57 = vadd.f32 %v3548_v40, %v1032_v54 }
 0x2a1   : > { %2779 = vmatprep.subr.bf16.mxu1 %v1456_v36  ;;  %v2737_v37 = vpop.f32.mrb[4].mxu1  ;;  %v3560_v58 = vmul.f32 0.125, %v1041_v50 }
 0x2a2   : > { %2780 = vmatpush3.bf16.xpose.msra.mxu1 %v1456_v36  ;;  %v1224_v41 = vadd.f32 %v2737_v37, %v3541_v27  ;;  %v1215_v42 = vpop.f32.mrb[5].mxu1  ;;  %v1433_v60 = vmul.f32 0.125, %v1033_v57 }
 0x2a3   : > { %2781 = vmatprep.subr.bf16.mxu1 %v1457_v22  ;;  %v1216_v43 = vadd.f32 %v3541_v27, %v1215_v42  ;;  %v2738_v44 = vpop.f32.mrb[6].mxu1  ;;  %v1449_v39 = vpack.c.bf16 %v3560_v58, %v3556_v48  ;;  %v3003_v48 = vld [vmem:[%s3321_s12 + $0x98] sm:$0xff]   ;;  %v3004_v58 = vld [vmem:[%s3321_s12 + $0xa0] sm:$0xff]  }
 0x2a4   : > { %v1227_v62 = vadd.f32 %v2738_v44, %v3541_v27  ;;  %v1218_v23 = vpop.f32.mrb[7].mxu1  ;;  %v1448_v63 = vpack.c.bf16 %v1433_v60, %v1432_v38  ;;  %v2705_v45 = vpop.f32.mrb[4].mxu0 }
 0x2a5   : > { %v1219_v52 = vadd.f32 %v3541_v27, %v1218_v23  ;;  %v1054_v2 = vadd.f32 %v2705_v45, %v3548_v40  ;;  %v1045_v6 = vpop.f32.mrb[5].mxu0 }
 0x2a6   : > { %v1459_v56 = vpack.c.bf16 %v1227_v62, %v1224_v41  ;;  %2795 = vmatprep.mubr.bf16.mxu1 %v1448_v63  ;;  %v1046_v4 = vadd.f32 %v3548_v40, %v1045_v6  ;;  %v2706_v5 = vpop.f32.mrb[6].mxu0  ;;  %v3001_v6 = vld [vmem:[%s3321_s12 + $0x88] sm:$0xff]  }
 0x2a7   : > { %v1458_v31 = vpack.c.bf16 %v1219_v52, %v1216_v43  ;;  %v1438_v9 = vmul.f32 0.125, %v1054_v2  ;;  %v1057_v10 = vadd.f32 %v2706_v5, %v3548_v40  ;;  %v1048_v11 = vpop.f32.mrb[7].mxu0  ;;  %v3007_v5 = vld [vmem:[%s3321_s12 + $0xb8] sm:$0xff]  }
 0x2a8   : > { %v1436_v13 = vmul.f32 0.125, %v1046_v4  ;;  %v1049_v16 = vadd.f32 %v3548_v40, %v1048_v11  ;;  %v3006_v4 = vld [vmem:[%s3321_s12 + $0xb0] sm:$0xff]  }
 0x2a9   : > { %v2741_v59 = vpop.f32.mrb[8].mxu1  ;;  %v1439_v18 = vmul.f32 0.125, %v1057_v10 }
 0x2aa   : > { %2782 = vmatpush3.bf16.xpose.msra.mxu1 %v1457_v22  ;;  %v1240_v61 = vadd.f32 %v2741_v59, %v3541_v27  ;;  %v1231_v0 = vpop.f32.mrb[9].mxu1  ;;  %v1437_v28 = vmul.f32 0.125, %v1049_v16 }
 0x2ab   : > { %2783 = vmatprep.subr.bf16.mxu1 %v1458_v31  ;;  %v1232_v46 = vadd.f32 %v3541_v27, %v1231_v0  ;;  %v2742_v1 = vpop.f32.mrb[10].mxu1  ;;  %v1451_v33 = vpack.c.bf16 %v1439_v18, %v1438_v9 }
 0x2ac   : > { %v1243_v21 = vadd.f32 %v2742_v1, %v3541_v27  ;;  %v1234_v35 = vpop.f32.mrb[11].mxu1  ;;  %v1450_v34 = vpack.c.bf16 %v1437_v28, %v1436_v13  ;;  %v2709_v22 = vpop.f32.mrb[8].mxu0 }
 0x2ad   : > { %v1235_v3 = vadd.f32 %v3541_v27, %v1234_v35  ;;  %v1070_v41 = vadd.f32 %v2709_v22, %v3548_v40  ;;  %v1061_v42 = vpop.f32.mrb[9].mxu0 }
 0x2ae   : > { %v1461_v8 = vpack.c.bf16 %v1243_v21, %v1240_v61  ;;  %v1062_v44 = vadd.f32 %v3548_v40, %v1061_v42  ;;  %v2710_v51 = vpop.f32.mrb[10].mxu0 }
 0x2af   : > { %v1460_v12 = vpack.c.bf16 %v1235_v3, %v1232_v46  ;;  %v1442_v23 = vmul.f32 0.125, %v1070_v41  ;;  %v1073_v30 = vadd.f32 %v2710_v51, %v3548_v40  ;;  %v1064_v47 = vpop.f32.mrb[11].mxu0  ;;  %v3002_v3 = vld [vmem:[%s3321_s12 + $0x90] sm:$0xff]  }
 0x2b0   : > { %v1440_v53 = vmul.f32 0.125, %v1062_v44  ;;  %v1065_v49 = vadd.f32 %v3548_v40, %v1064_v47 }
 0x2b1   : > { %v2745_v26 = vpop.f32.mrb[12].mxu1  ;;  %v1443_v50 = vmul.f32 0.125, %v1073_v30 }
 0x2b2   : > { %2784 = vmatpush3.bf16.xpose.msra.mxu1 %v1458_v31  ;;  %v1256_v29 = vadd.f32 %v2745_v26, %v3541_v27  ;;  %v1247_v32 = vpop.f32.mrb[13].mxu1  ;;  %v1441_v54 = vmul.f32 0.125, %v1065_v49 }
 0x2b3   : > { %2785 = vmatprep.subr.bf16.mxu1 %v1459_v56  ;;  %v1248_v55 = vadd.f32 %v3541_v27, %v1247_v32  ;;  %v2746_v15 = vpop.f32.mrb[14].mxu1  ;;  %v1453_v31 = vpack.c.bf16 %v1443_v50, %v1442_v23 }
 0x2b4   : > { %v1259_v36 = vadd.f32 %v2746_v15, %v3541_v27  ;;  %v1250_v37 = vpop.f32.mrb[15].mxu1  ;;  %v1452_v38 = vpack.c.bf16 %v1441_v54, %v1440_v53  ;;  %v2713_v57 = vpop.f32.mrb[12].mxu0 }
 0x2b5   : > { %v1251_v43 = vadd.f32 %v3541_v27, %v1250_v37  ;;  %v1086_v27 = vadd.f32 %v2713_v57, %v3548_v40  ;;  %v1077_v59 = vpop.f32.mrb[13].mxu0 }
 0x2b6   : > { %v1463_v62 = vpack.c.bf16 %v1259_v36, %v1256_v29  ;;  %v1078_v60 = vadd.f32 %v3548_v40, %v1077_v59  ;;  %v2714_v61 = vpop.f32.mrb[14].mxu0 }
 0x2b7   : > { %v1462_v52 = vpack.c.bf16 %v1251_v43, %v1248_v55  ;;  %v1446_v0 = vmul.f32 0.125, %v1086_v27  ;;  %v1089_v46 = vadd.f32 %v2714_v61, %v3548_v40  ;;  %v1080_v1 = vpop.f32.mrb[15].mxu0 }
 0x2b8   : > { %v1444_v63 = vmul.f32 0.125, %v1078_v60  ;;  %v1081_v45 = vadd.f32 %v3548_v40, %v1080_v1  ;;  %v3000_v40 = vld [vmem:[%s3321_s12 + $0x80] sm:$0xff]  }
 0x2b9   : > { %v1447_v21 = vmul.f32 0.125, %v1089_v46  ;;  %2747 = vmatprep.subr.bf16.mxu0 %v3000_v40 }
 0x2ba   : > { %2786 = vmatpush3.bf16.xpose.msra.mxu1 %v1459_v56  ;;  %v1445_v35 = vmul.f32 0.125, %v1081_v45  ;;  %2748 = vmatpush3.bf16.msra.mxu0 %v3000_v40 }
 0x2bb   : > { %2787 = vmatprep.subr.bf16.mxu1 %v1460_v12  ;;  %v1455_v56 = vpack.c.bf16 %v1447_v21, %v1446_v0  ;;  %2749 = vmatprep.subr.bf16.mxu0 %v3001_v6 }
 0x2bc   : > { %v1454_v2 = vpack.c.bf16 %v1445_v35, %v1444_v63 }
 0x2be   : > { %2750 = vmatpush3.bf16.msra.mxu0 %v3001_v6 }
 0x2bf   : > { %2751 = vmatprep.subr.bf16.mxu0 %v3002_v3 }
 0x2c2   : > { %2788 = vmatpush3.bf16.xpose.msra.mxu1 %v1460_v12  ;;  %2752 = vmatpush3.bf16.msra.mxu0 %v3002_v3 }
 0x2c3   : > { %2789 = vmatprep.subr.bf16.mxu1 %v1461_v8  ;;  %2753 = vmatprep.subr.bf16.mxu0 %v3003_v48 }
 0x2c6   : > { %2754 = vmatpush3.bf16.msra.mxu0 %v3003_v48 }
 0x2c7   : > { %2755 = vmatprep.subr.bf16.mxu0 %v3004_v58 }
 0x2ca   : > { %2790 = vmatpush3.bf16.xpose.msra.mxu1 %v1461_v8  ;;  %2756 = vmatpush3.bf16.msra.mxu0 %v3004_v58  ;;  %v921_v8 = vlaneseq }
 0x2cb   : > { %2791 = vmatprep.subr.bf16.mxu1 %v1462_v52 }
 0x2cc   : > { %v922_v9 = vand.u32 127, %v921_v8 }
 0x2ce   : > { %vm923_vm0 = vcmp.lt.s32.totalorder %v922_v9, 5 }
 0x2d2   : > { %2792 = vmatpush3.bf16.xpose.msra.mxu1 %v1462_v52 }
 0x2d3   : > { %2793 = vmatprep.subr.bf16.mxu1 %v1463_v62 }
 0x2da   : > { %2794 = vmatpush3.bf16.xpose.msra.mxu1 %v1463_v62 }
 0x2e1   : > { %2796 = vmatmul.mubr.bf16.vlgmr.msra.gmra.mrb[16].mxu1 %v1449_v39  ;;  %v3005_v39 = vld [vmem:[%s3321_s12 + $0xa8] sm:$0xff]  }
 0x2e2   : > { %2799 = vmatprep.mubr.bf16.mxu1 %v1450_v34  ;;  %2757 = vmatprep.subr.bf16.mxu0 %v3005_v39 }
 0x2e3   : > { %2758 = vmatpush3.bf16.msra.mxu0 %v3005_v39 }
 0x2e4   : > { %2759 = vmatprep.subr.bf16.mxu0 %v3006_v4 }
 0x2e7   : > { %2760 = vmatpush3.bf16.msra.mxu0 %v3006_v4 }
 0x2e8   : > { %2761 = vmatprep.subr.bf16.mxu0 %v3007_v5 }
 0x2e9   : > { %2800 = vmatmul.mubr.bf16.gmra.mrb[20].mxu1 %v1451_v33 }
 0x2ea   : > { %2803 = vmatprep.mubr.bf16.mxu1 %v1452_v38 }
 0x2eb   : > { %2762 = vmatpush3.bf16.msra.mxu0 %v3007_v5 }
 0x2ee   : > { %2764 = vmatmul.mubr.bf16.vlgmr.msra.gmra.mrb[16].mxu0 %v3511_v17 }
 0x2ef   : > { %2767 = vmatprep.mubr.bf16.mxu0 %v3513_v7 }
 0x2f1   : > { %2804 = vmatmul.mubr.bf16.gmra.mrb[24].mxu1 %v1453_v31  ;;  %v3652_v31 = vld [vmem:[%s3323_s4 + $0x2] ss:$0 sm:$0xff] }
 0x2f2   : > { %2807 = vmatprep.mubr.bf16.mxu1 %v1454_v2 }
 0x2f6   : > { %2768 = vmatmul.mubr.bf16.gmra.mrb[20].mxu0 %v3518_v19 }
 0x2f7   : > { %2771 = vmatprep.mubr.bf16.mxu0 %v3520_v14 }
 0x2f9   : > { %2808 = vmatmul.mubr.bf16.gmra.mrb[28].mxu1 %v1455_v56 }
 0x2fe   : > { %2772 = vmatmul.mubr.bf16.gmra.mrb[24].mxu0 %v3526_v20 }
 0x2ff   : > { %2775 = vmatprep.mubr.bf16.mxu0 %v3528_v24 }
 0x306   : > { %2776 = vmatmul.mubr.bf16.gmra.mrb[28].mxu0 %v3534_v25 }
 0x3b4   : > { %v2797_v10 = vpop.f32.mrb[16].mxu1 }
 0x3b5   : > { %v1498_v11 = vpop.f32.mrb[17].mxu1  ;;  %v1565_v12 = vsel %vm923_vm0, %v2797_v10, -1e+30 }
 0x3b6   : > { %1583 = vmax.xlane.f32.xlu1 %v1565_v12  ;;  %v2798_v17 = vpop.f32.mrb[18].mxu1  ;;  %v1563_v7 = vsel %vm923_vm0, %v1498_v11, -1e+30 }
 0x3b7   : > { %1579 = vmax.xlane.f32.xlu0 %v1563_v7  ;;  %v1501_v19 = vpop.f32.mrb[19].mxu1  ;;  %v1566_v14 = vsel %vm923_vm0, %v2798_v17, -1e+30 }
 0x3b8   : > { %v1564_v20 = vsel %vm923_vm0, %v1501_v19, -1e+30 }
 0x3ba   : > { %1585 = vmax.xlane.f32.xlu1 %v1566_v14 }
 0x3bb   : > { %1581 = vmax.xlane.f32.xlu0 %v1564_v20 }
 0x3bc   : > { %v2801_v24 = vpop.f32.mrb[20].mxu1 }
 0x3bd   : > { %v1514_v25 = vpop.f32.mrb[21].mxu1  ;;  %v3612_v28 = vsel %vm923_vm0, %v2801_v24, -1e+30 }
 0x3be   : > { %v2802_v13 = vpop.f32.mrb[22].mxu1  ;;  %v1567_v16 = vsel %vm923_vm0, %v1514_v25, -1e+30 }
 0x3bf   : > { %1587 = vmax.xlane.f32.xlu0 %v1567_v16  ;;  %v1517_v18 = vpop.f32.mrb[23].mxu1  ;;  %v3616_v32 = vsel %vm923_vm0, %v2802_v13, -1e+30 }
 0x3c0   : > { %v3608_v26 = vsel %vm923_vm0, %v1517_v18, -1e+30 }
 0x3c1   : > { %1589 = vmax.xlane.f32.xlu1 %v3608_v26  ;;  %v2765_v59 = vpop.f32.mrb[16].mxu0 }
 0x3c2   : > { %v1378_v61 = vadd.f32 %v2765_v59, %v3652_v31  ;;  %v1369_v0 = vpop.f32.mrb[17].mxu0 }
 0x3c3   : > { %1591 = vmax.xlane.f32.xlu0 %v3612_v28  ;;  %v1370_v46 = vadd.f32 %v3652_v31, %v1369_v0  ;;  %v2766_v1 = vpop.f32.mrb[18].mxu0 }
 0x3c4   : > { %v2805_v29 = vpop.f32.mrb[24].mxu1  ;;  %v1381_v45 = vadd.f32 %v2766_v1, %v3652_v31  ;;  %v1372_v21 = vpop.f32.mrb[19].mxu0 }
 0x3c5   : > { %1593 = vmax.xlane.f32.xlu1 %v3616_v32  ;;  %v1530_v33 = vpop.f32.mrb[25].mxu1  ;;  %v3628_v36 = vsel %vm923_vm0, %v2805_v29, -1e+30  ;;  %v1373_v2 = vadd.f32 %v3652_v31, %v1372_v21 }
 0x3c6   : > { %v2806_v55 = vpop.f32.mrb[26].mxu1  ;;  %v3620_v15 = vsel %vm923_vm0, %v1530_v33, -1e+30  ;;  %v1732_v6 = vpack.c.bf16 %v1381_v45, %v1378_v61 }
 0x3c7   : > { %1595 = vmax.xlane.f32.xlu0 %v3620_v15  ;;  %v1533_v34 = vpop.f32.mrb[27].mxu1  ;;  %v3632_v41 = vsel %vm923_vm0, %v2806_v55, -1e+30  ;;  %v1731_v48 = vpack.c.bf16 %v1373_v2, %v1370_v46 }
 0x3c8   : > { %v3624_v22 = vsel %vm923_vm0, %v1533_v34, -1e+30 }
 0x3c9   : > { %1597 = vmax.xlane.f32.xlu1 %v3624_v22  ;;  %v2769_v5 = vpop.f32.mrb[20].mxu0  ;;  %2811 = vmatprep.subr.bf16.mxu0 %v1731_v48 }
 0x3ca   : > { %v1394_v10 = vadd.f32 %v2769_v5, %v3652_v31  ;;  %v1385_v11 = vpop.f32.mrb[21].mxu0  ;;  %2812 = vmatpush3.bf16.msra.mxu0 %v1731_v48 }
 0x3cb   : > { %1599 = vmax.xlane.f32.xlu0 %v3628_v36  ;;  %v1386_v17 = vadd.f32 %v3652_v31, %v1385_v11  ;;  %2813 = vmatprep.subr.bf16.mxu0 %v1732_v6 }
 0x3cc   : > { %v2809_v37 = vpop.f32.mrb[28].mxu1 }
 0x3cd   : > { %1601 = vmax.xlane.f32.xlu1 %v3632_v41  ;;  %v1546_v42 = vpop.f32.mrb[29].mxu1  ;;  %v3644_v23 = vsel %vm923_vm0, %v2809_v37, -1e+30 }
 0x3ce   : > { %v2810_v43 = vpop.f32.mrb[30].mxu1  ;;  %v3636_v44 = vsel %vm923_vm0, %v1546_v42, -1e+30  ;;  %2814 = vmatpush3.bf16.msra.mxu0 %v1732_v6 }
 0x3cf   : > { %1603 = vmax.xlane.f32.xlu0 %v3636_v44  ;;  %v1549_v51 = vpop.f32.mrb[31].mxu1  ;;  %v3648_v30 = vsel %vm923_vm0, %v2810_v43, -1e+30 }
 0x3d0   : > { %v3640_v62 = vsel %vm923_vm0, %v1549_v51, -1e+30 }
 0x3d1   : > { %1605 = vmax.xlane.f32.xlu1 %v3640_v62 }
 0x3d3   : > { %1607 = vmax.xlane.f32.xlu0 %v3644_v23 }
 0x3d5   : > { %1609 = vmax.xlane.f32.xlu1 %v3648_v30 }
 0x443   : > { %v1584_v47 = vpop.xlane.xlu1 %1583 }
 0x444   : > { %v1613_v52 = vsub.f32 %v1565_v12, %v1584_v47  ;;  %v1580_v53 = vpop.xlane.xlu0 %1579 }
 0x445   : > { %v1611_v49 = vsub.f32 %v1563_v7, %v1580_v53  ;;  %v2770_v7 = vpop.f32.mrb[22].mxu0 }
 0x446   : > { %v1631_v38 = vmul.f32 1.442695, %v1613_v52  ;;  %v1397_v24 = vadd.f32 %v2770_v7, %v3652_v31  ;;  %v1388_v25 = vpop.f32.mrb[23].mxu0 }
 0x447   : > { %v1627_v50 = vmul.f32 1.442695, %v1611_v49  ;;  %v1586_v54 = vpop.xlane.xlu1 %1585  ;;  %v2773_v43 = vpop.f32.mrb[24].mxu0 }
 0x448   : > { %v1614_v57 = vsub.f32 %v1566_v14, %v1586_v54  ;;  %v1582_v27 = vpop.xlane.xlu0 %1581  ;;  %v1410_v47 = vadd.f32 %v2773_v43, %v3652_v31  ;;  %v1401_v52 = vpop.f32.mrb[25].mxu0 }
 0x449   : > { %3016 = vpow2.f32 %v1627_v50  ;;  %v1612_v60 = vsub.f32 %v1564_v20, %v1582_v27  ;;  %v2774_v50 = vpop.f32.mrb[26].mxu0 }
 0x44a   : > { %3018 = vpow2.f32 %v1631_v38  ;;  %v1633_v35 = vmul.f32 1.442695, %v1614_v57  ;;  %v1413_v27 = vadd.f32 %v2774_v50, %v3652_v31  ;;  %v1404_v59 = vpop.f32.mrb[27].mxu0 }
 0x44b   : > { %v1629_v63 = vmul.f32 1.442695, %v1612_v60  ;;  %v1405_v60 = vadd.f32 %v3652_v31, %v1404_v59  ;;  %v2777_v2 = vpop.f32.mrb[28].mxu0 }
 0x44c   : > { %v1588_v56 = vpop.xlane.xlu0 %1587  ;;  %v1736_v46 = vpack.c.bf16 %v1413_v27, %v1410_v47  ;;  %v1426_v6 = vadd.f32 %v2777_v2, %v3652_v31 }
 0x44d   : > { %3020 = vpow2.f32 %v1629_v63  ;;  %v1615_v40 = vsub.f32 %v1567_v16, %v1588_v56  ;;  %v1389_v16 = vadd.f32 %v3652_v31, %v1388_v25 }
 0x44e   : > { %v1590_v3 = vpop.xlane.xlu1 %1589  ;;  %3022 = vpow2.f32 %v1633_v35 }
 0x44f   : > { %v1635_v58 = vmul.f32 1.442695, %v1615_v40  ;;  %v1616_v39 = vsub.f32 %v3608_v26, %v1590_v3  ;;  %v1733_v55 = vpack.c.bf16 %v1389_v16, %v1386_v17  ;;  %v1417_v3 = vpop.f32.mrb[29].mxu0  ;;  %v3734_v16 = vld [vmem:[%s3314_s11 + $0x8] sm:$0xff]  }
 0x450   : > { %v1592_v4 = vpop.xlane.xlu0 %1591 }
 0x451   : > { %3024 = vpow2.f32 %v1635_v58  ;;  %v1637_v8 = vmul.f32 1.442695, %v1616_v39  ;;  %v1617_v9 = vsub.f32 %v3612_v28, %v1592_v4  ;;  %v1734_v28 = vpack.c.bf16 %v1397_v24, %v1394_v10  ;;  %2815 = vmatprep.subr.bf16.mxu0 %v1733_v55  ;;  %v2778_v39 = vpop.f32.mrb[30].mxu0 }
 0x452   : > { %v1594_v12 = vpop.xlane.xlu1 %1593  ;;  %2816 = vmatpush3.bf16.msra.mxu0 %v1733_v55  ;;  %v1420_v10 = vpop.f32.mrb[31].mxu0  ;;  %v3760_v55 = vld [vmem:[%s3314_s11 + $0x30] sm:$0xff]  }
 0x453   : > { %v3662_v19 = vpop.eup %3016  ;;  %v1639_v14 = vmul.f32 1.442695, %v1617_v9  ;;  %v1618_v20 = vsub.f32 %v3616_v32, %v1594_v12  ;;  %3026 = vpow2.f32 %v1637_v8  ;;  %2817 = vmatprep.subr.bf16.mxu0 %v1734_v28  ;;  %v1429_v9 = vadd.f32 %v2778_v39, %v3652_v31 }
 0x454   : > { %v1596_v13 = vpop.xlane.xlu0 %1595  ;;  %1659 = vadd.xlane.f32.xlu0 %v3662_v19  ;;  %v3669_v29 = vpop.eup %3018 }
 0x455   : > { %3028 = vpow2.f32 %v1639_v14  ;;  %v1641_v18 = vmul.f32 1.442695, %v1618_v20  ;;  %v1619_v26 = vsub.f32 %v3620_v15, %v1596_v13  ;;  %v1738_v12 = vpack.c.bf16 %v1429_v9, %v1426_v6  ;;  %v3730_v13 = vld [vmem:[%s3314_s11] sm:$0xff]  }
 0x456   : > { %v1598_v33 = vpop.xlane.xlu1 %1597  ;;  %2818 = vmatpush3.bf16.msra.mxu0 %v1734_v28  ;;  %2875 = vmatprep.subr.bf16.mxu1 %v3730_v13  ;;  %v3750_v28 = vld [vmem:[%s3314_s11 + $0x20] sm:$0xff]  }
 0x457   : > { %v3671_v32 = vpop.eup %3020  ;;  %v1643_v34 = vmul.f32 1.442695, %v1619_v26  ;;  %v1620_v37 = vsub.f32 %v3624_v22, %v1598_v33  ;;  %3030 = vpow2.f32 %v1641_v18  ;;  %v1402_v22 = vadd.f32 %v3652_v31, %v1401_v52  ;;  %2883 = vmatpush3.bf16.msra.mxu1 %v3730_v13  ;;  %v3740_v18 = vld [vmem:[%s3314_s11 + $0x10] sm:$0xff]   ;;  %v3745_v26 = vld [vmem:[%s3314_s11 + $0x18] sm:$0xff]   ;;  %v3755_v33 = vld [vmem:[%s3314_s11 + $0x28] sm:$0xff]  }
 0x458   : > { %v1600_v42 = vpop.xlane.xlu0 %1599  ;;  %1663 = vadd.xlane.f32.xlu0 %v3669_v29  ;;  %1661 = vadd.xlane.f32.xlu1 %v3671_v32  ;;  %v3678_v53 = vpop.eup %3022 }
 0x459   : > { %3032 = vpow2.f32 %v1643_v34  ;;  %v1645_v15 = vmul.f32 1.442695, %v1620_v37  ;;  %v1621_v51 = vsub.f32 %v3628_v36, %v1600_v42  ;;  %v1735_v63 = vpack.c.bf16 %v1405_v60, %v1402_v22  ;;  %2876 = vmatprep.subr.bf16.mxu1 %v3734_v16 }
 0x45a   : > { %v1602_v49 = vpop.xlane.xlu1 %1601 }
 0x45b   : > { %v3681_v54 = vpop.eup %3024  ;;  %v1647_v38 = vmul.f32 1.442695, %v1621_v51  ;;  %v1622_v57 = vsub.f32 %v3632_v41, %v1602_v49  ;;  %3034 = vpow2.f32 %v1645_v15  ;;  %2819 = vmatprep.subr.bf16.mxu0 %v1735_v63  ;;  %2884 = vmatpush3.bf16.msra.mxu1 %v3734_v16 }
 0x45c   : > { %1667 = vadd.xlane.f32.xlu0 %v3681_v54  ;;  %v1604_v36 = vpop.xlane.xlu0 %1603  ;;  %1665 = vadd.xlane.f32.xlu1 %v3678_v53 }
 0x45d   : > { %3036 = vpow2.f32 %v1647_v38  ;;  %v1649_v61 = vmul.f32 1.442695, %v1622_v57  ;;  %v1623_v0 = vsub.f32 %v3636_v44, %v1604_v36  ;;  %v3689_v1 = vpop.eup %3026  ;;  %2820 = vmatpush3.bf16.msra.mxu0 %v1735_v63  ;;  %2877 = vmatprep.subr.bf16.mxu1 %v3740_v18 }
 0x45e   : > { %v1606_v41 = vpop.xlane.xlu1 %1605  ;;  %2821 = vmatprep.subr.bf16.mxu0 %v1736_v46 }
 0x45f   : > { %v3691_v45 = vpop.eup %3028  ;;  %v1651_v21 = vmul.f32 1.442695, %v1623_v0  ;;  %v1624_v35 = vsub.f32 %v3640_v62, %v1606_v41  ;;  %3038 = vpow2.f32 %v1649_v61  ;;  %v1418_v62 = vadd.f32 %v3652_v31, %v1417_v3  ;;  %2885 = vmatpush3.bf16.msra.mxu1 %v3740_v18 }
 0x460   : > { %1671 = vadd.xlane.f32.xlu0 %v3691_v45  ;;  %v1608_v56 = vpop.xlane.xlu0 %1607  ;;  %1669 = vadd.xlane.f32.xlu1 %v3689_v1 }
 0x461   : > { %3040 = vpow2.f32 %v1651_v21  ;;  %v1653_v44 = vmul.f32 1.442695, %v1624_v35  ;;  %v1625_v40 = vsub.f32 %v3644_v23, %v1608_v56  ;;  %v3698_v48 = vpop.eup %3030  ;;  %v1421_v23 = vadd.f32 %v3652_v31, %v1420_v10  ;;  %2822 = vmatpush3.bf16.msra.mxu0 %v1736_v46  ;;  %2878 = vmatprep.subr.bf16.mxu1 %v3745_v26 }
 0x462   : > { %v1610_v58 = vpop.xlane.xlu1 %1609 }
 0x463   : > { %v3701_v4 = vpop.eup %3032  ;;  %v1655_v5 = vmul.f32 1.442695, %v1625_v40  ;;  %v1626_v8 = vsub.f32 %v3648_v30, %v1610_v58  ;;  %3042 = vpow2.f32 %v1653_v44  ;;  %v1737_v7 = vpack.c.bf16 %v1421_v23, %v1418_v62  ;;  %2886 = vmatpush3.bf16.msra.mxu1 %v3745_v26 }
 0x464   : > { %1675 = vadd.xlane.f32.xlu0 %v3701_v4  ;;  %1673 = vadd.xlane.f32.xlu1 %v3698_v48 }
 0x465   : > { %3044 = vpow2.f32 %v1655_v5  ;;  %v1657_v11 = vmul.f32 1.442695, %v1626_v8  ;;  %v3708_v17 = vpop.eup %3034  ;;  %2823 = vmatprep.subr.bf16.mxu0 %v1737_v7  ;;  %2879 = vmatprep.subr.bf16.mxu1 %v3750_v28 }
 0x466   : > { %2824 = vmatpush3.bf16.msra.mxu0 %v1737_v7 }
 0x467   : > { %v3710_v14 = vpop.eup %3036  ;;  %3046 = vpow2.f32 %v1657_v11  ;;  %2825 = vmatprep.subr.bf16.mxu0 %v1738_v12  ;;  %2887 = vmatpush3.bf16.msra.mxu1 %v3750_v28 }
 0x468   : > { %1679 = vadd.xlane.f32.xlu0 %v3710_v14  ;;  %1677 = vadd.xlane.f32.xlu1 %v3708_v17 }
 0x469   : > { %v3714_v30 = vpop.eup %3038  ;;  %2880 = vmatprep.subr.bf16.mxu1 %v3755_v33 }
 0x46a   : > { %2826 = vmatpush3.bf16.msra.mxu0 %v1738_v12 }
 0x46b   : > { %v3716_v31 = vpop.eup %3040  ;;  %2843 = vmatprep.subr.bf16.mxu0 %v3730_v13  ;;  %2888 = vmatpush3.bf16.msra.mxu1 %v3755_v33 }
 0x46c   : > { %1683 = vadd.xlane.f32.xlu0 %v3716_v31  ;;  %1681 = vadd.xlane.f32.xlu1 %v3714_v30 }
 0x46d   : > { %v3720_v20 = vpop.eup %3042  ;;  %2881 = vmatprep.subr.bf16.mxu1 %v3760_v55 }
 0x46f   : > { %v3722_v24 = vpop.eup %3044  ;;  %2889 = vmatpush3.bf16.msra.mxu1 %v3760_v55 }
 0x470   : > { %1687 = vadd.xlane.f32.xlu0 %v3722_v24  ;;  %1685 = vadd.xlane.f32.xlu1 %v3720_v20 }
 0x471   : > { %v3726_v25 = vpop.eup %3046 }
 0x474   : > { %1689 = vadd.xlane.f32.xlu1 %v3726_v25 }
 0x4e1   : > { %v1660_v34 = vpop.xlane.xlu0 %1659 }
 0x4e2   : > { %3048 = vrcp.f32 %v1660_v34 }
 0x4e5   : > { %v1664_v37 = vpop.xlane.xlu0 %1663  ;;  %v1662_v42 = vpop.xlane.xlu1 %1661 }
 0x4e6   : > { %3050 = vrcp.f32 %v1662_v42 }
 0x4e7   : > { %3052 = vrcp.f32 %v1664_v37 }
 0x4e9   : > { %v1668_v43 = vpop.xlane.xlu0 %1667  ;;  %v1666_v15 = vpop.xlane.xlu1 %1665 }
 0x4ea   : > { %3054 = vrcp.f32 %v1666_v15 }
 0x4eb   : > { %3056 = vrcp.f32 %v1668_v43 }
 0x4ec   : > { %v3049_v52 = vpop.eup %3048 }
 0x4ed   : > { %v1672_v51 = vpop.xlane.xlu0 %1671  ;;  %v1670_v47 = vpop.xlane.xlu1 %1669  ;;  %v1707_v38 = vmul.f32 %v3049_v52, %v3662_v19 }
 0x4ee   : > { %3058 = vrcp.f32 %v1670_v47 }
 0x4ef   : > { %3060 = vrcp.f32 %v1672_v51 }
 0x4f0   : > { %v3051_v49 = vpop.eup %3050 }
 0x4f1   : > { %v1676_v22 = vpop.xlane.xlu0 %1675  ;;  %v1674_v50 = vpop.xlane.xlu1 %1673  ;;  %v1708_v57 = vmul.f32 %v3051_v49, %v3671_v32 }
 0x4f2   : > { %v3053_v27 = vpop.eup %3052  ;;  %3062 = vrcp.f32 %v1674_v50 }
 0x4f3   : > { %v1723_v59 = vpack.c.bf16 %v1708_v57, %v1707_v38  ;;  %3064 = vrcp.f32 %v1676_v22  ;;  %v1709_v0 = vmul.f32 %v3053_v27, %v3669_v29 }
 0x4f4   : > { %v3055_v36 = vpop.eup %3054 }
 0x4f5   : > { %v1680_v60 = vpop.xlane.xlu0 %1679  ;;  %v1678_v61 = vpop.xlane.xlu1 %1677  ;;  %v1710_v46 = vmul.f32 %v3055_v36, %v3678_v53  ;;  %2827 = vmatprep.mubr.bf16.mxu0 %v1723_v59 }
 0x4f6   : > { %v3057_v41 = vpop.eup %3056  ;;  %3066 = vrcp.f32 %v1678_v61  ;;  %v1838_v61 = vld [vmem:[#allocation3 + $0x10] sm:$0xff] }
 0x4f7   : > { %v1724_v63 = vpack.c.bf16 %v1710_v46, %v1709_v0  ;;  %3068 = vrcp.f32 %v1680_v60  ;;  %v1711_v32 = vmul.f32 %v3057_v41, %v3681_v54  ;;  %v1836_v0 = vld [vmem:[#allocation3] sm:$0xff]  ;;  %v1839_v41 = vld [vmem:[#allocation3 + $0x18] sm:$0xff] }
 0x4f8   : > { %v3059_v21 = vpop.eup %3058 }
 0x4f9   : > { %v1684_v19 = vpop.xlane.xlu0 %1683  ;;  %v1682_v35 = vpop.xlane.xlu1 %1681  ;;  %2828 = vmatmul.mubr.bf16.vlgmr.msra.gmra.mrb[32].mxu0 %v1724_v63  ;;  %v1712_v56 = vmul.f32 %v3059_v21, %v3689_v1 }
 0x4fa   : > { %v3061_v2 = vpop.eup %3060  ;;  %3070 = vrcp.f32 %v1682_v35  ;;  %2844 = vmatpush3.bf16.msra.mxu0 %v3730_v13 }
 0x4fb   : > { %v1725_v29 = vpack.c.bf16 %v1712_v56, %v1711_v32  ;;  %2845 = vmatprep.subr.bf16.mxu0 %v3734_v16  ;;  %3072 = vrcp.f32 %v1684_v19  ;;  %v1713_v6 = vmul.f32 %v3061_v2, %v3691_v45  ;;  %v1837_v19 = vld [vmem:[#allocation3 + $0x8] sm:$0xff] }
 0x4fc   : > { %v3063_v53 = vpop.eup %3062 }
 0x4fd   : > { %v1688_v44 = vpop.xlane.xlu0 %1687  ;;  %v1686_v40 = vpop.xlane.xlu1 %1685  ;;  %2831 = vmatprep.mubr.bf16.mxu0 %v1725_v29  ;;  %v1714_v3 = vmul.f32 %v3063_v53, %v3698_v48  ;;  %v1842_v53 = vld [vmem:[#allocation3 + $0x30] sm:$0xff] }
 0x4fe   : > { %v3065_v58 = vpop.eup %3064  ;;  %3074 = vrcp.f32 %v1686_v40  ;;  %2846 = vmatpush3.bf16.msra.mxu0 %v3734_v16 }
 0x4ff   : > { %3076 = vrcp.f32 %v1688_v44  ;;  %v1726_v54 = vpack.c.bf16 %v1714_v3, %v1713_v6  ;;  %2847 = vmatprep.subr.bf16.mxu0 %v3740_v18  ;;  %v1715_v39 = vmul.f32 %v3065_v58, %v3701_v4  ;;  %v1840_v44 = vld [vmem:[#allocation3 + $0x20] sm:$0xff]  ;;  %v1843_v6 = vld [vmem:[#allocation3 + $0x38] sm:$0xff] }
 0x500   : > { %v3067_v1 = vpop.eup %3066 }
 0x501   : > { %v1690_v62 = vpop.xlane.xlu1 %1689  ;;  %2832 = vmatmul.mubr.bf16.gmra.mrb[36].mxu0 %v1726_v54  ;;  %v1716_v5 = vmul.f32 %v3067_v1, %v3708_v17  ;;  %v3069_v8 = vpop.eup %3068  ;;  %v1841_v54 = vld [vmem:[#allocation3 + $0x28] sm:$0xff] }
 0x502   : > { %3078 = vrcp.f32 %v1690_v62  ;;  %2848 = vmatpush3.bf16.msra.mxu0 %v3740_v18  ;;  %v1717_v9 = vmul.f32 %v3069_v8, %v3710_v14 }
 0x503   : > { %v1727_v45 = vpack.c.bf16 %v1716_v5, %v1715_v39  ;;  %2849 = vmatprep.subr.bf16.mxu0 %v3745_v26 }
 0x504   : > { %v3071_v48 = vpop.eup %3070 }
 0x505   : > { %2835 = vmatprep.mubr.bf16.mxu0 %v1727_v45  ;;  %v1718_v10 = vmul.f32 %v3071_v48, %v3714_v30  ;;  %v3073_v23 = vpop.eup %3072  ;;  %v1846_v45 = vld [vmem:[#allocation3 + $0x50] sm:$0xff]  ;;  %v1844_v48 = vld [vmem:[#allocation3 + $0x40] sm:$0xff] }
 0x506   : > { %2850 = vmatpush3.bf16.msra.mxu0 %v3745_v26  ;;  %v1719_v17 = vmul.f32 %v3073_v23, %v3716_v31  ;;  %v3015_v31 = vld [vmem:[%s3314_s11 + $0x38] sm:$0xff]  }
 0x507   : > { %v1728_v11 = vpack.c.bf16 %v1718_v10, %v1717_v9  ;;  %2851 = vmatprep.subr.bf16.mxu0 %v3750_v28  ;;  %2882 = vmatprep.subr.bf16.mxu1 %v3015_v31  ;;  %v1847_v10 = vld [vmem:[#allocation3 + $0x58] sm:$0xff] }
 0x508   : > { %v3075_v4 = vpop.eup %3074  ;;  %2890 = vmatpush3.bf16.msra.mxu1 %v3015_v31 }
 0x509   : > { %v3077_v12 = vpop.eup %3076  ;;  %2836 = vmatmul.mubr.bf16.gmra.mrb[40].mxu0 %v1728_v11  ;;  %v1720_v7 = vmul.f32 %v3075_v4, %v3720_v20  ;;  %v1845_v4 = vld [vmem:[#allocation3 + $0x48] sm:$0xff] }
 0x50a   : > { %2852 = vmatpush3.bf16.msra.mxu0 %v3750_v28  ;;  %v1721_v30 = vmul.f32 %v3077_v12, %v3722_v24 }
 0x50b   : > { %v1729_v14 = vpack.c.bf16 %v1720_v7, %v1719_v17  ;;  %2853 = vmatprep.subr.bf16.mxu0 %v3755_v33 }
 0x50c   : > { %v3079_v13 = vpop.eup %3078 }
 0x50d   : > { %v1722_v16 = vmul.f32 %v3079_v13, %v3726_v25  ;;  %2839 = vmatprep.mubr.bf16.mxu0 %v1729_v14 }
 0x50e   : > { %2854 = vmatpush3.bf16.msra.mxu0 %v3755_v33 }
 0x50f   : > { %v1730_v18 = vpack.c.bf16 %v1722_v16, %v1721_v30  ;;  %2855 = vmatprep.subr.bf16.mxu0 %v3760_v55  ;;  %v1850_v30 = vld [vmem:[#allocation3 + $0x70] sm:$0xff]  ;;  %v1848_v16 = vld [vmem:[#allocation3 + $0x60] sm:$0xff] }
 0x511   : > { %2840 = vmatmul.mubr.bf16.gmra.mrb[44].mxu0 %v1730_v18 }
 0x512   : > { %2856 = vmatpush3.bf16.msra.mxu0 %v3760_v55 }
 0x513   : > { %2857 = vmatprep.subr.bf16.mxu0 %v3015_v31 }
 0x516   : > { %2858 = vmatpush3.bf16.msra.mxu0 %v3015_v31  ;;  %v1851_v31 = vld [vmem:[#allocation3 + $0x78] sm:$0xff] }
 0x5cc   : > { %v2829_v20 = vpop.f32.mrb[32].mxu0 }
 0x5cd   : > { %v1773_v26 = vpop.f32.mrb[33].mxu0 }
 0x5ce   : > { %v2830_v28 = vpop.f32.mrb[34].mxu0 }
 0x5cf   : > { %v1853_v24 = vpack.c.bf16 %v2830_v28, %v2829_v20  ;;  %v1776_v34 = vpop.f32.mrb[35].mxu0  ;;  %v1849_v28 = vld [vmem:[#allocation3 + $0x68] sm:$0xff] }
 0x5d0   : > { %v1852_v25 = vpack.c.bf16 %v1776_v34, %v1773_v26 }
 0x5d2   : > { %2859 = vmatprep.mubr.bf16.mxu0 %v1852_v25 }
 0x5d3   : > { %2860 = vmatmul.mubr.bf16.vlgmr.msra.gmra.mrb[48].mxu0 %v1853_v24 }
 0x5d4   : > { %v2833_v37 = vpop.f32.mrb[36].mxu0 }
 0x5d5   : > { %v1789_v33 = vpop.f32.mrb[37].mxu0 }
 0x5d6   : > { %v2834_v42 = vpop.f32.mrb[38].mxu0 }
 0x5d7   : > { %v1855_v43 = vpack.c.bf16 %v2834_v42, %v2833_v37  ;;  %v1792_v15 = vpop.f32.mrb[39].mxu0  ;;  %v2495_v42 = vld [vmem:[%s3309_s21] sm:$0xff] (!%p2422_p13)  }
 0x5d8   : > { %v1854_v51 = vpack.c.bf16 %v1792_v15, %v1789_v33 }
 0x5da   : > { %2863 = vmatprep.mubr.bf16.mxu0 %v1854_v51  ;;  %v2496_v51 = vunpack.c.l.bf16 (!%p2422_p13), %v2495_v42 }
 0x5db   : > { %2864 = vmatmul.mubr.bf16.gmra.mrb[52].mxu0 %v1855_v43 }
 0x5dc   : > { %v2837_v55 = vpop.f32.mrb[40].mxu0 }
 0x5dd   : > { %v1805_v47 = vpop.f32.mrb[41].mxu0 }
 0x5de   : > { %v2838_v52 = vpop.f32.mrb[42].mxu0 }
 0x5df   : > { %v1857_v49 = vpack.c.bf16 %v2838_v52, %v2837_v55  ;;  %v1808_v22 = vpop.f32.mrb[43].mxu0  ;;  %v2497_v55 = vunpack.c.h.bf16 (!%p2422_p13), %v2495_v42  ;;  %v2573_v52 = vld [vmem:[%s3309_s21 + $0x8] sm:$0xff] (!%p2422_p13)  }
 0x5e0   : > { %v1856_v50 = vpack.c.bf16 %v1808_v22, %v1805_v47  ;;  %v3800_v47 = vld [vmem:[%s3860_s6] ss:$0 sm:$0xff] (!%p2422_p13)  ;;  %v2500_v22 = vunpack.c.l.bf16 (!%p2422_p13), %v2573_v52 }
 0x5e2   : > { %2867 = vmatprep.mubr.bf16.mxu1 %v1856_v50  ;;  %v2501_v50 = vunpack.c.h.bf16 (!%p2422_p13), %v2573_v52 }
 0x5e3   : > { %2868 = vmatmul.mubr.bf16.vlgmr.msra.gmra.mrb[32].mxu1 %v1857_v49 }
 0x5e4   : > { %v2841_v38 = vpop.f32.mrb[44].mxu0 }
 0x5e5   : > { %v1821_v57 = vpop.f32.mrb[45].mxu0 }
 0x5e6   : > { %v2842_v27 = vpop.f32.mrb[46].mxu0 }
 0x5e7   : > { %v1859_v59 = vpack.c.bf16 %v2842_v27, %v2841_v38  ;;  %v1824_v36 = vpop.f32.mrb[47].mxu0 }
 0x5e8   : > { %v1858_v60 = vpack.c.bf16 %v1824_v36, %v1821_v57  ;;  %v2574_v57 = vld [vmem:[%s3309_s21 + $0x10] sm:$0xff] (!%p2422_p13)  }
 0x5ea   : > { %2871 = vmatprep.mubr.bf16.mxu1 %v1858_v60  ;;  %v2504_v60 = vunpack.c.l.bf16 (!%p2422_p13), %v2574_v57 }
 0x5eb   : > { %2872 = vmatmul.mubr.bf16.gmra.mrb[36].mxu1 %v1859_v59 }
 0x6a6   : > { %v2861_v46 = vpop.f32.mrb[48].mxu0 }
 0x6a7   : > { %v2023_v63 = vadd.f32 %v2861_v46, %v1838_v61  ;;  %v1958_v21 = vpop.f32.mrb[49].mxu0  ;;  %v2505_v61 = vunpack.c.h.bf16 (!%p2422_p13), %v2574_v57  ;;  %v2575_v46 = vld [vmem:[%s3309_s21 + $0x18] sm:$0xff] (!%p2422_p13)  }
 0x6a8   : > { %v2021_v35 = vadd.f32 %v1958_v21, %v1836_v0  ;;  %v2862_v32 = vpop.f32.mrb[50].mxu0 }
 0x6a9   : > { %2039 = vst [vmem:[#allocation3 + $0x10] sm:$0xff] %v2023_v63  ;;  %v2024_v56 = vadd.f32 %v2862_v32, %v1839_v41  ;;  %v1961_v2 = vpop.f32.mrb[51].mxu0 }
 0x6aa   : > { %2037 = vst [vmem:[#allocation3] sm:$0xff] %v2021_v35  ;;  %v2022_v29 = vadd.f32 %v1961_v2, %v1837_v19  ;;  %v2508_v19 = vunpack.c.l.bf16 (!%p2422_p13), %v2575_v46  ;;  %v2509_v35 = vunpack.c.h.bf16 (!%p2422_p13), %v2575_v46 }
 0x6ab   : > { %2040 = vst [vmem:[#allocation3 + $0x18] sm:$0xff] %v2024_v56  ;;  %v2576_v56 = vld [vmem:[%s3309_s21 + $0x20] sm:$0xff] (!%p2422_p13)  }
 0x6ac   : > { %2038 = vst [vmem:[#allocation3 + $0x8] sm:$0xff] %v2022_v29 }
 0x6ae   : > { %v2865_v40 = vpop.f32.mrb[52].mxu0 }
 0x6af   : > { %v2027_v3 = vadd.f32 %v2865_v40, %v1842_v53  ;;  %v1974_v58 = vpop.f32.mrb[53].mxu0 }
 0x6b0   : > { %v2025_v1 = vadd.f32 %v1974_v58, %v1840_v44  ;;  %v2866_v62 = vpop.f32.mrb[54].mxu0  ;;  %v2091_v49 = vld [vmem:[#allocation3 + $0x10] sm:$0xff] (!%p2422_p13) }
 0x6b1   : > { %2043 = vst [vmem:[#allocation3 + $0x30] sm:$0xff] %v2027_v3  ;;  %v2028_v39 = vadd.f32 %v2866_v62, %v1843_v6  ;;  %v1977_v5 = vpop.f32.mrb[55].mxu0  ;;  %v2089_v43 = vld [vmem:[#allocation3] sm:$0xff] (!%p2422_p13)  ;;  %v2107_v63 = vadd.f32 (!%p2422_p13), %v2500_v22, %v2091_v49 }
 0x6b2   : > { %2041 = vst [vmem:[#allocation3 + $0x20] sm:$0xff] %v2025_v1  ;;  %v2026_v8 = vadd.f32 %v1977_v5, %v1841_v54  ;;  %v2092_v38 = vld [vmem:[#allocation3 + $0x18] sm:$0xff] (!%p2422_p13)  ;;  %v2105_v59 = vadd.f32 (!%p2422_p13), %v2496_v51, %v2089_v43  ;;  %v2577_v1 = vld [vmem:[%s3309_s21 + $0x28] sm:$0xff] (!%p2422_p13)  }
 0x6b3   : > { %2044 = vst [vmem:[#allocation3 + $0x38] sm:$0xff] %v2028_v39  ;;  %v2090_v15 = vld [vmem:[#allocation3 + $0x8] sm:$0xff] (!%p2422_p13)  ;;  %v2108_v21 = vadd.f32 (!%p2422_p13), %v2501_v50, %v2092_v38  ;;  %v2130_v40 = vadd.f32 (!%p2422_p13), %v3800_v47, %v2107_v63 }
 0x6b4   : > { %2042 = vst [vmem:[#allocation3 + $0x28] sm:$0xff] %v2026_v8  ;;  %v2106_v36 = vadd.f32 (!%p2422_p13), %v2497_v55, %v2090_v15  ;;  %v2128_v2 = vadd.f32 (!%p2422_p13), %v3800_v47, %v2105_v59  ;;  %v2512_v8 = vunpack.c.l.bf16 (!%p2422_p13), %v2576_v56 }
 0x6b5   : > { %v2131_v6 = vadd.f32 (!%p2422_p13), %v3800_v47, %v2108_v21 }
 0x6b6   : > { %v2869_v9 = vpop.f32.mrb[32].mxu1  ;;  %v2129_v29 = vadd.f32 (!%p2422_p13), %v3800_v47, %v2106_v36 }
 0x6b7   : > { %v2031_v23 = vadd.f32 %v2869_v9, %v1846_v45  ;;  %v1990_v11 = vpop.f32.mrb[33].mxu1  ;;  %v2534_v9 = vpack.c.bf16 (!%p2422_p13), %v2131_v6, %v2130_v40 }
 0x6b8   : > { %v2029_v12 = vadd.f32 %v1990_v11, %v1844_v48  ;;  %v2870_v17 = vpop.f32.mrb[34].mxu1  ;;  %v2095_v41 = vld [vmem:[#allocation3 + $0x30] sm:$0xff] (!%p2422_p13)  ;;  %v2529_v62 = vpack.c.bf16 (!%p2422_p13), %v2129_v29, %v2128_v2  ;;  %v2513_v11 = vunpack.c.h.bf16 (!%p2422_p13), %v2576_v56 }
 0x6b9   : > { %2047 = vst [vmem:[#allocation3 + $0x50] sm:$0xff] %v2031_v23  ;;  %v2032_v7 = vadd.f32 %v2870_v17, %v1847_v10  ;;  %v1993_v13 = vpop.f32.mrb[35].mxu1  ;;  %v2093_v27 = vld [vmem:[#allocation3 + $0x20] sm:$0xff] (!%p2422_p13)  ;;  %v2111_v3 = vadd.f32 (!%p2422_p13), %v2508_v19, %v2095_v41  ;;  %v2578_v48 = vld [vmem:[%s3309_s21 + $0x30] sm:$0xff] (!%p2422_p13)   ;;  %v2579_v17 = vld [vmem:[%s3309_s21 + $0x38] sm:$0xff] (!%p2422_p13)  }
 0x6ba   : > { %2045 = vst [vmem:[#allocation3 + $0x40] sm:$0xff] %v2029_v12  ;;  %v2030_v14 = vadd.f32 %v1993_v13, %v1845_v4  ;;  %v2096_v32 = vld [vmem:[#allocation3 + $0x38] sm:$0xff] (!%p2422_p13)  ;;  %v2109_v53 = vadd.f32 (!%p2422_p13), %v2504_v60, %v2093_v27  ;;  %2530 = vst [vmem:[%s3319_s3] sm:$0xff] (!%p2422_p13), %v2529_v62   ;;  %v2525_v55 = vunpack.c.h.bf16 (!%p2422_p13), %v2579_v17 }
 0x6bb   : > { %2048 = vst [vmem:[#allocation3 + $0x58] sm:$0xff] %v2032_v7  ;;  %v2094_v0 = vld [vmem:[#allocation3 + $0x28] sm:$0xff] (!%p2422_p13)  ;;  %v2112_v58 = vadd.f32 (!%p2422_p13), %v2509_v35, %v2096_v32  ;;  %v2134_v10 = vadd.f32 (!%p2422_p13), %v3800_v47, %v2111_v3  ;;  %2580 = vst [vmem:[%s3319_s3 + $0x8] sm:$0xff] (!%p2422_p13), %v2534_v9  }
 0x6bc   : > { %2046 = vst [vmem:[#allocation3 + $0x48] sm:$0xff] %v2030_v14  ;;  %v2110_v44 = vadd.f32 (!%p2422_p13), %v2505_v61, %v2094_v0  ;;  %v2132_v39 = vadd.f32 (!%p2422_p13), %v3800_v47, %v2109_v53  ;;  %v2516_v14 = vunpack.c.l.bf16 (!%p2422_p13), %v2577_v1 }
 0x6bd   : > { %v2135_v23 = vadd.f32 (!%p2422_p13), %v3800_v47, %v2112_v58 }
 0x6be   : > { %v2873_v18 = vpop.f32.mrb[36].mxu1  ;;  %2056 = sbr.rel (%p2422_p13) target bundleno = 1747 (0x6d3), region = 131  ;;  %v2133_v5 = vadd.f32 (!%p2422_p13), %v3800_v47, %v2110_v44 }
 0x6bf   : > { %v2035_v20 = vadd.f32 %v2873_v18, %v1850_v30  ;;  %v2006_v26 = vpop.f32.mrb[37].mxu1  ;;  %v2517_v30 = vunpack.c.h.bf16 (!%p2422_p13), %v2577_v1 }
 0x6c0   : > { %v2033_v24 = vadd.f32 %v2006_v26, %v1848_v16  ;;  %v2874_v34 = vpop.f32.mrb[38].mxu1  ;;  %v2099_v4 = vld [vmem:[#allocation3 + $0x50] sm:$0xff] (!%p2422_p13)  ;;  %v2539_v7 = vpack.c.bf16 (!%p2422_p13), %v2133_v5, %v2132_v39  ;;  %v2520_v26 = vunpack.c.l.bf16 (!%p2422_p13), %v2578_v48 }
 0x6c1   : > { %2051 = vst [vmem:[#allocation3 + $0x70] sm:$0xff] %v2035_v20  ;;  %v2036_v25 = vadd.f32 %v2874_v34, %v1851_v31  ;;  %v2009_v37 = vpop.f32.mrb[39].mxu1  ;;  %v2097_v54 = vld [vmem:[#allocation3 + $0x40] sm:$0xff] (!%p2422_p13)  ;;  %v2544_v31 = vpack.c.bf16 (!%p2422_p13), %v2135_v23, %v2134_v10 }
 0x6c2   : > { %2049 = vst [vmem:[#allocation3 + $0x60] sm:$0xff] %v2033_v24  ;;  %v2034_v33 = vadd.f32 %v2009_v37, %v1849_v28  ;;  %v2100_v12 = vld [vmem:[#allocation3 + $0x58] sm:$0xff] (!%p2422_p13)  ;;  %v2113_v13 = vadd.f32 (!%p2422_p13), %v2512_v8, %v2097_v54  ;;  %v2521_v28 = vunpack.c.h.bf16 (!%p2422_p13), %v2578_v48  ;;  %2581 = vst [vmem:[%s3319_s3 + $0x10] sm:$0xff] (!%p2422_p13), %v2539_v7  }
 0x6c3   : > { %2052 = vst [vmem:[#allocation3 + $0x78] sm:$0xff] %v2036_v25  ;;  %v2098_v45 = vld [vmem:[#allocation3 + $0x48] sm:$0xff] (!%p2422_p13)  ;;  %v2115_v25 = vadd.f32 (!%p2422_p13), %v2516_v14, %v2099_v4  ;;  %v2116_v37 = vadd.f32 (!%p2422_p13), %v2517_v30, %v2100_v12  ;;  %2582 = vst [vmem:[%s3319_s3 + $0x18] sm:$0xff] (!%p2422_p13), %v2544_v31  }
 0x6c4   : > { %2050 = vst [vmem:[#allocation3 + $0x68] sm:$0xff] %v2034_v33  ;;  %v2114_v20 = vadd.f32 (!%p2422_p13), %v2513_v11, %v2098_v45  ;;  %v2136_v34 = vadd.f32 (!%p2422_p13), %v3800_v47, %v2113_v13  ;;  %v2524_v33 = vunpack.c.l.bf16 (!%p2422_p13), %v2579_v17 }
 0x6c5   : > { %v2138_v52 = vadd.f32 %v3800_v47, %v2115_v25  ;;  %v2139_v49 = vadd.f32 %v3800_v47, %v2116_v37 }
 0x6c6   : > { %v2137_v43 = vadd.f32 %v3800_v47, %v2114_v20 }
 0x6c7   : > { %v2554_v59 = vpack.c.bf16 %v2139_v49, %v2138_v52 }
 0x6c8   : > { %v2103_v24 = vld [vmem:[#allocation3 + $0x70] sm:$0xff]  ;;  %v2549_v50 = vpack.c.bf16 %v2137_v43, %v2136_v34 }
 0x6c9   : > { %v2101_v16 = vld [vmem:[#allocation3 + $0x60] sm:$0xff]  ;;  %v2119_v22 = vadd.f32 %v2524_v33, %v2103_v24  ;;  %2584 = vst [vmem:[%s3319_s3 + $0x28] sm:$0xff] %v2554_v59  }
 0x6ca   : > { %v2104_v42 = vld [vmem:[#allocation3 + $0x78] sm:$0xff]  ;;  %v2117_v15 = vadd.f32 %v2520_v26, %v2101_v16  ;;  %2583 = vst [vmem:[%s3319_s3 + $0x20] sm:$0xff] %v2549_v50  }
 0x6cb   : > { %v2102_v18 = vld [vmem:[#allocation3 + $0x68] sm:$0xff]  ;;  %v2120_v27 = vadd.f32 %v2525_v55, %v2104_v42  ;;  %v2142_v36 = vadd.f32 %v3800_v47, %v2119_v22 }
 0x6cc   : > { %v2118_v51 = vadd.f32 %v2521_v28, %v2102_v18  ;;  %v2140_v38 = vadd.f32 %v3800_v47, %v2117_v15 }
 0x6cd   : > { %v2143_v61 = vadd.f32 %v3800_v47, %v2120_v27 }
 0x6ce   : > { %v2141_v57 = vadd.f32 %v3800_v47, %v2118_v51 }
 0x6cf   : > { %v2564_v0 = vpack.c.bf16 %v2143_v61, %v2142_v36 }
 0x6d0   : > { %v2559_v60 = vpack.c.bf16 %v2141_v57, %v2140_v38 }
 0x6d1   : > { %2586 = vst [vmem:[%s3319_s3 + $0x38] sm:$0xff] %v2564_v0  }
 0x6d2   : > { %2585 = vst [vmem:[%s3319_s3 + $0x30] sm:$0xff] %v2559_v60  }
 0x6d3 PF: > { %s17_s30 = sadd.s32 1, %s3134_s30   ;;  %s3867_s24 = smov %s3114_s25 }
 0x6d4   : > { %p14_p0 = scmp.ge.s32.totalorder %s17_s30, 6   ;;  %s3868_s25 = smov %s3230_s13 }
 0x6d5   : > { %s3869_s26 = smov %s3126_s28  ;;  %s3870_s27 = smov %s3130_s29 }
 0x6d6   : > { %s3871_s28 = smov %s3874_s8  ;;  %s3872_s29 = smov %s3878_s9 }
 0x6d7   :  { %16 = sbr.rel (!%p14_p0) target bundleno = 7 (0x7), region = 184 }

// kernel: c_radio_v2_forward.8
= control target key start
LH: loop header
LB: loop body
LE: loop exit
PB: predicated region body
PF: predicated region fallthrough
CT: control target
= control target key end

     0   :  { %s3599_s24 = smov 0   ;;  %s3601_s25 = smov 0   ;;  %s5114_s0 = inlined_call_operand.vmem [shape: bf16[256,128], index: 0, kind: input, shape index: {}]   ;;  %s5115_s1 = inlined_call_operand.vmem [shape: f32[1,128], index: 1, kind: input, shape index: {}]   ;;  %s5116_s2 = inlined_call_operand.vmem [shape: f32[1,128], index: 2, kind: input, shape index: {}]   ;;  %s5117_s3 = inlined_call_operand.vmem [shape: bf16[128,512], index: 3, kind: input, shape index: {}]   ;;  %s5118_s4 = inlined_call_operand.vmem [shape: f32[1,512], index: 4, kind: input, shape index: {}]   ;;  %s5119_s5 = inlined_call_operand.vmem [shape: bf16[512,128], index: 5, kind: input, shape index: {}]   ;;  %s5120_s6 = inlined_call_operand.vmem [shape: f32[1,128], index: 6, kind: input, shape index: {}]   ;;  %s5121_s7 = inlined_call_operand.vmem [shape: bf16[256,128], index: 7, kind: output, shape index: {}]  }
   0x1   :  { %s3603_s26 = smov 0   ;;  %s3605_s27 = smov 0  }
   0x2   :  { %s3607_s28 = smov 0  }
   0x3 LB: > { %s26_s29 = sadd.s32 1, %s3551_s27  ;;  %p111_p1 = scmp.ne.s32.totalorder %s3543_s25, %s3539_s24  ;;  %s3555_s28 = sphi %s3607_s28, %s17_s28   ;;  %s3551_s27 = sphi %s3605_s27, %s5125_s27   ;;  %s3547_s26 = sphi %s3603_s26, %s5124_s26   ;;  %s3543_s25 = sphi %s3601_s25, %s5123_s25   ;;  %s3539_s24 = sphi %s3599_s24, %s5122_s24  }
   0x4   : > { %p27_p0 = scmp.ge.s32.totalorder %s26_s29, 2  ;;  %p112_p2 = scmp.eq.s32.totalorder %s3555_s28, 0 }
   0x5   : > { %s104_s8 = sadd.s32 1, %s3543_s25  ;;  %p2763_p5 = scmp.ge.s32.totalorder %s3555_s28, 2 }
   0x6   : > { %s5127_s29 = smov (%p27_p0, %s26_s29), 0  ;;  %p113_p3 = por %p112_p2, %p111_p1 }
   0x7   : > { %s101_s30 = ssub.s32 %s3551_s27, %s5127_s29  ;;  %254 = sbr.rel (%p2763_p5) target bundleno = 26 (0x1a), region = 32 }
   0x8   : > { %p102_p4 = scmp.eq.s32.totalorder %s101_s30, 0 }
   0xa   : > { %s3634_s9 = scalar_select %p102_p4, %s3543_s25, %s104_s8  }
   0xe   : > { %257 = sbr.rel (!%p113_p3) target bundleno = 26 (0x1a), region = 36  ;;  %s259_s10 = sand.u32 (%p113_p3), 1, %s3543_s25  }
   0xf   : > { %s2845_s11 = sshll.u32 (%p113_p3), %s3551_s27, 3  ;;  %s2764_s12 = sshll.u32 (%p113_p3), %s259_s10, 7 }
  0x10   : > { %s3642_s15 = scalar_lea.vmem (%p113_p3), %s5117_s3, %s2845_s11  ;;  %s261_s16 = scalar_lea.vmem (%p113_p3), [#allocation4], %s2764_s12 }
  0x11   : > { %v322_v0 = vld [vmem:[%s3642_s15] sm:$0xff] (%p113_p3)  ;;  %v324_v1 = vld [vmem:[%s3642_s15 + $0x10] sm:$0xff] (%p113_p3) }
  0x12   : > { %v326_v2 = vld [vmem:[%s3642_s15 + $0x20] sm:$0xff] (%p113_p3)  ;;  %323 = vst [vmem:[%s261_s16] sm:$0xff] (%p113_p3), %v322_v0  ;;  %325 = vst [vmem:[%s261_s16 + $0x8] sm:$0xff] (%p113_p3), %v324_v1  ;;  %v328_v3 = vld [vmem:[%s3642_s15 + $0x30] sm:$0xff] (%p113_p3) }
  0x13   : > { %327 = vst [vmem:[%s261_s16 + $0x10] sm:$0xff] (%p113_p3), %v326_v2  ;;  %v330_v4 = vld [vmem:[%s3642_s15 + $0x40] sm:$0xff] (%p113_p3)  ;;  %v332_v5 = vld [vmem:[%s3642_s15 + $0x50] sm:$0xff] (%p113_p3)  ;;  %329 = vst [vmem:[%s261_s16 + $0x18] sm:$0xff] (%p113_p3), %v328_v3 }
  0x14   : > { %331 = vst [vmem:[%s261_s16 + $0x20] sm:$0xff] (%p113_p3), %v330_v4  ;;  %333 = vst [vmem:[%s261_s16 + $0x28] sm:$0xff] (%p113_p3), %v332_v5  ;;  %v334_v6 = vld [vmem:[%s3642_s15 + $0x60] sm:$0xff] (%p113_p3)  ;;  %v336_v7 = vld [vmem:[%s3642_s15 + $0x70] sm:$0xff] (%p113_p3) }
  0x15   : > { %v338_v8 = vld [vmem:[%s3642_s15 + $0x80] sm:$0xff]  ;;  %335 = vst [vmem:[%s261_s16 + $0x30] sm:$0xff] %v334_v6  ;;  %337 = vst [vmem:[%s261_s16 + $0x38] sm:$0xff] %v336_v7  ;;  %v340_v9 = vld [vmem:[%s3642_s15 + $0x90] sm:$0xff] }
  0x16   : > { %339 = vst [vmem:[%s261_s16 + $0x40] sm:$0xff] %v338_v8  ;;  %v342_v10 = vld [vmem:[%s3642_s15 + $0xa0] sm:$0xff]  ;;  %v344_v11 = vld [vmem:[%s3642_s15 + $0xb0] sm:$0xff]  ;;  %341 = vst [vmem:[%s261_s16 + $0x48] sm:$0xff] %v340_v9 }
  0x17   : > { %343 = vst [vmem:[%s261_s16 + $0x50] sm:$0xff] %v342_v10  ;;  %345 = vst [vmem:[%s261_s16 + $0x58] sm:$0xff] %v344_v11  ;;  %v346_v12 = vld [vmem:[%s3642_s15 + $0xc0] sm:$0xff]  ;;  %v348_v13 = vld [vmem:[%s3642_s15 + $0xd0] sm:$0xff] }
  0x18   : > { %v350_v14 = vld [vmem:[%s3642_s15 + $0xe0] sm:$0xff]  ;;  %347 = vst [vmem:[%s261_s16 + $0x60] sm:$0xff] %v346_v12  ;;  %349 = vst [vmem:[%s261_s16 + $0x68] sm:$0xff] %v348_v13  ;;  %v352_v15 = vld [vmem:[%s3642_s15 + $0xf0] sm:$0xff] }
  0x19   : > { %351 = vst [vmem:[%s261_s16 + $0x70] sm:$0xff] %v350_v14  ;;  %353 = vst [vmem:[%s261_s16 + $0x78] sm:$0xff] %v352_v15 }
  0x1a PF: > { %p2767_p6 = scmp.ge.s32.totalorder %s3555_s28, 1  ;;  %p375_p7 = scmp.lt.s32.totalorder %s3555_s28, 3 }
  0x1c   : > { %p376_p8 = pnand %p2767_p6, %p375_p7 }
  0x1d   : > { %s382_s17 = sand.u32 (!%p376_p8), 1, %s3539_s24   ;;  %s2769_s18 = sshll.u32 (!%p376_p8), %s3547_s26, 1 }
  0x1e   : > { %379 = sbr.rel (%p376_p8) target bundleno = 1096 (0x448), region = 82  ;;  %s2768_s19 = sshll.u32 (!%p376_p8), %s382_s17, 7 }
  0x1f   : > { %p435_p9 = scmp.lt.s32.totalorder (!%p376_p8), %s2769_s18, 3  ;;  %s2770_s20 = sshll.u32 (!%p376_p8), %s3547_s26, 5 }
  0x20   : > { %p440_p10 = scmp.lt.s32.totalorder (!%p376_p8), %s2770_s20, 63  ;;  %s3676_s24 = scalar_lea.vmem (!%p376_p8), [#allocation4], %s2768_s19 }
  0x21   : > { %p2772_p11 = scmp.ne.s32.totalorder (!%p376_p8), %s3547_s26, 0 }
  0x25   : > { %s5129_s18 = smov (!%p435_p9, %s2769_s18), 3  ;;  %s5131_s20 = smov (!%p440_p10, %s2770_s20), 63 }
  0x26   : > { %s437_s23 = scalar_lea.vmem %s5118_s4, %s5129_s18  ;;  %s2771_s30 = sshll.u32 %s5131_s20, 2  ;;  %v3682_v16 = vld [vmem:[%s5114_s0] sm:$0xff] (!%p2772_p11)   ;;  %v3687_v17 = vld [vmem:[%s5114_s0 + $0x8] sm:$0xff] (!%p2772_p11)   ;;  %v3700_v22 = vld [vmem:[%s5114_s0 + $0x10] sm:$0xff] (!%p2772_p11)  }
  0x27   : > { %s3674_s11 = scalar_lea.vmem %s5119_s5, %s2771_s30  ;;  %455 = sbr.rel (%p2772_p11) target bundleno = 419 (0x1a3), region = 90  ;;  %v2880_v18 = vunpack.c.l.bf16 (!%p2772_p11), %v3682_v16  ;;  %v2884_v19 = vunpack.c.l.bf16 (!%p2772_p11), %v3687_v17  ;;  %v2881_v20 = vunpack.c.h.bf16 (!%p2772_p11), %v3682_v16  ;;  %v2885_v21 = vunpack.c.h.bf16 (!%p2772_p11), %v3687_v17  ;;  %v3711_v25 = vld [vmem:[%s5114_s0 + $0x18] sm:$0xff] (!%p2772_p11)   ;;  %v3722_v28 = vld [vmem:[%s5114_s0 + $0x20] sm:$0xff] (!%p2772_p11)   ;;  %v3733_v31 = vld [vmem:[%s5114_s0 + $0x28] sm:$0xff] (!%p2772_p11)  }
  0x28   : > { %v2888_v23 = vunpack.c.l.bf16 (!%p2772_p11), %v3700_v22  ;;  %v2889_v24 = vunpack.c.h.bf16 (!%p2772_p11), %v3700_v22  ;;  %v2892_v26 = vunpack.c.l.bf16 (!%p2772_p11), %v3711_v25  ;;  %v2893_v27 = vunpack.c.h.bf16 (!%p2772_p11), %v3711_v25  ;;  %v3744_v34 = vld [vmem:[%s5114_s0 + $0x30] sm:$0xff] (!%p2772_p11)   ;;  %v3755_v37 = vld [vmem:[%s5114_s0 + $0x38] sm:$0xff] (!%p2772_p11)   ;;  %v3766_v40 = vld [vmem:[%s5114_s0 + $0x40] sm:$0xff] (!%p2772_p11)  }
  0x29   : > { %522 = vadd.xlane.f32.xlu0 (!%p2772_p11), %v2880_v18  ;;  %526 = vadd.xlane.f32.xlu1 (!%p2772_p11), %v2884_v19  ;;  %v2896_v29 = vunpack.c.l.bf16 (!%p2772_p11), %v3722_v28  ;;  %v2897_v30 = vunpack.c.h.bf16 (!%p2772_p11), %v3722_v28  ;;  %v2900_v32 = vunpack.c.l.bf16 (!%p2772_p11), %v3733_v31  ;;  %v2901_v33 = vunpack.c.h.bf16 (!%p2772_p11), %v3733_v31  ;;  %v3777_v43 = vld [vmem:[%s5114_s0 + $0x48] sm:$0xff] (!%p2772_p11)   ;;  %v3788_v46 = vld [vmem:[%s5114_s0 + $0x50] sm:$0xff] (!%p2772_p11)   ;;  %v3799_v49 = vld [vmem:[%s5114_s0 + $0x58] sm:$0xff] (!%p2772_p11)  }
  0x2a   : > { %v2904_v35 = vunpack.c.l.bf16 (!%p2772_p11), %v3744_v34  ;;  %v2905_v36 = vunpack.c.h.bf16 (!%p2772_p11), %v3744_v34  ;;  %v2908_v38 = vunpack.c.l.bf16 (!%p2772_p11), %v3755_v37  ;;  %v2909_v39 = vunpack.c.h.bf16 (!%p2772_p11), %v3755_v37  ;;  %v3810_v52 = vld [vmem:[%s5114_s0 + $0x60] sm:$0xff] (!%p2772_p11)   ;;  %v3821_v55 = vld [vmem:[%s5114_s0 + $0x68] sm:$0xff] (!%p2772_p11)   ;;  %v3832_v58 = vld [vmem:[%s5114_s0 + $0x70] sm:$0xff] (!%p2772_p11)  }
  0x2b   : > { %v2912_v41 = vunpack.c.l.bf16 (!%p2772_p11), %v3766_v40  ;;  %v2913_v42 = vunpack.c.h.bf16 (!%p2772_p11), %v3766_v40  ;;  %v2916_v44 = vunpack.c.l.bf16 (!%p2772_p11), %v3777_v43  ;;  %v2917_v45 = vunpack.c.h.bf16 (!%p2772_p11), %v3777_v43  ;;  %v3843_v61 = vld [vmem:[%s5114_s0 + $0x78] sm:$0xff] (!%p2772_p11)  }
  0x2c   : > { %v2920_v47 = vunpack.c.l.bf16 (!%p2772_p11), %v3788_v46  ;;  %v2921_v48 = vunpack.c.h.bf16 (!%p2772_p11), %v3788_v46  ;;  %v2924_v50 = vunpack.c.l.bf16 (!%p2772_p11), %v3799_v49  ;;  %v2925_v51 = vunpack.c.h.bf16 (!%p2772_p11), %v3799_v49 }
  0x2d   : > { %524 = vadd.xlane.f32.xlu0 (!%p2772_p11), %v2881_v20  ;;  %528 = vadd.xlane.f32.xlu1 (!%p2772_p11), %v2885_v21  ;;  %v2928_v53 = vunpack.c.l.bf16 (!%p2772_p11), %v3810_v52  ;;  %v2929_v54 = vunpack.c.h.bf16 (!%p2772_p11), %v3810_v52  ;;  %v2932_v56 = vunpack.c.l.bf16 (!%p2772_p11), %v3821_v55  ;;  %v2933_v57 = vunpack.c.h.bf16 (!%p2772_p11), %v3821_v55 }
  0x2e   : > { %v2936_v59 = vunpack.c.l.bf16 %v3832_v58  ;;  %v2937_v60 = vunpack.c.h.bf16 %v3832_v58  ;;  %v2940_v62 = vunpack.c.l.bf16 %v3843_v61  ;;  %v2941_v63 = vunpack.c.h.bf16 %v3843_v61 }
  0x31   : > { %530 = vadd.xlane.f32.xlu0 %v2888_v23  ;;  %532 = vadd.xlane.f32.xlu1 %v2889_v24 }
  0x35   : > { %534 = vadd.xlane.f32.xlu0 %v2892_v26  ;;  %536 = vadd.xlane.f32.xlu1 %v2893_v27 }
  0x39   : > { %538 = vadd.xlane.f32.xlu0 %v2896_v29  ;;  %540 = vadd.xlane.f32.xlu1 %v2897_v30 }
  0x3d   : > { %542 = vadd.xlane.f32.xlu0 %v2900_v32  ;;  %544 = vadd.xlane.f32.xlu1 %v2901_v33 }
  0x41   : > { %546 = vadd.xlane.f32.xlu0 %v2904_v35  ;;  %548 = vadd.xlane.f32.xlu1 %v2905_v36 }
  0x45   : > { %550 = vadd.xlane.f32.xlu0 %v2908_v38  ;;  %552 = vadd.xlane.f32.xlu1 %v2909_v39 }
  0x49   : > { %554 = vadd.xlane.f32.xlu0 %v2912_v41  ;;  %556 = vadd.xlane.f32.xlu1 %v2913_v42 }
  0x4d   : > { %558 = vadd.xlane.f32.xlu0 %v2916_v44  ;;  %560 = vadd.xlane.f32.xlu1 %v2917_v45 }
  0x51   : > { %562 = vadd.xlane.f32.xlu0 %v2920_v47  ;;  %564 = vadd.xlane.f32.xlu1 %v2921_v48 }
  0x55   : > { %566 = vadd.xlane.f32.xlu0 %v2924_v50  ;;  %568 = vadd.xlane.f32.xlu1 %v2925_v51 }
  0x59   : > { %570 = vadd.xlane.f32.xlu0 %v2928_v53  ;;  %572 = vadd.xlane.f32.xlu1 %v2929_v54 }
  0x5d   : > { %574 = vadd.xlane.f32.xlu0 %v2932_v56  ;;  %576 = vadd.xlane.f32.xlu1 %v2933_v57 }
  0x61   : > { %578 = vadd.xlane.f32.xlu0 %v2936_v59  ;;  %580 = vadd.xlane.f32.xlu1 %v2937_v60 }
  0x65   : > { %582 = vadd.xlane.f32.xlu0 %v2940_v62  ;;  %584 = vadd.xlane.f32.xlu1 %v2941_v63 }
  0xb6   : > { %v523_v0 = vpop.xlane.xlu0 %522  ;;  %v527_v1 = vpop.xlane.xlu1 %526 }
  0xb7   : > { %v587_v2 = vmul.f32 0.0078125, %v523_v0  ;;  %v589_v3 = vmul.f32 0.0078125, %v527_v1 }
  0xb9   : > { %v3857_v4 = vsub.f32 %v2880_v18, %v587_v2  ;;  %v3861_v5 = vsub.f32 %v2884_v19, %v589_v3 }
  0xba   : > { %v525_v6 = vpop.xlane.xlu0 %524  ;;  %v529_v7 = vpop.xlane.xlu1 %528 }
  0xbb   : > { %v588_v8 = vmul.f32 0.0078125, %v525_v6  ;;  %v651_v9 = vmul.f32 %v3857_v4, %v3857_v4  ;;  %v590_v10 = vmul.f32 0.0078125, %v529_v7  ;;  %v653_v13 = vmul.f32 %v3861_v5, %v3861_v5 }
  0xbd   : > { %v3867_v11 = vsub.f32 %v2881_v20, %v588_v8  ;;  %683 = vadd.xlane.f32.xlu0 %v651_v9  ;;  %v3871_v12 = vsub.f32 %v2885_v21, %v590_v10 }
  0xbe   : > { %v531_v14 = vpop.xlane.xlu0 %530  ;;  %v533_v15 = vpop.xlane.xlu1 %532 }
  0xbf   : > { %v591_v18 = vmul.f32 0.0078125, %v531_v14  ;;  %v652_v19 = vmul.f32 %v3867_v11, %v3867_v11  ;;  %v592_v0 = vmul.f32 0.0078125, %v533_v15  ;;  %v654_v20 = vmul.f32 %v3871_v12, %v3871_v12 }
  0xc1   : > { %v3879_v16 = vsub.f32 %v2888_v23, %v591_v18  ;;  %687 = vadd.xlane.f32.xlu0 %v653_v13  ;;  %685 = vadd.xlane.f32.xlu1 %v652_v19  ;;  %v3883_v17 = vsub.f32 %v2889_v24, %v592_v0 }
  0xc2   : > { %v535_v21 = vpop.xlane.xlu0 %534  ;;  %v537_v1 = vpop.xlane.xlu1 %536 }
  0xc3   : > { %v593_v2 = vmul.f32 0.0078125, %v535_v21  ;;  %v655_v3 = vmul.f32 %v3879_v16, %v3879_v16  ;;  %v594_v6 = vmul.f32 0.0078125, %v537_v1  ;;  %v656_v24 = vmul.f32 %v3883_v17, %v3883_v17 }
  0xc5   : > { %v3891_v23 = vsub.f32 %v2892_v26, %v593_v2  ;;  %689 = vadd.xlane.f32.xlu1 %v654_v20  ;;  %691 = vadd.xlane.f32.xlu0 %v655_v3  ;;  %v3895_v22 = vsub.f32 %v2893_v27, %v594_v6 }
  0xc6   : > { %v539_v7 = vpop.xlane.xlu0 %538  ;;  %v541_v8 = vpop.xlane.xlu1 %540 }
  0xc7   : > { %v595_v9 = vmul.f32 0.0078125, %v539_v7  ;;  %v657_v10 = vmul.f32 %v3891_v23, %v3891_v23  ;;  %v596_v13 = vmul.f32 0.0078125, %v541_v8  ;;  %v658_v27 = vmul.f32 %v3895_v22, %v3895_v22 }
  0xc9   : > { %v3903_v26 = vsub.f32 %v2896_v29, %v595_v9  ;;  %693 = vadd.xlane.f32.xlu1 %v656_v24  ;;  %695 = vadd.xlane.f32.xlu0 %v657_v10  ;;  %v3907_v25 = vsub.f32 %v2897_v30, %v596_v13 }
  0xca   : > { %v543_v14 = vpop.xlane.xlu0 %542  ;;  %v545_v15 = vpop.xlane.xlu1 %544 }
  0xcb   : > { %v597_v18 = vmul.f32 0.0078125, %v543_v14  ;;  %v659_v19 = vmul.f32 %v3903_v26, %v3903_v26  ;;  %v598_v0 = vmul.f32 0.0078125, %v545_v15  ;;  %v660_v30 = vmul.f32 %v3907_v25, %v3907_v25 }
  0xcd   : > { %v3915_v29 = vsub.f32 %v2900_v32, %v597_v18  ;;  %697 = vadd.xlane.f32.xlu1 %v658_v27  ;;  %699 = vadd.xlane.f32.xlu0 %v659_v19  ;;  %v3919_v28 = vsub.f32 %v2901_v33, %v598_v0 }
  0xce   : > { %v547_v20 = vpop.xlane.xlu0 %546  ;;  %v549_v21 = vpop.xlane.xlu1 %548 }
  0xcf   : > { %v599_v1 = vmul.f32 0.0078125, %v547_v20  ;;  %v661_v2 = vmul.f32 %v3915_v29, %v3915_v29  ;;  %v600_v3 = vmul.f32 0.0078125, %v549_v21  ;;  %v662_v33 = vmul.f32 %v3919_v28, %v3919_v28 }
  0xd1   : > { %v3927_v32 = vsub.f32 %v2904_v35, %v599_v1  ;;  %701 = vadd.xlane.f32.xlu1 %v660_v30  ;;  %703 = vadd.xlane.f32.xlu0 %v661_v2  ;;  %v3931_v31 = vsub.f32 %v2905_v36, %v600_v3 }
  0xd2   : > { %v551_v6 = vpop.xlane.xlu0 %550  ;;  %v553_v24 = vpop.xlane.xlu1 %552 }
  0xd3   : > { %v601_v7 = vmul.f32 0.0078125, %v551_v6  ;;  %v663_v8 = vmul.f32 %v3927_v32, %v3927_v32  ;;  %v602_v9 = vmul.f32 0.0078125, %v553_v24  ;;  %v664_v36 = vmul.f32 %v3931_v31, %v3931_v31 }
  0xd5   : > { %v3939_v35 = vsub.f32 %v2908_v38, %v601_v7  ;;  %705 = vadd.xlane.f32.xlu1 %v662_v33  ;;  %707 = vadd.xlane.f32.xlu0 %v663_v8  ;;  %v3943_v34 = vsub.f32 %v2909_v39, %v602_v9 }
  0xd6   : > { %v555_v10 = vpop.xlane.xlu0 %554  ;;  %v557_v13 = vpop.xlane.xlu1 %556 }
  0xd7   : > { %v603_v27 = vmul.f32 0.0078125, %v555_v10  ;;  %v665_v14 = vmul.f32 %v3939_v35, %v3939_v35  ;;  %v604_v15 = vmul.f32 0.0078125, %v557_v13  ;;  %v666_v39 = vmul.f32 %v3943_v34, %v3943_v34 }
  0xd9   : > { %v3951_v38 = vsub.f32 %v2912_v41, %v603_v27  ;;  %709 = vadd.xlane.f32.xlu1 %v664_v36  ;;  %711 = vadd.xlane.f32.xlu0 %v665_v14  ;;  %v3955_v37 = vsub.f32 %v2913_v42, %v604_v15 }
  0xda   : > { %v559_v18 = vpop.xlane.xlu0 %558  ;;  %v561_v19 = vpop.xlane.xlu1 %560 }
  0xdb   : > { %v605_v0 = vmul.f32 0.0078125, %v559_v18  ;;  %v667_v30 = vmul.f32 %v3951_v38, %v3951_v38  ;;  %v606_v20 = vmul.f32 0.0078125, %v561_v19  ;;  %v668_v42 = vmul.f32 %v3955_v37, %v3955_v37 }
  0xdd   : > { %v3963_v41 = vsub.f32 %v2916_v44, %v605_v0  ;;  %713 = vadd.xlane.f32.xlu1 %v666_v39  ;;  %715 = vadd.xlane.f32.xlu0 %v667_v30  ;;  %v3967_v40 = vsub.f32 %v2917_v45, %v606_v20 }
  0xde   : > { %v563_v21 = vpop.xlane.xlu0 %562  ;;  %v565_v1 = vpop.xlane.xlu1 %564 }
  0xdf   : > { %v607_v2 = vmul.f32 0.0078125, %v563_v21  ;;  %v669_v3 = vmul.f32 %v3963_v41, %v3963_v41  ;;  %v608_v33 = vmul.f32 0.0078125, %v565_v1  ;;  %v670_v45 = vmul.f32 %v3967_v40, %v3967_v40 }
  0xe1   : > { %v3975_v44 = vsub.f32 %v2920_v47, %v607_v2  ;;  %717 = vadd.xlane.f32.xlu1 %v668_v42  ;;  %719 = vadd.xlane.f32.xlu0 %v669_v3  ;;  %v3979_v43 = vsub.f32 %v2921_v48, %v608_v33 }
  0xe2   : > { %v567_v6 = vpop.xlane.xlu0 %566  ;;  %v569_v24 = vpop.xlane.xlu1 %568 }
  0xe3   : > { %v609_v7 = vmul.f32 0.0078125, %v567_v6  ;;  %v671_v8 = vmul.f32 %v3975_v44, %v3975_v44  ;;  %v610_v9 = vmul.f32 0.0078125, %v569_v24  ;;  %v672_v48 = vmul.f32 %v3979_v43, %v3979_v43 }
  0xe5   : > { %v3987_v47 = vsub.f32 %v2924_v50, %v609_v7  ;;  %721 = vadd.xlane.f32.xlu1 %v670_v45  ;;  %723 = vadd.xlane.f32.xlu0 %v671_v8  ;;  %v3991_v46 = vsub.f32 %v2925_v51, %v610_v9 }
  0xe6   : > { %v571_v36 = vpop.xlane.xlu0 %570  ;;  %v573_v10 = vpop.xlane.xlu1 %572 }
  0xe7   : > { %v611_v13 = vmul.f32 0.0078125, %v571_v36  ;;  %v673_v27 = vmul.f32 %v3987_v47, %v3987_v47  ;;  %v612_v14 = vmul.f32 0.0078125, %v573_v10  ;;  %v674_v51 = vmul.f32 %v3991_v46, %v3991_v46 }
  0xe9   : > { %v3999_v50 = vsub.f32 %v2928_v53, %v611_v13  ;;  %725 = vadd.xlane.f32.xlu1 %v672_v48  ;;  %727 = vadd.xlane.f32.xlu0 %v673_v27  ;;  %v4003_v49 = vsub.f32 %v2929_v54, %v612_v14 }
  0xea   : > { %v575_v15 = vpop.xlane.xlu0 %574  ;;  %v577_v39 = vpop.xlane.xlu1 %576 }
  0xeb   : > { %v613_v18 = vmul.f32 0.0078125, %v575_v15  ;;  %v675_v19 = vmul.f32 %v3999_v50, %v3999_v50  ;;  %v614_v0 = vmul.f32 0.0078125, %v577_v39  ;;  %v676_v54 = vmul.f32 %v4003_v49, %v4003_v49 }
  0xed   : > { %v4011_v53 = vsub.f32 %v2932_v56, %v613_v18  ;;  %729 = vadd.xlane.f32.xlu1 %v674_v51  ;;  %731 = vadd.xlane.f32.xlu0 %v675_v19  ;;  %v4015_v52 = vsub.f32 %v2933_v57, %v614_v0 }
  0xee   : > { %v579_v30 = vpop.xlane.xlu0 %578  ;;  %v581_v20 = vpop.xlane.xlu1 %580 }
  0xef   : > { %v615_v42 = vmul.f32 0.0078125, %v579_v30  ;;  %v677_v21 = vmul.f32 %v4011_v53, %v4011_v53  ;;  %v616_v1 = vmul.f32 0.0078125, %v581_v20  ;;  %v678_v57 = vmul.f32 %v4015_v52, %v4015_v52 }
  0xf1   : > { %v4023_v56 = vsub.f32 %v2936_v59, %v615_v42  ;;  %733 = vadd.xlane.f32.xlu1 %v676_v54  ;;  %735 = vadd.xlane.f32.xlu0 %v677_v21  ;;  %v4027_v55 = vsub.f32 %v2937_v60, %v616_v1 }
  0xf2   : > { %v583_v2 = vpop.xlane.xlu0 %582  ;;  %v585_v3 = vpop.xlane.xlu1 %584 }
  0xf3   : > { %v617_v33 = vmul.f32 0.0078125, %v583_v2  ;;  %v679_v45 = vmul.f32 %v4023_v56, %v4023_v56  ;;  %v618_v6 = vmul.f32 0.0078125, %v585_v3  ;;  %v680_v60 = vmul.f32 %v4027_v55, %v4027_v55 }
  0xf5   : > { %v4035_v59 = vsub.f32 %v2940_v62, %v617_v33  ;;  %737 = vadd.xlane.f32.xlu1 %v678_v57  ;;  %739 = vadd.xlane.f32.xlu0 %v679_v45  ;;  %v4039_v58 = vsub.f32 %v2941_v63, %v618_v6  ;;  %v3557_v62 = vmov 0.0   ;;  %v4051_v33 = vld [vmem:[%s5115_s1] ss:$0 sm:$0xff] }
  0xf6   : > { %983 = vst [vmem:[#allocation3] sm:$0xff] %v3557_v62  ;;  %984 = vst [vmem:[#allocation3 + $0x8] sm:$0xff] %v3557_v62 }
  0xf7   : > { %v681_v24 = vmul.f32 %v4035_v59, %v4035_v59  ;;  %v682_v7 = vmul.f32 %v4039_v58, %v4039_v58  ;;  %985 = vst [vmem:[#allocation3 + $0x10] sm:$0xff] %v3557_v62  ;;  %986 = vst [vmem:[#allocation3 + $0x18] sm:$0xff] %v3557_v62 }
  0xf8   : > { %987 = vst [vmem:[#allocation3 + $0x20] sm:$0xff] %v3557_v62  ;;  %988 = vst [vmem:[#allocation3 + $0x28] sm:$0xff] %v3557_v62 }
  0xf9   : > { %741 = vadd.xlane.f32.xlu1 %v680_v60  ;;  %743 = vadd.xlane.f32.xlu0 %v681_v24  ;;  %989 = vst [vmem:[#allocation3 + $0x30] sm:$0xff] %v3557_v62  ;;  %990 = vst [vmem:[#allocation3 + $0x38] sm:$0xff] %v3557_v62 }
  0xfa   : > { %991 = vst [vmem:[#allocation3 + $0x40] sm:$0xff] %v3557_v62  ;;  %992 = vst [vmem:[#allocation3 + $0x48] sm:$0xff] %v3557_v62 }
  0xfb   : > { %993 = vst [vmem:[#allocation3 + $0x50] sm:$0xff] %v3557_v62  ;;  %994 = vst [vmem:[#allocation3 + $0x58] sm:$0xff] %v3557_v62 }
  0xfc   : > { %995 = vst [vmem:[#allocation3 + $0x60] sm:$0xff] %v3557_v62  ;;  %996 = vst [vmem:[#allocation3 + $0x68] sm:$0xff] %v3557_v62 }
  0xfd   : > { %745 = vadd.xlane.f32.xlu1 %v682_v7  ;;  %997 = vst [vmem:[#allocation3 + $0x70] sm:$0xff] %v3557_v62  ;;  %998 = vst [vmem:[#allocation3 + $0x78] sm:$0xff] %v3557_v62 }
  0xfe   : > { %999 = vst [vmem:[#allocation3 + $0x80] sm:$0xff] %v3557_v62  ;;  %1000 = vst [vmem:[#allocation3 + $0x88] sm:$0xff] %v3557_v62 }
  0xff   : > { %1001 = vst [vmem:[#allocation3 + $0x90] sm:$0xff] %v3557_v62  ;;  %1002 = vst [vmem:[#allocation3 + $0x98] sm:$0xff] %v3557_v62 }
 0x100   : > { %1003 = vst [vmem:[#allocation3 + $0xa0] sm:$0xff] %v3557_v62  ;;  %1004 = vst [vmem:[#allocation3 + $0xa8] sm:$0xff] %v3557_v62 }
 0x101   : > { %1005 = vst [vmem:[#allocation3 + $0xb0] sm:$0xff] %v3557_v62  ;;  %1006 = vst [vmem:[#allocation3 + $0xb8] sm:$0xff] %v3557_v62 }
 0x102   : > { %1007 = vst [vmem:[#allocation3 + $0xc0] sm:$0xff] %v3557_v62  ;;  %1008 = vst [vmem:[#allocation3 + $0xc8] sm:$0xff] %v3557_v62 }
 0x103   : > { %1009 = vst [vmem:[#allocation3 + $0xd0] sm:$0xff] %v3557_v62  ;;  %1010 = vst [vmem:[#allocation3 + $0xd8] sm:$0xff] %v3557_v62 }
 0x104   : > { %1011 = vst [vmem:[#allocation3 + $0xe0] sm:$0xff] %v3557_v62  ;;  %1012 = vst [vmem:[#allocation3 + $0xe8] sm:$0xff] %v3557_v62 }
 0x105   : > { %1013 = vst [vmem:[#allocation3 + $0xf0] sm:$0xff] %v3557_v62  ;;  %1014 = vst [vmem:[#allocation3 + $0xf8] sm:$0xff] %v3557_v62 }
 0x14a   : > { %v684_v61 = vpop.xlane.xlu0 %683 }
 0x14b   : > { %v747_v63 = vmul.f32 0.0078125, %v684_v61 }
 0x14d   : > { %v779_v8 = vadd.f32 1e-06, %v747_v63 }
 0x14e   : > { %v686_v9 = vpop.xlane.xlu1 %685  ;;  %v688_v48 = vpop.xlane.xlu0 %687 }
 0x14f   : > { %3285 = vrsqrt.f32 %v779_v8  ;;  %v748_v36 = vmul.f32 0.0078125, %v686_v9  ;;  %v749_v10 = vmul.f32 0.0078125, %v688_v48  ;;  %v4058_v9 = vld [vmem:[%s5116_s2] ss:$0 sm:$0xff] }
 0x151   : > { %v780_v13 = vadd.f32 1e-06, %v748_v36  ;;  %v781_v27 = vadd.f32 1e-06, %v749_v10 }
 0x152   : > { %v690_v14 = vpop.xlane.xlu1 %689  ;;  %v692_v51 = vpop.xlane.xlu0 %691 }
 0x153   : > { %3287 = vrsqrt.f32 %v780_v13  ;;  %v750_v15 = vmul.f32 0.0078125, %v690_v14  ;;  %v751_v39 = vmul.f32 0.0078125, %v692_v51 }
 0x154   : > { %3289 = vrsqrt.f32 %v781_v27 }
 0x155   : > { %v782_v18 = vadd.f32 1e-06, %v750_v15  ;;  %v783_v19 = vadd.f32 1e-06, %v751_v39 }
 0x156   : > { %v694_v0 = vpop.xlane.xlu1 %693  ;;  %v696_v54 = vpop.xlane.xlu0 %695 }
 0x157   : > { %3291 = vrsqrt.f32 %v782_v18  ;;  %v752_v30 = vmul.f32 0.0078125, %v694_v0  ;;  %v753_v20 = vmul.f32 0.0078125, %v696_v54 }
 0x158   : > { %3293 = vrsqrt.f32 %v783_v19 }
 0x159   : > { %v3286_v42 = vpop.eup %3285  ;;  %v784_v21 = vadd.f32 1e-06, %v752_v30  ;;  %v785_v1 = vadd.f32 1e-06, %v753_v20 }
 0x15a   : > { %v843_v57 = vmul.f32 %v3286_v42, %v3857_v4  ;;  %v698_v2 = vpop.xlane.xlu1 %697  ;;  %v700_v3 = vpop.xlane.xlu0 %699 }
 0x15b   : > { %3295 = vrsqrt.f32 %v784_v21  ;;  %v754_v45 = vmul.f32 0.0078125, %v698_v2  ;;  %v755_v6 = vmul.f32 0.0078125, %v700_v3 }
 0x15c   : > { %3297 = vrsqrt.f32 %v785_v1  ;;  %v881_v61 = vmul.f32 %v4051_v33, %v843_v57 }
 0x15d   : > { %v3288_v60 = vpop.eup %3287  ;;  %v786_v24 = vadd.f32 1e-06, %v754_v45  ;;  %v787_v7 = vadd.f32 1e-06, %v755_v6 }
 0x15e   : > { %v3290_v62 = vpop.eup %3289  ;;  %v844_v63 = vmul.f32 %v3288_v60, %v3867_v11  ;;  %v702_v4 = vpop.xlane.xlu1 %701  ;;  %v919_v11 = vadd.f32 %v4058_v9, %v881_v61 }
 0x15f   : > { %v704_v8 = vpop.xlane.xlu0 %703  ;;  %v845_v48 = vmul.f32 %v3290_v62, %v3861_v5  ;;  %3299 = vrsqrt.f32 %v786_v24  ;;  %v756_v36 = vmul.f32 0.0078125, %v702_v4 }
 0x160   : > { %v757_v10 = vmul.f32 0.0078125, %v704_v8  ;;  %v882_v13 = vmul.f32 %v4051_v33, %v844_v63  ;;  %3301 = vrsqrt.f32 %v787_v7 }
 0x161   : > { %v3292_v27 = vpop.eup %3291  ;;  %v788_v14 = vadd.f32 1e-06, %v756_v36  ;;  %v883_v18 = vmul.f32 %v4051_v33, %v845_v48 }
 0x162   : > { %v789_v51 = vadd.f32 1e-06, %v757_v10  ;;  %v3294_v15 = vpop.eup %3293  ;;  %v920_v39 = vadd.f32 %v4058_v9, %v882_v13  ;;  %v846_v19 = vmul.f32 %v3292_v27, %v3871_v12  ;;  %v706_v0 = vpop.xlane.xlu1 %705 }
 0x163   : > { %v708_v5 = vpop.xlane.xlu0 %707  ;;  %v847_v54 = vmul.f32 %v3294_v15, %v3879_v16  ;;  %3303 = vrsqrt.f32 %v788_v14  ;;  %v758_v30 = vmul.f32 0.0078125, %v706_v0  ;;  %v921_v45 = vadd.f32 %v4058_v9, %v883_v18 }
 0x164   : > { %v951_v20 = vpack.c.bf16 %v920_v39, %v919_v11  ;;  %v884_v42 = vmul.f32 %v4051_v33, %v846_v19  ;;  %3305 = vrsqrt.f32 %v789_v51  ;;  %v759_v21 = vmul.f32 0.0078125, %v708_v5 }
 0x165   : > { %v3296_v1 = vpop.eup %3295  ;;  %v885_v57 = vmul.f32 %v4051_v33, %v847_v54  ;;  %v790_v2 = vadd.f32 1e-06, %v758_v30 }
 0x166   : > { %v3298_v3 = vpop.eup %3297  ;;  %967 = vst [vmem:[#allocation2] sm:$0xff] %v951_v20  ;;  %v922_v12 = vadd.f32 %v4058_v9, %v884_v42  ;;  %v848_v6 = vmul.f32 %v3296_v1, %v3883_v17  ;;  %v791_v16 = vadd.f32 1e-06, %v759_v21  ;;  %v710_v60 = vpop.xlane.xlu1 %709 }
 0x167   : > { %v712_v24 = vpop.xlane.xlu0 %711  ;;  %v849_v7 = vmul.f32 %v3298_v3, %v3891_v23  ;;  %3307 = vrsqrt.f32 %v790_v2  ;;  %v760_v62 = vmul.f32 0.0078125, %v710_v60  ;;  %v923_v48 = vadd.f32 %v4058_v9, %v885_v57 }
 0x168   : > { %v952_v61 = vpack.c.bf16 %v922_v12, %v921_v45  ;;  %v886_v63 = vmul.f32 %v4051_v33, %v848_v6  ;;  %3309 = vrsqrt.f32 %v791_v16  ;;  %v761_v4 = vmul.f32 0.0078125, %v712_v24 }
 0x169   : > { %v3300_v8 = vpop.eup %3299  ;;  %v792_v36 = vadd.f32 1e-06, %v760_v62  ;;  %v887_v13 = vmul.f32 %v4051_v33, %v849_v7 }
 0x16a   : > { %v3302_v10 = vpop.eup %3301  ;;  %968 = vst [vmem:[#allocation2 + $0x8] sm:$0xff] %v952_v61  ;;  %v924_v17 = vadd.f32 %v4058_v9, %v886_v63  ;;  %v850_v27 = vmul.f32 %v3300_v8, %v3895_v22  ;;  %v793_v23 = vadd.f32 1e-06, %v761_v4  ;;  %v714_v14 = vpop.xlane.xlu1 %713 }
 0x16b   : > { %v716_v51 = vpop.xlane.xlu0 %715  ;;  %v851_v15 = vmul.f32 %v3302_v10, %v3903_v26  ;;  %3311 = vrsqrt.f32 %v792_v36  ;;  %v762_v11 = vmul.f32 0.0078125, %v714_v14  ;;  %v925_v22 = vadd.f32 %v4058_v9, %v887_v13 }
 0x16c   : > { %v953_v39 = vpack.c.bf16 %v924_v17, %v923_v48  ;;  %v888_v18 = vmul.f32 %v4051_v33, %v850_v27  ;;  %3313 = vrsqrt.f32 %v793_v23  ;;  %v763_v19 = vmul.f32 0.0078125, %v716_v51 }
 0x16d   : > { %v3304_v0 = vpop.eup %3303  ;;  %v889_v5 = vmul.f32 %v4051_v33, %v851_v15  ;;  %v794_v54 = vadd.f32 1e-06, %v762_v11 }
 0x16e   : > { %v3306_v30 = vpop.eup %3305  ;;  %969 = vst [vmem:[#allocation2 + $0x10] sm:$0xff] %v953_v39  ;;  %v926_v20 = vadd.f32 %v4058_v9, %v888_v18  ;;  %v852_v42 = vmul.f32 %v3304_v0, %v3907_v25  ;;  %v795_v26 = vadd.f32 1e-06, %v763_v19  ;;  %v718_v21 = vpop.xlane.xlu1 %717 }
 0x16f   : > { %v720_v1 = vpop.xlane.xlu0 %719  ;;  %v853_v57 = vmul.f32 %v3306_v30, %v3915_v29  ;;  %3315 = vrsqrt.f32 %v794_v54  ;;  %v764_v2 = vmul.f32 0.0078125, %v718_v21  ;;  %v927_v16 = vadd.f32 %v4058_v9, %v889_v5 }
 0x170   : > { %v954_v3 = vpack.c.bf16 %v926_v20, %v925_v22  ;;  %v890_v45 = vmul.f32 %v4051_v33, %v852_v42  ;;  %3317 = vrsqrt.f32 %v795_v26  ;;  %v765_v12 = vmul.f32 0.0078125, %v720_v1 }
 0x171   : > { %v3308_v6 = vpop.eup %3307  ;;  %v796_v60 = vadd.f32 1e-06, %v764_v2  ;;  %v891_v7 = vmul.f32 %v4051_v33, %v853_v57 }
 0x172   : > { %v3310_v24 = vpop.eup %3309  ;;  %970 = vst [vmem:[#allocation2 + $0x18] sm:$0xff] %v954_v3  ;;  %v928_v25 = vadd.f32 %v4058_v9, %v890_v45  ;;  %v854_v62 = vmul.f32 %v3308_v6, %v3919_v28  ;;  %v797_v29 = vadd.f32 1e-06, %v765_v12  ;;  %v722_v61 = vpop.xlane.xlu1 %721 }
 0x173   : > { %v724_v63 = vpop.xlane.xlu0 %723  ;;  %v855_v4 = vmul.f32 %v3310_v24, %v3927_v32  ;;  %3319 = vrsqrt.f32 %v796_v60  ;;  %v766_v8 = vmul.f32 0.0078125, %v722_v61  ;;  %v929_v28 = vadd.f32 %v4058_v9, %v891_v7 }
 0x174   : > { %v955_v48 = vpack.c.bf16 %v928_v25, %v927_v16  ;;  %v892_v36 = vmul.f32 %v4051_v33, %v854_v62  ;;  %3321 = vrsqrt.f32 %v797_v29  ;;  %v767_v10 = vmul.f32 0.0078125, %v724_v63 }
 0x175   : > { %v3312_v17 = vpop.eup %3311  ;;  %v893_v13 = vmul.f32 %v4051_v33, %v855_v4  ;;  %v798_v27 = vadd.f32 1e-06, %v766_v8 }
 0x176   : > { %v3314_v23 = vpop.eup %3313  ;;  %971 = vst [vmem:[#allocation2 + $0x20] sm:$0xff] %v955_v48  ;;  %v930_v14 = vadd.f32 %v4058_v9, %v892_v36  ;;  %v856_v51 = vmul.f32 %v3312_v17, %v3931_v31  ;;  %v799_v32 = vadd.f32 1e-06, %v767_v10  ;;  %v726_v15 = vpop.xlane.xlu1 %725 }
 0x177   : > { %v728_v11 = vpop.xlane.xlu0 %727  ;;  %v857_v39 = vmul.f32 %v3314_v23, %v3939_v35  ;;  %3323 = vrsqrt.f32 %v798_v27  ;;  %v768_v18 = vmul.f32 0.0078125, %v726_v15  ;;  %v931_v30 = vadd.f32 %v4058_v9, %v893_v13 }
 0x178   : > { %v956_v19 = vpack.c.bf16 %v930_v14, %v929_v28  ;;  %v894_v0 = vmul.f32 %v4051_v33, %v856_v51  ;;  %3325 = vrsqrt.f32 %v799_v32  ;;  %v769_v5 = vmul.f32 0.0078125, %v728_v11 }
 0x179   : > { %v3316_v54 = vpop.eup %3315  ;;  %v800_v22 = vadd.f32 1e-06, %v768_v18  ;;  %v895_v42 = vmul.f32 %v4051_v33, %v857_v39 }
 0x17a   : > { %v3318_v20 = vpop.eup %3317  ;;  %972 = vst [vmem:[#allocation2 + $0x28] sm:$0xff] %v956_v19  ;;  %v932_v31 = vadd.f32 %v4058_v9, %v894_v0  ;;  %v858_v26 = vmul.f32 %v3316_v54, %v3943_v34  ;;  %v801_v35 = vadd.f32 1e-06, %v769_v5  ;;  %v730_v21 = vpop.xlane.xlu1 %729 }
 0x17b   : > { %v732_v1 = vpop.xlane.xlu0 %731  ;;  %v859_v57 = vmul.f32 %v3318_v20, %v3951_v38  ;;  %3327 = vrsqrt.f32 %v800_v22  ;;  %v770_v2 = vmul.f32 0.0078125, %v730_v21  ;;  %v933_v34 = vadd.f32 %v4058_v9, %v895_v42 }
 0x17c   : > { %v957_v3 = vpack.c.bf16 %v932_v31, %v931_v30  ;;  %v896_v45 = vmul.f32 %v4051_v33, %v858_v26  ;;  %3329 = vrsqrt.f32 %v801_v35  ;;  %v771_v12 = vmul.f32 0.0078125, %v732_v1 }
 0x17d   : > { %v3320_v6 = vpop.eup %3319  ;;  %v897_v16 = vmul.f32 %v4051_v33, %v859_v57  ;;  %v802_v60 = vadd.f32 1e-06, %v770_v2 }
 0x17e   : > { %v3322_v24 = vpop.eup %3321  ;;  %973 = vst [vmem:[#allocation2 + $0x30] sm:$0xff] %v957_v3  ;;  %v934_v25 = vadd.f32 %v4058_v9, %v896_v45  ;;  %v860_v7 = vmul.f32 %v3320_v6, %v3955_v37  ;;  %v803_v38 = vadd.f32 1e-06, %v771_v12  ;;  %v734_v62 = vpop.xlane.xlu1 %733 }
 0x17f   : > { %v736_v29 = vpop.xlane.xlu0 %735  ;;  %v861_v61 = vmul.f32 %v3322_v24, %v3963_v41  ;;  %3331 = vrsqrt.f32 %v802_v60  ;;  %v772_v63 = vmul.f32 0.0078125, %v734_v62  ;;  %v935_v10 = vadd.f32 %v4058_v9, %v897_v16 }
 0x180   : > { %v958_v4 = vpack.c.bf16 %v934_v25, %v933_v34  ;;  %v898_v8 = vmul.f32 %v4051_v33, %v860_v7  ;;  %3333 = vrsqrt.f32 %v803_v38  ;;  %v773_v48 = vmul.f32 0.0078125, %v736_v29 }
 0x181   : > { %v3324_v36 = vpop.eup %3323  ;;  %v804_v17 = vadd.f32 1e-06, %v772_v63  ;;  %v899_v27 = vmul.f32 %v4051_v33, %v861_v61 }
 0x182   : > { %v3326_v13 = vpop.eup %3325  ;;  %974 = vst [vmem:[#allocation2 + $0x38] sm:$0xff] %v958_v4  ;;  %v936_v37 = vadd.f32 %v4058_v9, %v898_v8  ;;  %v862_v23 = vmul.f32 %v3324_v36, %v3967_v40  ;;  %v805_v41 = vadd.f32 1e-06, %v773_v48  ;;  %v738_v28 = vpop.xlane.xlu1 %737 }
 0x183   : > { %v740_v14 = vpop.xlane.xlu0 %739  ;;  %v863_v51 = vmul.f32 %v3326_v13, %v3975_v44  ;;  %3335 = vrsqrt.f32 %v804_v17  ;;  %v774_v32 = vmul.f32 0.0078125, %v738_v28  ;;  %v937_v40 = vadd.f32 %v4058_v9, %v899_v27 }
 0x184   : > { %v959_v15 = vpack.c.bf16 %v936_v37, %v935_v10  ;;  %v900_v11 = vmul.f32 %v4051_v33, %v862_v23  ;;  %3337 = vrsqrt.f32 %v805_v41  ;;  %v775_v39 = vmul.f32 0.0078125, %v740_v14 }
 0x185   : > { %v3328_v18 = vpop.eup %3327  ;;  %v901_v19 = vmul.f32 %v4051_v33, %v863_v51  ;;  %v806_v0 = vadd.f32 1e-06, %v774_v32 }
 0x186   : > { %v3330_v5 = vpop.eup %3329  ;;  %975 = vst [vmem:[#allocation2 + $0x40] sm:$0xff] %v959_v15  ;;  %v938_v54 = vadd.f32 %v4058_v9, %v900_v11  ;;  %v864_v30 = vmul.f32 %v3328_v18, %v3979_v43  ;;  %v807_v44 = vadd.f32 1e-06, %v775_v39  ;;  %v742_v22 = vpop.xlane.xlu1 %741 }
 0x187   : > { %v744_v20 = vpop.xlane.xlu0 %743  ;;  %v865_v31 = vmul.f32 %v3330_v5, %v3987_v47  ;;  %3339 = vrsqrt.f32 %v806_v0  ;;  %v776_v42 = vmul.f32 0.0078125, %v742_v22  ;;  %v939_v57 = vadd.f32 %v4058_v9, %v901_v19 }
 0x188   : > { %v960_v26 = vpack.c.bf16 %v938_v54, %v937_v40  ;;  %v902_v35 = vmul.f32 %v4051_v33, %v864_v30  ;;  %3341 = vrsqrt.f32 %v807_v44  ;;  %v777_v21 = vmul.f32 0.0078125, %v744_v20 }
 0x189   : > { %v3332_v1 = vpop.eup %3331  ;;  %v808_v2 = vadd.f32 1e-06, %v776_v42  ;;  %v903_v45 = vmul.f32 %v4051_v33, %v865_v31 }
 0x18a   : > { %v3334_v3 = vpop.eup %3333  ;;  %976 = vst [vmem:[#allocation2 + $0x48] sm:$0xff] %v960_v26  ;;  %v940_v43 = vadd.f32 %v4058_v9, %v902_v35  ;;  %v866_v12 = vmul.f32 %v3332_v1, %v3991_v46  ;;  %v809_v47 = vadd.f32 1e-06, %v777_v21  ;;  %v746_v6 = vpop.xlane.xlu1 %745 }
 0x18b   : > { %v867_v16 = vmul.f32 %v3334_v3, %v3999_v50  ;;  %3343 = vrsqrt.f32 %v808_v2  ;;  %v778_v60 = vmul.f32 0.0078125, %v746_v6  ;;  %v941_v62 = vadd.f32 %v4058_v9, %v903_v45 }
 0x18c   : > { %v961_v24 = vpack.c.bf16 %v940_v43, %v939_v57  ;;  %v904_v34 = vmul.f32 %v4051_v33, %v866_v12  ;;  %3345 = vrsqrt.f32 %v809_v47 }
 0x18d   : > { %v3336_v25 = vpop.eup %3335  ;;  %v810_v7 = vadd.f32 1e-06, %v778_v60  ;;  %v905_v46 = vmul.f32 %v4051_v33, %v867_v16 }
 0x18e   : > { %v3338_v38 = vpop.eup %3337  ;;  %977 = vst [vmem:[#allocation2 + $0x50] sm:$0xff] %v961_v24  ;;  %v942_v29 = vadd.f32 %v4058_v9, %v904_v34  ;;  %v868_v61 = vmul.f32 %v3336_v25, %v4003_v49 }
 0x18f   : > { %v869_v50 = vmul.f32 %v3338_v38, %v4011_v53  ;;  %3347 = vrsqrt.f32 %v810_v7  ;;  %v943_v36 = vadd.f32 %v4058_v9, %v905_v46 }
 0x190   : > { %v962_v63 = vpack.c.bf16 %v942_v29, %v941_v62  ;;  %v906_v4 = vmul.f32 %v4051_v33, %v868_v61 }
 0x191   : > { %v3340_v8 = vpop.eup %3339  ;;  %v907_v17 = vmul.f32 %v4051_v33, %v869_v50 }
 0x192   : > { %v3342_v48 = vpop.eup %3341  ;;  %978 = vst [vmem:[#allocation2 + $0x58] sm:$0xff] %v962_v63  ;;  %v944_v10 = vadd.f32 %v4058_v9, %v906_v4  ;;  %v870_v13 = vmul.f32 %v3340_v8, %v4015_v52 }
 0x193   : > { %v871_v37 = vmul.f32 %v3342_v48, %v4023_v56  ;;  %v945_v41 = vadd.f32 %v4058_v9, %v907_v17 }
 0x194   : > { %v963_v49 = vpack.c.bf16 %v944_v10, %v943_v36  ;;  %v908_v53 = vmul.f32 %v4051_v33, %v870_v13 }
 0x195   : > { %v3344_v27 = vpop.eup %3343  ;;  %v909_v14 = vmul.f32 %v4051_v33, %v871_v37 }
 0x196   : > { %v3346_v23 = vpop.eup %3345  ;;  %979 = vst [vmem:[#allocation2 + $0x60] sm:$0xff] %v963_v49  ;;  %v946_v28 = vadd.f32 %v4058_v9, %v908_v53  ;;  %v872_v51 = vmul.f32 %v3344_v27, %v4027_v55 }
 0x197   : > { %v873_v32 = vmul.f32 %v3346_v23, %v4035_v59  ;;  %v947_v11 = vadd.f32 %v4058_v9, %v909_v14 }
 0x198   : > { %v964_v15 = vpack.c.bf16 %v946_v28, %v945_v41  ;;  %v910_v52 = vmul.f32 %v4051_v33, %v872_v51 }
 0x199   : > { %v3348_v56 = vpop.eup %3347  ;;  %v911_v18 = vmul.f32 %v4051_v33, %v873_v32 }
 0x19a   : > { %980 = vst [vmem:[#allocation2 + $0x68] sm:$0xff] %v964_v15  ;;  %v948_v39 = vadd.f32 %v4058_v9, %v910_v52  ;;  %v874_v19 = vmul.f32 %v3348_v56, %v4039_v58 }
 0x19b   : > { %v949_v55 = vadd.f32 %v4058_v9, %v911_v18 }
 0x19c   : > { %v965_v0 = vpack.c.bf16 %v948_v39, %v947_v11  ;;  %v912_v5 = vmul.f32 %v4051_v33, %v874_v19 }
 0x19e   : > { %981 = vst [vmem:[#allocation2 + $0x70] sm:$0xff] %v965_v0  ;;  %v950_v59 = vadd.f32 %v4058_v9, %v912_v5 }
 0x1a0   : > { %v966_v40 = vpack.c.bf16 %v950_v59, %v949_v55 }
 0x1a2   : > { %982 = vst [vmem:[#allocation2 + $0x78] sm:$0xff] %v966_v40 }
 0x1a3 PF: > { %v3349_v58 = vld [vmem:[%s3676_s24 + $0x4] ss:$8 sps:$4 sm:$0xff]   ;;  %v3351_v54 = vld [vmem:[%s3676_s24] ss:$8 sps:$4 sm:$0xff]   ;;  %v3558_v33 = vmov 0   ;;  %v1017_v12 = vld [vmem:[#allocation2 + $0x10] sm:$0xff]  ;;  %v1049_v14 = vlaneseq }
 0x1a4   : > { %1171 = vmatprep.mubr.bf16.mxu0 %v3558_v33  ;;  %1139 = vmatprep.subr.bf16.mxu0 %v3349_v58  ;;  %v3352_v9 = vld [vmem:[%s3676_s24 + $0x14] ss:$8 sps:$4 sm:$0xff]   ;;  %v3354_v30 = vld [vmem:[%s3676_s24 + $0x10] ss:$8 sps:$4 sm:$0xff]   ;;  %v3355_v44 = vld [vmem:[%s3676_s24 + $0x24] ss:$8 sps:$4 sm:$0xff]  }
 0x1a5   : > { %1140 = vmatpush1.bf16.msra.mxu0 %v3351_v54  ;;  %v3357_v22 = vld [vmem:[%s3676_s24 + $0x20] ss:$8 sps:$4 sm:$0xff]   ;;  %v3358_v20 = vld [vmem:[%s3676_s24 + $0x34] ss:$8 sps:$4 sm:$0xff]   ;;  %v3360_v31 = vld [vmem:[%s3676_s24 + $0x30] ss:$8 sps:$4 sm:$0xff]  }
 0x1a6   : > { %1141 = vmatprep.subr.bf16.mxu0 %v3352_v9  ;;  %v3361_v42 = vld [vmem:[%s3676_s24 + $0x44] ss:$8 sps:$4 sm:$0xff]   ;;  %v3363_v26 = vld [vmem:[%s3676_s24 + $0x40] ss:$8 sps:$4 sm:$0xff]   ;;  %v3364_v35 = vld [vmem:[%s3676_s24 + $0x54] ss:$8 sps:$4 sm:$0xff]  }
 0x1a7   : > { %v3366_v21 = vld [vmem:[%s3676_s24 + $0x50] ss:$8 sps:$4 sm:$0xff]   ;;  %v3367_v1 = vld [vmem:[%s3676_s24 + $0x64] ss:$8 sps:$4 sm:$0xff]   ;;  %v3369_v57 = vld [vmem:[%s3676_s24 + $0x60] ss:$8 sps:$4 sm:$0xff]  }
 0x1a8   : > { %v3370_v2 = vld [vmem:[%s3676_s24 + $0x74] ss:$8 sps:$4 sm:$0xff]   ;;  %v3372_v3 = vld [vmem:[%s3676_s24 + $0x70] ss:$8 sps:$4 sm:$0xff]   ;;  %v1015_v43 = vld [vmem:[#allocation2] sm:$0xff]  ;;  %v1050_v51 = vshrl.u32 %v1049_v14, 7 }
 0x1a9   : > { %1142 = vmatpush1.bf16.msra.mxu0 %v3354_v30  ;;  %v1016_v45 = vld [vmem:[#allocation2 + $0x8] sm:$0xff]  ;;  %v1018_v47 = vld [vmem:[#allocation2 + $0x18] sm:$0xff]  ;;  %v1019_v6 = vld [vmem:[#allocation2 + $0x20] sm:$0xff]  ;;  %p2807_p12 = scmp.ne.s32.totalorder %s3547_s26, 1 }
 0x1aa   : > { %1143 = vmatprep.subr.bf16.mxu0 %v3355_v44  ;;  %v1020_v16 = vld [vmem:[#allocation2 + $0x28] sm:$0xff]  ;;  %v1021_v60 = vld [vmem:[#allocation2 + $0x30] sm:$0xff]  ;;  %v1022_v24 = vld [vmem:[#allocation2 + $0x38] sm:$0xff]  ;;  %v1051_v32 = vsub.s32 0, %v1050_v51  ;;  %v1055_v52 = vsub.s32 1, %v1050_v51 }
 0x1ab   : > { %v1023_v34 = vld [vmem:[#allocation2 + $0x40] sm:$0xff]  ;;  %v1024_v25 = vld [vmem:[#allocation2 + $0x48] sm:$0xff]  ;;  %v1025_v7 = vld [vmem:[#allocation2 + $0x50] sm:$0xff] }
 0x1ac   : > { %v1026_v38 = vld [vmem:[#allocation2 + $0x58] sm:$0xff]  ;;  %v3373_v62 = vld [vmem:[%s3674_s11 + $0x40] sm:$0xff]   ;;  %v3375_v46 = vld [vmem:[%s3674_s11 + $0x48] sm:$0xff]  }
 0x1ad   : > { %1144 = vmatpush1.bf16.msra.mxu0 %v3357_v22  ;;  %v3374_v29 = vld [vmem:[%s3674_s11] sm:$0xff]   ;;  %3131 = vmatprep.subr.bf16.mxu1 %v3373_v62  ;;  %v3376_v61 = vld [vmem:[%s3674_s11 + $0x8] sm:$0xff]   ;;  %v3377_v63 = vld [vmem:[%s3674_s11 + $0x50] sm:$0xff]  }
 0x1ae   : > { %1145 = vmatprep.subr.bf16.mxu0 %v3358_v20  ;;  %3132 = vmatpush3.bf16.msra.mxu1 %v3374_v29  ;;  %v1027_v50 = vld [vmem:[#allocation2 + $0x60] sm:$0xff]  ;;  %v3378_v4 = vld [vmem:[%s3674_s11 + $0x10] sm:$0xff]   ;;  %v3379_v8 = vld [vmem:[%s3674_s11 + $0x58] sm:$0xff]  }
 0x1af   : > { %3133 = vmatprep.subr.bf16.mxu1 %v3375_v46  ;;  %v3380_v48 = vld [vmem:[%s3674_s11 + $0x18] sm:$0xff]   ;;  %v1028_v36 = vld [vmem:[#allocation2 + $0x68] sm:$0xff]  ;;  %v3381_v10 = vld [vmem:[%s3674_s11 + $0x60] sm:$0xff]  }
 0x1b0   : > { %v3382_v17 = vld [vmem:[%s3674_s11 + $0x20] sm:$0xff]   ;;  %v3383_v13 = vld [vmem:[%s3674_s11 + $0x68] sm:$0xff]   ;;  %v1029_v49 = vld [vmem:[#allocation2 + $0x70] sm:$0xff] }
 0x1b1   : > { %1146 = vmatpush1.bf16.msra.mxu0 %v3360_v31  ;;  %v3384_v37 = vld [vmem:[%s3674_s11 + $0x28] sm:$0xff]   ;;  %v3385_v53 = vld [vmem:[%s3674_s11 + $0x70] sm:$0xff]   ;;  %v3387_v23 = vld [vmem:[%s3674_s11 + $0x78] sm:$0xff]  }
 0x1b2   : > { %1147 = vmatprep.subr.bf16.mxu0 %v3361_v42  ;;  %3134 = vmatpush3.bf16.msra.mxu1 %v3376_v61  ;;  %v3386_v27 = vld [vmem:[%s3674_s11 + $0x30] sm:$0xff]   ;;  %v3388_v41 = vld [vmem:[%s3674_s11 + $0x38] sm:$0xff]   ;;  %v1047_v15 = vld [vmem:[%s437_s23] sm:$0x3] }
 0x1b3   : > { %3135 = vmatprep.subr.bf16.mxu1 %v3377_v63  ;;  %v1030_v28 = vld [vmem:[#allocation2 + $0x78] sm:$0xff]  ;;  %v4206_v56 = vrot.slane %v1047_v15, %v1051_v32  ;;  %v4208_v11 = vrot.slane %v1047_v15, %v1055_v52 }
 0x1b5   : > { %1148 = vmatpush1.bf16.msra.mxu0 %v3363_v26 }
 0x1b6   : > { %1149 = vmatprep.subr.bf16.mxu0 %v3364_v35  ;;  %3136 = vmatpush3.bf16.msra.mxu1 %v3378_v4 }
 0x1b7   : > { %3137 = vmatprep.subr.bf16.mxu1 %v3379_v8 }
 0x1b9   : > { %1150 = vmatpush1.bf16.msra.mxu0 %v3366_v21 }
 0x1ba   : > { %1151 = vmatprep.subr.bf16.mxu0 %v3367_v1  ;;  %3138 = vmatpush3.bf16.msra.mxu1 %v3380_v48 }
 0x1bb   : > { %3139 = vmatprep.subr.bf16.mxu1 %v3381_v10 }
 0x1bd   : > { %1152 = vmatpush1.bf16.msra.mxu0 %v3369_v57 }
 0x1be   : > { %1153 = vmatprep.subr.bf16.mxu0 %v3370_v2  ;;  %3140 = vmatpush3.bf16.msra.mxu1 %v3382_v17 }
 0x1bf   : > { %3141 = vmatprep.subr.bf16.mxu1 %v3383_v13 }
 0x1c1   : > { %1154 = vmatpush1.bf16.msra.mxu0 %v3372_v3 }
 0x1c2   : > { %3142 = vmatpush3.bf16.msra.mxu1 %v3384_v37 }
 0x1c3   : > { %3143 = vmatprep.subr.bf16.mxu1 %v3385_v53 }
 0x1c4   : > { %1172 = vmatmul.mubr.bf16.vlgmr.msra.gmra.mrb[0].mxu0 %v1015_v43 }
 0x1c5   : > { %1181 = vmatprep.mubr.bf16.mxu0 %v3558_v33 }
 0x1c6   : > { %3144 = vmatpush3.bf16.msra.mxu1 %v3386_v27 }
 0x1c7   : > { %3145 = vmatprep.subr.bf16.mxu1 %v3387_v23 }
 0x1ca   : > { %3146 = vmatpush3.bf16.msra.mxu1 %v3388_v41 }
 0x1cc   : > { %1182 = vmatmul.mubr.bf16.gmra.mrb[4].mxu0 %v1016_v45 }
 0x1cd   : > { %1191 = vmatprep.mubr.bf16.mxu0 %v3558_v33 }
 0x1d4   : > { %1192 = vmatmul.mubr.bf16.gmra.mrb[8].mxu0 %v1017_v12 }
 0x1d5   : > { %1201 = vmatprep.mubr.bf16.mxu0 %v3558_v33 }
 0x1dc   : > { %1202 = vmatmul.mubr.bf16.gmra.mrb[12].mxu0 %v1018_v47 }
 0x1dd   : > { %1211 = vmatprep.mubr.bf16.mxu0 %v3558_v33 }
 0x1e4   : > { %1212 = vmatmul.mubr.bf16.gmra.mrb[16].mxu0 %v1019_v6 }
 0x1e5   : > { %1221 = vmatprep.mubr.bf16.mxu0 %v3558_v33 }
 0x1ec   : > { %1222 = vmatmul.mubr.bf16.gmra.mrb[20].mxu0 %v1020_v16 }
 0x1ed   : > { %1231 = vmatprep.mubr.bf16.mxu0 %v3558_v33 }
 0x1f4   : > { %1232 = vmatmul.mubr.bf16.gmra.mrb[24].mxu0 %v1021_v60 }
 0x1f5   : > { %1241 = vmatprep.mubr.bf16.mxu0 %v3558_v33 }
 0x1fc   : > { %1242 = vmatmul.mubr.bf16.gmra.mrb[28].mxu0 %v1022_v24 }
 0x1fd   : > { %1251 = vmatprep.mubr.bf16.mxu0 %v3558_v33 }
 0x204   : > { %1252 = vmatmul.mubr.bf16.gmra.mrb[32].mxu0 %v1023_v34 }
 0x205   : > { %1261 = vmatprep.mubr.bf16.mxu0 %v3558_v33 }
 0x20c   : > { %1262 = vmatmul.mubr.bf16.gmra.mrb[36].mxu0 %v1024_v25 }
 0x20d   : > { %1271 = vmatprep.mubr.bf16.mxu0 %v3558_v33 }
 0x214   : > { %1272 = vmatmul.mubr.bf16.gmra.mrb[40].mxu0 %v1025_v7 }
 0x215   : > { %1281 = vmatprep.mubr.bf16.mxu0 %v3558_v33 }
 0x21c   : > { %1282 = vmatmul.mubr.bf16.gmra.mrb[44].mxu0 %v1026_v38 }
 0x21d   : > { %1291 = vmatprep.mubr.bf16.mxu0 %v3558_v33 }
 0x224   : > { %1292 = vmatmul.mubr.bf16.gmra.mrb[48].mxu0 %v1027_v50 }
 0x225   : > { %1301 = vmatprep.mubr.bf16.mxu0 %v3558_v33 }
 0x22c   : > { %1302 = vmatmul.mubr.bf16.gmra.mrb[52].mxu0 %v1028_v36 }
 0x22d   : > { %1311 = vmatprep.mubr.bf16.mxu0 %v3558_v33 }
 0x234   : > { %1312 = vmatmul.mubr.bf16.gmra.mrb[56].mxu0 %v1029_v49 }
 0x235   : > { %1321 = vmatprep.mubr.bf16.mxu0 %v3558_v33 }
 0x23c   : > { %1322 = vmatmul.mubr.bf16.gmra.mrb[60].mxu0 %v1030_v28 }
 0x297   : > { %v1173_v39 = vpop.f32.mrb[0].mxu0 }
 0x298   : > { %v4211_v18 = vadd.f32 %v1173_v39, %v4206_v56  ;;  %v1175_v19 = vpop.f32.mrb[1].mxu0 }
 0x299   : > { %v4214_v0 = vadd.f32 %v1175_v19, %v4208_v11  ;;  %v1177_v5 = vpop.f32.mrb[2].mxu0 }
 0x29a   : > { %v1332_v55 = vmul.f32 %v4211_v18, %v4211_v18  ;;  %v4219_v59 = vadd.f32 %v1177_v5, %v4206_v56  ;;  %v1179_v40 = vpop.f32.mrb[3].mxu0 }
 0x29b   : > { %v1333_v58 = vmul.f32 %v4214_v0, %v4214_v0  ;;  %v4224_v54 = vadd.f32 %v1179_v40, %v4208_v11 }
 0x29c   : > { %v1396_v33 = vmul.f32 %v1332_v55, %v4211_v18  ;;  %v1334_v9 = vmul.f32 %v4219_v59, %v4219_v59 }
 0x29d   : > { %v1397_v30 = vmul.f32 %v1333_v58, %v4214_v0  ;;  %v1335_v44 = vmul.f32 %v4224_v54, %v4224_v54 }
 0x29e   : > { %v1460_v22 = vmul.f32 0.044715, %v1396_v33  ;;  %v1398_v20 = vmul.f32 %v1334_v9, %v4219_v59 }
 0x29f   : > { %v1461_v31 = vmul.f32 0.044715, %v1397_v30  ;;  %v1399_v42 = vmul.f32 %v1335_v44, %v4224_v54  ;;  %v1183_v26 = vpop.f32.mrb[4].mxu0 }
 0x2a0   : > { %v1524_v35 = vadd.f32 %v1460_v22, %v4211_v18  ;;  %v1462_v21 = vmul.f32 0.044715, %v1398_v20  ;;  %v4236_v1 = vadd.f32 %v1183_v26, %v4206_v56  ;;  %v1185_v57 = vpop.f32.mrb[5].mxu0 }
 0x2a1   : > { %v1463_v2 = vmul.f32 0.044715, %v1399_v42  ;;  %v4239_v3 = vadd.f32 %v1185_v57, %v4208_v11  ;;  %v1187_v43 = vpop.f32.mrb[6].mxu0  ;;  %v1525_v45 = vadd.f32 %v1461_v31, %v4214_v0 }
 0x2a2   : > { %v1588_v12 = vmul.f32 0.7978846, %v1524_v35  ;;  %v1526_v47 = vadd.f32 %v1462_v21, %v4219_v59  ;;  %v1336_v6 = vmul.f32 %v4236_v1, %v4236_v1  ;;  %v4246_v16 = vadd.f32 %v1187_v43, %v4206_v56  ;;  %v1189_v60 = vpop.f32.mrb[7].mxu0 }
 0x2a3   : > { %v1337_v24 = vmul.f32 %v4239_v3, %v4239_v3  ;;  %v4251_v34 = vadd.f32 %v1189_v60, %v4208_v11  ;;  %v1527_v25 = vadd.f32 %v1463_v2, %v4224_v54  ;;  %v1589_v7 = vmul.f32 0.7978846, %v1525_v45 }
 0x2a4   : > { %3389 = vtanh.f32 %v1588_v12  ;;  %v1590_v38 = vmul.f32 0.7978846, %v1526_v47  ;;  %v1400_v62 = vmul.f32 %v1336_v6, %v4236_v1  ;;  %v1338_v29 = vmul.f32 %v4246_v16, %v4246_v16 }
 0x2a5   : > { %v1401_v46 = vmul.f32 %v1337_v24, %v4239_v3  ;;  %v1339_v61 = vmul.f32 %v4251_v34, %v4251_v34  ;;  %v1591_v50 = vmul.f32 0.7978846, %v1527_v25  ;;  %3391 = vtanh.f32 %v1589_v7 }
 0x2a6   : > { %3393 = vtanh.f32 %v1590_v38  ;;  %v1464_v63 = vmul.f32 0.044715, %v1400_v62  ;;  %v1402_v4 = vmul.f32 %v1338_v29, %v4246_v16 }
 0x2a7   : > { %v1465_v8 = vmul.f32 0.044715, %v1401_v46  ;;  %v1403_v48 = vmul.f32 %v1339_v61, %v4251_v34  ;;  %v1193_v36 = vpop.f32.mrb[8].mxu0  ;;  %3395 = vtanh.f32 %v1591_v50 }
 0x2a8   : > { %v1528_v10 = vadd.f32 %v1464_v63, %v4236_v1  ;;  %v1466_v17 = vmul.f32 0.044715, %v1402_v4  ;;  %v4264_v13 = vadd.f32 %v1193_v36, %v4206_v56  ;;  %v1195_v37 = vpop.f32.mrb[9].mxu0 }
 0x2a9   : > { %v1529_v49 = vadd.f32 %v1465_v8, %v4239_v3  ;;  %v1467_v53 = vmul.f32 0.044715, %v1403_v48  ;;  %v4268_v27 = vadd.f32 %v1195_v37, %v4208_v11  ;;  %v1197_v23 = vpop.f32.mrb[10].mxu0 }
 0x2aa   : > { %v1592_v41 = vmul.f32 0.7978846, %v1528_v10  ;;  %v1530_v28 = vadd.f32 %v1466_v17, %v4246_v16  ;;  %v1340_v14 = vmul.f32 %v4264_v13, %v4264_v13  ;;  %v4274_v51 = vadd.f32 %v1197_v23, %v4206_v56  ;;  %v1199_v32 = vpop.f32.mrb[11].mxu0 }
 0x2ab   : > { %v1593_v15 = vmul.f32 0.7978846, %v1529_v49  ;;  %v1531_v52 = vadd.f32 %v1467_v53, %v4251_v34  ;;  %v1341_v39 = vmul.f32 %v4268_v27, %v4268_v27  ;;  %v4280_v19 = vadd.f32 %v1199_v32, %v4208_v11 }
 0x2ac   : > { %3397 = vtanh.f32 %v1592_v41  ;;  %v1594_v5 = vmul.f32 0.7978846, %v1530_v28  ;;  %v1404_v55 = vmul.f32 %v1340_v14, %v4264_v13  ;;  %v1342_v40 = vmul.f32 %v4274_v51, %v4274_v51 }
 0x2ad   : > { %3399 = vtanh.f32 %v1593_v15  ;;  %v1595_v58 = vmul.f32 0.7978846, %v1531_v52  ;;  %v1405_v33 = vmul.f32 %v1341_v39, %v4268_v27  ;;  %v1343_v9 = vmul.f32 %v4280_v19, %v4280_v19 }
 0x2ae   : > { %v3390_v30 = vpop.eup %3389  ;;  %3401 = vtanh.f32 %v1594_v5  ;;  %v1468_v44 = vmul.f32 0.044715, %v1404_v55  ;;  %v1406_v22 = vmul.f32 %v1342_v40, %v4274_v51 }
 0x2af   : > { %v3392_v20 = vpop.eup %3391  ;;  %3403 = vtanh.f32 %v1595_v58  ;;  %v1469_v31 = vmul.f32 0.044715, %v1405_v33  ;;  %v1407_v42 = vmul.f32 %v1343_v9, %v4280_v19  ;;  %v1203_v26 = vpop.f32.mrb[12].mxu0  ;;  %v4290_v35 = vadd.f32 1.0, %v3390_v30 }
 0x2b0   : > { %v3394_v21 = vpop.eup %3393  ;;  %v1532_v57 = vadd.f32 %v1468_v44, %v4264_v13  ;;  %v1470_v2 = vmul.f32 0.044715, %v1406_v22  ;;  %v4294_v43 = vadd.f32 %v1203_v26, %v4206_v56  ;;  %v1205_v45 = vpop.f32.mrb[13].mxu0  ;;  %v1717_v12 = vadd.f32 1.0, %v3392_v20 }
 0x2b1   : > { %v1533_v47 = vadd.f32 %v1469_v31, %v4268_v27  ;;  %v1471_v6 = vmul.f32 0.044715, %v1407_v42  ;;  %v4298_v60 = vadd.f32 %v1205_v45, %v4208_v11  ;;  %v1207_v24 = vpop.f32.mrb[14].mxu0  ;;  %v4300_v25 = vadd.f32 1.0, %v3394_v21  ;;  %v3396_v61 = vpop.eup %3395 }
 0x2b2   : > { %v1596_v7 = vmul.f32 0.7978846, %v1532_v57  ;;  %v1534_v38 = vadd.f32 %v1470_v2, %v4274_v51  ;;  %v1344_v62 = vmul.f32 %v4294_v43, %v4294_v43  ;;  %v4306_v29 = vadd.f32 %v1207_v24, %v4206_v56  ;;  %v1209_v46 = vpop.f32.mrb[15].mxu0 }
 0x2b3   : > { %v1597_v50 = vmul.f32 0.7978846, %v1533_v47  ;;  %v1535_v63 = vadd.f32 %v1471_v6, %v4280_v19  ;;  %v1345_v4 = vmul.f32 %v4298_v60, %v4298_v60  ;;  %v4312_v8 = vadd.f32 %v1209_v46, %v4208_v11 }
 0x2b4   : > { %3405 = vtanh.f32 %v1596_v7  ;;  %v1598_v48 = vmul.f32 0.7978846, %v1534_v38  ;;  %v1408_v36 = vmul.f32 %v1344_v62, %v4294_v43  ;;  %v1346_v10 = vmul.f32 %v4306_v29, %v4306_v29 }
 0x2b5   : > { %3407 = vtanh.f32 %v1597_v50  ;;  %v1599_v17 = vmul.f32 0.7978846, %v1535_v63  ;;  %v1409_v37 = vmul.f32 %v1345_v4, %v4298_v60  ;;  %v1347_v49 = vmul.f32 %v4312_v8, %v4312_v8 }
 0x2b6   : > { %v4320_v53 = vpop.eup %3397  ;;  %3409 = vtanh.f32 %v1598_v48  ;;  %v1472_v23 = vmul.f32 0.044715, %v1408_v36  ;;  %v1410_v41 = vmul.f32 %v1346_v10, %v4306_v29  ;;  %v1719_v28 = vadd.f32 1.0, %v3396_v61 }
 0x2b7   : > { %v4323_v14 = vpop.eup %3399  ;;  %3411 = vtanh.f32 %v1599_v17  ;;  %v1473_v32 = vmul.f32 0.044715, %v1409_v37  ;;  %v1411_v15 = vmul.f32 %v1347_v49, %v4312_v8  ;;  %v1213_v52 = vpop.f32.mrb[16].mxu0  ;;  %v1781_v39 = vmul.f32 0.5, %v1717_v12 }
 0x2b8   : > { %v4326_v5 = vpop.eup %3401  ;;  %v1536_v55 = vadd.f32 %v1472_v23, %v4294_v43  ;;  %v1474_v40 = vmul.f32 0.044715, %v1410_v41  ;;  %v4330_v58 = vadd.f32 %v1213_v52, %v4206_v56  ;;  %v1215_v33 = vpop.f32.mrb[17].mxu0  ;;  %v1783_v9 = vmul.f32 0.5, %v1719_v28 }
 0x2b9   : > { %v4332_v30 = vpop.eup %3403  ;;  %v1537_v44 = vadd.f32 %v1473_v32, %v4298_v60  ;;  %v1475_v22 = vmul.f32 0.044715, %v1411_v15  ;;  %v4336_v20 = vadd.f32 %v1215_v33, %v4208_v11  ;;  %v1217_v31 = vpop.f32.mrb[18].mxu0  ;;  %v1845_v42 = vmul.f32 %v1781_v39, %v4214_v0 }
 0x2ba   : > { %v1600_v26 = vmul.f32 0.7978846, %v1536_v55  ;;  %v1538_v21 = vadd.f32 %v1474_v40, %v4306_v29  ;;  %v1348_v57 = vmul.f32 %v4330_v58, %v4330_v58  ;;  %v4343_v2 = vadd.f32 %v1217_v31, %v4206_v56  ;;  %v1219_v45 = vpop.f32.mrb[19].mxu0 }
 0x2bb   : > { %v1601_v12 = vmul.f32 0.7978846, %v1537_v44  ;;  %v1539_v47 = vadd.f32 %v1475_v22, %v4312_v8  ;;  %v1349_v6 = vmul.f32 %v4336_v20, %v4336_v20  ;;  %v4349_v24 = vadd.f32 %v1219_v45, %v4208_v11 }
 0x2bc   : > { %3413 = vtanh.f32 %v1600_v26  ;;  %v1602_v0 = vmul.f32 0.7978846, %v1538_v21  ;;  %v1412_v7 = vmul.f32 %v1348_v57, %v4330_v58  ;;  %v1350_v38 = vmul.f32 %v4343_v2, %v4343_v2 }
 0x2bd   : > { %3415 = vtanh.f32 %v1601_v12  ;;  %v1603_v62 = vmul.f32 0.7978846, %v1539_v47  ;;  %v1413_v46 = vmul.f32 %v1349_v6, %v4336_v20  ;;  %v1351_v61 = vmul.f32 %v4349_v24, %v4349_v24 }
 0x2be   : > { %v4357_v50 = vpop.eup %3405  ;;  %3417 = vtanh.f32 %v1602_v0  ;;  %v1476_v63 = vmul.f32 0.044715, %v1412_v7  ;;  %v1414_v4 = vmul.f32 %v1350_v38, %v4343_v2  ;;  %v1847_v48 = vmul.f32 %v1783_v9, %v4224_v54 }
 0x2bf   : > { %v4361_v36 = vpop.eup %3407  ;;  %3419 = vtanh.f32 %v1603_v62  ;;  %v1477_v10 = vmul.f32 0.044715, %v1413_v46  ;;  %v1415_v17 = vmul.f32 %v1351_v61, %v4349_v24  ;;  %v1780_v37 = vmul.f32 0.5, %v4290_v35  ;;  %v1223_v49 = vpop.f32.mrb[20].mxu0 }
 0x2c0   : > { %v4365_v23 = vpop.eup %3409  ;;  %v1540_v41 = vadd.f32 %v1476_v63, %v4330_v58  ;;  %v1478_v28 = vmul.f32 0.044715, %v1414_v4  ;;  %v1909_v32 = vpack.c.bf16 %v1847_v48, %v1845_v42  ;;  %v1782_v15 = vmul.f32 0.5, %v4300_v25  ;;  %v1225_v52 = vpop.f32.mrb[21].mxu0 }
 0x2c1   : > { %v4369_v39 = vpop.eup %3411  ;;  %v1541_v54 = vadd.f32 %v1477_v10, %v4336_v20  ;;  %v1479_v55 = vmul.f32 0.044715, %v1415_v17  ;;  %v1844_v40 = vmul.f32 %v1780_v37, %v4211_v18  ;;  %v4374_v33 = vadd.f32 %v1223_v49, %v4206_v56  ;;  %v1227_v35 = vpop.f32.mrb[22].mxu0 }
 0x2c2   : > { %v1604_v9 = vmul.f32 0.7978846, %v1540_v41  ;;  %v1542_v44 = vadd.f32 %v1478_v28, %v4343_v2  ;;  %2132 = vmatprep.mubr.bf16.mxu1 %v1909_v32  ;;  %v1846_v22 = vmul.f32 %v1782_v15, %v4219_v59  ;;  %v4379_v25 = vadd.f32 %v1225_v52, %v4208_v11  ;;  %v1229_v31 = vpop.f32.mrb[23].mxu0 }
 0x2c3   : > { %v1605_v42 = vmul.f32 0.7978846, %v1541_v54  ;;  %v1543_v26 = vadd.f32 %v1479_v55, %v4349_v24  ;;  %v1352_v18 = vmul.f32 %v4374_v33, %v4374_v33  ;;  %v4385_v21 = vadd.f32 %v1227_v35, %v4206_v56 }
 0x2c4   : > { %3421 = vtanh.f32 %v1604_v9  ;;  %v1606_v57 = vmul.f32 0.7978846, %v1542_v44  ;;  %v1908_v45 = vpack.c.bf16 %v1846_v22, %v1844_v40  ;;  %v1353_v12 = vmul.f32 %v4379_v25, %v4379_v25 }
 0x2c5   : > { %3423 = vtanh.f32 %v1605_v42  ;;  %v1607_v59 = vmul.f32 0.7978846, %v1543_v26  ;;  %v1416_v47 = vmul.f32 %v1352_v18, %v4374_v33  ;;  %v1354_v6 = vmul.f32 %v4385_v21, %v4385_v21 }
 0x2c6   : > { %v4392_v0 = vpop.eup %3413  ;;  %3425 = vtanh.f32 %v1606_v57  ;;  %2133 = vmatmul.mubr.bf16.vlgmr.msra.gmra.mrb[0].mxu1 %v1908_v45  ;;  %v1417_v7 = vmul.f32 %v1353_v12, %v4379_v25  ;;  %v4396_v38 = vadd.f32 %v1229_v31, %v4208_v11  ;;  %v1721_v62 = vadd.f32 1.0, %v4323_v14 }
 0x2c7   : > { %v4399_v46 = vpop.eup %3415  ;;  %3427 = vtanh.f32 %v1607_v59  ;;  %v1480_v61 = vmul.f32 0.044715, %v1416_v47  ;;  %v1418_v63 = vmul.f32 %v1354_v6, %v4385_v21  ;;  %v1723_v4 = vadd.f32 1.0, %v4332_v30  ;;  %v1233_v48 = vpop.f32.mrb[24].mxu0 }
 0x2c8   : > { %v4403_v10 = vpop.eup %3417  ;;  %v1481_v17 = vmul.f32 0.044715, %v1417_v7  ;;  %v1355_v37 = vmul.f32 %v4396_v38, %v4396_v38  ;;  %v1785_v49 = vmul.f32 0.5, %v1721_v62  ;;  %v1720_v41 = vadd.f32 1.0, %v4320_v53  ;;  %v1235_v28 = vpop.f32.mrb[25].mxu0 }
 0x2c9   : > { %v4408_v14 = vpop.eup %3419  ;;  %v1544_v32 = vadd.f32 %v1480_v61, %v4374_v33  ;;  %v1482_v15 = vmul.f32 0.044715, %v1418_v63  ;;  %v1787_v52 = vmul.f32 0.5, %v1723_v4  ;;  %v1722_v54 = vadd.f32 1.0, %v4326_v5  ;;  %v1237_v30 = vpop.f32.mrb[26].mxu0 }
 0x2ca   : > { %v1545_v55 = vadd.f32 %v1481_v17, %v4379_v25  ;;  %v1419_v40 = vmul.f32 %v1355_v37, %v4396_v38  ;;  %v1849_v35 = vmul.f32 %v1785_v49, %v4239_v3  ;;  %v1784_v9 = vmul.f32 0.5, %v1720_v41  ;;  %v1239_v44 = vpop.f32.mrb[27].mxu0 }
 0x2cb   : > { %v1608_v22 = vmul.f32 0.7978846, %v1544_v32  ;;  %v1546_v53 = vadd.f32 %v1482_v15, %v4385_v21  ;;  %v1851_v31 = vmul.f32 %v1787_v52, %v4251_v34  ;;  %v1786_v42 = vmul.f32 0.5, %v1722_v54 }
 0x2cc   : > { %v1609_v26 = vmul.f32 0.7978846, %v1545_v55  ;;  %v1483_v18 = vmul.f32 0.044715, %v1419_v40  ;;  %v1848_v57 = vmul.f32 %v1784_v9, %v4236_v1  ;;  %v4419_v5 = vadd.f32 %v1233_v48, %v4206_v56 }
 0x2cd   : > { %3429 = vtanh.f32 %v1608_v22  ;;  %v1610_v45 = vmul.f32 0.7978846, %v1546_v53  ;;  %v1911_v12 = vpack.c.bf16 %v1851_v31, %v1849_v35  ;;  %v1850_v3 = vmul.f32 %v1786_v42, %v4246_v16 }
 0x2ce   : > { %v4422_v59 = vpop.eup %3421  ;;  %3431 = vtanh.f32 %v1609_v26  ;;  %v1547_v47 = vadd.f32 %v1483_v18, %v4396_v38  ;;  %v1356_v34 = vmul.f32 %v4419_v5, %v4419_v5  ;;  %v4428_v6 = vadd.f32 %v1235_v28, %v4208_v11 }
 0x2cf   : > { %v4430_v1 = vpop.eup %3423  ;;  %3433 = vtanh.f32 %v1610_v45  ;;  %2140 = vmatprep.mubr.bf16.mxu1 %v1911_v12  ;;  %v1910_v7 = vpack.c.bf16 %v1850_v3, %v1848_v57  ;;  %v4433_v62 = vadd.f32 %v1237_v30, %v4206_v56  ;;  %v4436_v16 = vadd.f32 %v1239_v44, %v4208_v11  ;;  %v1243_v61 = vpop.f32.mrb[28].mxu0 }
 0x2d0   : > { %v4438_v63 = vpop.eup %3425  ;;  %v1611_v4 = vmul.f32 0.7978846, %v1547_v47  ;;  %v1420_v48 = vmul.f32 %v1356_v34, %v4419_v5  ;;  %v1357_v17 = vmul.f32 %v4428_v6, %v4428_v6  ;;  %v1725_v37 = vadd.f32 1.0, %v4361_v36  ;;  %v1245_v49 = vpop.f32.mrb[29].mxu0 }
 0x2d1   : > { %v4444_v41 = vpop.eup %3427  ;;  %2141 = vmatmul.mubr.bf16.gmra.mrb[4].mxu1 %v1910_v7  ;;  %v1358_v28 = vmul.f32 %v4433_v62, %v4433_v62  ;;  %v1359_v32 = vmul.f32 %v4436_v16, %v4436_v16  ;;  %v1727_v15 = vadd.f32 1.0, %v4369_v39  ;;  %v1724_v52 = vadd.f32 1.0, %v4357_v50  ;;  %v1247_v54 = vpop.f32.mrb[30].mxu0 }
 0x2d2   : > { %3435 = vtanh.f32 %v1611_v4  ;;  %v1484_v30 = vmul.f32 0.044715, %v1420_v48  ;;  %v1421_v55 = vmul.f32 %v1357_v17, %v4428_v6  ;;  %v1789_v36 = vmul.f32 0.5, %v1725_v37  ;;  %v1249_v40 = vpop.f32.mrb[31].mxu0 }
 0x2d3   : > { %v1422_v35 = vmul.f32 %v1358_v28, %v4433_v62  ;;  %v1423_v9 = vmul.f32 %v1359_v32, %v4436_v16  ;;  %v1791_v44 = vmul.f32 0.5, %v1727_v15  ;;  %v1726_v22 = vadd.f32 1.0, %v4365_v23 }
 0x2d4   : > { %v1548_v53 = vadd.f32 %v1484_v30, %v4419_v5  ;;  %v1485_v31 = vmul.f32 0.044715, %v1421_v55  ;;  %v1853_v39 = vmul.f32 %v1789_v36, %v4268_v27  ;;  %v1788_v50 = vmul.f32 0.5, %v1724_v52 }
 0x2d5   : > { %v1486_v42 = vmul.f32 0.044715, %v1422_v35  ;;  %v1487_v26 = vmul.f32 0.044715, %v1423_v9  ;;  %v1855_v18 = vmul.f32 %v1791_v44, %v4280_v19  ;;  %v1790_v57 = vmul.f32 0.5, %v1726_v22 }
 0x2d6   : > { %v1612_v45 = vmul.f32 0.7978846, %v1548_v53  ;;  %v1549_v12 = vadd.f32 %v1485_v31, %v4428_v6  ;;  %v1852_v3 = vmul.f32 %v1788_v50, %v4264_v13  ;;  %v4462_v47 = vadd.f32 %v1243_v61, %v4206_v56 }
 0x2d7   : > { %v4464_v23 = vpop.eup %3429  ;;  %v1550_v34 = vadd.f32 %v1486_v42, %v4433_v62  ;;  %v1551_v27 = vadd.f32 %v1487_v26, %v4436_v16  ;;  %v1913_v7 = vpack.c.bf16 %v1855_v18, %v1853_v39  ;;  %v1854_v4 = vmul.f32 %v1790_v57, %v4274_v51  ;;  %v1253_v48 = vpop.f32.mrb[32].mxu0 }
 0x2d8   : > { %v4469_v19 = vpop.eup %3431  ;;  %3437 = vtanh.f32 %v1612_v45  ;;  %v1613_v17 = vmul.f32 0.7978846, %v1549_v12  ;;  %v1360_v13 = vmul.f32 %v4462_v47, %v4462_v47  ;;  %v4474_v61 = vadd.f32 %v1245_v49, %v4208_v11  ;;  %v1255_v37 = vpop.f32.mrb[33].mxu0 }
 0x2d9   : > { %v4476_v28 = vpop.eup %3433  ;;  %v1614_v32 = vmul.f32 0.7978846, %v1550_v34  ;;  %v1615_v15 = vmul.f32 0.7978846, %v1551_v27  ;;  %2148 = vmatprep.mubr.bf16.mxu1 %v1913_v7  ;;  %v1912_v52 = vpack.c.bf16 %v1854_v4, %v1852_v3  ;;  %v4479_v51 = vadd.f32 %v1247_v54, %v4206_v56  ;;  %v1257_v30 = vpop.f32.mrb[34].mxu0 }
 0x2da   : > { %3439 = vtanh.f32 %v1613_v17  ;;  %v1424_v55 = vmul.f32 %v1360_v13, %v4462_v47  ;;  %v1361_v36 = vmul.f32 %v4474_v61, %v4474_v61  ;;  %v4485_v49 = vadd.f32 %v1249_v40, %v4208_v11  ;;  %v1259_v35 = vpop.f32.mrb[35].mxu0 }
 0x2db   : > { %3441 = vtanh.f32 %v1614_v32  ;;  %2149 = vmatmul.mubr.bf16.gmra.mrb[8].mxu1 %v1912_v52  ;;  %v1362_v9 = vmul.f32 %v4479_v51, %v4479_v51  ;;  %v1729_v44 = vadd.f32 1.0, %v4399_v46  ;;  %v1731_v54 = vadd.f32 1.0, %v4408_v14 }
 0x2dc   : > { %v4491_v22 = vpop.eup %3435  ;;  %3443 = vtanh.f32 %v1615_v15  ;;  %v1488_v53 = vmul.f32 0.044715, %v1424_v55  ;;  %v1425_v31 = vmul.f32 %v1361_v36, %v4474_v61  ;;  %v1363_v40 = vmul.f32 %v4485_v49, %v4485_v49 }
 0x2dd   : > { %v1426_v39 = vmul.f32 %v1362_v9, %v4479_v51  ;;  %v1793_v50 = vmul.f32 0.5, %v1729_v44  ;;  %v1795_v42 = vmul.f32 0.5, %v1731_v54  ;;  %v1728_v26 = vadd.f32 1.0, %v4392_v0 }
 0x2de   : > { %v1552_v18 = vadd.f32 %v1488_v53, %v4462_v47  ;;  %v1489_v46 = vmul.f32 0.044715, %v1425_v31  ;;  %v1427_v14 = vmul.f32 %v1363_v40, %v4485_v49  ;;  %v1730_v57 = vadd.f32 1.0, %v4403_v10 }
 0x2df   : > { %v1490_v45 = vmul.f32 0.044715, %v1426_v39  ;;  %v1857_v12 = vmul.f32 %v1793_v50, %v4298_v60  ;;  %v1859_v3 = vmul.f32 %v1795_v42, %v4312_v8  ;;  %v1792_v34 = vmul.f32 0.5, %v1728_v26  ;;  %v4503_v27 = vpop.f32.mrb[36].mxu0 }
 0x2e0   : > { %v1616_v7 = vmul.f32 0.7978846, %v1552_v18  ;;  %v1553_v4 = vadd.f32 %v1489_v46, %v4474_v61  ;;  %v1491_v17 = vmul.f32 0.044715, %v1427_v14  ;;  %v1794_v0 = vmul.f32 0.5, %v1730_v57  ;;  %v4506_v13 = vpop.f32.mrb[37].mxu0 }
 0x2e1   : > { %v1554_v32 = vadd.f32 %v1490_v45, %v4479_v51  ;;  %v1915_v15 = vpack.c.bf16 %v1859_v3, %v1857_v12  ;;  %v1856_v10 = vmul.f32 %v1792_v34, %v4294_v43  ;;  %v4511_v52 = vadd.f32 %v1253_v48, %v4206_v56  ;;  %v4513_v60 = vpop.f32.mrb[38].mxu0 }
 0x2e2   : > { %v4515_v8 = vpop.eup %3437  ;;  %3445 = vtanh.f32 %v1616_v7  ;;  %v1617_v55 = vmul.f32 0.7978846, %v1553_v4  ;;  %v1555_v36 = vadd.f32 %v1491_v17, %v4485_v49  ;;  %v1858_v9 = vmul.f32 %v1794_v0, %v4306_v29  ;;  %v4519_v44 = vpop.f32.mrb[39].mxu0 }
 0x2e3   : > { %v1618_v54 = vmul.f32 0.7978846, %v1554_v32  ;;  %2156 = vmatprep.mubr.bf16.mxu1 %v1915_v15  ;;  %v1364_v43 = vmul.f32 %v4511_v52, %v4511_v52  ;;  %v4524_v48 = vadd.f32 %v1255_v37, %v4208_v11  ;;  %v4527_v53 = vadd.f32 %v1257_v30, %v4206_v56 }
 0x2e4   : > { %v4529_v31 = vpop.eup %3439  ;;  %3447 = vtanh.f32 %v1617_v55  ;;  %v1619_v40 = vmul.f32 0.7978846, %v1555_v36  ;;  %v1914_v39 = vpack.c.bf16 %v1858_v9, %v1856_v10  ;;  %v4532_v29 = vadd.f32 %v1259_v35, %v4208_v11 }
 0x2e5   : > { %v4534_v50 = vpop.eup %3441  ;;  %3449 = vtanh.f32 %v1618_v54  ;;  %v1428_v42 = vmul.f32 %v1364_v43, %v4511_v52  ;;  %v1365_v37 = vmul.f32 %v4524_v48, %v4524_v48  ;;  %v1366_v30 = vmul.f32 %v4527_v53, %v4527_v53 }
 0x2e6   : > { %v4541_v26 = vpop.eup %3443  ;;  %3451 = vtanh.f32 %v1619_v40  ;;  %2157 = vmatmul.mubr.bf16.gmra.mrb[12].mxu1 %v1914_v39  ;;  %v1367_v18 = vmul.f32 %v4532_v29, %v4532_v29  ;;  %v1733_v35 = vadd.f32 1.0, %v4430_v1  ;;  %v1735_v46 = vadd.f32 1.0, %v4444_v41 }
 0x2e7   : > { %v1492_v14 = vmul.f32 0.044715, %v1428_v42  ;;  %v1429_v57 = vmul.f32 %v1365_v37, %v4524_v48  ;;  %v1430_v45 = vmul.f32 %v1366_v30, %v4527_v53  ;;  %v1732_v12 = vadd.f32 1.0, %v4422_v59  ;;  %v4550_v3 = vpop.f32.mrb[40].mxu0 }
 0x2e8   : > { %v1431_v34 = vmul.f32 %v1367_v18, %v4532_v29  ;;  %v1797_v7 = vmul.f32 0.5, %v1733_v35  ;;  %v1799_v4 = vmul.f32 0.5, %v1735_v46  ;;  %v1734_v17 = vadd.f32 1.0, %v4438_v63  ;;  %v4554_v0 = vpop.f32.mrb[41].mxu0 }
 0x2e9   : > { %v1556_v1 = vadd.f32 %v1492_v14, %v4511_v52  ;;  %v1493_v41 = vmul.f32 0.044715, %v1429_v57  ;;  %v1494_v32 = vmul.f32 0.044715, %v1430_v45  ;;  %v1796_v15 = vmul.f32 0.5, %v1732_v12  ;;  %v4557_v10 = vpop.f32.mrb[42].mxu0 }
 0x2ea   : > { %v1495_v55 = vmul.f32 0.044715, %v1431_v34  ;;  %v1861_v59 = vmul.f32 %v1797_v7, %v4336_v20  ;;  %v1863_v36 = vmul.f32 %v1799_v4, %v4349_v24  ;;  %v1798_v9 = vmul.f32 0.5, %v1734_v17  ;;  %v4561_v54 = vpop.f32.mrb[43].mxu0 }
 0x2eb   : > { %v1620_v43 = vmul.f32 0.7978846, %v1556_v1  ;;  %v1557_v63 = vadd.f32 %v1493_v41, %v4524_v48  ;;  %v1558_v40 = vadd.f32 %v1494_v32, %v4527_v53  ;;  %v1860_v39 = vmul.f32 %v1796_v15, %v4330_v58 }
 0x2ec   : > { %v4566_v42 = vpop.eup %3445  ;;  %v1559_v37 = vadd.f32 %v1495_v55, %v4532_v29  ;;  %v1917_v30 = vpack.c.bf16 %v1863_v36, %v1861_v59  ;;  %v1862_v18 = vmul.f32 %v1798_v9, %v4343_v2  ;;  %v4572_v20 = vadd.f32 %v4503_v27, %v4206_v56 }
 0x2ed   : > { %3453 = vtanh.f32 %v1620_v43  ;;  %v1621_v24 = vmul.f32 0.7978846, %v1557_v63  ;;  %v1622_v35 = vmul.f32 0.7978846, %v1558_v40  ;;  %v4576_v46 = vadd.f32 %v4506_v13, %v4208_v11 }
 0x2ee   : > { %v4578_v14 = vpop.eup %3447  ;;  %v1623_v58 = vmul.f32 0.7978846, %v1559_v37  ;;  %2164 = vmatprep.mubr.bf16.mxu1 %v1917_v30  ;;  %v1916_v57 = vpack.c.bf16 %v1862_v18, %v1860_v39  ;;  %v1368_v45 = vmul.f32 %v4572_v20, %v4572_v20  ;;  %v4584_v2 = vadd.f32 %v4513_v60, %v4206_v56 }
 0x2ef   : > { %v4586_v27 = vpop.eup %3449  ;;  %3455 = vtanh.f32 %v1621_v24  ;;  %v1369_v12 = vmul.f32 %v4576_v46, %v4576_v46  ;;  %v4592_v13 = vadd.f32 %v4519_v44, %v4208_v11  ;;  %v1737_v34 = vadd.f32 1.0, %v4469_v19  ;;  %v4595_v7 = vpop.f32.mrb[44].mxu0 }
 0x2f0   : > { %v4597_v4 = vpop.eup %3451  ;;  %3457 = vtanh.f32 %v1622_v35  ;;  %2165 = vmatmul.mubr.bf16.gmra.mrb[16].mxu1 %v1916_v57  ;;  %v1432_v60 = vmul.f32 %v1368_v45, %v4572_v20  ;;  %v1370_v17 = vmul.f32 %v4584_v2, %v4584_v2  ;;  %v1739_v1 = vadd.f32 1.0, %v4491_v22  ;;  %v4603_v41 = vpop.f32.mrb[45].mxu0 }
 0x2f1   : > { %3459 = vtanh.f32 %v1623_v58  ;;  %v1433_v44 = vmul.f32 %v1369_v12, %v4576_v46  ;;  %v1371_v19 = vmul.f32 %v4592_v13, %v4592_v13  ;;  %v1801_v32 = vmul.f32 0.5, %v1737_v34  ;;  %v4608_v15 = vpop.f32.mrb[46].mxu0 }
 0x2f2   : > { %v1496_v55 = vmul.f32 0.044715, %v1432_v60  ;;  %v1434_v59 = vmul.f32 %v1370_v17, %v4584_v2  ;;  %v1803_v36 = vmul.f32 0.5, %v1739_v1  ;;  %v1736_v9 = vadd.f32 1.0, %v4464_v23  ;;  %v4612_v43 = vpop.f32.mrb[47].mxu0 }
 0x2f3   : > { %v1497_v22 = vmul.f32 0.044715, %v1433_v44  ;;  %v1435_v63 = vmul.f32 %v1371_v19, %v4592_v13  ;;  %v1865_v40 = vmul.f32 %v1801_v32, %v4379_v25  ;;  %v1738_v39 = vadd.f32 1.0, %v4476_v28 }
 0x2f4   : > { %v1560_v37 = vadd.f32 %v1496_v55, %v4572_v20  ;;  %v1498_v30 = vmul.f32 0.044715, %v1434_v59  ;;  %v1867_v18 = vmul.f32 %v1803_v36, %v4396_v38  ;;  %v1800_v24 = vmul.f32 0.5, %v1736_v9 }
 0x2f5   : > { %v1561_v35 = vadd.f32 %v1497_v22, %v4576_v46  ;;  %v1499_v58 = vmul.f32 0.044715, %v1435_v63  ;;  %v1802_v57 = vmul.f32 0.5, %v1738_v39  ;;  %v4622_v23 = vadd.f32 %v4550_v3, %v4206_v56 }
 0x2f6   : > { %v1624_v45 = vmul.f32 0.7978846, %v1560_v37  ;;  %v1562_v12 = vadd.f32 %v1498_v30, %v4584_v2  ;;  %v1919_v25 = vpack.c.bf16 %v1867_v18, %v1865_v40  ;;  %v1864_v28 = vmul.f32 %v1800_v24, %v4374_v33 }
 0x2f7   : > { %v4626_v34 = vpop.eup %3453  ;;  %v1625_v60 = vmul.f32 0.7978846, %v1561_v35  ;;  %v1563_v38 = vadd.f32 %v1499_v58, %v4592_v13  ;;  %v1866_v17 = vmul.f32 %v1802_v57, %v4385_v21  ;;  %v1372_v1 = vmul.f32 %v4622_v23, %v4622_v23  ;;  %v4632_v44 = vpop.f32.mrb[48].mxu0 }
 0x2f8   : > { %3461 = vtanh.f32 %v1624_v45  ;;  %v1626_v3 = vmul.f32 0.7978846, %v1562_v12  ;;  %2172 = vmatprep.mubr.bf16.mxu1 %v1919_v25  ;;  %v4636_v19 = vadd.f32 %v4554_v0, %v4208_v11  ;;  %v4640_v33 = vadd.f32 %v4557_v10, %v4206_v56  ;;  %v4642_v32 = vpop.f32.mrb[49].mxu0 }
 0x2f9   : > { %v4644_v55 = vpop.eup %3455  ;;  %3463 = vtanh.f32 %v1625_v60  ;;  %v1627_v21 = vmul.f32 0.7978846, %v1563_v38  ;;  %v1918_v59 = vpack.c.bf16 %v1866_v17, %v1864_v28  ;;  %v1436_v36 = vmul.f32 %v1372_v1, %v4622_v23  ;;  %v4647_v9 = vpop.f32.mrb[50].mxu0 }
 0x2fa   : > { %v4649_v22 = vpop.eup %3457  ;;  %3465 = vtanh.f32 %v1626_v3  ;;  %v1373_v0 = vmul.f32 %v4636_v19, %v4636_v19  ;;  %v1374_v10 = vmul.f32 %v4640_v33, %v4640_v33  ;;  %v4657_v63 = vadd.f32 %v4561_v54, %v4208_v11  ;;  %v4659_v40 = vpop.f32.mrb[51].mxu0 }
 0x2fb   : > { %v4661_v39 = vpop.eup %3459  ;;  %3467 = vtanh.f32 %v1627_v21  ;;  %2173 = vmatmul.mubr.bf16.gmra.mrb[20].mxu1 %v1918_v59  ;;  %v1500_v37 = vmul.f32 0.044715, %v1436_v36  ;;  %v1741_v30 = vadd.f32 1.0, %v4529_v31  ;;  %v1743_v18 = vadd.f32 1.0, %v4541_v26 }
 0x2fc   : > { %v1437_v24 = vmul.f32 %v1373_v0, %v4636_v19  ;;  %v1438_v35 = vmul.f32 %v1374_v10, %v4640_v33  ;;  %v1375_v58 = vmul.f32 %v4657_v63, %v4657_v63  ;;  %v1740_v54 = vadd.f32 1.0, %v4515_v8 }
 0x2fd   : > { %v1564_v57 = vadd.f32 %v1500_v37, %v4622_v23  ;;  %v1805_v45 = vmul.f32 0.5, %v1741_v30  ;;  %v1807_v12 = vmul.f32 0.5, %v1743_v18  ;;  %v1742_v25 = vadd.f32 1.0, %v4534_v50 }
 0x2fe   : > { %v1501_v28 = vmul.f32 0.044715, %v1437_v24  ;;  %v1502_v60 = vmul.f32 0.044715, %v1438_v35  ;;  %v1439_v31 = vmul.f32 %v1375_v58, %v4657_v63  ;;  %v1804_v26 = vmul.f32 0.5, %v1740_v54 }
 0x2ff   : > { %v1628_v38 = vmul.f32 0.7978846, %v1564_v57  ;;  %v1869_v17 = vmul.f32 %v1805_v45, %v4428_v6  ;;  %v1871_v1 = vmul.f32 %v1807_v12, %v4436_v16  ;;  %v1806_v3 = vmul.f32 0.5, %v1742_v25  ;;  %v4675_v21 = vpop.f32.mrb[52].mxu0 }
 0x300   : > { %v1565_v8 = vadd.f32 %v1501_v28, %v4636_v19  ;;  %v1566_v59 = vadd.f32 %v1502_v60, %v4640_v33  ;;  %v1503_v36 = vmul.f32 0.044715, %v1439_v31  ;;  %v1868_v50 = vmul.f32 %v1804_v26, %v4419_v5  ;;  %v4680_v0 = vpop.f32.mrb[53].mxu0 }
 0x301   : > { %3469 = vtanh.f32 %v1628_v38  ;;  %v1921_v10 = vpack.c.bf16 %v1871_v1, %v1869_v17  ;;  %v1870_v37 = vmul.f32 %v1806_v3, %v4433_v62  ;;  %v4685_v6 = vadd.f32 %v4595_v7, %v4206_v56  ;;  %v4687_v16 = vpop.f32.mrb[54].mxu0 }
 0x302   : > { %v4689_v30 = vpop.eup %3461  ;;  %v1629_v18 = vmul.f32 0.7978846, %v1565_v8  ;;  %v1630_v24 = vmul.f32 0.7978846, %v1566_v59  ;;  %v1567_v35 = vadd.f32 %v1503_v36, %v4657_v63  ;;  %v4694_v5 = vadd.f32 %v4603_v41, %v4208_v11  ;;  %v4696_v58 = vpop.f32.mrb[55].mxu0 }
 0x303   : > { %v4698_v54 = vpop.eup %3463  ;;  %2180 = vmatprep.mubr.bf16.mxu1 %v1921_v10  ;;  %v1920_v62 = vpack.c.bf16 %v1870_v37, %v1868_v50  ;;  %v1376_v7 = vmul.f32 %v4685_v6, %v4685_v6  ;;  %v4704_v57 = vadd.f32 %v4608_v15, %v4206_v56  ;;  %v4708_v45 = vadd.f32 %v4612_v43, %v4208_v11 }
 0x304   : > { %v4710_v12 = vpop.eup %3465  ;;  %3471 = vtanh.f32 %v1629_v18  ;;  %v1631_v41 = vmul.f32 0.7978846, %v1567_v35  ;;  %v1377_v25 = vmul.f32 %v4694_v5, %v4694_v5  ;;  %v1745_v28 = vadd.f32 1.0, %v4578_v14 }
 0x305   : > { %v4715_v60 = vpop.eup %3467  ;;  %3473 = vtanh.f32 %v1630_v24  ;;  %2181 = vmatmul.mubr.bf16.gmra.mrb[24].mxu1 %v1920_v62  ;;  %v1440_v15 = vmul.f32 %v1376_v7, %v4685_v6  ;;  %v1378_v31 = vmul.f32 %v4704_v57, %v4704_v57  ;;  %v1379_v43 = vmul.f32 %v4708_v45, %v4708_v45 }
 0x306   : > { %3475 = vtanh.f32 %v1631_v41  ;;  %v1441_v26 = vmul.f32 %v1377_v25, %v4694_v5  ;;  %v1747_v38 = vadd.f32 1.0, %v4597_v4  ;;  %v1809_v17 = vmul.f32 0.5, %v1745_v28 }
 0x307   : > { %v1504_v1 = vmul.f32 0.044715, %v1440_v15  ;;  %v1442_v14 = vmul.f32 %v1378_v31, %v4704_v57  ;;  %v1443_v3 = vmul.f32 %v1379_v43, %v4708_v45  ;;  %v1744_v8 = vadd.f32 1.0, %v4566_v42  ;;  %v4727_v59 = vpop.f32.mrb[56].mxu0 }
 0x308   : > { %v1505_v36 = vmul.f32 0.044715, %v1441_v26  ;;  %v1811_v50 = vmul.f32 0.5, %v1747_v38  ;;  %v1873_v10 = vmul.f32 %v1809_v17, %v4474_v61  ;;  %v1746_v37 = vadd.f32 1.0, %v4586_v27  ;;  %v4731_v18 = vpop.f32.mrb[57].mxu0 }
 0x309   : > { %v1568_v4 = vadd.f32 %v1504_v1, %v4685_v6  ;;  %v1506_v24 = vmul.f32 0.044715, %v1442_v14  ;;  %v1507_v35 = vmul.f32 0.044715, %v1443_v3  ;;  %v1808_v62 = vmul.f32 0.5, %v1744_v8  ;;  %v4734_v7 = vpop.f32.mrb[58].mxu0 }
 0x30a   : > { %v1569_v41 = vadd.f32 %v1505_v36, %v4694_v5  ;;  %v1875_v42 = vmul.f32 %v1811_v50, %v4485_v49  ;;  %v1810_v25 = vmul.f32 0.5, %v1746_v37  ;;  %v4740_v28 = vadd.f32 %v4632_v44, %v4206_v56  ;;  %v4742_v61 = vpop.f32.mrb[59].mxu0 }
 0x30b   : > { %v4744_v27 = vpop.eup %3469  ;;  %v1632_v15 = vmul.f32 0.7978846, %v1568_v4  ;;  %v1570_v31 = vadd.f32 %v1506_v24, %v4704_v57  ;;  %v1571_v43 = vadd.f32 %v1507_v35, %v4708_v45  ;;  %v1872_v26 = vmul.f32 %v1808_v62, %v4462_v47 }
 0x30c   : > { %v1633_v38 = vmul.f32 0.7978846, %v1569_v41  ;;  %v1923_v17 = vpack.c.bf16 %v1875_v42, %v1873_v10  ;;  %v1874_v49 = vmul.f32 %v1810_v25, %v4479_v51  ;;  %v1380_v1 = vmul.f32 %v4740_v28, %v4740_v28 }
 0x30d   : > { %3477 = vtanh.f32 %v1632_v15  ;;  %v1634_v44 = vmul.f32 0.7978846, %v1570_v31  ;;  %v1635_v14 = vmul.f32 0.7978846, %v1571_v43  ;;  %v4754_v3 = vadd.f32 %v4642_v32, %v4208_v11 }
 0x30e   : > { %v4756_v8 = vpop.eup %3471  ;;  %3479 = vtanh.f32 %v1633_v38  ;;  %2188 = vmatprep.mubr.bf16.mxu1 %v1923_v17  ;;  %v1922_v36 = vpack.c.bf16 %v1874_v49, %v1872_v26  ;;  %v1444_v47 = vmul.f32 %v1380_v1, %v4740_v28  ;;  %v4761_v51 = vadd.f32 %v4647_v9, %v4206_v56 }
 0x30f   : > { %v4763_v50 = vpop.eup %3473  ;;  %3481 = vtanh.f32 %v1634_v44  ;;  %v1381_v10 = vmul.f32 %v4754_v3, %v4754_v3  ;;  %v4769_v32 = vadd.f32 %v4659_v40, %v4208_v11  ;;  %v1749_v37 = vadd.f32 1.0, %v4644_v55  ;;  %v4772_v4 = vpop.f32.mrb[60].mxu0 }
 0x310   : > { %v4774_v24 = vpop.eup %3475  ;;  %3483 = vtanh.f32 %v1635_v14  ;;  %2189 = vmatmul.mubr.bf16.gmra.mrb[28].mxu1 %v1922_v36  ;;  %v1508_v9 = vmul.f32 0.044715, %v1444_v47  ;;  %v1382_v35 = vmul.f32 %v4761_v51, %v4761_v51  ;;  %v1751_v62 = vadd.f32 1.0, %v4661_v39  ;;  %v4779_v41 = vpop.f32.mrb[61].mxu0 }
 0x311   : > { %v1445_v42 = vmul.f32 %v1381_v10, %v4754_v3  ;;  %v1383_v40 = vmul.f32 %v4769_v32, %v4769_v32  ;;  %v1813_v55 = vmul.f32 0.5, %v1749_v37  ;;  %v1748_v25 = vadd.f32 1.0, %v4626_v34  ;;  %v4785_v15 = vpop.f32.mrb[62].mxu0 }
 0x312   : > { %v1572_v31 = vadd.f32 %v1508_v9, %v4740_v28  ;;  %v1446_v43 = vmul.f32 %v1382_v35, %v4761_v51  ;;  %v1815_v26 = vmul.f32 0.5, %v1751_v62  ;;  %v1750_v38 = vadd.f32 1.0, %v4649_v22  ;;  %v4790_v39 = vpop.f32.mrb[63].mxu0 }
 0x313   : > { %v1509_v17 = vmul.f32 0.044715, %v1445_v42  ;;  %v1447_v49 = vmul.f32 %v1383_v40, %v4769_v32  ;;  %v1877_v1 = vmul.f32 %v1813_v55, %v4524_v48  ;;  %v1812_v44 = vmul.f32 0.5, %v1748_v25 }
 0x314   : > { %v1636_v14 = vmul.f32 0.7978846, %v1572_v31  ;;  %v1510_v36 = vmul.f32 0.044715, %v1446_v43  ;;  %v1879_v34 = vmul.f32 %v1815_v26, %v4532_v29  ;;  %v1814_v47 = vmul.f32 0.5, %v1750_v38 }
 0x315   : > { %v1573_v10 = vadd.f32 %v1509_v17, %v4754_v3  ;;  %v1511_v37 = vmul.f32 0.044715, %v1447_v49  ;;  %v1876_v9 = vmul.f32 %v1812_v44, %v4511_v52  ;;  %v4799_v22 = vadd.f32 %v4675_v21, %v4206_v56 }
 0x316   : > { %3485 = vtanh.f32 %v1636_v14  ;;  %v1574_v35 = vadd.f32 %v1510_v36, %v4761_v51  ;;  %v1925_v62 = vpack.c.bf16 %v1879_v34, %v1877_v1  ;;  %v1878_v48 = vmul.f32 %v1814_v47, %v4527_v53 }
 0x317   : > { %v4803_v42 = vpop.eup %3477  ;;  %v1637_v40 = vmul.f32 0.7978846, %v1573_v10  ;;  %v1575_v29 = vadd.f32 %v1511_v37, %v4769_v32  ;;  %v1384_v55 = vmul.f32 %v4799_v22, %v4799_v22  ;;  %v4810_v52 = vadd.f32 %v4680_v0, %v4208_v11 }
 0x318   : > { %v4812_v21 = vpop.eup %3479  ;;  %v1638_v25 = vmul.f32 0.7978846, %v1574_v35  ;;  %2196 = vmatprep.mubr.bf16.mxu1 %v1925_v62  ;;  %v1924_v31 = vpack.c.bf16 %v1878_v48, %v1876_v9  ;;  %v4816_v53 = vadd.f32 %v4687_v16, %v4206_v56  ;;  %v4820_v43 = vadd.f32 %v4696_v58, %v4208_v11 }
 0x319   : > { %v4822_v26 = vpop.eup %3481  ;;  %3487 = vtanh.f32 %v1637_v40  ;;  %v1639_v38 = vmul.f32 0.7978846, %v1575_v29  ;;  %v1448_v0 = vmul.f32 %v1384_v55, %v4799_v22  ;;  %v1385_v17 = vmul.f32 %v4810_v52, %v4810_v52 }
 0x31a   : > { %v4827_v49 = vpop.eup %3483  ;;  %3489 = vtanh.f32 %v1638_v25  ;;  %2197 = vmatmul.mubr.bf16.gmra.mrb[32].mxu1 %v1924_v31  ;;  %v1386_v16 = vmul.f32 %v4816_v53, %v4816_v53  ;;  %v1387_v58 = vmul.f32 %v4820_v43, %v4820_v43  ;;  %v1753_v1 = vadd.f32 1.0, %v4698_v54 }
 0x31b   : > { %3491 = vtanh.f32 %v1639_v38  ;;  %v1512_v44 = vmul.f32 0.044715, %v1448_v0  ;;  %v1449_v14 = vmul.f32 %v1385_v17, %v4810_v52  ;;  %v1755_v36 = vadd.f32 1.0, %v4715_v60 }
 0x31c   : > { %v1450_v34 = vmul.f32 %v1386_v16, %v4816_v53  ;;  %v1451_v47 = vmul.f32 %v1387_v58, %v4820_v43  ;;  %v1817_v10 = vmul.f32 0.5, %v1753_v1  ;;  %v1752_v37 = vadd.f32 1.0, %v4689_v30 }
 0x31d   : > { %v1576_v9 = vadd.f32 %v1512_v44, %v4799_v22  ;;  %v1513_v35 = vmul.f32 0.044715, %v1449_v14  ;;  %v1819_v62 = vmul.f32 0.5, %v1755_v36  ;;  %v1754_v48 = vadd.f32 1.0, %v4710_v12 }
 0x31e   : > { %v1514_v54 = vmul.f32 0.044715, %v1450_v34  ;;  %v1515_v40 = vmul.f32 0.044715, %v1451_v47  ;;  %v1881_v29 = vmul.f32 %v1817_v10, %v4576_v46  ;;  %v1816_v55 = vmul.f32 0.5, %v1752_v37 }
 0x31f   : > { %v1640_v25 = vmul.f32 0.7978846, %v1576_v9  ;;  %v1577_v60 = vadd.f32 %v1513_v35, %v4810_v52  ;;  %v1883_v31 = vmul.f32 %v1819_v62, %v4592_v13  ;;  %v1818_v38 = vmul.f32 0.5, %v1754_v48 }
 0x320   : > { %v4844_v0 = vpop.eup %3485  ;;  %v1578_v30 = vadd.f32 %v1514_v54, %v4816_v53  ;;  %v1579_v17 = vadd.f32 %v1515_v40, %v4820_v43  ;;  %v1880_v16 = vmul.f32 %v1816_v55, %v4572_v20  ;;  %v4851_v12 = vadd.f32 %v4727_v59, %v4206_v56 }
 0x321   : > { %3493 = vtanh.f32 %v1640_v25  ;;  %v1641_v46 = vmul.f32 0.7978846, %v1577_v60  ;;  %v1927_v58 = vpack.c.bf16 %v1883_v31, %v1881_v29  ;;  %v1882_v1 = vmul.f32 %v1818_v38, %v4584_v2 }
 0x322   : > { %v1642_v44 = vmul.f32 0.7978846, %v1578_v30  ;;  %v1643_v13 = vmul.f32 0.7978846, %v1579_v17  ;;  %v1388_v14 = vmul.f32 %v4851_v12, %v4851_v12  ;;  %v4858_v36 = vadd.f32 %v4731_v18, %v4208_v11 }
 0x323   : > { %v4860_v34 = vpop.eup %3487  ;;  %3495 = vtanh.f32 %v1641_v46  ;;  %2204 = vmatprep.mubr.bf16.mxu1 %v1927_v58  ;;  %v1926_v20 = vpack.c.bf16 %v1882_v1, %v1880_v16  ;;  %v4864_v59 = vadd.f32 %v4734_v7, %v4206_v56  ;;  %v4868_v2 = vadd.f32 %v4742_v61, %v4208_v11 }
 0x324   : > { %v4870_v47 = vpop.eup %3489  ;;  %3497 = vtanh.f32 %v1642_v44  ;;  %v1452_v10 = vmul.f32 %v1388_v14, %v4851_v12  ;;  %v1389_v18 = vmul.f32 %v4858_v36, %v4858_v36  ;;  %v1757_v37 = vadd.f32 1.0, %v4756_v8 }
 0x325   : > { %v4876_v9 = vpop.eup %3491  ;;  %3499 = vtanh.f32 %v1643_v13  ;;  %2205 = vmatmul.mubr.bf16.gmra.mrb[36].mxu1 %v1926_v20  ;;  %v1390_v7 = vmul.f32 %v4864_v59, %v4864_v59  ;;  %v1391_v61 = vmul.f32 %v4868_v2, %v4868_v2  ;;  %v1759_v35 = vadd.f32 1.0, %v4774_v24 }
 0x326   : > { %v1516_v62 = vmul.f32 0.044715, %v1452_v10  ;;  %v1453_v48 = vmul.f32 %v1389_v18, %v4858_v36  ;;  %v1821_v54 = vmul.f32 0.5, %v1757_v37  ;;  %v1756_v40 = vadd.f32 1.0, %v4744_v27 }
 0x327   : > { %v1454_v8 = vmul.f32 %v1390_v7, %v4864_v59  ;;  %v1455_v29 = vmul.f32 %v1391_v61, %v4868_v2  ;;  %v1823_v55 = vmul.f32 0.5, %v1759_v35  ;;  %v1758_v25 = vadd.f32 1.0, %v4763_v50 }
 0x328   : > { %v1580_v60 = vadd.f32 %v1516_v62, %v4851_v12  ;;  %v1517_v31 = vmul.f32 0.044715, %v1453_v48  ;;  %v1885_v38 = vmul.f32 %v1821_v54, %v4636_v19  ;;  %v1820_v30 = vmul.f32 0.5, %v1756_v40 }
 0x329   : > { %v1518_v24 = vmul.f32 0.044715, %v1454_v8  ;;  %v1519_v17 = vmul.f32 0.044715, %v1455_v29  ;;  %v1887_v16 = vmul.f32 %v1823_v55, %v4657_v63  ;;  %v1822_v46 = vmul.f32 0.5, %v1758_v25 }
 0x32a   : > { %v1644_v58 = vmul.f32 0.7978846, %v1580_v60  ;;  %v1581_v27 = vadd.f32 %v1517_v31, %v4858_v36  ;;  %v1884_v1 = vmul.f32 %v1820_v30, %v4622_v23  ;;  %v4895_v44 = vadd.f32 %v4772_v4, %v4206_v56 }
 0x32b   : > { %v4897_v50 = vpop.eup %3493  ;;  %v1582_v13 = vadd.f32 %v1518_v24, %v4864_v59  ;;  %v1583_v19 = vadd.f32 %v1519_v17, %v4868_v2  ;;  %v1929_v14 = vpack.c.bf16 %v1887_v16, %v1885_v38  ;;  %v1886_v20 = vmul.f32 %v1822_v46, %v4640_v33 }
 0x32c   : > { %3501 = vtanh.f32 %v1644_v58  ;;  %v1645_v63 = vmul.f32 0.7978846, %v1581_v27  ;;  %v1392_v10 = vmul.f32 %v4895_v44, %v4895_v44  ;;  %v4906_v23 = vadd.f32 %v4779_v41, %v4208_v11 }
 0x32d   : > { %v4908_v4 = vpop.eup %3495  ;;  %v1646_v18 = vmul.f32 0.7978846, %v1582_v13  ;;  %v1647_v37 = vmul.f32 0.7978846, %v1583_v19  ;;  %2212 = vmatprep.mubr.bf16.mxu1 %v1929_v14  ;;  %v1928_v7 = vpack.c.bf16 %v1886_v20, %v1884_v1  ;;  %v4912_v61 = vadd.f32 %v4785_v15, %v4206_v56 }
 0x32e   : > { %v4914_v33 = vpop.eup %3497  ;;  %3503 = vtanh.f32 %v1645_v63  ;;  %v1456_v35 = vmul.f32 %v1392_v10, %v4895_v44  ;;  %v1393_v62 = vmul.f32 %v4906_v23, %v4906_v23  ;;  %v4921_v41 = vadd.f32 %v4790_v39, %v4208_v11 }
 0x32f   : > { %v3500_v48 = vpop.eup %3499  ;;  %3505 = vtanh.f32 %v1646_v18  ;;  %2213 = vmatmul.mubr.bf16.gmra.mrb[40].mxu1 %v1928_v7  ;;  %v1394_v54 = vmul.f32 %v4912_v61, %v4912_v61  ;;  %v1761_v56 = vadd.f32 1.0, %v4812_v21  ;;  %v1763_v15 = vadd.f32 1.0, %v4827_v49 }
 0x330   : > { %3507 = vtanh.f32 %v1647_v37  ;;  %v1520_v40 = vmul.f32 0.044715, %v1456_v35  ;;  %v1457_v8 = vmul.f32 %v1393_v62, %v4906_v23  ;;  %v1395_v29 = vmul.f32 %v4921_v41, %v4921_v41 }
 0x331   : > { %v1458_v11 = vmul.f32 %v1394_v54, %v4912_v61  ;;  %v1825_v39 = vmul.f32 0.5, %v1761_v56  ;;  %v1827_v55 = vmul.f32 0.5, %v1763_v15  ;;  %v1760_v25 = vadd.f32 1.0, %v4803_v42 }
 0x332   : > { %v1584_v60 = vadd.f32 %v1520_v40, %v4895_v44  ;;  %v1521_v31 = vmul.f32 0.044715, %v1457_v8  ;;  %v1459_v21 = vmul.f32 %v1395_v29, %v4921_v41  ;;  %v1762_v49 = vadd.f32 1.0, %v4822_v26 }
 0x333   : > { %v1522_v38 = vmul.f32 0.044715, %v1458_v11  ;;  %v1889_v30 = vmul.f32 %v1825_v39, %v4694_v5  ;;  %v1891_v24 = vmul.f32 %v1827_v55, %v4708_v45  ;;  %v1824_v17 = vmul.f32 0.5, %v1760_v25 }
 0x334   : > { %v1648_v16 = vmul.f32 0.7978846, %v1584_v60  ;;  %v1585_v46 = vadd.f32 %v1521_v31, %v4906_v23  ;;  %v1523_v58 = vmul.f32 0.044715, %v1459_v21  ;;  %v1826_v27 = vmul.f32 0.5, %v1762_v49 }
 0x335   : > { %v1586_v42 = vadd.f32 %v1522_v38, %v4912_v61  ;;  %v1931_v1 = vpack.c.bf16 %v1891_v24, %v1889_v30  ;;  %v1888_v13 = vmul.f32 %v1824_v17, %v4685_v6  ;;  %v1765_v19 = vadd.f32 1.0, %v4860_v34 }
 0x336   : > { %v3502_v14 = vpop.eup %3501  ;;  %3509 = vtanh.f32 %v1648_v16  ;;  %v1649_v26 = vmul.f32 0.7978846, %v1585_v46  ;;  %v1587_v5 = vadd.f32 %v1523_v58, %v4921_v41  ;;  %v1890_v45 = vmul.f32 %v1826_v27, %v4704_v57 }
 0x337   : > { %v1650_v20 = vmul.f32 0.7978846, %v1586_v42  ;;  %2220 = vmatprep.mubr.bf16.mxu1 %v1931_v1  ;;  %v1767_v63 = vadd.f32 1.0, %v4876_v9  ;;  %v1829_v10 = vmul.f32 0.5, %v1765_v19  ;;  %v1764_v18 = vadd.f32 1.0, %v4844_v0 }
 0x338   : > { %v3504_v37 = vpop.eup %3503  ;;  %3511 = vtanh.f32 %v1649_v26  ;;  %v1651_v7 = vmul.f32 0.7978846, %v1587_v5  ;;  %v1930_v6 = vpack.c.bf16 %v1890_v45, %v1888_v13  ;;  %v1766_v34 = vadd.f32 1.0, %v4870_v47 }
 0x339   : > { %v3506_v35 = vpop.eup %3505  ;;  %3513 = vtanh.f32 %v1650_v20  ;;  %v1831_v62 = vmul.f32 0.5, %v1767_v63  ;;  %v1893_v54 = vmul.f32 %v1829_v10, %v4754_v3  ;;  %v1828_v56 = vmul.f32 0.5, %v1764_v18 }
 0x33a   : > { %v3508_v57 = vpop.eup %3507  ;;  %3515 = vtanh.f32 %v1651_v7  ;;  %2221 = vmatmul.mubr.bf16.gmra.mrb[44].mxu1 %v1930_v6  ;;  %v1830_v15 = vmul.f32 0.5, %v1766_v34  ;;  %v1769_v9 = vadd.f32 1.0, %v4908_v4  ;;  %v1771_v40 = vadd.f32 1.0, %v3500_v48  ;;  %v1940_v6 = vld [vmem:[#allocation3] sm:$0xff] }
 0x33b   : > { %v1895_v0 = vmul.f32 %v1831_v62, %v4769_v32  ;;  %v1892_v8 = vmul.f32 %v1828_v56, %v4740_v28  ;;  %v1768_v29 = vadd.f32 1.0, %v4897_v50  ;;  %v1770_v47 = vadd.f32 1.0, %v4914_v33 }
 0x33c   : > { %v1894_v11 = vmul.f32 %v1830_v15, %v4761_v51  ;;  %v1833_v39 = vmul.f32 0.5, %v1769_v9  ;;  %v1835_v3 = vmul.f32 0.5, %v1771_v40  ;;  %v1773_v55 = vadd.f32 1.0, %v3504_v37 }
 0x33d   : > { %v1933_v25 = vpack.c.bf16 %v1895_v0, %v1893_v54  ;;  %v1832_v60 = vmul.f32 0.5, %v1768_v29  ;;  %v1834_v31 = vmul.f32 0.5, %v1770_v47  ;;  %v1775_v21 = vadd.f32 1.0, %v3508_v57  ;;  %v1941_v54 = vld [vmem:[#allocation3 + $0x8] sm:$0xff]  ;;  %v1942_v57 = vld [vmem:[#allocation3 + $0x10] sm:$0xff]  ;;  %v1943_v0 = vld [vmem:[#allocation3 + $0x18] sm:$0xff] }
 0x33e   : > { %v1932_v49 = vpack.c.bf16 %v1894_v11, %v1892_v8  ;;  %v1897_v4 = vmul.f32 %v1833_v39, %v4810_v52  ;;  %v1899_v32 = vmul.f32 %v1835_v3, %v4820_v43  ;;  %v1837_v48 = vmul.f32 0.5, %v1773_v55  ;;  %v1944_v3 = vld [vmem:[#allocation3 + $0x20] sm:$0xff] }
 0x33f   : > { %2228 = vmatprep.mubr.bf16.mxu1 %v1933_v25  ;;  %v1896_v28 = vmul.f32 %v1832_v60, %v4799_v22  ;;  %v1898_v50 = vmul.f32 %v1834_v31, %v4816_v53  ;;  %v1839_v33 = vmul.f32 0.5, %v1775_v21  ;;  %v1772_v51 = vadd.f32 1.0, %v3502_v14  ;;  %v1945_v31 = vld [vmem:[#allocation3 + $0x28] sm:$0xff] }
 0x340   : > { %v3510_v38 = vpop.eup %3509  ;;  %v1935_v30 = vpack.c.bf16 %v1899_v32, %v1897_v4  ;;  %v1901_v24 = vmul.f32 %v1837_v48, %v4858_v36  ;;  %v1774_v17 = vadd.f32 1.0, %v3506_v35 }
 0x341   : > { %v1934_v16 = vpack.c.bf16 %v1898_v50, %v1896_v28  ;;  %v1903_v46 = vmul.f32 %v1839_v33, %v4868_v2  ;;  %v1836_v58 = vmul.f32 0.5, %v1772_v51  ;;  %v1776_v52 = vadd.f32 1.0, %v3510_v38  ;;  %v1946_v28 = vld [vmem:[#allocation3 + $0x30] sm:$0xff]  ;;  %v1947_v38 = vld [vmem:[#allocation3 + $0x38] sm:$0xff] }
 0x342   : > { %v3512_v27 = vpop.eup %3511  ;;  %2229 = vmatmul.mubr.bf16.gmra.mrb[48].mxu1 %v1932_v49  ;;  %v1838_v43 = vmul.f32 0.5, %v1774_v17 }
 0x343   : > { %v3514_v42 = vpop.eup %3513  ;;  %2236 = vmatprep.mubr.bf16.mxu1 %v1935_v30  ;;  %v1937_v22 = vpack.c.bf16 %v1903_v46, %v1901_v24  ;;  %v1777_v1 = vadd.f32 1.0, %v3512_v27  ;;  %v1900_v13 = vmul.f32 %v1836_v58, %v4851_v12  ;;  %v1840_v36 = vmul.f32 0.5, %v1776_v52  ;;  %v1948_v58 = vld [vmem:[#allocation3 + $0x40] sm:$0xff] }
 0x344   : > { %v3516_v53 = vpop.eup %3515  ;;  %v1902_v19 = vmul.f32 %v1838_v43, %v4864_v59  ;;  %v1778_v14 = vadd.f32 1.0, %v3514_v42  ;;  %v1949_v42 = vld [vmem:[#allocation3 + $0x48] sm:$0xff] }
 0x345   : > { %v1779_v26 = vadd.f32 1.0, %v3516_v53  ;;  %v1841_v5 = vmul.f32 0.5, %v1777_v1  ;;  %v1904_v63 = vmul.f32 %v1840_v36, %v4895_v44 }
 0x346   : > { %v1936_v45 = vpack.c.bf16 %v1902_v19, %v1900_v13  ;;  %v1842_v2 = vmul.f32 0.5, %v1778_v14  ;;  %v1950_v14 = vld [vmem:[#allocation3 + $0x50] sm:$0xff] }
 0x347   : > { %v1843_v20 = vmul.f32 0.5, %v1779_v26  ;;  %v1905_v18 = vmul.f32 %v1841_v5, %v4906_v23 }
 0x348   : > { %v1906_v10 = vmul.f32 %v1842_v2, %v4912_v61 }
 0x349   : > { %v1907_v37 = vmul.f32 %v1843_v20, %v4921_v41 }
 0x34a   : > { %2237 = vmatmul.mubr.bf16.gmra.mrb[52].mxu1 %v1934_v16  ;;  %v1938_v7 = vpack.c.bf16 %v1906_v10, %v1904_v63 }
 0x34b   : > { %2244 = vmatprep.mubr.bf16.mxu1 %v1937_v22  ;;  %v1939_v12 = vpack.c.bf16 %v1907_v37, %v1905_v18  ;;  %v1952_v37 = vld [vmem:[#allocation3 + $0x60] sm:$0xff] }
 0x352   : > { %2245 = vmatmul.mubr.bf16.gmra.mrb[56].mxu1 %v1936_v45  ;;  %v1951_v45 = vld [vmem:[#allocation3 + $0x58] sm:$0xff] }
 0x353   : > { %2252 = vmatprep.mubr.bf16.mxu1 %v1939_v12 }
 0x35a   : > { %2253 = vmatmul.mubr.bf16.gmra.mrb[60].mxu1 %v1938_v7 }
 0x399   : > { %v3147_v59 = vpop.f32.mrb[0].mxu1 }
 0x39a   : > { %v3148_v34 = vpop.f32.mrb[1].mxu1 }
 0x39b   : > { %v3149_v35 = vadd.f32 %v3148_v34, %v3147_v59  ;;  %v3150_v62 = vpop.f32.mrb[2].mxu1 }
 0x39c   : > { %v3151_v44 = vpop.f32.mrb[3].mxu1 }
 0x39d   : > { %v2261_v56 = vadd.f32 %v3149_v35, %v1940_v6  ;;  %v3152_v61 = vadd.f32 %v3151_v44, %v3150_v62  ;;  %v1953_v6 = vld [vmem:[#allocation3 + $0x68] sm:$0xff] }
 0x39f   : > { %2293 = vst [vmem:[#allocation3] sm:$0xff] %v2261_v56  ;;  %v2262_v23 = vadd.f32 %v3152_v61, %v1941_v54  ;;  %v1954_v56 = vld [vmem:[#allocation3 + $0x70] sm:$0xff] }
 0x3a1   : > { %2294 = vst [vmem:[#allocation3 + $0x8] sm:$0xff] %v2262_v23 }
 0x3a4   : > { %v3153_v41 = vpop.f32.mrb[4].mxu1 }
 0x3a5   : > { %v3154_v15 = vpop.f32.mrb[5].mxu1 }
 0x3a6   : > { %v3155_v9 = vadd.f32 %v3154_v15, %v3153_v41  ;;  %v3156_v40 = vpop.f32.mrb[6].mxu1 }
 0x3a7   : > { %v3157_v8 = vpop.f32.mrb[7].mxu1 }
 0x3a8   : > { %v2263_v29 = vadd.f32 %v3155_v9, %v1942_v57  ;;  %v3158_v47 = vadd.f32 %v3157_v8, %v3156_v40  ;;  %v1955_v57 = vld [vmem:[#allocation3 + $0x78] sm:$0xff] }
 0x3aa   : > { %2295 = vst [vmem:[#allocation3 + $0x10] sm:$0xff] %v2263_v29  ;;  %v2264_v11 = vadd.f32 %v3158_v47, %v1943_v0  ;;  %v1956_v29 = vld [vmem:[#allocation3 + $0x80] sm:$0xff] }
 0x3ac   : > { %2296 = vst [vmem:[#allocation3 + $0x18] sm:$0xff] %v2264_v11 }
 0x3ae   : > { %v3159_v39 = vpop.f32.mrb[8].mxu1 }
 0x3af   : > { %v3160_v55 = vpop.f32.mrb[9].mxu1 }
 0x3b0   : > { %v3161_v25 = vadd.f32 %v3160_v55, %v3159_v39  ;;  %v3162_v60 = vpop.f32.mrb[10].mxu1 }
 0x3b1   : > { %v3163_v21 = vpop.f32.mrb[11].mxu1 }
 0x3b2   : > { %v2265_v49 = vadd.f32 %v3161_v25, %v1944_v3  ;;  %v3164_v4 = vadd.f32 %v3163_v21, %v3162_v60  ;;  %v1957_v3 = vld [vmem:[#allocation3 + $0x88] sm:$0xff] }
 0x3b4   : > { %2297 = vst [vmem:[#allocation3 + $0x20] sm:$0xff] %v2265_v49  ;;  %v2266_v32 = vadd.f32 %v3164_v4, %v1945_v31  ;;  %v1958_v49 = vld [vmem:[#allocation3 + $0x90] sm:$0xff] }
 0x3b6   : > { %2298 = vst [vmem:[#allocation3 + $0x28] sm:$0xff] %v2266_v32 }
 0x3b9   : > { %v3165_v48 = vpop.f32.mrb[12].mxu1 }
 0x3ba   : > { %v3166_v50 = vpop.f32.mrb[13].mxu1 }
 0x3bb   : > { %v3167_v33 = vadd.f32 %v3166_v50, %v3165_v48  ;;  %v3168_v51 = vpop.f32.mrb[14].mxu1 }
 0x3bc   : > { %v3169_v30 = vpop.f32.mrb[15].mxu1 }
 0x3bd   : > { %v2267_v24 = vadd.f32 %v3167_v33, %v1946_v28  ;;  %v3170_v17 = vadd.f32 %v3169_v30, %v3168_v51  ;;  %v1959_v28 = vld [vmem:[#allocation3 + $0x98] sm:$0xff] }
 0x3bf   : > { %2299 = vst [vmem:[#allocation3 + $0x30] sm:$0xff] %v2267_v24  ;;  %v2268_v16 = vadd.f32 %v3170_v17, %v1947_v38  ;;  %v1960_v24 = vld [vmem:[#allocation3 + $0xa0] sm:$0xff] }
 0x3c1   : > { %2300 = vst [vmem:[#allocation3 + $0x38] sm:$0xff] %v2268_v16 }
 0x3c3   : > { %v3171_v46 = vpop.f32.mrb[16].mxu1 }
 0x3c4   : > { %v3172_v52 = vpop.f32.mrb[17].mxu1 }
 0x3c5   : > { %v3173_v27 = vadd.f32 %v3172_v52, %v3171_v46  ;;  %v3174_v43 = vpop.f32.mrb[18].mxu1 }
 0x3c6   : > { %v3175_v22 = vpop.f32.mrb[19].mxu1 }
 0x3c7   : > { %v2269_v1 = vadd.f32 %v3173_v27, %v1948_v58  ;;  %v3176_v53 = vadd.f32 %v3175_v22, %v3174_v43  ;;  %v1961_v58 = vld [vmem:[#allocation3 + $0xa8] sm:$0xff] }
 0x3c9   : > { %2301 = vst [vmem:[#allocation3 + $0x40] sm:$0xff] %v2269_v1  ;;  %v2270_v13 = vadd.f32 %v3176_v53, %v1949_v42  ;;  %v1962_v1 = vld [vmem:[#allocation3 + $0xb0] sm:$0xff] }
 0x3cb   : > { %2302 = vst [vmem:[#allocation3 + $0x48] sm:$0xff] %v2270_v13 }
 0x3ce   : > { %v3177_v19 = vpop.f32.mrb[20].mxu1 }
 0x3cf   : > { %v3178_v36 = vpop.f32.mrb[21].mxu1 }
 0x3d0   : > { %v3179_v26 = vadd.f32 %v3178_v36, %v3177_v19  ;;  %v3180_v5 = vpop.f32.mrb[22].mxu1 }
 0x3d1   : > { %v3181_v2 = vpop.f32.mrb[23].mxu1 }
 0x3d2   : > { %v2271_v20 = vadd.f32 %v3179_v26, %v1950_v14  ;;  %v3182_v63 = vadd.f32 %v3181_v2, %v3180_v5  ;;  %v1963_v14 = vld [vmem:[#allocation3 + $0xb8] sm:$0xff] }
 0x3d4   : > { %2303 = vst [vmem:[#allocation3 + $0x50] sm:$0xff] %v2271_v20  ;;  %v2272_v10 = vadd.f32 %v3182_v63, %v1951_v45  ;;  %v1964_v20 = vld [vmem:[#allocation3 + $0xc0] sm:$0xff] }
 0x3d6   : > { %2304 = vst [vmem:[#allocation3 + $0x58] sm:$0xff] %v2272_v10 }
 0x3d8   : > { %v3183_v18 = vpop.f32.mrb[24].mxu1 }
 0x3d9   : > { %v3184_v7 = vpop.f32.mrb[25].mxu1 }
 0x3da   : > { %v3185_v12 = vadd.f32 %v3184_v7, %v3183_v18  ;;  %v3186_v59 = vpop.f32.mrb[26].mxu1 }
 0x3db   : > { %v3187_v34 = vpop.f32.mrb[27].mxu1 }
 0x3dc   : > { %v2273_v35 = vadd.f32 %v3185_v12, %v1952_v37  ;;  %v3188_v62 = vadd.f32 %v3187_v34, %v3186_v59  ;;  %v1965_v37 = vld [vmem:[#allocation3 + $0xc8] sm:$0xff] }
 0x3de   : > { %2305 = vst [vmem:[#allocation3 + $0x60] sm:$0xff] %v2273_v35  ;;  %v2274_v54 = vadd.f32 %v3188_v62, %v1953_v6  ;;  %v1966_v35 = vld [vmem:[#allocation3 + $0xd0] sm:$0xff] }
 0x3e0   : > { %2306 = vst [vmem:[#allocation3 + $0x68] sm:$0xff] %v2274_v54 }
 0x3e3   : > { %v3189_v44 = vpop.f32.mrb[28].mxu1 }
 0x3e4   : > { %v3190_v61 = vpop.f32.mrb[29].mxu1 }
 0x3e5   : > { %v3191_v23 = vadd.f32 %v3190_v61, %v3189_v44  ;;  %v3192_v41 = vpop.f32.mrb[30].mxu1 }
 0x3e6   : > { %v3193_v15 = vpop.f32.mrb[31].mxu1 }
 0x3e7   : > { %v2275_v9 = vadd.f32 %v3191_v23, %v1954_v56  ;;  %v3194_v40 = vadd.f32 %v3193_v15, %v3192_v41  ;;  %v1967_v56 = vld [vmem:[#allocation3 + $0xd8] sm:$0xff] }
 0x3e9   : > { %2307 = vst [vmem:[#allocation3 + $0x70] sm:$0xff] %v2275_v9  ;;  %v2276_v0 = vadd.f32 %v3194_v40, %v1955_v57  ;;  %v1968_v9 = vld [vmem:[#allocation3 + $0xe0] sm:$0xff] }
 0x3eb   : > { %2308 = vst [vmem:[#allocation3 + $0x78] sm:$0xff] %v2276_v0 }
 0x3ed   : > { %v3195_v8 = vpop.f32.mrb[32].mxu1 }
 0x3ee   : > { %v3196_v47 = vpop.f32.mrb[33].mxu1 }
 0x3ef   : > { %v3197_v11 = vadd.f32 %v3196_v47, %v3195_v8  ;;  %v3198_v39 = vpop.f32.mrb[34].mxu1 }
 0x3f0   : > { %v3199_v55 = vpop.f32.mrb[35].mxu1 }
 0x3f1   : > { %v2277_v25 = vadd.f32 %v3197_v11, %v1956_v29  ;;  %v3200_v60 = vadd.f32 %v3199_v55, %v3198_v39  ;;  %v1969_v29 = vld [vmem:[#allocation3 + $0xe8] sm:$0xff] }
 0x3f3   : > { %2309 = vst [vmem:[#allocation3 + $0x80] sm:$0xff] %v2277_v25  ;;  %v2278_v31 = vadd.f32 %v3200_v60, %v1957_v3  ;;  %v1970_v25 = vld [vmem:[#allocation3 + $0xf0] sm:$0xff] }
 0x3f5   : > { %2310 = vst [vmem:[#allocation3 + $0x88] sm:$0xff] %v2278_v31 }
 0x3f8   : > { %v3201_v21 = vpop.f32.mrb[36].mxu1 }
 0x3f9   : > { %v3202_v4 = vpop.f32.mrb[37].mxu1 }
 0x3fa   : > { %v3203_v32 = vadd.f32 %v3202_v4, %v3201_v21  ;;  %v3204_v48 = vpop.f32.mrb[38].mxu1 }
 0x3fb   : > { %v3205_v50 = vpop.f32.mrb[39].mxu1 }
 0x3fc   : > { %v2279_v33 = vadd.f32 %v3203_v32, %v1958_v49  ;;  %v3206_v51 = vadd.f32 %v3205_v50, %v3204_v48  ;;  %v1971_v49 = vld [vmem:[#allocation3 + $0xf8] sm:$0xff]  ;;  %v2943_v50 = vld [vmem:[%s5114_s0] sm:$0xff] (!%p2807_p12)  }
 0x3fe   : > { %2311 = vst [vmem:[#allocation3 + $0x90] sm:$0xff] %v2279_v33  ;;  %v2280_v38 = vadd.f32 %v3206_v51, %v1959_v28  ;;  %v2393_v33 = vld [vmem:[#allocation3] sm:$0xff] (!%p2807_p12)  ;;  %v2394_v51 = vld [vmem:[#allocation3 + $0x8] sm:$0xff] (!%p2807_p12) }
 0x400   : > { %2312 = vst [vmem:[#allocation3 + $0x98] sm:$0xff] %v2280_v38  ;;  %v2944_v38 = vunpack.c.l.bf16 (!%p2807_p12), %v2943_v50 }
 0x402   : > { %v3207_v30 = vpop.f32.mrb[40].mxu1 }
 0x403   : > { %v3208_v17 = vpop.f32.mrb[41].mxu1 }
 0x404   : > { %v3209_v16 = vadd.f32 %v3208_v17, %v3207_v30  ;;  %v3210_v46 = vpop.f32.mrb[42].mxu1  ;;  %v2945_v30 = vunpack.c.h.bf16 (!%p2807_p12), %v2943_v50  ;;  %v3101_v17 = vld [vmem:[%s5114_s0 + $0x8] sm:$0xff] (!%p2807_p12)  }
 0x405   : > { %v3211_v52 = vpop.f32.mrb[43].mxu1 }
 0x406   : > { %v2281_v27 = vadd.f32 %v3209_v16, %v1960_v24  ;;  %v3212_v43 = vadd.f32 %v3211_v52, %v3210_v46  ;;  %v4972_v24 = vld [vmem:[%s5120_s6] ss:$0 sm:$0xff] (!%p2807_p12)  ;;  %v2395_v16 = vld [vmem:[#allocation3 + $0x10] sm:$0xff] (!%p2807_p12)  ;;  %v2948_v46 = vunpack.c.l.bf16 (!%p2807_p12), %v3101_v17  ;;  %v2396_v52 = vld [vmem:[#allocation3 + $0x18] sm:$0xff] (!%p2807_p12) }
 0x408   : > { %2313 = vst [vmem:[#allocation3 + $0xa0] sm:$0xff] %v2281_v27  ;;  %v2282_v42 = vadd.f32 %v3212_v43, %v1961_v58  ;;  %v2949_v58 = vunpack.c.h.bf16 (!%p2807_p12), %v3101_v17  ;;  %v3102_v27 = vld [vmem:[%s5114_s0 + $0x10] sm:$0xff] (!%p2807_p12)   ;;  %v2397_v43 = vld [vmem:[#allocation3 + $0x20] sm:$0xff] (!%p2807_p12) }
 0x40a   : > { %2314 = vst [vmem:[#allocation3 + $0xa8] sm:$0xff] %v2282_v42  ;;  %v2425_v42 = vadd.f32 (!%p2807_p12), %v2944_v38, %v2393_v33  ;;  %v2408_v33 = vld [vmem:[#allocation3 + $0x78] sm:$0xff] (!%p2807_p12) }
 0x40d   : > { %v3213_v22 = vpop.f32.mrb[44].mxu1 }
 0x40e   : > { %v3214_v53 = vpop.f32.mrb[45].mxu1 }
 0x40f   : > { %v3215_v13 = vadd.f32 %v3214_v53, %v3213_v22  ;;  %v3216_v19 = vpop.f32.mrb[46].mxu1  ;;  %v2426_v22 = vadd.f32 (!%p2807_p12), %v2945_v30, %v2394_v51  ;;  %v2953_v53 = vunpack.c.h.bf16 (!%p2807_p12), %v3102_v27 }
 0x410   : > { %v3217_v36 = vpop.f32.mrb[47].mxu1 }
 0x411   : > { %v2283_v26 = vadd.f32 %v3215_v13, %v1962_v1  ;;  %v3218_v5 = vadd.f32 %v3217_v36, %v3216_v19  ;;  %v2952_v1 = vunpack.c.l.bf16 (!%p2807_p12), %v3102_v27  ;;  %v2398_v13 = vld [vmem:[#allocation3 + $0x28] sm:$0xff] (!%p2807_p12)  ;;  %v3103_v19 = vld [vmem:[%s5114_s0 + $0x18] sm:$0xff] (!%p2807_p12)   ;;  %v2427_v36 = vadd.f32 (!%p2807_p12), %v2948_v46, %v2395_v16  ;;  %v2409_v16 = vld [vmem:[#allocation3 + $0x80] sm:$0xff] (!%p2807_p12) }
 0x413   : > { %2315 = vst [vmem:[#allocation3 + $0xb0] sm:$0xff] %v2283_v26  ;;  %v2284_v45 = vadd.f32 %v3218_v5, %v1963_v14  ;;  %v2399_v14 = vld [vmem:[#allocation3 + $0x30] sm:$0xff] (!%p2807_p12)  ;;  %v2428_v26 = vadd.f32 (!%p2807_p12), %v2949_v58, %v2396_v52  ;;  %v2956_v5 = vunpack.c.l.bf16 (!%p2807_p12), %v3103_v19 }
 0x415   : > { %2316 = vst [vmem:[#allocation3 + $0xb8] sm:$0xff] %v2284_v45  ;;  %v3219_v2 = vpop.f32.mrb[48].mxu1  ;;  %v2957_v45 = vunpack.c.h.bf16 (!%p2807_p12), %v3103_v19  ;;  %v3110_v19 = vld [vmem:[%s5114_s0 + $0x50] sm:$0xff] (!%p2807_p12)  }
 0x416   : > { %v3220_v63 = vpop.f32.mrb[49].mxu1 }
 0x417   : > { %v3221_v10 = vadd.f32 %v3220_v63, %v3219_v2  ;;  %v3222_v18 = vpop.f32.mrb[50].mxu1  ;;  %v2400_v2 = vld [vmem:[#allocation3 + $0x38] sm:$0xff] (!%p2807_p12)  ;;  %v2464_v63 = vadd.f32 (!%p2807_p12), %v4972_v24, %v2425_v42 }
 0x418   : > { %v3223_v7 = vpop.f32.mrb[51].mxu1 }
 0x419   : > { %v2285_v12 = vadd.f32 %v3221_v10, %v1964_v20  ;;  %v3224_v59 = vadd.f32 %v3223_v7, %v3222_v18  ;;  %v3104_v20 = vld [vmem:[%s5114_s0 + $0x20] sm:$0xff] (!%p2807_p12)   ;;  %v2465_v10 = vadd.f32 (!%p2807_p12), %v4972_v24, %v2426_v22  ;;  %v2429_v18 = vadd.f32 (!%p2807_p12), %v2952_v1, %v2397_v43  ;;  %v3109_v43 = vld [vmem:[%s5114_s0 + $0x48] sm:$0xff] (!%p2807_p12)  }
 0x41a   : > { %v2466_v7 = vadd.f32 (!%p2807_p12), %v4972_v24, %v2427_v36 }
 0x41b   : > { %2317 = vst [vmem:[#allocation3 + $0xc0] sm:$0xff] %v2285_v12  ;;  %v2286_v6 = vadd.f32 %v3224_v59, %v1965_v37  ;;  %v2430_v37 = vadd.f32 (!%p2807_p12), %v2953_v53, %v2398_v13  ;;  %v2467_v12 = vadd.f32 (!%p2807_p12), %v4972_v24, %v2428_v26  ;;  %v2431_v59 = vadd.f32 (!%p2807_p12), %v2956_v5, %v2399_v14  ;;  %v2410_v13 = vld [vmem:[#allocation3 + $0x88] sm:$0xff] (!%p2807_p12) }
 0x41d   : > { %2318 = vst [vmem:[#allocation3 + $0xc8] sm:$0xff] %v2286_v6  ;;  %v3225_v34 = vpop.f32.mrb[52].mxu1  ;;  %v2432_v6 = vadd.f32 (!%p2807_p12), %v2957_v45, %v2400_v2  ;;  %v2411_v45 = vld [vmem:[#allocation3 + $0x90] sm:$0xff] (!%p2807_p12)  ;;  %v2412_v2 = vld [vmem:[#allocation3 + $0x98] sm:$0xff] (!%p2807_p12) }
 0x41e   : > { %v3226_v62 = vpop.f32.mrb[53].mxu1 }
 0x41f   : > { %v3227_v54 = vadd.f32 %v3226_v62, %v3225_v34  ;;  %v3228_v44 = vpop.f32.mrb[54].mxu1  ;;  %v2401_v34 = vld [vmem:[#allocation3 + $0x40] sm:$0xff] (!%p2807_p12)  ;;  %v3009_v62 = vpack.c.bf16 (!%p2807_p12), %v2465_v10, %v2464_v63 }
 0x420   : > { %v3229_v61 = vpop.f32.mrb[55].mxu1 }
 0x421   : > { %v2287_v23 = vadd.f32 %v3227_v54, %v1966_v35  ;;  %v3230_v41 = vadd.f32 %v3229_v61, %v3228_v44  ;;  %v3105_v35 = vld [vmem:[%s5114_s0 + $0x28] sm:$0xff] (!%p2807_p12)   ;;  %v2468_v54 = vadd.f32 (!%p2807_p12), %v4972_v24, %v2429_v18  ;;  %v2469_v44 = vadd.f32 (!%p2807_p12), %v4972_v24, %v2430_v37  ;;  %3010 = vst [vmem:[%s5121_s7] sm:$0xff] (!%p2807_p12), %v3009_v62   ;;  %v2415_v62 = vld [vmem:[#allocation3 + $0xb0] sm:$0xff] (!%p2807_p12) }
 0x422   : > { %v2402_v61 = vld [vmem:[#allocation3 + $0x48] sm:$0xff] (!%p2807_p12)  ;;  %v2980_v18 = vunpack.c.l.bf16 (!%p2807_p12), %v3109_v43  ;;  %v2981_v37 = vunpack.c.h.bf16 (!%p2807_p12), %v3109_v43 }
 0x423   : > { %2319 = vst [vmem:[#allocation3 + $0xd0] sm:$0xff] %v2287_v23  ;;  %v2288_v57 = vadd.f32 %v3230_v41, %v1967_v56  ;;  %v2960_v56 = vunpack.c.l.bf16 (!%p2807_p12), %v3104_v20  ;;  %v3106_v23 = vld [vmem:[%s5114_s0 + $0x30] sm:$0xff] (!%p2807_p12)   ;;  %v3014_v41 = vpack.c.bf16 (!%p2807_p12), %v2467_v12, %v2466_v7  ;;  %v2413_v7 = vld [vmem:[#allocation3 + $0xa0] sm:$0xff] (!%p2807_p12)  ;;  %v2414_v12 = vld [vmem:[#allocation3 + $0xa8] sm:$0xff] (!%p2807_p12) }
 0x425   : > { %2320 = vst [vmem:[#allocation3 + $0xd8] sm:$0xff] %v2288_v57  ;;  %v3231_v15 = vpop.f32.mrb[56].mxu1  ;;  %v2470_v57 = vadd.f32 (!%p2807_p12), %v4972_v24, %v2431_v59  ;;  %3116 = vst [vmem:[%s5121_s7 + $0x8] sm:$0xff] (!%p2807_p12), %v3014_v41   ;;  %v2416_v41 = vld [vmem:[#allocation3 + $0xb8] sm:$0xff] (!%p2807_p12) }
 0x426   : > { %v3232_v40 = vpop.f32.mrb[57].mxu1 }
 0x427   : > { %v3233_v0 = vadd.f32 %v3232_v40, %v3231_v15  ;;  %v3234_v8 = vpop.f32.mrb[58].mxu1  ;;  %v2471_v15 = vadd.f32 (!%p2807_p12), %v4972_v24, %v2432_v6  ;;  %v2403_v40 = vld [vmem:[#allocation3 + $0x50] sm:$0xff] (!%p2807_p12) }
 0x428   : > { %v3235_v47 = vpop.f32.mrb[59].mxu1 }
 0x429   : > { %v2289_v11 = vadd.f32 %v3233_v0, %v1968_v9  ;;  %v3236_v39 = vadd.f32 %v3235_v47, %v3234_v8  ;;  %v2961_v9 = vunpack.c.h.bf16 (!%p2807_p12), %v3104_v20  ;;  %v2404_v0 = vld [vmem:[#allocation3 + $0x58] sm:$0xff] (!%p2807_p12)  ;;  %v2433_v47 = vadd.f32 (!%p2807_p12), %v2960_v56, %v2401_v34 }
 0x42a   : > { %v3107_v8 = vld [vmem:[%s5114_s0 + $0x38] sm:$0xff] (!%p2807_p12)   ;;  %v2984_v34 = vunpack.c.l.bf16 (!%p2807_p12), %v3110_v19  ;;  %v2443_v56 = vadd.f32 (!%p2807_p12), %v2980_v18, %v2411_v45 }
 0x42b   : > { %2321 = vst [vmem:[#allocation3 + $0xe0] sm:$0xff] %v2289_v11  ;;  %v2290_v3 = vadd.f32 %v3236_v39, %v1969_v29  ;;  %v3019_v29 = vpack.c.bf16 (!%p2807_p12), %v2469_v44, %v2468_v54  ;;  %v2964_v11 = vunpack.c.l.bf16 (!%p2807_p12), %v3105_v35  ;;  %v2965_v39 = vunpack.c.h.bf16 (!%p2807_p12), %v3105_v35  ;;  %v3111_v20 = vld [vmem:[%s5114_s0 + $0x58] sm:$0xff] (!%p2807_p12)   ;;  %v3112_v54 = vld [vmem:[%s5114_s0 + $0x60] sm:$0xff] (!%p2807_p12)  }
 0x42c   : > { %v2972_v50 = vunpack.c.l.bf16 (!%p2807_p12), %v3107_v8  ;;  %v2973_v17 = vunpack.c.h.bf16 (!%p2807_p12), %v3107_v8  ;;  %v2985_v35 = vunpack.c.h.bf16 (!%p2807_p12), %v3110_v19  ;;  %v2482_v8 = vadd.f32 (!%p2807_p12), %v4972_v24, %v2443_v56 }
 0x42d   : > { %2322 = vst [vmem:[#allocation3 + $0xe8] sm:$0xff] %v2290_v3  ;;  %v3237_v55 = vpop.f32.mrb[60].mxu1  ;;  %v2405_v3 = vld [vmem:[#allocation3 + $0x60] sm:$0xff] (!%p2807_p12)  ;;  %3117 = vst [vmem:[%s5121_s7 + $0x10] sm:$0xff] (!%p2807_p12), %v3019_v29  }
 0x42e   : > { %v3238_v60 = vpop.f32.mrb[61].mxu1  ;;  %v2440_v53 = vadd.f32 (!%p2807_p12), %v2973_v17, %v2408_v33  ;;  %v3115_v33 = vld [vmem:[%s5114_s0 + $0x78] sm:$0xff] (!%p2807_p12)  }
 0x42f   : > { %v3239_v31 = vadd.f32 %v3238_v60, %v3237_v55  ;;  %v3240_v21 = vpop.f32.mrb[62].mxu1  ;;  %2328 = sbr.rel (%p2807_p12) target bundleno = 1096 (0x448), region = 94  ;;  %v2406_v55 = vld [vmem:[#allocation3 + $0x68] sm:$0xff] (!%p2807_p12)  ;;  %v2434_v60 = vadd.f32 (!%p2807_p12), %v2961_v9, %v2402_v61  ;;  %v2444_v61 = vadd.f32 (!%p2807_p12), %v2981_v37, %v2412_v2  ;;  %v2446_v9 = vadd.f32 (!%p2807_p12), %v2985_v35, %v2414_v12 }
 0x430   : > { %v3241_v4 = vpop.f32.mrb[63].mxu1  ;;  %v2479_v10 = vadd.f32 (!%p2807_p12), %v4972_v24, %v2440_v53 }
 0x431   : > { %v2291_v32 = vadd.f32 %v3239_v31, %v1970_v25  ;;  %v3242_v48 = vadd.f32 %v3241_v4, %v3240_v21  ;;  %v3024_v25 = vpack.c.bf16 (!%p2807_p12), %v2471_v15, %v2470_v57  ;;  %v2968_v31 = vunpack.c.l.bf16 (!%p2807_p12), %v3106_v23  ;;  %v3108_v4 = vld [vmem:[%s5114_s0 + $0x40] sm:$0xff] (!%p2807_p12)  }
 0x432   : > { %v2969_v21 = vunpack.c.h.bf16 (!%p2807_p12), %v3106_v23  ;;  %v2473_v51 = vadd.f32 (!%p2807_p12), %v4972_v24, %v2434_v60  ;;  %v2976_v27 = vunpack.c.l.bf16 (!%p2807_p12), %v3108_v4  ;;  %v2977_v26 = vunpack.c.h.bf16 (!%p2807_p12), %v3108_v4 }
 0x433   : > { %2323 = vst [vmem:[#allocation3 + $0xf0] sm:$0xff] %v2291_v32  ;;  %v2292_v28 = vadd.f32 %v3242_v48, %v1971_v49  ;;  %v2407_v49 = vld [vmem:[#allocation3 + $0x70] sm:$0xff] (!%p2807_p12)  ;;  %v2472_v32 = vadd.f32 (!%p2807_p12), %v4972_v24, %v2433_v47  ;;  %v2435_v48 = vadd.f32 (!%p2807_p12), %v2964_v11, %v2403_v40  ;;  %3118 = vst [vmem:[%s5121_s7 + $0x18] sm:$0xff] (!%p2807_p12), %v3024_v25   ;;  %v2988_v23 = vunpack.c.l.bf16 (!%p2807_p12), %v3111_v20 }
 0x434   : > { %v2437_v38 = vadd.f32 (!%p2807_p12), %v2968_v31, %v2405_v3  ;;  %v2438_v30 = vadd.f32 (!%p2807_p12), %v2969_v21, %v2406_v55  ;;  %v2439_v52 = vadd.f32 (!%p2807_p12), %v2972_v50, %v2407_v49  ;;  %v2441_v5 = vadd.f32 (!%p2807_p12), %v2976_v27, %v2409_v16  ;;  %v2418_v31 = vld [vmem:[#allocation3 + $0xc8] sm:$0xff] (!%p2807_p12)  ;;  %v3114_v21 = vld [vmem:[%s5114_s0 + $0x70] sm:$0xff] (!%p2807_p12)   ;;  %v2420_v50 = vld [vmem:[#allocation3 + $0xd8] sm:$0xff] (!%p2807_p12) }
 0x435   : > { %2324 = vst [vmem:[#allocation3 + $0xf8] sm:$0xff] %v2292_v28  ;;  %v2436_v28 = vadd.f32 (!%p2807_p12), %v2965_v39, %v2404_v0  ;;  %v2474_v46 = vadd.f32 (!%p2807_p12), %v4972_v24, %v2435_v48  ;;  %v3029_v42 = vpack.c.bf16 (!%p2807_p12), %v2473_v51, %v2472_v32  ;;  %v2442_v59 = vadd.f32 (!%p2807_p12), %v2977_v26, %v2410_v13  ;;  %v2417_v0 = vld [vmem:[#allocation3 + $0xc0] sm:$0xff] (!%p2807_p12)  ;;  %v3113_v39 = vld [vmem:[%s5114_s0 + $0x68] sm:$0xff] (!%p2807_p12)  }
 0x436   : > { %v2476_v22 = vadd.f32 %v4972_v24, %v2437_v38  ;;  %v2477_v1 = vadd.f32 %v4972_v24, %v2438_v30  ;;  %v2478_v36 = vadd.f32 %v4972_v24, %v2439_v52  ;;  %v2480_v6 = vadd.f32 %v4972_v24, %v2441_v5  ;;  %v2421_v16 = vld [vmem:[#allocation3 + $0xe0] sm:$0xff] }
 0x437   : > { %v2475_v58 = vadd.f32 %v4972_v24, %v2436_v28  ;;  %3119 = vst [vmem:[%s5121_s7 + $0x20] sm:$0xff] %v3029_v42   ;;  %v2481_v57 = vadd.f32 %v4972_v24, %v2442_v59  ;;  %v2445_v15 = vadd.f32 %v2984_v34, %v2413_v7  ;;  %v2989_v40 = vunpack.c.h.bf16 %v3111_v20  ;;  %v2419_v28 = vld [vmem:[#allocation3 + $0xd0] sm:$0xff] }
 0x438   : > { %v3039_v63 = vpack.c.bf16 %v2477_v1, %v2476_v22  ;;  %v3044_v44 = vpack.c.bf16 %v2479_v10, %v2478_v36  ;;  %v2483_v29 = vadd.f32 %v4972_v24, %v2444_v61  ;;  %v2447_v47 = vadd.f32 %v2988_v23, %v2415_v62 }
 0x439   : > { %v3034_v14 = vpack.c.bf16 %v2475_v58, %v2474_v46  ;;  %v2992_v11 = vunpack.c.l.bf16 %v3112_v54  ;;  %v3049_v3 = vpack.c.bf16 %v2481_v57, %v2480_v6  ;;  %v2484_v55 = vadd.f32 %v4972_v24, %v2445_v15  ;;  %v2422_v46 = vld [vmem:[#allocation3 + $0xe8] sm:$0xff] }
 0x43a   : > { %3121 = vst [vmem:[%s5121_s7 + $0x30] sm:$0xff] %v3039_v63   ;;  %3122 = vst [vmem:[%s5121_s7 + $0x38] sm:$0xff] %v3044_v44   ;;  %v2485_v25 = vadd.f32 %v4972_v24, %v2446_v9  ;;  %v2448_v60 = vadd.f32 %v2989_v40, %v2416_v41  ;;  %v3054_v49 = vpack.c.bf16 %v2483_v29, %v2482_v8  ;;  %v2993_v32 = vunpack.c.h.bf16 %v3112_v54  ;;  %v2423_v42 = vld [vmem:[#allocation3 + $0xf0] sm:$0xff] }
 0x43b   : > { %3120 = vst [vmem:[%s5121_s7 + $0x28] sm:$0xff] %v3034_v14   ;;  %v2486_v4 = vadd.f32 %v4972_v24, %v2447_v47  ;;  %v2449_v48 = vadd.f32 %v2992_v11, %v2417_v0  ;;  %3123 = vst [vmem:[%s5121_s7 + $0x40] sm:$0xff] %v3049_v3   ;;  %v2996_v30 = vunpack.c.l.bf16 %v3113_v39  ;;  %v2997_v17 = vunpack.c.h.bf16 %v3113_v39 }
 0x43c   : > { %v3059_v51 = vpack.c.bf16 %v2485_v25, %v2484_v55  ;;  %v2487_v38 = vadd.f32 %v4972_v24, %v2448_v60  ;;  %3124 = vst [vmem:[%s5121_s7 + $0x48] sm:$0xff] %v3054_v49   ;;  %v2450_v58 = vadd.f32 %v2993_v32, %v2418_v31  ;;  %v3000_v27 = vunpack.c.l.bf16 %v3114_v21  ;;  %v2424_v19 = vld [vmem:[#allocation3 + $0xf8] sm:$0xff] }
 0x43d   : > { %v2488_v52 = vadd.f32 %v4972_v24, %v2449_v48  ;;  %v3001_v43 = vunpack.c.h.bf16 %v3114_v21  ;;  %v2451_v1 = vadd.f32 %v2996_v30, %v2419_v28  ;;  %v2452_v53 = vadd.f32 %v2997_v17, %v2420_v50 }
 0x43e   : > { %3125 = vst [vmem:[%s5121_s7 + $0x50] sm:$0xff] %v3059_v51   ;;  %v3064_v22 = vpack.c.bf16 %v2487_v38, %v2486_v4  ;;  %v3004_v13 = vunpack.c.l.bf16 %v3115_v33  ;;  %v2489_v14 = vadd.f32 %v4972_v24, %v2450_v58  ;;  %v2453_v36 = vadd.f32 %v3000_v27, %v2421_v16 }
 0x43f   : > { %v2454_v26 = vadd.f32 %v3001_v43, %v2422_v46  ;;  %v3005_v5 = vunpack.c.h.bf16 %v3115_v33  ;;  %v2490_v45 = vadd.f32 %v4972_v24, %v2451_v1  ;;  %v2491_v2 = vadd.f32 %v4972_v24, %v2452_v53 }
 0x440   : > { %3126 = vst [vmem:[%s5121_s7 + $0x58] sm:$0xff] %v3064_v22   ;;  %v2455_v20 = vadd.f32 %v3004_v13, %v2423_v42  ;;  %v3069_v63 = vpack.c.bf16 %v2489_v14, %v2488_v52  ;;  %v2492_v10 = vadd.f32 %v4972_v24, %v2453_v36 }
 0x441   : > { %v2493_v18 = vadd.f32 %v4972_v24, %v2454_v26  ;;  %v2456_v37 = vadd.f32 %v3005_v5, %v2424_v19  ;;  %v3074_v7 = vpack.c.bf16 %v2491_v2, %v2490_v45 }
 0x442   : > { %v2494_v12 = vadd.f32 %v4972_v24, %v2455_v20  ;;  %3127 = vst [vmem:[%s5121_s7 + $0x60] sm:$0xff] %v3069_v63  }
 0x443   : > { %v3079_v59 = vpack.c.bf16 %v2493_v18, %v2492_v10  ;;  %v2495_v6 = vadd.f32 %v4972_v24, %v2456_v37  ;;  %3128 = vst [vmem:[%s5121_s7 + $0x68] sm:$0xff] %v3074_v7  }
 0x445   : > { %3129 = vst [vmem:[%s5121_s7 + $0x70] sm:$0xff] %v3079_v59   ;;  %v3084_v34 = vpack.c.bf16 %v2495_v6, %v2494_v12 }
 0x447   : > { %3130 = vst [vmem:[%s5121_s7 + $0x78] sm:$0xff] %v3084_v34  }
 0x448 PF: > { %s17_s28 = sadd.s32 1, %s3555_s28   ;;  %s5122_s24 = smov %s3543_s25 }
 0x449   : > { %p14_p13 = scmp.ge.s32.totalorder %s17_s28, 4   ;;  %s5123_s25 = smov %s3634_s9 }
 0x44a   : > { %s5124_s26 = smov %s3551_s27  ;;  %s5125_s27 = smov %s5127_s29 }
 0x44b   :  { %16 = sbr.rel (!%p14_p13) target bundleno = 3 (0x3), region = 138 }

</bundles_post_ra>
